<compile_context>
chip_gen: v6e
topology: v6e:2x2x1
jax: 0.10.0
libtpu: 0.0.40
codegen_flags: <defaults>
</compile_context>

<pallas_src>
import functools

import jax
import jax.numpy as jnp
from jax import lax
from jax.experimental import pallas as pl
from jax.experimental.pallas import tpu as pltpu

LEAKY_SLOPE = 0.01                     # nn.LeakyReLU() default
VMEM_LIMIT = 32 * 1024 * 1024          # safe headroom on v5e/v6e (128 MiB) and v7x (64 MiB)


def _mosaic(grid_len, semantics="parallel"):
    return pltpu.CompilerParams(
        dimension_semantics=(semantics,) * grid_len,
        vmem_limit_bytes=VMEM_LIMIT)


def _tile(m, pref):
    """M-tile size: `pref` rows if it divides M (pipelined grid), else one full block."""
    return pref if (m % pref == 0) else m


# ------------------------------------------------------------------
# Pallas kernels
# ------------------------------------------------------------------

def mm_bias_act_kernel(x_ref, w_ref, b_ref, o_ref, *, slope):
    """out = act(x @ w + b); bf16 operands, f32 accumulate, f32 epilogue."""
    acc = jnp.dot(x_ref[...], w_ref[...], preferred_element_type=jnp.float32)
    acc = acc + b_ref[...]
    if slope is not None:
        acc = jnp.where(acc >= 0, acc, acc * slope)
    o_ref[...] = acc.astype(o_ref.dtype)


def conv_pool_kernel(x_ref, w_ref, b_ref, o_ref, *, slope):
    """Fused ConvBlock(stride 2) + MaxPool2d(2).

    x_ref: (4, tm, K) -- the 4 pooling phases of the im2col rows.
    Per phase: matmul + bias + LeakyReLU on the f32 accumulator, then max over
    the four phases (exactly conv -> lrelu -> 2x2 maxpool).
    """
    w = w_ref[...]
    b = b_ref[...]
    out = None
    for p in range(4):
        acc = jnp.dot(x_ref[p], w, preferred_element_type=jnp.float32) + b
        acc = jnp.where(acc >= 0, acc, acc * slope)
        out = acc if out is None else jnp.maximum(out, acc)
    o_ref[...] = out.astype(o_ref.dtype)


def grouped_conv_pool_kernel(x_ref, w_ref, b_ref, o_ref, *, slope, groups):
    """Per-branch fused ConvBlock + MaxPool; x_ref is (G*4, tm, K) group-major."""
    for g in range(groups):
        w = w_ref[g]
        b = b_ref[g]
        out = None
        for p in range(4):
            acc = jnp.dot(x_ref[4 * g + p], w,
                          preferred_element_type=jnp.float32) + b
            acc = jnp.where(acc >= 0, acc, acc * slope)
            out = acc if out is None else jnp.maximum(out, acc)
        o_ref[g] = out.astype(o_ref.dtype)


def grouped_conv_kernel(x_ref, w_ref, b_ref, o_ref, *, slope, groups):
    """Per-branch ConvBlock (no pooling); x_ref is (G, tm, K)."""
    for g in range(groups):
        acc = jnp.dot(x_ref[g], w_ref[g], preferred_element_type=jnp.float32)
        acc = acc + b_ref[g]
        acc = jnp.where(acc >= 0, acc, acc * slope)
        o_ref[g] = acc.astype(o_ref.dtype)


def pool_fc_kernel(x_ref, w_ref, b_ref, o_ref, *, groups):
    """Fused GlobalPoolingBlock (spatial mean) + Dropout(eval id) + Linear."""
    for g in range(groups):
        pooled = jnp.mean(x_ref[g], axis=0, keepdims=True)          # (1, C)
        o_ref[g] = (jnp.dot(pooled, w_ref[g],
                            preferred_element_type=jnp.float32)
                    + b_ref[g]).astype(o_ref.dtype)


# ------------------------------------------------------------------
# XLA-side glue: im2col + pooling-phase reorder (all cheap reshapes/slices)
# ------------------------------------------------------------------

def im2col_3x3(x, stride):
    """x: (H, W, C) -> ((Ho*Wo, 9*C), Ho, Wo); Conv2d(k=3, padding=1) semantics."""
    H, W, C = x.shape
    xp = jnp.pad(x, ((1, 1), (1, 1), (0, 0)))
    Ho = (H - 1) // stride + 1
    Wo = (W - 1) // stride + 1
    cols = []
    for kh in range(3):
        for kw in range(3):
            patch = lax.slice(
                xp, (kh, kw, 0),
                (kh + (Ho - 1) * stride + 1, kw + (Wo - 1) * stride + 1, C),
                (stride, stride, 1))
            cols.append(patch.reshape(Ho * Wo, C))
    return jnp.concatenate(cols, axis=1), Ho, Wo


def phase_reorder(cols, Ho, Wo):
    """Reorder im2col rows into the four 2x2-pooling phases: -> (4, Ho*Wo//4, K)."""
    K = cols.shape[-1]
    t = cols.reshape(Ho // 2, 2, Wo // 2, 2, K)
    t = jnp.transpose(t, (1, 3, 0, 2, 4))                 # (2, 2, Ho/2, Wo/2, K)
    return t.reshape(4, (Ho // 2) * (Wo // 2), K)


# ------------------------------------------------------------------
# Pallas wrappers
# ------------------------------------------------------------------

def matmul_bias_act(x, w, b, *, slope=LEAKY_SLOPE, tm=512):
    """Fused (M,K)@(K,N)+bias(+LeakyReLU); M-tiled grid, bf16 MXU, resident weights."""
    M, K = x.shape
    N = w.shape[1]
    tm = _tile(M, tm)
    return pl.pallas_call(
        functools.partial(mm_bias_act_kernel, slope=slope),
        grid=(M // tm,),
        out_shape=jax.ShapeDtypeStruct((M, N), jnp.float32),
        in_specs=[pl.BlockSpec((tm, K), lambda i: (i, 0)),
                  pl.BlockSpec((K, N), lambda i: (0, 0)),    # weight: VMEM-resident
                  pl.BlockSpec((1, N), lambda i: (0, 0))],   # bias:   VMEM-resident
        out_specs=pl.BlockSpec((tm, N), lambda i: (i, 0)),
        compiler_params=_mosaic(1),
    )(x.astype(jnp.bfloat16), w.astype(jnp.bfloat16),
      b.reshape(1, N).astype(jnp.float32))


def conv_pool(x_hwc, w, b, *, tm=128):
    """ConvBlock(stride 2) + MaxPool2d(2) fused in one pallas_call (shared input)."""
    cols, Ho, Wo = im2col_3x3(x_hwc, stride=2)
    xph = phase_reorder(cols, Ho, Wo).astype(jnp.bfloat16)        # (4, Mp, K)
    _, Mp, K = xph.shape
    N = w.shape[1]
    tm = _tile(Mp, tm)
    out = pl.pallas_call(
        functools.partial(conv_pool_kernel, slope=LEAKY_SLOPE),
        grid=(Mp // tm,),
        out_shape=jax.ShapeDtypeStruct((Mp, N), jnp.float32),
        in_specs=[pl.BlockSpec((4, tm, K), lambda i: (0, i, 0)),
                  pl.BlockSpec((K, N), lambda i: (0, 0)),
                  pl.BlockSpec((1, N), lambda i: (0, 0))],
        out_specs=pl.BlockSpec((tm, N), lambda i: (i, 0)),
        compiler_params=_mosaic(1),
    )(xph, w.astype(jnp.bfloat16), b.reshape(1, N).astype(jnp.float32))
    return out.reshape(Ho // 2, Wo // 2, N)


def grouped_conv_pool(x_ghwc, w_g, b_g, *, tm=256):
    """Per-branch ConvBlock(stride 2)+MaxPool2d(2), all branches in one call."""
    G = x_ghwc.shape[0]
    cols = []
    for g in range(G):
        c, Ho, Wo = im2col_3x3(x_ghwc[g], stride=2)
        cols.append(phase_reorder(c, Ho, Wo))
    xph = jnp.stack(cols, axis=0).astype(jnp.bfloat16)            # (G, 4, Mp, K)
    _, _, Mp, K = xph.shape
    xph = xph.reshape(G * 4, Mp, K)
    N = w_g.shape[2]
    tm = _tile(Mp, tm)
    out = pl.pallas_call(
        functools.partial(grouped_conv_pool_kernel, slope=LEAKY_SLOPE, groups=G),
        grid=(Mp // tm,),
        out_shape=jax.ShapeDtypeStruct((G, Mp, N), jnp.float32),
        in_specs=[pl.BlockSpec((G * 4, tm, K), lambda i: (0, i, 0)),
                  pl.BlockSpec((G, K, N), lambda i: (0, 0, 0)),
                  pl.BlockSpec((G, 1, N), lambda i: (0, 0, 0))],
        out_specs=pl.BlockSpec((G, tm, N), lambda i: (0, i, 0)),
        compiler_params=_mosaic(1),
    )(xph, w_g.astype(jnp.bfloat16), b_g.reshape(G, 1, N).astype(jnp.float32))
    return out.reshape(G, Ho // 2, Wo // 2, N)


def grouped_conv(x_ghwc, w_g, b_g, *, tm=512):
    """Per-branch ConvBlock(stride 2), no pooling (layer 7)."""
    G = x_ghwc.shape[0]
    cols = []
    for g in range(G):
        c, Ho, Wo = im2col_3x3(x_ghwc[g], stride=2)
        cols.append(c)
    xc = jnp.stack(cols, axis=0).astype(jnp.bfloat16)             # (G, M, K)
    _, M, K = xc.shape
    N = w_g.shape[2]
    tm = _tile(M, tm)
    out = pl.pallas_call(
        functools.partial(grouped_conv_kernel, slope=LEAKY_SLOPE, groups=G),
        grid=(M // tm,),
        out_shape=jax.ShapeDtypeStruct((G, M, N), jnp.float32),
        in_specs=[pl.BlockSpec((G, tm, K), lambda i: (0, i, 0)),
                  pl.BlockSpec((G, K, N), lambda i: (0, 0, 0)),
                  pl.BlockSpec((G, 1, N), lambda i: (0, 0, 0))],
        out_specs=pl.BlockSpec((G, tm, N), lambda i: (0, i, 0)),
        compiler_params=_mosaic(1),
    )(xc, w_g.astype(jnp.bfloat16), b_g.reshape(G, 1, N).astype(jnp.float32))
    return out.reshape(G, Ho, Wo, N)


def pool_fc(x_gmc, w_g, b_g):
    """Fused GlobalPool + Dropout(eval) + Linear for all branches. x: (G, M, C) f32."""
    G, M, C = x_gmc.shape
    Nf = w_g.shape[2]
    return pl.pallas_call(
        functools.partial(pool_fc_kernel, groups=G),
        grid=(1,),
        out_shape=jax.ShapeDtypeStruct((G, 1, Nf), jnp.float32),
        in_specs=[pl.BlockSpec((G, M, C), lambda i: (0, 0, 0)),
                  pl.BlockSpec((G, C, Nf), lambda i: (0, 0, 0)),
                  pl.BlockSpec((G, 1, Nf), lambda i: (0, 0, 0))],
        out_specs=pl.BlockSpec((G, 1, Nf), lambda i: (0, 0, 0)),
        compiler_params=_mosaic(1, "arbitrary"),
    )(x_gmc, w_g, b_g.reshape(G, 1, Nf))


# ------------------------------------------------------------------
# Parameter initialisation (deterministic, synthetic)
# ------------------------------------------------------------------

def init_params(key):
    ks = jax.random.split(key, 32)
    it = iter(ks)

    def nrm(shape, scale=0.05):
        return scale * jax.random.normal(next(it), shape, jnp.float32)

    def conv_w():  # (9*Cin, Cout) im2col layout of a (Cout, 64, 3, 3) conv weight
        return nrm((9 * 64, 64))

    def conv_b():
        return nrm((64,), 0.01)

    # Branch order is [lab, rgb, hsv] everywhere.
    c1_w = jnp.concatenate([conv_w() for _ in range(3)], axis=1)   # (576, 192) N-stacked
    c1_b = jnp.concatenate([conv_b() for _ in range(3)], axis=0)   # (192,)
    c3_w = jnp.stack([conv_w() for _ in range(3)], 0)              # (3, 576, 64) grouped
    c3_b = jnp.stack([conv_b() for _ in range(3)], 0)
    c5_w = jnp.stack([conv_w() for _ in range(3)], 0)
    c5_b = jnp.stack([conv_b() for _ in range(3)], 0)
    c7_w = jnp.stack([conv_w() for _ in range(3)], 0)
    c7_b = jnp.stack([conv_b() for _ in range(3)], 0)

    # fc: lab 64->48, rgb 64->48, hsv 64->64; pad the 48-wide ones with zero
    # columns so all three share one grouped (3, 64, 64) weight (padding is
    # sliced off after the kernel, so it is exact).
    def pad_fc(w, b, nf):
        wp = jnp.zeros((64, 64), jnp.float32).at[:, :nf].set(w)
        bp = jnp.zeros((64,), jnp.float32).at[:nf].set(b)
        return wp, bp

    fcs = [pad_fc(nrm((64, 48)), nrm((48,), 0.01), 48),
           pad_fc(nrm((64, 48)), nrm((48,), 0.01), 48),
           pad_fc(nrm((64, 64)), nrm((64,), 0.01), 64)]
    fc_w = jnp.stack([w for w, _ in fcs], 0)                       # (3, 64, 64)
    fc_b = jnp.stack([b for _, b in fcs], 0)                       # (3, 64)

    return {
        # TODO(synk): rgb_ted.TEDModel source is not provided; stand-in is a single
        # 3x3 conv (3->64, stride 1) + LeakyReLU producing the 64-channel map
        # CURLLayer expects.
        'ted_w': nrm((9 * 3, 64)), 'ted_b': nrm((64,), 0.01),
        'c1_w': c1_w, 'c1_b': c1_b,
        'c3_w': c3_w, 'c3_b': c3_b,
        'c5_w': c5_w, 'c5_b': c5_b,
        'c7_w': c7_w, 'c7_b': c7_b,
        'fc_w': fc_w, 'fc_b': fc_b,
    }


# ------------------------------------------------------------------
# Full CURLNet forward
# ------------------------------------------------------------------

@jax.jit
def curlnet_forward(params, img_nchw):
    # img_nchw: (1, 3, H, W) float32 in [0, 1]; H, W must survive the
    # stride-2 / pool-2 chain (H = W = 64 is the smallest clean size).
    x = jnp.transpose(img_nchw[0], (1, 2, 0))                      # (H, W, 3)

    # ---- tednet stand-in: 3x3 conv (3->64, stride 1) + LeakyReLU, M-tiled ----
    cols, Ho, Wo = im2col_3x3(x, stride=1)
    feat64 = matmul_bias_act(cols, params['ted_w'],
                             params['ted_b']).reshape(Ho, Wo, 64)

    feat = feat64[..., 3:64]                                       # (H, W, 61)
    img = feat64[..., 0:3]                                         # (H, W, 3)
    img_clamped = jnp.clip(img, 0.0, 1.0)

    # TODO(synk): ImageProcessing.rgb_to_lab / adjust_lab / lab_to_rgb /
    # adjust_rgb / rgb_to_hsv / adjust_hsv / hsv_to_rgb are not provided;
    # identity placeholders with zero gradient regularisers.  Because the
    # three colour-space inputs are identical under these placeholders, the
    # lab/rgb/hsv branches are batched below (stacked weights / group axis).
    img_lab = img_clamped
    feat_in = jnp.concatenate([feat, img_lab], axis=-1)            # (H, W, 64)

    # Branch layers 1+2 (shared input): dense N-stacked conv+pool, N = 3*64.
    y = conv_pool(feat_in, params['c1_w'], params['c1_b'])         # (H/4, W/4, 192)
    H1, W1 = y.shape[0], y.shape[1]
    y = jnp.transpose(y.reshape(H1, W1, 3, 64), (2, 0, 1, 3))      # (3, H/4, W/4, 64)

    # Branch layers 3+4 and 5+6: grouped (per-branch) fused conv+pool.
    y = grouped_conv_pool(y, params['c3_w'], params['c3_b'])       # (3, H/16, W/16, 64)
    y = grouped_conv_pool(y, params['c5_w'], params['c5_b'])       # (3, H/64, W/64, 64)

    # Branch layer 7: grouped conv (stride 2, no pool).
    y = grouped_conv(y, params['c7_w'], params['c7_b'])            # (3, h7, w7, 64)

    # Layer 8 (AdaptiveAvgPool2d(1)) + Dropout(eval identity) + fc, one kernel.
    G, h7, w7, C7 = y.shape
    fc = pool_fc(y.reshape(G, h7 * w7, C7), params['fc_w'], params['fc_b'])
    L = fc[0, :, 0:48]
    R = fc[1, :, 0:48]
    H_out = fc[2, :, 0:64]

    gradient_regulariser = jnp.zeros((), jnp.float32)              # placeholders sum to 0
    img_residual = jnp.clip(img_lab, 0.0, 1.0)

    # Residual add + clamp: tiny elementwise op, left to XLA (fuses for free).
    img_out = jnp.clip(img + img_residual, 0.0, 1.0)

    img_out_nchw = jnp.transpose(img_out, (2, 0, 1))[None]         # (1, 3, H, W)
    return img_out_nchw, gradient_regulariser, L, R, H_out


# ------------------------------------------------------------------
# Driver
# ------------------------------------------------------------------

if __name__ == "__main__":
    key = jax.random.PRNGKey(0)
    k_param, k_img = jax.random.split(key)

    params = init_params(k_param)
    # batch=1 (CURLLayer assumes batch 1 via squeeze(0)); 64x64 spatial is the
    # smallest size that survives the conv(stride 2)/maxpool chain.
    img = jax.random.uniform(k_img, (1, 3, 64, 64), jnp.float32)

    out_img, grad_reg, L, R, H = curlnet_forward(params, img)
    jax.block_until_ready((out_img, grad_reg, L, R, H))

    assert out_img.shape == (1, 3, 64, 64)
    assert L.shape == (1, 48) and R.shape == (1, 48) and H.shape == (1, 64)
    print("KERNEL_OK")
</pallas_src>

<mosaic_0001>
module attributes {stable_mosaic.version = 11 : i64} {
  func.func @mm_bias_act_kernel(%arg0: i32, %arg1: memref<512x27xbf16, #tpu.memory_space<vmem>>, %arg2: memref<27x64xbf16, #tpu.memory_space<vmem>>, %arg3: memref<1x64xf32, #tpu.memory_space<vmem>>, %arg4: memref<512x64xf32, #tpu.memory_space<vmem>>) attributes {dimension_semantics = [#tpu.dimension_semantics<parallel>], iteration_bounds = array<i64: 8>, scalar_prefetch = 0 : i64, scratch_operands = 0 : i64, tpu.core_type = #tpu.core_type<tc>, window_params = [{transform_indices = @transform_0, window_bounds = array<i64: 512, 27>}, {pipeline_mode = #tpu.pipeline_mode<synchronous>, transform_indices = @transform_1, window_bounds = array<i64: 27, 64>}, {pipeline_mode = #tpu.pipeline_mode<synchronous>, transform_indices = @transform_2, window_bounds = array<i64: 1, 64>}, {transform_indices = @transform_3, window_bounds = array<i64: 512, 64>}]} {
    %c0 = arith.constant 0 : index
    %c0_0 = arith.constant 0 : index
    %0 = vector.load %arg1[%c0, %c0_0] : memref<512x27xbf16, #tpu.memory_space<vmem>>, vector<512x27xbf16>
    %c0_1 = arith.constant 0 : index
    %c0_2 = arith.constant 0 : index
    %1 = vector.load %arg2[%c0_1, %c0_2] : memref<27x64xbf16, #tpu.memory_space<vmem>>, vector<27x64xbf16>
    %cst = arith.constant dense<0.000000e+00> : vector<512x64xf32>
    %2 = tpu.matmul %0, %1, %cst {dimension_numbers = #tpu.dot_dimension_numbers<[1], [0], [0], [1], [0, 0, 1, 1], [], []>} : vector<512x27xbf16>, vector<27x64xbf16>, vector<512x64xf32> -> vector<512x64xf32>
    %c0_3 = arith.constant 0 : index
    %c0_4 = arith.constant 0 : index
    %3 = vector.load %arg3[%c0_3, %c0_4] : memref<1x64xf32, #tpu.memory_space<vmem>>, vector<1x64xf32>
    %4 = vector.broadcast %3 : vector<1x64xf32> to vector<512x64xf32>
    %5 = arith.addf %2, %4 : vector<512x64xf32>
    %cst_5 = arith.constant 0.000000e+00 : f32
    %6 = vector.broadcast %cst_5 : f32 to vector<512x64xf32>
    %7 = arith.cmpf oge, %5, %6 : vector<512x64xf32>
    %cst_6 = arith.constant 0.00999999977 : f32
    %8 = vector.broadcast %cst_6 : f32 to vector<512x64xf32>
    %9 = arith.mulf %5, %8 : vector<512x64xf32>
    %10 = arith.select %7, %5, %9 : vector<512x64xi1>, vector<512x64xf32>
    %c0_7 = arith.constant 0 : index
    %c0_8 = arith.constant 0 : index
    %11 = vector.load %arg4[%c0_7, %c0_8] : memref<512x64xf32, #tpu.memory_space<vmem>>, vector<512x64xf32>
    tpu.vector_store %arg4[%c0_7, %c0_8], %10 {strides = array<i32>} : memref<512x64xf32, #tpu.memory_space<vmem>>, vector<512x64xf32>,
    return
  }
  func.func @transform_0(%arg0: i32) -> (i32, i32) {
    %c0_i32 = arith.constant 0 : i32
    %c0_i32_0 = arith.constant 0 : i32
    return %arg0, %c0_i32 : i32, i32
  }
  func.func @transform_1(%arg0: i32) -> (i32, i32) {
    %c0_i32 = arith.constant 0 : i32
    %c0_i32_0 = arith.constant 0 : i32
    %c0_i32_1 = arith.constant 0 : i32
    return %c0_i32, %c0_i32_0 : i32, i32
  }
  func.func @transform_2(%arg0: i32) -> (i32, i32) {
    %c0_i32 = arith.constant 0 : i32
    %c0_i32_0 = arith.constant 0 : i32
    %c0_i32_1 = arith.constant 0 : i32
    return %c0_i32, %c0_i32_0 : i32, i32
  }
  func.func @transform_3(%arg0: i32) -> (i32, i32) {
    %c0_i32 = arith.constant 0 : i32
    %c0_i32_0 = arith.constant 0 : i32
    return %arg0, %c0_i32 : i32, i32
  }
}

module attributes {stable_mosaic.version = 11 : i64} {
  func.func @conv_pool_kernel(%arg0: i32, %arg1: memref<4x128x576xbf16, #tpu.memory_space<vmem>>, %arg2: memref<576x192xbf16, #tpu.memory_space<vmem>>, %arg3: memref<1x192xf32, #tpu.memory_space<vmem>>, %arg4: memref<128x192xf32, #tpu.memory_space<vmem>>) attributes {dimension_semantics = [#tpu.dimension_semantics<parallel>], iteration_bounds = array<i64: 2>, scalar_prefetch = 0 : i64, scratch_operands = 0 : i64, tpu.core_type = #tpu.core_type<tc>, window_params = [{transform_indices = @transform_0, window_bounds = array<i64: 4, 128, 576>}, {pipeline_mode = #tpu.pipeline_mode<synchronous>, transform_indices = @transform_1, window_bounds = array<i64: 576, 192>}, {pipeline_mode = #tpu.pipeline_mode<synchronous>, transform_indices = @transform_2, window_bounds = array<i64: 1, 192>}, {transform_indices = @transform_3, window_bounds = array<i64: 128, 192>}]} {
    %c0 = arith.constant 0 : index
    %c0_0 = arith.constant 0 : index
    %0 = vector.load %arg2[%c0, %c0_0] : memref<576x192xbf16, #tpu.memory_space<vmem>>, vector<576x192xbf16>
    %c0_1 = arith.constant 0 : index
    %c0_2 = arith.constant 0 : index
    %1 = vector.load %arg3[%c0_1, %c0_2] : memref<1x192xf32, #tpu.memory_space<vmem>>, vector<1x192xf32>
    %c0_3 = arith.constant 0 : index
    %c0_4 = arith.constant 0 : index
    %c0_5 = arith.constant 0 : index
    %2 = vector.load %arg1[%c0_3, %c0_4, %c0_5] : memref<4x128x576xbf16, #tpu.memory_space<vmem>>, vector<1x128x576xbf16>
    %3 = vector.shape_cast %2 : vector<1x128x576xbf16> to vector<128x576xbf16>
    %cst = arith.constant dense<0.000000e+00> : vector<128x192xf32>
    %4 = tpu.matmul %3, %0, %cst {dimension_numbers = #tpu.dot_dimension_numbers<[1], [0], [0], [1], [0, 0, 1, 1], [], []>} : vector<128x576xbf16>, vector<576x192xbf16>, vector<128x192xf32> -> vector<128x192xf32>
    %5 = vector.broadcast %1 : vector<1x192xf32> to vector<128x192xf32>
    %6 = arith.addf %4, %5 : vector<128x192xf32>
    %cst_6 = arith.constant 0.000000e+00 : f32
    %7 = vector.broadcast %cst_6 : f32 to vector<128x192xf32>
    %8 = arith.cmpf oge, %6, %7 : vector<128x192xf32>
    %cst_7 = arith.constant 0.00999999977 : f32
    %9 = vector.broadcast %cst_7 : f32 to vector<128x192xf32>
    %10 = arith.mulf %6, %9 : vector<128x192xf32>
    %11 = arith.select %8, %6, %10 : vector<128x192xi1>, vector<128x192xf32>
    %c1 = arith.constant 1 : index
    %c0_8 = arith.constant 0 : index
    %c0_9 = arith.constant 0 : index
    %12 = vector.load %arg1[%c1, %c0_8, %c0_9] : memref<4x128x576xbf16, #tpu.memory_space<vmem>>, vector<1x128x576xbf16>
    %13 = vector.shape_cast %12 : vector<1x128x576xbf16> to vector<128x576xbf16>
    %cst_10 = arith.constant dense<0.000000e+00> : vector<128x192xf32>
    %14 = tpu.matmul %13, %0, %cst_10 {dimension_numbers = #tpu.dot_dimension_numbers<[1], [0], [0], [1], [0, 0, 1, 1], [], []>} : vector<128x576xbf16>, vector<576x192xbf16>, vector<128x192xf32> -> vector<128x192xf32>
    %15 = vector.broadcast %1 : vector<1x192xf32> to vector<128x192xf32>
    %16 = arith.addf %14, %15 : vector<128x192xf32>
    %cst_11 = arith.constant 0.000000e+00 : f32
    %17 = vector.broadcast %cst_11 : f32 to vector<128x192xf32>
    %18 = arith.cmpf oge, %16, %17 : vector<128x192xf32>
    %cst_12 = arith.constant 0.00999999977 : f32
    %19 = vector.broadcast %cst_12 : f32 to vector<128x192xf32>
    %20 = arith.mulf %16, %19 : vector<128x192xf32>
    %21 = arith.select %18, %16, %20 : vector<128x192xi1>, vector<128x192xf32>
    %22 = arith.maximumf %11, %21 : vector<128x192xf32>
    %c2 = arith.constant 2 : index
    %c0_13 = arith.constant 0 : index
    %c0_14 = arith.constant 0 : index
    %23 = vector.load %arg1[%c2, %c0_13, %c0_14] : memref<4x128x576xbf16, #tpu.memory_space<vmem>>, vector<1x128x576xbf16>
    %24 = vector.shape_cast %23 : vector<1x128x576xbf16> to vector<128x576xbf16>
    %cst_15 = arith.constant dense<0.000000e+00> : vector<128x192xf32>
    %25 = tpu.matmul %24, %0, %cst_15 {dimension_numbers = #tpu.dot_dimension_numbers<[1], [0], [0], [1], [0, 0, 1, 1], [], []>} : vector<128x576xbf16>, vector<576x192xbf16>, vector<128x192xf32> -> vector<128x192xf32>
    %26 = vector.broadcast %1 : vector<1x192xf32> to vector<128x192xf32>
    %27 = arith.addf %25, %26 : vector<128x192xf32>
    %cst_16 = arith.constant 0.000000e+00 : f32
    %28 = vector.broadcast %cst_16 : f32 to vector<128x192xf32>
    %29 = arith.cmpf oge, %27, %28 : vector<128x192xf32>
    %cst_17 = arith.constant 0.00999999977 : f32
    %30 = vector.broadcast %cst_17 : f32 to vector<128x192xf32>
    %31 = arith.mulf %27, %30 : vector<128x192xf32>
    %32 = arith.select %29, %27, %31 : vector<128x192xi1>, vector<128x192xf32>
    %33 = arith.maximumf %22, %32 : vector<128x192xf32>
    %c3 = arith.constant 3 : index
    %c0_18 = arith.constant 0 : index
    %c0_19 = arith.constant 0 : index
    %34 = vector.load %arg1[%c3, %c0_18, %c0_19] : memref<4x128x576xbf16, #tpu.memory_space<vmem>>, vector<1x128x576xbf16>
    %35 = vector.shape_cast %34 : vector<1x128x576xbf16> to vector<128x576xbf16>
    %cst_20 = arith.constant dense<0.000000e+00> : vector<128x192xf32>
    %36 = tpu.matmul %35, %0, %cst_20 {dimension_numbers = #tpu.dot_dimension_numbers<[1], [0], [0], [1], [0, 0, 1, 1], [], []>} : vector<128x576xbf16>, vector<576x192xbf16>, vector<128x192xf32> -> vector<128x192xf32>
    %37 = vector.broadcast %1 : vector<1x192xf32> to vector<128x192xf32>
    %38 = arith.addf %36, %37 : vector<128x192xf32>
    %cst_21 = arith.constant 0.000000e+00 : f32
    %39 = vector.broadcast %cst_21 : f32 to vector<128x192xf32>
    %40 = arith.cmpf oge, %38, %39 : vector<128x192xf32>
    %cst_22 = arith.constant 0.00999999977 : f32
    %41 = vector.broadcast %cst_22 : f32 to vector<128x192xf32>
    %42 = arith.mulf %38, %41 : vector<128x192xf32>
    %43 = arith.select %40, %38, %42 : vector<128x192xi1>, vector<128x192xf32>
    %44 = arith.maximumf %33, %43 : vector<128x192xf32>
    %c0_23 = arith.constant 0 : index
    %c0_24 = arith.constant 0 : index
    %45 = vector.load %arg4[%c0_23, %c0_24] : memref<128x192xf32, #tpu.memory_space<vmem>>, vector<128x192xf32>
    tpu.vector_store %arg4[%c0_23, %c0_24], %44 {strides = array<i32>} : memref<128x192xf32, #tpu.memory_space<vmem>>, vector<128x192xf32>,
    return
  }
  func.func @transform_0(%arg0: i32) -> (i32, i32, i32) {
    %c0_i32 = arith.constant 0 : i32
    %c0_i32_0 = arith.constant 0 : i32
    %c0_i32_1 = arith.constant 0 : i32
    return %c0_i32, %arg0, %c0_i32_0 : i32, i32, i32
  }
  func.func @transform_1(%arg0: i32) -> (i32, i32) {
    %c0_i32 = arith.constant 0 : i32
    %c0_i32_0 = arith.constant 0 : i32
    %c0_i32_1 = arith.constant 0 : i32
    return %c0_i32, %c0_i32_0 : i32, i32
  }
  func.func @transform_2(%arg0: i32) -> (i32, i32) {
    %c0_i32 = arith.constant 0 : i32
    %c0_i32_0 = arith.constant 0 : i32
    %c0_i32_1 = arith.constant 0 : i32
    return %c0_i32, %c0_i32_0 : i32, i32
  }
  func.func @transform_3(%arg0: i32) -> (i32, i32) {
    %c0_i32 = arith.constant 0 : i32
    %c0_i32_0 = arith.constant 0 : i32
    return %arg0, %c0_i32 : i32, i32
  }
}

module attributes {stable_mosaic.version = 11 : i64} {
  func.func @grouped_conv_pool_kernel(%arg0: i32, %arg1: memref<12x16x576xbf16, #tpu.memory_space<vmem>>, %arg2: memref<3x576x64xbf16, #tpu.memory_space<vmem>>, %arg3: memref<3x1x64xf32, #tpu.memory_space<vmem>>, %arg4: memref<3x16x64xf32, #tpu.memory_space<vmem>>) attributes {dimension_semantics = [#tpu.dimension_semantics<parallel>], iteration_bounds = array<i64: 1>, scalar_prefetch = 0 : i64, scratch_operands = 0 : i64, tpu.core_type = #tpu.core_type<tc>, window_params = [{transform_indices = @transform_0, window_bounds = array<i64: 12, 16, 576>}, {pipeline_mode = #tpu.pipeline_mode<synchronous>, transform_indices = @transform_1, window_bounds = array<i64: 3, 576, 64>}, {pipeline_mode = #tpu.pipeline_mode<synchronous>, transform_indices = @transform_2, window_bounds = array<i64: 3, 1, 64>}, {transform_indices = @transform_3, window_bounds = array<i64: 3, 16, 64>}]} {
    %c0 = arith.constant 0 : index
    %c0_0 = arith.constant 0 : index
    %c0_1 = arith.constant 0 : index
    %0 = vector.load %arg2[%c0, %c0_0, %c0_1] : memref<3x576x64xbf16, #tpu.memory_space<vmem>>, vector<1x576x64xbf16>
    %1 = vector.shape_cast %0 : vector<1x576x64xbf16> to vector<576x64xbf16>
    %c0_2 = arith.constant 0 : index
    %c0_3 = arith.constant 0 : index
    %c0_4 = arith.constant 0 : index
    %2 = vector.load %arg3[%c0_2, %c0_3, %c0_4] : memref<3x1x64xf32, #tpu.memory_space<vmem>>, vector<1x1x64xf32>
    %3 = vector.shape_cast %2 : vector<1x1x64xf32> to vector<1x64xf32>
    %c0_5 = arith.constant 0 : index
    %c0_6 = arith.constant 0 : index
    %c0_7 = arith.constant 0 : index
    %4 = vector.load %arg1[%c0_5, %c0_6, %c0_7] : memref<12x16x576xbf16, #tpu.memory_space<vmem>>, vector<1x16x576xbf16>
    %5 = vector.shape_cast %4 : vector<1x16x576xbf16> to vector<16x576xbf16>
    %cst = arith.constant dense<0.000000e+00> : vector<16x64xf32>
    %6 = tpu.matmul %5, %1, %cst {dimension_numbers = #tpu.dot_dimension_numbers<[1], [0], [0], [1], [0, 0, 1, 1], [], []>} : vector<16x576xbf16>, vector<576x64xbf16>, vector<16x64xf32> -> vector<16x64xf32>
    %7 = vector.broadcast %3 : vector<1x64xf32> to vector<16x64xf32>
    %8 = arith.addf %6, %7 : vector<16x64xf32>
    %cst_8 = arith.constant 0.000000e+00 : f32
    %9 = vector.broadcast %cst_8 : f32 to vector<16x64xf32>
    %10 = arith.cmpf oge, %8, %9 : vector<16x64xf32>
    %cst_9 = arith.constant 0.00999999977 : f32
    %11 = vector.broadcast %cst_9 : f32 to vector<16x64xf32>
    %12 = arith.mulf %8, %11 : vector<16x64xf32>
    %13 = arith.select %10, %8, %12 : vector<16x64xi1>, vector<16x64xf32>
    %c1 = arith.constant 1 : index
    %c0_10 = arith.constant 0 : index
    %c0_11 = arith.constant 0 : index
    %14 = vector.load %arg1[%c1, %c0_10, %c0_11] : memref<12x16x576xbf16, #tpu.memory_space<vmem>>, vector<1x16x576xbf16>
    %15 = vector.shape_cast %14 : vector<1x16x576xbf16> to vector<16x576xbf16>
    %cst_12 = arith.constant dense<0.000000e+00> : vector<16x64xf32>
    %16 = tpu.matmul %15, %1, %cst_12 {dimension_numbers = #tpu.dot_dimension_numbers<[1], [0], [0], [1], [0, 0, 1, 1], [], []>} : vector<16x576xbf16>, vector<576x64xbf16>, vector<16x64xf32> -> vector<16x64xf32>
    %17 = vector.broadcast %3 : vector<1x64xf32> to vector<16x64xf32>
    %18 = arith.addf %16, %17 : vector<16x64xf32>
    %cst_13 = arith.constant 0.000000e+00 : f32
    %19 = vector.broadcast %cst_13 : f32 to vector<16x64xf32>
    %20 = arith.cmpf oge, %18, %19 : vector<16x64xf32>
    %cst_14 = arith.constant 0.00999999977 : f32
    %21 = vector.broadcast %cst_14 : f32 to vector<16x64xf32>
    %22 = arith.mulf %18, %21 : vector<16x64xf32>
    %23 = arith.select %20, %18, %22 : vector<16x64xi1>, vector<16x64xf32>
    %24 = arith.maximumf %13, %23 : vector<16x64xf32>
    %c2 = arith.constant 2 : index
    %c0_15 = arith.constant 0 : index
    %c0_16 = arith.constant 0 : index
    %25 = vector.load %arg1[%c2, %c0_15, %c0_16] : memref<12x16x576xbf16, #tpu.memory_space<vmem>>, vector<1x16x576xbf16>
    %26 = vector.shape_cast %25 : vector<1x16x576xbf16> to vector<16x576xbf16>
    %cst_17 = arith.constant dense<0.000000e+00> : vector<16x64xf32>
    %27 = tpu.matmul %26, %1, %cst_17 {dimension_numbers = #tpu.dot_dimension_numbers<[1], [0], [0], [1], [0, 0, 1, 1], [], []>} : vector<16x576xbf16>, vector<576x64xbf16>, vector<16x64xf32> -> vector<16x64xf32>
    %28 = vector.broadcast %3 : vector<1x64xf32> to vector<16x64xf32>
    %29 = arith.addf %27, %28 : vector<16x64xf32>
    %cst_18 = arith.constant 0.000000e+00 : f32
    %30 = vector.broadcast %cst_18 : f32 to vector<16x64xf32>
    %31 = arith.cmpf oge, %29, %30 : vector<16x64xf32>
    %cst_19 = arith.constant 0.00999999977 : f32
    %32 = vector.broadcast %cst_19 : f32 to vector<16x64xf32>
    %33 = arith.mulf %29, %32 : vector<16x64xf32>
    %34 = arith.select %31, %29, %33 : vector<16x64xi1>, vector<16x64xf32>
    %35 = arith.maximumf %24, %34 : vector<16x64xf32>
    %c3 = arith.constant 3 : index
    %c0_20 = arith.constant 0 : index
    %c0_21 = arith.constant 0 : index
    %36 = vector.load %arg1[%c3, %c0_20, %c0_21] : memref<12x16x576xbf16, #tpu.memory_space<vmem>>, vector<1x16x576xbf16>
    %37 = vector.shape_cast %36 : vector<1x16x576xbf16> to vector<16x576xbf16>
    %cst_22 = arith.constant dense<0.000000e+00> : vector<16x64xf32>
    %38 = tpu.matmul %37, %1, %cst_22 {dimension_numbers = #tpu.dot_dimension_numbers<[1], [0], [0], [1], [0, 0, 1, 1], [], []>} : vector<16x576xbf16>, vector<576x64xbf16>, vector<16x64xf32> -> vector<16x64xf32>
    %39 = vector.broadcast %3 : vector<1x64xf32> to vector<16x64xf32>
    %40 = arith.addf %38, %39 : vector<16x64xf32>
    %cst_23 = arith.constant 0.000000e+00 : f32
    %41 = vector.broadcast %cst_23 : f32 to vector<16x64xf32>
    %42 = arith.cmpf oge, %40, %41 : vector<16x64xf32>
    %cst_24 = arith.constant 0.00999999977 : f32
    %43 = vector.broadcast %cst_24 : f32 to vector<16x64xf32>
    %44 = arith.mulf %40, %43 : vector<16x64xf32>
    %45 = arith.select %42, %40, %44 : vector<16x64xi1>, vector<16x64xf32>
    %46 = arith.maximumf %35, %45 : vector<16x64xf32>
    %c0_25 = arith.constant 0 : index
    %c0_26 = arith.constant 0 : index
    %c0_27 = arith.constant 0 : index
    %47 = vector.load %arg4[%c0_25, %c0_26, %c0_27] : memref<3x16x64xf32, #tpu.memory_space<vmem>>, vector<1x16x64xf32>
    %48 = vector.shape_cast %47 : vector<1x16x64xf32> to vector<16x64xf32>
    %49 = vector.shape_cast %46 : vector<16x64xf32> to vector<1x16x64xf32>
    tpu.vector_store %arg4[%c0_25, %c0_26, %c0_27], %49 {strides = array<i32>} : memref<3x16x64xf32, #tpu.memory_space<vmem>>, vector<1x16x64xf32>,
    %c1_28 = arith.constant 1 : index
    %c0_29 = arith.constant 0 : index
    %c0_30 = arith.constant 0 : index
    %50 = vector.load %arg2[%c1_28, %c0_29, %c0_30] : memref<3x576x64xbf16, #tpu.memory_space<vmem>>, vector<1x576x64xbf16>
    %51 = vector.shape_cast %50 : vector<1x576x64xbf16> to vector<576x64xbf16>
    %c1_31 = arith.constant 1 : index
    %c0_32 = arith.constant 0 : index
    %c0_33 = arith.constant 0 : index
    %52 = vector.load %arg3[%c1_31, %c0_32, %c0_33] : memref<3x1x64xf32, #tpu.memory_space<vmem>>, vector<1x1x64xf32>
    %53 = vector.shape_cast %52 : vector<1x1x64xf32> to vector<1x64xf32>
    %c4 = arith.constant 4 : index
    %c0_34 = arith.constant 0 : index
    %c0_35 = arith.constant 0 : index
    %54 = vector.load %arg1[%c4, %c0_34, %c0_35] : memref<12x16x576xbf16, #tpu.memory_space<vmem>>, vector<1x16x576xbf16>
    %55 = vector.shape_cast %54 : vector<1x16x576xbf16> to vector<16x576xbf16>
    %cst_36 = arith.constant dense<0.000000e+00> : vector<16x64xf32>
    %56 = tpu.matmul %55, %51, %cst_36 {dimension_numbers = #tpu.dot_dimension_numbers<[1], [0], [0], [1], [0, 0, 1, 1], [], []>} : vector<16x576xbf16>, vector<576x64xbf16>, vector<16x64xf32> -> vector<16x64xf32>
    %57 = vector.broadcast %53 : vector<1x64xf32> to vector<16x64xf32>
    %58 = arith.addf %56, %57 : vector<16x64xf32>
    %cst_37 = arith.constant 0.000000e+00 : f32
    %59 = vector.broadcast %cst_37 : f32 to vector<16x64xf32>
    %60 = arith.cmpf oge, %58, %59 : vector<16x64xf32>
    %cst_38 = arith.constant 0.00999999977 : f32
    %61 = vector.broadcast %cst_38 : f32 to vector<16x64xf32>
    %62 = arith.mulf %58, %61 : vector<16x64xf32>
    %63 = arith.select %60, %58, %62 : vector<16x64xi1>, vector<16x64xf32>
    %c5 = arith.constant 5 : index
    %c0_39 = arith.constant 0 : index
    %c0_40 = arith.constant 0 : index
    %64 = vector.load %arg1[%c5, %c0_39, %c0_40] : memref<12x16x576xbf16, #tpu.memory_space<vmem>>, vector<1x16x576xbf16>
    %65 = vector.shape_cast %64 : vector<1x16x576xbf16> to vector<16x576xbf16>
    %cst_41 = arith.constant dense<0.000000e+00> : vector<16x64xf32>
    %66 = tpu.matmul %65, %51, %cst_41 {dimension_numbers = #tpu.dot_dimension_numbers<[1], [0], [0], [1], [0, 0, 1, 1], [], []>} : vector<16x576xbf16>, vector<576x64xbf16>, vector<16x64xf32> -> vector<16x64xf32>
    %67 = vector.broadcast %53 : vector<1x64xf32> to vector<16x64xf32>
    %68 = arith.addf %66, %67 : vector<16x64xf32>
    %cst_42 = arith.constant 0.000000e+00 : f32
    %69 = vector.broadcast %cst_42 : f32 to vector<16x64xf32>
    %70 = arith.cmpf oge, %68, %69 : vector<16x64xf32>
    %cst_43 = arith.constant 0.00999999977 : f32
    %71 = vector.broadcast %cst_43 : f32 to vector<16x64xf32>
    %72 = arith.mulf %68, %71 : vector<16x64xf32>
    %73 = arith.select %70, %68, %72 : vector<16x64xi1>, vector<16x64xf32>
    %74 = arith.maximumf %63, %73 : vector<16x64xf32>
    %c6 = arith.constant 6 : index
    %c0_44 = arith.constant 0 : index
    %c0_45 = arith.constant 0 : index
    %75 = vector.load %arg1[%c6, %c0_44, %c0_45] : memref<12x16x576xbf16, #tpu.memory_space<vmem>>, vector<1x16x576xbf16>
    %76 = vector.shape_cast %75 : vector<1x16x576xbf16> to vector<16x576xbf16>
    %cst_46 = arith.constant dense<0.000000e+00> : vector<16x64xf32>
    %77 = tpu.matmul %76, %51, %cst_46 {dimension_numbers = #tpu.dot_dimension_numbers<[1], [0], [0], [1], [0, 0, 1, 1], [], []>} : vector<16x576xbf16>, vector<576x64xbf16>, vector<16x64xf32> -> vector<16x64xf32>
    %78 = vector.broadcast %53 : vector<1x64xf32> to vector<16x64xf32>
    %79 = arith.addf %77, %78 : vector<16x64xf32>
    %cst_47 = arith.constant 0.000000e+00 : f32
    %80 = vector.broadcast %cst_47 : f32 to vector<16x64xf32>
    %81 = arith.cmpf oge, %79, %80 : vector<16x64xf32>
    %cst_48 = arith.constant 0.00999999977 : f32
    %82 = vector.broadcast %cst_48 : f32 to vector<16x64xf32>
    %83 = arith.mulf %79, %82 : vector<16x64xf32>
    %84 = arith.select %81, %79, %83 : vector<16x64xi1>, vector<16x64xf32>
    %85 = arith.maximumf %74, %84 : vector<16x64xf32>
    %c7 = arith.constant 7 : index
    %c0_49 = arith.constant 0 : index
    %c0_50 = arith.constant 0 : index
    %86 = vector.load %arg1[%c7, %c0_49, %c0_50] : memref<12x16x576xbf16, #tpu.memory_space<vmem>>, vector<1x16x576xbf16>
    %87 = vector.shape_cast %86 : vector<1x16x576xbf16> to vector<16x576xbf16>
    %cst_51 = arith.constant dense<0.000000e+00> : vector<16x64xf32>
    %88 = tpu.matmul %87, %51, %cst_51 {dimension_numbers = #tpu.dot_dimension_numbers<[1], [0], [0], [1], [0, 0, 1, 1], [], []>} : vector<16x576xbf16>, vector<576x64xbf16>, vector<16x64xf32> -> vector<16x64xf32>
    %89 = vector.broadcast %53 : vector<1x64xf32> to vector<16x64xf32>
    %90 = arith.addf %88, %89 : vector<16x64xf32>
    %cst_52 = arith.constant 0.000000e+00 : f32
    %91 = vector.broadcast %cst_52 : f32 to vector<16x64xf32>
    %92 = arith.cmpf oge, %90, %91 : vector<16x64xf32>
    %cst_53 = arith.constant 0.00999999977 : f32
    %93 = vector.broadcast %cst_53 : f32 to vector<16x64xf32>
    %94 = arith.mulf %90, %93 : vector<16x64xf32>
    %95 = arith.select %92, %90, %94 : vector<16x64xi1>, vector<16x64xf32>
    %96 = arith.maximumf %85, %95 : vector<16x64xf32>
    %c1_54 = arith.constant 1 : index
    %c0_55 = arith.constant 0 : index
    %c0_56 = arith.constant 0 : index
    %97 = vector.load %arg4[%c1_54, %c0_55, %c0_56] : memref<3x16x64xf32, #tpu.memory_space<vmem>>, vector<1x16x64xf32>
    %98 = vector.shape_cast %97 : vector<1x16x64xf32> to vector<16x64xf32>
    %99 = vector.shape_cast %96 : vector<16x64xf32> to vector<1x16x64xf32>
    tpu.vector_store %arg4[%c1_54, %c0_55, %c0_56], %99 {strides = array<i32>} : memref<3x16x64xf32, #tpu.memory_space<vmem>>, vector<1x16x64xf32>,
    %c2_57 = arith.constant 2 : index
    %c0_58 = arith.constant 0 : index
    %c0_59 = arith.constant 0 : index
    %100 = vector.load %arg2[%c2_57, %c0_58, %c0_59] : memref<3x576x64xbf16, #tpu.memory_space<vmem>>, vector<1x576x64xbf16>
    %101 = vector.shape_cast %100 : vector<1x576x64xbf16> to vector<576x64xbf16>
    %c2_60 = arith.constant 2 : index
    %c0_61 = arith.constant 0 : index
    %c0_62 = arith.constant 0 : index
    %102 = vector.load %arg3[%c2_60, %c0_61, %c0_62] : memref<3x1x64xf32, #tpu.memory_space<vmem>>, vector<1x1x64xf32>
    %103 = vector.shape_cast %102 : vector<1x1x64xf32> to vector<1x64xf32>
    %c8 = arith.constant 8 : index
    %c0_63 = arith.constant 0 : index
    %c0_64 = arith.constant 0 : index
    %104 = vector.load %arg1[%c8, %c0_63, %c0_64] : memref<12x16x576xbf16, #tpu.memory_space<vmem>>, vector<1x16x576xbf16>
    %105 = vector.shape_cast %104 : vector<1x16x576xbf16> to vector<16x576xbf16>
    %cst_65 = arith.constant dense<0.000000e+00> : vector<16x64xf32>
    %106 = tpu.matmul %105, %101, %cst_65 {dimension_numbers = #tpu.dot_dimension_numbers<[1], [0], [0], [1], [0, 0, 1, 1], [], []>} : vector<16x576xbf16>, vector<576x64xbf16>, vector<16x64xf32> -> vector<16x64xf32>
    %107 = vector.broadcast %103 : vector<1x64xf32> to vector<16x64xf32>
    %108 = arith.addf %106, %107 : vector<16x64xf32>
    %cst_66 = arith.constant 0.000000e+00 : f32
    %109 = vector.broadcast %cst_66 : f32 to vector<16x64xf32>
    %110 = arith.cmpf oge, %108, %109 : vector<16x64xf32>
    %cst_67 = arith.constant 0.00999999977 : f32
    %111 = vector.broadcast %cst_67 : f32 to vector<16x64xf32>
    %112 = arith.mulf %108, %111 : vector<16x64xf32>
    %113 = arith.select %110, %108, %112 : vector<16x64xi1>, vector<16x64xf32>
    %c9 = arith.constant 9 : index
    %c0_68 = arith.constant 0 : index
    %c0_69 = arith.constant 0 : index
    %114 = vector.load %arg1[%c9, %c0_68, %c0_69] : memref<12x16x576xbf16, #tpu.memory_space<vmem>>, vector<1x16x576xbf16>
    %115 = vector.shape_cast %114 : vector<1x16x576xbf16> to vector<16x576xbf16>
    %cst_70 = arith.constant dense<0.000000e+00> : vector<16x64xf32>
    %116 = tpu.matmul %115, %101, %cst_70 {dimension_numbers = #tpu.dot_dimension_numbers<[1], [0], [0], [1], [0, 0, 1, 1], [], []>} : vector<16x576xbf16>, vector<576x64xbf16>, vector<16x64xf32> -> vector<16x64xf32>
    %117 = vector.broadcast %103 : vector<1x64xf32> to vector<16x64xf32>
    %118 = arith.addf %116, %117 : vector<16x64xf32>
    %cst_71 = arith.constant 0.000000e+00 : f32
    %119 = vector.broadcast %cst_71 : f32 to vector<16x64xf32>
    %120 = arith.cmpf oge, %118, %119 : vector<16x64xf32>
    %cst_72 = arith.constant 0.00999999977 : f32
    %121 = vector.broadcast %cst_72 : f32 to vector<16x64xf32>
    %122 = arith.mulf %118, %121 : vector<16x64xf32>
    %123 = arith.select %120, %118, %122 : vector<16x64xi1>, vector<16x64xf32>
    %124 = arith.maximumf %113, %123 : vector<16x64xf32>
    %c10 = arith.constant 10 : index
    %c0_73 = arith.constant 0 : index
    %c0_74 = arith.constant 0 : index
    %125 = vector.load %arg1[%c10, %c0_73, %c0_74] : memref<12x16x576xbf16, #tpu.memory_space<vmem>>, vector<1x16x576xbf16>
    %126 = vector.shape_cast %125 : vector<1x16x576xbf16> to vector<16x576xbf16>
    %cst_75 = arith.constant dense<0.000000e+00> : vector<16x64xf32>
    %127 = tpu.matmul %126, %101, %cst_75 {dimension_numbers = #tpu.dot_dimension_numbers<[1], [0], [0], [1], [0, 0, 1, 1], [], []>} : vector<16x576xbf16>, vector<576x64xbf16>, vector<16x64xf32> -> vector<16x64xf32>
    %128 = vector.broadcast %103 : vector<1x64xf32> to vector<16x64xf32>
    %129 = arith.addf %127, %128 : vector<16x64xf32>
    %cst_76 = arith.constant 0.000000e+00 : f32
    %130 = vector.broadcast %cst_76 : f32 to vector<16x64xf32>
    %131 = arith.cmpf oge, %129, %130 : vector<16x64xf32>
    %cst_77 = arith.constant 0.00999999977 : f32
    %132 = vector.broadcast %cst_77 : f32 to vector<16x64xf32>
    %133 = arith.mulf %129, %132 : vector<16x64xf32>
    %134 = arith.select %131, %129, %133 : vector<16x64xi1>, vector<16x64xf32>
    %135 = arith.maximumf %124, %134 : vector<16x64xf32>
    %c11 = arith.constant 11 : index
    %c0_78 = arith.constant 0 : index
    %c0_79 = arith.constant 0 : index
    %136 = vector.load %arg1[%c11, %c0_78, %c0_79] : memref<12x16x576xbf16, #tpu.memory_space<vmem>>, vector<1x16x576xbf16>
    %137 = vector.shape_cast %136 : vector<1x16x576xbf16> to vector<16x576xbf16>
    %cst_80 = arith.constant dense<0.000000e+00> : vector<16x64xf32>
    %138 = tpu.matmul %137, %101, %cst_80 {dimension_numbers = #tpu.dot_dimension_numbers<[1], [0], [0], [1], [0, 0, 1, 1], [], []>} : vector<16x576xbf16>, vector<576x64xbf16>, vector<16x64xf32> -> vector<16x64xf32>
    %139 = vector.broadcast %103 : vector<1x64xf32> to vector<16x64xf32>
    %140 = arith.addf %138, %139 : vector<16x64xf32>
    %cst_81 = arith.constant 0.000000e+00 : f32
    %141 = vector.broadcast %cst_81 : f32 to vector<16x64xf32>
    %142 = arith.cmpf oge, %140, %141 : vector<16x64xf32>
    %cst_82 = arith.constant 0.00999999977 : f32
    %143 = vector.broadcast %cst_82 : f32 to vector<16x64xf32>
    %144 = arith.mulf %140, %143 : vector<16x64xf32>
    %145 = arith.select %142, %140, %144 : vector<16x64xi1>, vector<16x64xf32>
    %146 = arith.maximumf %135, %145 : vector<16x64xf32>
    %c2_83 = arith.constant 2 : index
    %c0_84 = arith.constant 0 : index
    %c0_85 = arith.constant 0 : index
    %147 = vector.load %arg4[%c2_83, %c0_84, %c0_85] : memref<3x16x64xf32, #tpu.memory_space<vmem>>, vector<1x16x64xf32>
    %148 = vector.shape_cast %147 : vector<1x16x64xf32> to vector<16x64xf32>
    %149 = vector.shape_cast %146 : vector<16x64xf32> to vector<1x16x64xf32>
    tpu.vector_store %arg4[%c2_83, %c0_84, %c0_85], %149 {strides = array<i32>} : memref<3x16x64xf32, #tpu.memory_space<vmem>>, vector<1x16x64xf32>,
    return
  }
  func.func @transform_0(%arg0: i32) -> (i32, i32, i32) {
    %c0_i32 = arith.constant 0 : i32
    %c0_i32_0 = arith.constant 0 : i32
    %c0_i32_1 = arith.constant 0 : i32
    return %c0_i32, %arg0, %c0_i32_0 : i32, i32, i32
  }
  func.func @transform_1(%arg0: i32) -> (i32, i32, i32) {
    %c0_i32 = arith.constant 0 : i32
    %c0_i32_0 = arith.constant 0 : i32
    %c0_i32_1 = arith.constant 0 : i32
    %c0_i32_2 = arith.constant 0 : i32
    return %c0_i32, %c0_i32_0, %c0_i32_1 : i32, i32, i32
  }
  func.func @transform_2(%arg0: i32) -> (i32, i32, i32) {
    %c0_i32 = arith.constant 0 : i32
    %c0_i32_0 = arith.constant 0 : i32
    %c0_i32_1 = arith.constant 0 : i32
    %c0_i32_2 = arith.constant 0 : i32
    return %c0_i32, %c0_i32_0, %c0_i32_1 : i32, i32, i32
  }
  func.func @transform_3(%arg0: i32) -> (i32, i32, i32) {
    %c0_i32 = arith.constant 0 : i32
    %c0_i32_0 = arith.constant 0 : i32
    %c0_i32_1 = arith.constant 0 : i32
    return %c0_i32, %arg0, %c0_i32_0 : i32, i32, i32
  }
}

module attributes {stable_mosaic.version = 11 : i64} {
  func.func @grouped_conv_pool_kernel(%arg0: i32, %arg1: memref<12x1x576xbf16, #tpu.memory_space<vmem>>, %arg2: memref<3x576x64xbf16, #tpu.memory_space<vmem>>, %arg3: memref<3x1x64xf32, #tpu.memory_space<vmem>>, %arg4: memref<3x1x64xf32, #tpu.memory_space<vmem>>) attributes {dimension_semantics = [#tpu.dimension_semantics<parallel>], iteration_bounds = array<i64: 1>, scalar_prefetch = 0 : i64, scratch_operands = 0 : i64, tpu.core_type = #tpu.core_type<tc>, window_params = [{transform_indices = @transform_0, window_bounds = array<i64: 12, 1, 576>}, {pipeline_mode = #tpu.pipeline_mode<synchronous>, transform_indices = @transform_1, window_bounds = array<i64: 3, 576, 64>}, {pipeline_mode = #tpu.pipeline_mode<synchronous>, transform_indices = @transform_2, window_bounds = array<i64: 3, 1, 64>}, {transform_indices = @transform_3, window_bounds = array<i64: 3, 1, 64>}]} {
    %c0 = arith.constant 0 : index
    %c0_0 = arith.constant 0 : index
    %c0_1 = arith.constant 0 : index
    %0 = vector.load %arg2[%c0, %c0_0, %c0_1] : memref<3x576x64xbf16, #tpu.memory_space<vmem>>, vector<1x576x64xbf16>
    %1 = vector.shape_cast %0 : vector<1x576x64xbf16> to vector<576x64xbf16>
    %c0_2 = arith.constant 0 : index
    %c0_3 = arith.constant 0 : index
    %c0_4 = arith.constant 0 : index
    %2 = vector.load %arg3[%c0_2, %c0_3, %c0_4] : memref<3x1x64xf32, #tpu.memory_space<vmem>>, vector<1x1x64xf32>
    %3 = vector.shape_cast %2 : vector<1x1x64xf32> to vector<1x64xf32>
    %c0_5 = arith.constant 0 : index
    %c0_6 = arith.constant 0 : index
    %c0_7 = arith.constant 0 : index
    %4 = vector.load %arg1[%c0_5, %c0_6, %c0_7] : memref<12x1x576xbf16, #tpu.memory_space<vmem>>, vector<1x1x576xbf16>
    %5 = vector.shape_cast %4 : vector<1x1x576xbf16> to vector<1x576xbf16>
    %cst = arith.constant dense<0.000000e+00> : vector<1x64xf32>
    %6 = tpu.matmul %5, %1, %cst {dimension_numbers = #tpu.dot_dimension_numbers<[1], [0], [0], [1], [0, 0, 1, 1], [], []>} : vector<1x576xbf16>, vector<576x64xbf16>, vector<1x64xf32> -> vector<1x64xf32>
    %7 = arith.addf %6, %3 : vector<1x64xf32>
    %cst_8 = arith.constant 0.000000e+00 : f32
    %8 = vector.broadcast %cst_8 : f32 to vector<1x64xf32>
    %9 = arith.cmpf oge, %7, %8 : vector<1x64xf32>
    %cst_9 = arith.constant 0.00999999977 : f32
    %10 = vector.broadcast %cst_9 : f32 to vector<1x64xf32>
    %11 = arith.mulf %7, %10 : vector<1x64xf32>
    %12 = arith.select %9, %7, %11 : vector<1x64xi1>, vector<1x64xf32>
    %c1 = arith.constant 1 : index
    %c0_10 = arith.constant 0 : index
    %c0_11 = arith.constant 0 : index
    %13 = vector.load %arg1[%c1, %c0_10, %c0_11] : memref<12x1x576xbf16, #tpu.memory_space<vmem>>, vector<1x1x576xbf16>
    %14 = vector.shape_cast %13 : vector<1x1x576xbf16> to vector<1x576xbf16>
    %cst_12 = arith.constant dense<0.000000e+00> : vector<1x64xf32>
    %15 = tpu.matmul %14, %1, %cst_12 {dimension_numbers = #tpu.dot_dimension_numbers<[1], [0], [0], [1], [0, 0, 1, 1], [], []>} : vector<1x576xbf16>, vector<576x64xbf16>, vector<1x64xf32> -> vector<1x64xf32>
    %16 = arith.addf %15, %3 : vector<1x64xf32>
    %cst_13 = arith.constant 0.000000e+00 : f32
    %17 = vector.broadcast %cst_13 : f32 to vector<1x64xf32>
    %18 = arith.cmpf oge, %16, %17 : vector<1x64xf32>
    %cst_14 = arith.constant 0.00999999977 : f32
    %19 = vector.broadcast %cst_14 : f32 to vector<1x64xf32>
    %20 = arith.mulf %16, %19 : vector<1x64xf32>
    %21 = arith.select %18, %16, %20 : vector<1x64xi1>, vector<1x64xf32>
    %22 = arith.maximumf %12, %21 : vector<1x64xf32>
    %c2 = arith.constant 2 : index
    %c0_15 = arith.constant 0 : index
    %c0_16 = arith.constant 0 : index
    %23 = vector.load %arg1[%c2, %c0_15, %c0_16] : memref<12x1x576xbf16, #tpu.memory_space<vmem>>, vector<1x1x576xbf16>
    %24 = vector.shape_cast %23 : vector<1x1x576xbf16> to vector<1x576xbf16>
    %cst_17 = arith.constant dense<0.000000e+00> : vector<1x64xf32>
    %25 = tpu.matmul %24, %1, %cst_17 {dimension_numbers = #tpu.dot_dimension_numbers<[1], [0], [0], [1], [0, 0, 1, 1], [], []>} : vector<1x576xbf16>, vector<576x64xbf16>, vector<1x64xf32> -> vector<1x64xf32>
    %26 = arith.addf %25, %3 : vector<1x64xf32>
    %cst_18 = arith.constant 0.000000e+00 : f32
    %27 = vector.broadcast %cst_18 : f32 to vector<1x64xf32>
    %28 = arith.cmpf oge, %26, %27 : vector<1x64xf32>
    %cst_19 = arith.constant 0.00999999977 : f32
    %29 = vector.broadcast %cst_19 : f32 to vector<1x64xf32>
    %30 = arith.mulf %26, %29 : vector<1x64xf32>
    %31 = arith.select %28, %26, %30 : vector<1x64xi1>, vector<1x64xf32>
    %32 = arith.maximumf %22, %31 : vector<1x64xf32>
    %c3 = arith.constant 3 : index
    %c0_20 = arith.constant 0 : index
    %c0_21 = arith.constant 0 : index
    %33 = vector.load %arg1[%c3, %c0_20, %c0_21] : memref<12x1x576xbf16, #tpu.memory_space<vmem>>, vector<1x1x576xbf16>
    %34 = vector.shape_cast %33 : vector<1x1x576xbf16> to vector<1x576xbf16>
    %cst_22 = arith.constant dense<0.000000e+00> : vector<1x64xf32>
    %35 = tpu.matmul %34, %1, %cst_22 {dimension_numbers = #tpu.dot_dimension_numbers<[1], [0], [0], [1], [0, 0, 1, 1], [], []>} : vector<1x576xbf16>, vector<576x64xbf16>, vector<1x64xf32> -> vector<1x64xf32>
    %36 = arith.addf %35, %3 : vector<1x64xf32>
    %cst_23 = arith.constant 0.000000e+00 : f32
    %37 = vector.broadcast %cst_23 : f32 to vector<1x64xf32>
    %38 = arith.cmpf oge, %36, %37 : vector<1x64xf32>
    %cst_24 = arith.constant 0.00999999977 : f32
    %39 = vector.broadcast %cst_24 : f32 to vector<1x64xf32>
    %40 = arith.mulf %36, %39 : vector<1x64xf32>
    %41 = arith.select %38, %36, %40 : vector<1x64xi1>, vector<1x64xf32>
    %42 = arith.maximumf %32, %41 : vector<1x64xf32>
    %c0_25 = arith.constant 0 : index
    %c0_26 = arith.constant 0 : index
    %c0_27 = arith.constant 0 : index
    %43 = vector.load %arg4[%c0_25, %c0_26, %c0_27] : memref<3x1x64xf32, #tpu.memory_space<vmem>>, vector<1x1x64xf32>
    %44 = vector.shape_cast %43 : vector<1x1x64xf32> to vector<1x64xf32>
    %45 = vector.shape_cast %42 : vector<1x64xf32> to vector<1x1x64xf32>
    tpu.vector_store %arg4[%c0_25, %c0_26, %c0_27], %45 {strides = array<i32>} : memref<3x1x64xf32, #tpu.memory_space<vmem>>, vector<1x1x64xf32>,
    %c1_28 = arith.constant 1 : index
    %c0_29 = arith.constant 0 : index
    %c0_30 = arith.constant 0 : index
    %46 = vector.load %arg2[%c1_28, %c0_29, %c0_30] : memref<3x576x64xbf16, #tpu.memory_space<vmem>>, vector<1x576x64xbf16>
    %47 = vector.shape_cast %46 : vector<1x576x64xbf16> to vector<576x64xbf16>
    %c1_31 = arith.constant 1 : index
    %c0_32 = arith.constant 0 : index
    %c0_33 = arith.constant 0 : index
    %48 = vector.load %arg3[%c1_31, %c0_32, %c0_33] : memref<3x1x64xf32, #tpu.memory_space<vmem>>, vector<1x1x64xf32>
    %49 = vector.shape_cast %48 : vector<1x1x64xf32> to vector<1x64xf32>
    %c4 = arith.constant 4 : index
    %c0_34 = arith.constant 0 : index
    %c0_35 = arith.constant 0 : index
    %50 = vector.load %arg1[%c4, %c0_34, %c0_35] : memref<12x1x576xbf16, #tpu.memory_space<vmem>>, vector<1x1x576xbf16>
    %51 = vector.shape_cast %50 : vector<1x1x576xbf16> to vector<1x576xbf16>
    %cst_36 = arith.constant dense<0.000000e+00> : vector<1x64xf32>
    %52 = tpu.matmul %51, %47, %cst_36 {dimension_numbers = #tpu.dot_dimension_numbers<[1], [0], [0], [1], [0, 0, 1, 1], [], []>} : vector<1x576xbf16>, vector<576x64xbf16>, vector<1x64xf32> -> vector<1x64xf32>
    %53 = arith.addf %52, %49 : vector<1x64xf32>
    %cst_37 = arith.constant 0.000000e+00 : f32
    %54 = vector.broadcast %cst_37 : f32 to vector<1x64xf32>
    %55 = arith.cmpf oge, %53, %54 : vector<1x64xf32>
    %cst_38 = arith.constant 0.00999999977 : f32
    %56 = vector.broadcast %cst_38 : f32 to vector<1x64xf32>
    %57 = arith.mulf %53, %56 : vector<1x64xf32>
    %58 = arith.select %55, %53, %57 : vector<1x64xi1>, vector<1x64xf32>
    %c5 = arith.constant 5 : index
    %c0_39 = arith.constant 0 : index
    %c0_40 = arith.constant 0 : index
    %59 = vector.load %arg1[%c5, %c0_39, %c0_40] : memref<12x1x576xbf16, #tpu.memory_space<vmem>>, vector<1x1x576xbf16>
    %60 = vector.shape_cast %59 : vector<1x1x576xbf16> to vector<1x576xbf16>
    %cst_41 = arith.constant dense<0.000000e+00> : vector<1x64xf32>
    %61 = tpu.matmul %60, %47, %cst_41 {dimension_numbers = #tpu.dot_dimension_numbers<[1], [0], [0], [1], [0, 0, 1, 1], [], []>} : vector<1x576xbf16>, vector<576x64xbf16>, vector<1x64xf32> -> vector<1x64xf32>
    %62 = arith.addf %61, %49 : vector<1x64xf32>
    %cst_42 = arith.constant 0.000000e+00 : f32
    %63 = vector.broadcast %cst_42 : f32 to vector<1x64xf32>
    %64 = arith.cmpf oge, %62, %63 : vector<1x64xf32>
    %cst_43 = arith.constant 0.00999999977 : f32
    %65 = vector.broadcast %cst_43 : f32 to vector<1x64xf32>
    %66 = arith.mulf %62, %65 : vector<1x64xf32>
    %67 = arith.select %64, %62, %66 : vector<1x64xi1>, vector<1x64xf32>
    %68 = arith.maximumf %58, %67 : vector<1x64xf32>
    %c6 = arith.constant 6 : index
    %c0_44 = arith.constant 0 : index
    %c0_45 = arith.constant 0 : index
    %69 = vector.load %arg1[%c6, %c0_44, %c0_45] : memref<12x1x576xbf16, #tpu.memory_space<vmem>>, vector<1x1x576xbf16>
    %70 = vector.shape_cast %69 : vector<1x1x576xbf16> to vector<1x576xbf16>
    %cst_46 = arith.constant dense<0.000000e+00> : vector<1x64xf32>
    %71 = tpu.matmul %70, %47, %cst_46 {dimension_numbers = #tpu.dot_dimension_numbers<[1], [0], [0], [1], [0, 0, 1, 1], [], []>} : vector<1x576xbf16>, vector<576x64xbf16>, vector<1x64xf32> -> vector<1x64xf32>
    %72 = arith.addf %71, %49 : vector<1x64xf32>
    %cst_47 = arith.constant 0.000000e+00 : f32
    %73 = vector.broadcast %cst_47 : f32 to vector<1x64xf32>
    %74 = arith.cmpf oge, %72, %73 : vector<1x64xf32>
    %cst_48 = arith.constant 0.00999999977 : f32
    %75 = vector.broadcast %cst_48 : f32 to vector<1x64xf32>
    %76 = arith.mulf %72, %75 : vector<1x64xf32>
    %77 = arith.select %74, %72, %76 : vector<1x64xi1>, vector<1x64xf32>
    %78 = arith.maximumf %68, %77 : vector<1x64xf32>
    %c7 = arith.constant 7 : index
    %c0_49 = arith.constant 0 : index
    %c0_50 = arith.constant 0 : index
    %79 = vector.load %arg1[%c7, %c0_49, %c0_50] : memref<12x1x576xbf16, #tpu.memory_space<vmem>>, vector<1x1x576xbf16>
    %80 = vector.shape_cast %79 : vector<1x1x576xbf16> to vector<1x576xbf16>
    %cst_51 = arith.constant dense<0.000000e+00> : vector<1x64xf32>
    %81 = tpu.matmul %80, %47, %cst_51 {dimension_numbers = #tpu.dot_dimension_numbers<[1], [0], [0], [1], [0, 0, 1, 1], [], []>} : vector<1x576xbf16>, vector<576x64xbf16>, vector<1x64xf32> -> vector<1x64xf32>
    %82 = arith.addf %81, %49 : vector<1x64xf32>
    %cst_52 = arith.constant 0.000000e+00 : f32
    %83 = vector.broadcast %cst_52 : f32 to vector<1x64xf32>
    %84 = arith.cmpf oge, %82, %83 : vector<1x64xf32>
    %cst_53 = arith.constant 0.00999999977 : f32
    %85 = vector.broadcast %cst_53 : f32 to vector<1x64xf32>
    %86 = arith.mulf %82, %85 : vector<1x64xf32>
    %87 = arith.select %84, %82, %86 : vector<1x64xi1>, vector<1x64xf32>
    %88 = arith.maximumf %78, %87 : vector<1x64xf32>
    %c1_54 = arith.constant 1 : index
    %c0_55 = arith.constant 0 : index
    %c0_56 = arith.constant 0 : index
    %89 = vector.load %arg4[%c1_54, %c0_55, %c0_56] : memref<3x1x64xf32, #tpu.memory_space<vmem>>, vector<1x1x64xf32>
    %90 = vector.shape_cast %89 : vector<1x1x64xf32> to vector<1x64xf32>
    %91 = vector.shape_cast %88 : vector<1x64xf32> to vector<1x1x64xf32>
    tpu.vector_store %arg4[%c1_54, %c0_55, %c0_56], %91 {strides = array<i32>} : memref<3x1x64xf32, #tpu.memory_space<vmem>>, vector<1x1x64xf32>,
    %c2_57 = arith.constant 2 : index
    %c0_58 = arith.constant 0 : index
    %c0_59 = arith.constant 0 : index
    %92 = vector.load %arg2[%c2_57, %c0_58, %c0_59] : memref<3x576x64xbf16, #tpu.memory_space<vmem>>, vector<1x576x64xbf16>
    %93 = vector.shape_cast %92 : vector<1x576x64xbf16> to vector<576x64xbf16>
    %c2_60 = arith.constant 2 : index
    %c0_61 = arith.constant 0 : index
    %c0_62 = arith.constant 0 : index
    %94 = vector.load %arg3[%c2_60, %c0_61, %c0_62] : memref<3x1x64xf32, #tpu.memory_space<vmem>>, vector<1x1x64xf32>
    %95 = vector.shape_cast %94 : vector<1x1x64xf32> to vector<1x64xf32>
    %c8 = arith.constant 8 : index
    %c0_63 = arith.constant 0 : index
    %c0_64 = arith.constant 0 : index
    %96 = vector.load %arg1[%c8, %c0_63, %c0_64] : memref<12x1x576xbf16, #tpu.memory_space<vmem>>, vector<1x1x576xbf16>
    %97 = vector.shape_cast %96 : vector<1x1x576xbf16> to vector<1x576xbf16>
    %cst_65 = arith.constant dense<0.000000e+00> : vector<1x64xf32>
    %98 = tpu.matmul %97, %93, %cst_65 {dimension_numbers = #tpu.dot_dimension_numbers<[1], [0], [0], [1], [0, 0, 1, 1], [], []>} : vector<1x576xbf16>, vector<576x64xbf16>, vector<1x64xf32> -> vector<1x64xf32>
    %99 = arith.addf %98, %95 : vector<1x64xf32>
    %cst_66 = arith.constant 0.000000e+00 : f32
    %100 = vector.broadcast %cst_66 : f32 to vector<1x64xf32>
    %101 = arith.cmpf oge, %99, %100 : vector<1x64xf32>
    %cst_67 = arith.constant 0.00999999977 : f32
    %102 = vector.broadcast %cst_67 : f32 to vector<1x64xf32>
    %103 = arith.mulf %99, %102 : vector<1x64xf32>
    %104 = arith.select %101, %99, %103 : vector<1x64xi1>, vector<1x64xf32>
    %c9 = arith.constant 9 : index
    %c0_68 = arith.constant 0 : index
    %c0_69 = arith.constant 0 : index
    %105 = vector.load %arg1[%c9, %c0_68, %c0_69] : memref<12x1x576xbf16, #tpu.memory_space<vmem>>, vector<1x1x576xbf16>
    %106 = vector.shape_cast %105 : vector<1x1x576xbf16> to vector<1x576xbf16>
    %cst_70 = arith.constant dense<0.000000e+00> : vector<1x64xf32>
    %107 = tpu.matmul %106, %93, %cst_70 {dimension_numbers = #tpu.dot_dimension_numbers<[1], [0], [0], [1], [0, 0, 1, 1], [], []>} : vector<1x576xbf16>, vector<576x64xbf16>, vector<1x64xf32> -> vector<1x64xf32>
    %108 = arith.addf %107, %95 : vector<1x64xf32>
    %cst_71 = arith.constant 0.000000e+00 : f32
    %109 = vector.broadcast %cst_71 : f32 to vector<1x64xf32>
    %110 = arith.cmpf oge, %108, %109 : vector<1x64xf32>
    %cst_72 = arith.constant 0.00999999977 : f32
    %111 = vector.broadcast %cst_72 : f32 to vector<1x64xf32>
    %112 = arith.mulf %108, %111 : vector<1x64xf32>
    %113 = arith.select %110, %108, %112 : vector<1x64xi1>, vector<1x64xf32>
    %114 = arith.maximumf %104, %113 : vector<1x64xf32>
    %c10 = arith.constant 10 : index
    %c0_73 = arith.constant 0 : index
    %c0_74 = arith.constant 0 : index
    %115 = vector.load %arg1[%c10, %c0_73, %c0_74] : memref<12x1x576xbf16, #tpu.memory_space<vmem>>, vector<1x1x576xbf16>
    %116 = vector.shape_cast %115 : vector<1x1x576xbf16> to vector<1x576xbf16>
    %cst_75 = arith.constant dense<0.000000e+00> : vector<1x64xf32>
    %117 = tpu.matmul %116, %93, %cst_75 {dimension_numbers = #tpu.dot_dimension_numbers<[1], [0], [0], [1], [0, 0, 1, 1], [], []>} : vector<1x576xbf16>, vector<576x64xbf16>, vector<1x64xf32> -> vector<1x64xf32>
    %118 = arith.addf %117, %95 : vector<1x64xf32>
    %cst_76 = arith.constant 0.000000e+00 : f32
    %119 = vector.broadcast %cst_76 : f32 to vector<1x64xf32>
    %120 = arith.cmpf oge, %118, %119 : vector<1x64xf32>
    %cst_77 = arith.constant 0.00999999977 : f32
    %121 = vector.broadcast %cst_77 : f32 to vector<1x64xf32>
    %122 = arith.mulf %118, %121 : vector<1x64xf32>
    %123 = arith.select %120, %118, %122 : vector<1x64xi1>, vector<1x64xf32>
    %124 = arith.maximumf %114, %123 : vector<1x64xf32>
    %c11 = arith.constant 11 : index
    %c0_78 = arith.constant 0 : index
    %c0_79 = arith.constant 0 : index
    %125 = vector.load %arg1[%c11, %c0_78, %c0_79] : memref<12x1x576xbf16, #tpu.memory_space<vmem>>, vector<1x1x576xbf16>
    %126 = vector.shape_cast %125 : vector<1x1x576xbf16> to vector<1x576xbf16>
    %cst_80 = arith.constant dense<0.000000e+00> : vector<1x64xf32>
    %127 = tpu.matmul %126, %93, %cst_80 {dimension_numbers = #tpu.dot_dimension_numbers<[1], [0], [0], [1], [0, 0, 1, 1], [], []>} : vector<1x576xbf16>, vector<576x64xbf16>, vector<1x64xf32> -> vector<1x64xf32>
    %128 = arith.addf %127, %95 : vector<1x64xf32>
    %cst_81 = arith.constant 0.000000e+00 : f32
    %129 = vector.broadcast %cst_81 : f32 to vector<1x64xf32>
    %130 = arith.cmpf oge, %128, %129 : vector<1x64xf32>
    %cst_82 = arith.constant 0.00999999977 : f32
    %131 = vector.broadcast %cst_82 : f32 to vector<1x64xf32>
    %132 = arith.mulf %128, %131 : vector<1x64xf32>
    %133 = arith.select %130, %128, %132 : vector<1x64xi1>, vector<1x64xf32>
    %134 = arith.maximumf %124, %133 : vector<1x64xf32>
    %c2_83 = arith.constant 2 : index
    %c0_84 = arith.constant 0 : index
    %c0_85 = arith.constant 0 : index
    %135 = vector.load %arg4[%c2_83, %c0_84, %c0_85] : memref<3x1x64xf32, #tpu.memory_space<vmem>>, vector<1x1x64xf32>
    %136 = vector.shape_cast %135 : vector<1x1x64xf32> to vector<1x64xf32>
    %137 = vector.shape_cast %134 : vector<1x64xf32> to vector<1x1x64xf32>
    tpu.vector_store %arg4[%c2_83, %c0_84, %c0_85], %137 {strides = array<i32>} : memref<3x1x64xf32, #tpu.memory_space<vmem>>, vector<1x1x64xf32>,
    return
  }
  func.func @transform_0(%arg0: i32) -> (i32, i32, i32) {
    %c0_i32 = arith.constant 0 : i32
    %c0_i32_0 = arith.constant 0 : i32
    %c0_i32_1 = arith.constant 0 : i32
    return %c0_i32, %arg0, %c0_i32_0 : i32, i32, i32
  }
  func.func @transform_1(%arg0: i32) -> (i32, i32, i32) {
    %c0_i32 = arith.constant 0 : i32
    %c0_i32_0 = arith.constant 0 : i32
    %c0_i32_1 = arith.constant 0 : i32
    %c0_i32_2 = arith.constant 0 : i32
    return %c0_i32, %c0_i32_0, %c0_i32_1 : i32, i32, i32
  }
  func.func @transform_2(%arg0: i32) -> (i32, i32, i32) {
    %c0_i32 = arith.constant 0 : i32
    %c0_i32_0 = arith.constant 0 : i32
    %c0_i32_1 = arith.constant 0 : i32
    %c0_i32_2 = arith.constant 0 : i32
    return %c0_i32, %c0_i32_0, %c0_i32_1 : i32, i32, i32
  }
  func.func @transform_3(%arg0: i32) -> (i32, i32, i32) {
    %c0_i32 = arith.constant 0 : i32
    %c0_i32_0 = arith.constant 0 : i32
    %c0_i32_1 = arith.constant 0 : i32
    return %c0_i32, %arg0, %c0_i32_0 : i32, i32, i32
  }
}

module attributes {stable_mosaic.version = 11 : i64} {
  func.func @grouped_conv_kernel(%arg0: i32, %arg1: memref<3x1x576xbf16, #tpu.memory_space<vmem>>, %arg2: memref<3x576x64xbf16, #tpu.memory_space<vmem>>, %arg3: memref<3x1x64xf32, #tpu.memory_space<vmem>>, %arg4: memref<3x1x64xf32, #tpu.memory_space<vmem>>) attributes {dimension_semantics = [#tpu.dimension_semantics<parallel>], iteration_bounds = array<i64: 1>, scalar_prefetch = 0 : i64, scratch_operands = 0 : i64, tpu.core_type = #tpu.core_type<tc>, window_params = [{transform_indices = @transform_0, window_bounds = array<i64: 3, 1, 576>}, {pipeline_mode = #tpu.pipeline_mode<synchronous>, transform_indices = @transform_1, window_bounds = array<i64: 3, 576, 64>}, {pipeline_mode = #tpu.pipeline_mode<synchronous>, transform_indices = @transform_2, window_bounds = array<i64: 3, 1, 64>}, {transform_indices = @transform_3, window_bounds = array<i64: 3, 1, 64>}]} {
    %c0 = arith.constant 0 : index
    %c0_0 = arith.constant 0 : index
    %c0_1 = arith.constant 0 : index
    %0 = vector.load %arg1[%c0, %c0_0, %c0_1] : memref<3x1x576xbf16, #tpu.memory_space<vmem>>, vector<1x1x576xbf16>
    %1 = vector.shape_cast %0 : vector<1x1x576xbf16> to vector<1x576xbf16>
    %c0_2 = arith.constant 0 : index
    %c0_3 = arith.constant 0 : index
    %c0_4 = arith.constant 0 : index
    %2 = vector.load %arg2[%c0_2, %c0_3, %c0_4] : memref<3x576x64xbf16, #tpu.memory_space<vmem>>, vector<1x576x64xbf16>
    %3 = vector.shape_cast %2 : vector<1x576x64xbf16> to vector<576x64xbf16>
    %cst = arith.constant dense<0.000000e+00> : vector<1x64xf32>
    %4 = tpu.matmul %1, %3, %cst {dimension_numbers = #tpu.dot_dimension_numbers<[1], [0], [0], [1], [0, 0, 1, 1], [], []>} : vector<1x576xbf16>, vector<576x64xbf16>, vector<1x64xf32> -> vector<1x64xf32>
    %c0_5 = arith.constant 0 : index
    %c0_6 = arith.constant 0 : index
    %c0_7 = arith.constant 0 : index
    %5 = vector.load %arg3[%c0_5, %c0_6, %c0_7] : memref<3x1x64xf32, #tpu.memory_space<vmem>>, vector<1x1x64xf32>
    %6 = vector.shape_cast %5 : vector<1x1x64xf32> to vector<1x64xf32>
    %7 = arith.addf %4, %6 : vector<1x64xf32>
    %cst_8 = arith.constant 0.000000e+00 : f32
    %8 = vector.broadcast %cst_8 : f32 to vector<1x64xf32>
    %9 = arith.cmpf oge, %7, %8 : vector<1x64xf32>
    %cst_9 = arith.constant 0.00999999977 : f32
    %10 = vector.broadcast %cst_9 : f32 to vector<1x64xf32>
    %11 = arith.mulf %7, %10 : vector<1x64xf32>
    %12 = arith.select %9, %7, %11 : vector<1x64xi1>, vector<1x64xf32>
    %c0_10 = arith.constant 0 : index
    %c0_11 = arith.constant 0 : index
    %c0_12 = arith.constant 0 : index
    %13 = vector.load %arg4[%c0_10, %c0_11, %c0_12] : memref<3x1x64xf32, #tpu.memory_space<vmem>>, vector<1x1x64xf32>
    %14 = vector.shape_cast %13 : vector<1x1x64xf32> to vector<1x64xf32>
    %15 = vector.shape_cast %12 : vector<1x64xf32> to vector<1x1x64xf32>
    tpu.vector_store %arg4[%c0_10, %c0_11, %c0_12], %15 {strides = array<i32>} : memref<3x1x64xf32, #tpu.memory_space<vmem>>, vector<1x1x64xf32>,
    %c1 = arith.constant 1 : index
    %c0_13 = arith.constant 0 : index
    %c0_14 = arith.constant 0 : index
    %16 = vector.load %arg1[%c1, %c0_13, %c0_14] : memref<3x1x576xbf16, #tpu.memory_space<vmem>>, vector<1x1x576xbf16>
    %17 = vector.shape_cast %16 : vector<1x1x576xbf16> to vector<1x576xbf16>
    %c1_15 = arith.constant 1 : index
    %c0_16 = arith.constant 0 : index
    %c0_17 = arith.constant 0 : index
    %18 = vector.load %arg2[%c1_15, %c0_16, %c0_17] : memref<3x576x64xbf16, #tpu.memory_space<vmem>>, vector<1x576x64xbf16>
    %19 = vector.shape_cast %18 : vector<1x576x64xbf16> to vector<576x64xbf16>
    %cst_18 = arith.constant dense<0.000000e+00> : vector<1x64xf32>
    %20 = tpu.matmul %17, %19, %cst_18 {dimension_numbers = #tpu.dot_dimension_numbers<[1], [0], [0], [1], [0, 0, 1, 1], [], []>} : vector<1x576xbf16>, vector<576x64xbf16>, vector<1x64xf32> -> vector<1x64xf32>
    %c1_19 = arith.constant 1 : index
    %c0_20 = arith.constant 0 : index
    %c0_21 = arith.constant 0 : index
    %21 = vector.load %arg3[%c1_19, %c0_20, %c0_21] : memref<3x1x64xf32, #tpu.memory_space<vmem>>, vector<1x1x64xf32>
    %22 = vector.shape_cast %21 : vector<1x1x64xf32> to vector<1x64xf32>
    %23 = arith.addf %20, %22 : vector<1x64xf32>
    %cst_22 = arith.constant 0.000000e+00 : f32
    %24 = vector.broadcast %cst_22 : f32 to vector<1x64xf32>
    %25 = arith.cmpf oge, %23, %24 : vector<1x64xf32>
    %cst_23 = arith.constant 0.00999999977 : f32
    %26 = vector.broadcast %cst_23 : f32 to vector<1x64xf32>
    %27 = arith.mulf %23, %26 : vector<1x64xf32>
    %28 = arith.select %25, %23, %27 : vector<1x64xi1>, vector<1x64xf32>
    %c1_24 = arith.constant 1 : index
    %c0_25 = arith.constant 0 : index
    %c0_26 = arith.constant 0 : index
    %29 = vector.load %arg4[%c1_24, %c0_25, %c0_26] : memref<3x1x64xf32, #tpu.memory_space<vmem>>, vector<1x1x64xf32>
    %30 = vector.shape_cast %29 : vector<1x1x64xf32> to vector<1x64xf32>
    %31 = vector.shape_cast %28 : vector<1x64xf32> to vector<1x1x64xf32>
    tpu.vector_store %arg4[%c1_24, %c0_25, %c0_26], %31 {strides = array<i32>} : memref<3x1x64xf32, #tpu.memory_space<vmem>>, vector<1x1x64xf32>,
    %c2 = arith.constant 2 : index
    %c0_27 = arith.constant 0 : index
    %c0_28 = arith.constant 0 : index
    %32 = vector.load %arg1[%c2, %c0_27, %c0_28] : memref<3x1x576xbf16, #tpu.memory_space<vmem>>, vector<1x1x576xbf16>
    %33 = vector.shape_cast %32 : vector<1x1x576xbf16> to vector<1x576xbf16>
    %c2_29 = arith.constant 2 : index
    %c0_30 = arith.constant 0 : index
    %c0_31 = arith.constant 0 : index
    %34 = vector.load %arg2[%c2_29, %c0_30, %c0_31] : memref<3x576x64xbf16, #tpu.memory_space<vmem>>, vector<1x576x64xbf16>
    %35 = vector.shape_cast %34 : vector<1x576x64xbf16> to vector<576x64xbf16>
    %cst_32 = arith.constant dense<0.000000e+00> : vector<1x64xf32>
    %36 = tpu.matmul %33, %35, %cst_32 {dimension_numbers = #tpu.dot_dimension_numbers<[1], [0], [0], [1], [0, 0, 1, 1], [], []>} : vector<1x576xbf16>, vector<576x64xbf16>, vector<1x64xf32> -> vector<1x64xf32>
    %c2_33 = arith.constant 2 : index
    %c0_34 = arith.constant 0 : index
    %c0_35 = arith.constant 0 : index
    %37 = vector.load %arg3[%c2_33, %c0_34, %c0_35] : memref<3x1x64xf32, #tpu.memory_space<vmem>>, vector<1x1x64xf32>
    %38 = vector.shape_cast %37 : vector<1x1x64xf32> to vector<1x64xf32>
    %39 = arith.addf %36, %38 : vector<1x64xf32>
    %cst_36 = arith.constant 0.000000e+00 : f32
    %40 = vector.broadcast %cst_36 : f32 to vector<1x64xf32>
    %41 = arith.cmpf oge, %39, %40 : vector<1x64xf32>
    %cst_37 = arith.constant 0.00999999977 : f32
    %42 = vector.broadcast %cst_37 : f32 to vector<1x64xf32>
    %43 = arith.mulf %39, %42 : vector<1x64xf32>
    %44 = arith.select %41, %39, %43 : vector<1x64xi1>, vector<1x64xf32>
    %c2_38 = arith.constant 2 : index
    %c0_39 = arith.constant 0 : index
    %c0_40 = arith.constant 0 : index
    %45 = vector.load %arg4[%c2_38, %c0_39, %c0_40] : memref<3x1x64xf32, #tpu.memory_space<vmem>>, vector<1x1x64xf32>
    %46 = vector.shape_cast %45 : vector<1x1x64xf32> to vector<1x64xf32>
    %47 = vector.shape_cast %44 : vector<1x64xf32> to vector<1x1x64xf32>
    tpu.vector_store %arg4[%c2_38, %c0_39, %c0_40], %47 {strides = array<i32>} : memref<3x1x64xf32, #tpu.memory_space<vmem>>, vector<1x1x64xf32>,
    return
  }
  func.func @transform_0(%arg0: i32) -> (i32, i32, i32) {
    %c0_i32 = arith.constant 0 : i32
    %c0_i32_0 = arith.constant 0 : i32
    %c0_i32_1 = arith.constant 0 : i32
    return %c0_i32, %arg0, %c0_i32_0 : i32, i32, i32
  }
  func.func @transform_1(%arg0: i32) -> (i32, i32, i32) {
    %c0_i32 = arith.constant 0 : i32
    %c0_i32_0 = arith.constant 0 : i32
    %c0_i32_1 = arith.constant 0 : i32
    %c0_i32_2 = arith.constant 0 : i32
    return %c0_i32, %c0_i32_0, %c0_i32_1 : i32, i32, i32
  }
  func.func @transform_2(%arg0: i32) -> (i32, i32, i32) {
    %c0_i32 = arith.constant 0 : i32
    %c0_i32_0 = arith.constant 0 : i32
    %c0_i32_1 = arith.constant 0 : i32
    %c0_i32_2 = arith.constant 0 : i32
    return %c0_i32, %c0_i32_0, %c0_i32_1 : i32, i32, i32
  }
  func.func @transform_3(%arg0: i32) -> (i32, i32, i32) {
    %c0_i32 = arith.constant 0 : i32
    %c0_i32_0 = arith.constant 0 : i32
    %c0_i32_1 = arith.constant 0 : i32
    return %c0_i32, %arg0, %c0_i32_0 : i32, i32, i32
  }
}

module attributes {stable_mosaic.version = 11 : i64} {
  func.func @pool_fc_kernel(%arg0: i32, %arg1: memref<3x1x64xf32, #tpu.memory_space<vmem>>, %arg2: memref<3x64x64xf32, #tpu.memory_space<vmem>>, %arg3: memref<3x1x64xf32, #tpu.memory_space<vmem>>, %arg4: memref<3x1x64xf32, #tpu.memory_space<vmem>>) attributes {dimension_semantics = [#tpu.dimension_semantics<arbitrary>], iteration_bounds = array<i64: 1>, scalar_prefetch = 0 : i64, scratch_operands = 0 : i64, tpu.core_type = #tpu.core_type<tc>, window_params = [{pipeline_mode = #tpu.pipeline_mode<synchronous>, transform_indices = @transform_0, window_bounds = array<i64: 3, 1, 64>}, {pipeline_mode = #tpu.pipeline_mode<synchronous>, transform_indices = @transform_1, window_bounds = array<i64: 3, 64, 64>}, {pipeline_mode = #tpu.pipeline_mode<synchronous>, transform_indices = @transform_2, window_bounds = array<i64: 3, 1, 64>}, {pipeline_mode = #tpu.pipeline_mode<synchronous>, transform_indices = @transform_3, window_bounds = array<i64: 3, 1, 64>}]} {
    %c0 = arith.constant 0 : index
    %c0_0 = arith.constant 0 : index
    %c0_1 = arith.constant 0 : index
    %0 = vector.load %arg1[%c0, %c0_0, %c0_1] : memref<3x1x64xf32, #tpu.memory_space<vmem>>, vector<1x1x64xf32>
    %1 = vector.shape_cast %0 : vector<1x1x64xf32> to vector<1x64xf32>
    %cst = arith.constant dense<0.000000e+00> : vector<64xf32>
    %2 = vector.multi_reduction <add>, %1, %cst [0] : vector<1x64xf32> to vector<64xf32>
    %3 = vector.shape_cast %2 : vector<64xf32> to vector<1x64xf32>
    %cst_2 = arith.constant 1.000000e+00 : f32
    %4 = vector.broadcast %cst_2 : f32 to vector<1x64xf32>
    %5 = arith.divf %3, %4 : vector<1x64xf32>
    %c0_3 = arith.constant 0 : index
    %c0_4 = arith.constant 0 : index
    %c0_5 = arith.constant 0 : index
    %6 = vector.load %arg2[%c0_3, %c0_4, %c0_5] : memref<3x64x64xf32, #tpu.memory_space<vmem>>, vector<1x64x64xf32>
    %7 = vector.shape_cast %6 : vector<1x64x64xf32> to vector<64x64xf32>
    %cst_6 = arith.constant dense<0.000000e+00> : vector<1x64xf32>
    %8 = tpu.matmul %5, %7, %cst_6 {dimension_numbers = #tpu.dot_dimension_numbers<[1], [0], [0], [1], [0, 0, 1, 1], [], []>} : vector<1x64xf32>, vector<64x64xf32>, vector<1x64xf32> -> vector<1x64xf32>
    %c0_7 = arith.constant 0 : index
    %c0_8 = arith.constant 0 : index
    %c0_9 = arith.constant 0 : index
    %9 = vector.load %arg3[%c0_7, %c0_8, %c0_9] : memref<3x1x64xf32, #tpu.memory_space<vmem>>, vector<1x1x64xf32>
    %10 = vector.shape_cast %9 : vector<1x1x64xf32> to vector<1x64xf32>
    %11 = arith.addf %8, %10 : vector<1x64xf32>
    %c0_10 = arith.constant 0 : index
    %c0_11 = arith.constant 0 : index
    %c0_12 = arith.constant 0 : index
    %12 = vector.load %arg4[%c0_10, %c0_11, %c0_12] : memref<3x1x64xf32, #tpu.memory_space<vmem>>, vector<1x1x64xf32>
    %13 = vector.shape_cast %12 : vector<1x1x64xf32> to vector<1x64xf32>
    %14 = vector.shape_cast %11 : vector<1x64xf32> to vector<1x1x64xf32>
    tpu.vector_store %arg4[%c0_10, %c0_11, %c0_12], %14 {strides = array<i32>} : memref<3x1x64xf32, #tpu.memory_space<vmem>>, vector<1x1x64xf32>,
    %c1 = arith.constant 1 : index
    %c0_13 = arith.constant 0 : index
    %c0_14 = arith.constant 0 : index
    %15 = vector.load %arg1[%c1, %c0_13, %c0_14] : memref<3x1x64xf32, #tpu.memory_space<vmem>>, vector<1x1x64xf32>
    %16 = vector.shape_cast %15 : vector<1x1x64xf32> to vector<1x64xf32>
    %cst_15 = arith.constant dense<0.000000e+00> : vector<64xf32>
    %17 = vector.multi_reduction <add>, %16, %cst_15 [0] : vector<1x64xf32> to vector<64xf32>
    %18 = vector.shape_cast %17 : vector<64xf32> to vector<1x64xf32>
    %cst_16 = arith.constant 1.000000e+00 : f32
    %19 = vector.broadcast %cst_16 : f32 to vector<1x64xf32>
    %20 = arith.divf %18, %19 : vector<1x64xf32>
    %c1_17 = arith.constant 1 : index
    %c0_18 = arith.constant 0 : index
    %c0_19 = arith.constant 0 : index
    %21 = vector.load %arg2[%c1_17, %c0_18, %c0_19] : memref<3x64x64xf32, #tpu.memory_space<vmem>>, vector<1x64x64xf32>
    %22 = vector.shape_cast %21 : vector<1x64x64xf32> to vector<64x64xf32>
    %cst_20 = arith.constant dense<0.000000e+00> : vector<1x64xf32>
    %23 = tpu.matmul %20, %22, %cst_20 {dimension_numbers = #tpu.dot_dimension_numbers<[1], [0], [0], [1], [0, 0, 1, 1], [], []>} : vector<1x64xf32>, vector<64x64xf32>, vector<1x64xf32> -> vector<1x64xf32>
    %c1_21 = arith.constant 1 : index
    %c0_22 = arith.constant 0 : index
    %c0_23 = arith.constant 0 : index
    %24 = vector.load %arg3[%c1_21, %c0_22, %c0_23] : memref<3x1x64xf32, #tpu.memory_space<vmem>>, vector<1x1x64xf32>
    %25 = vector.shape_cast %24 : vector<1x1x64xf32> to vector<1x64xf32>
    %26 = arith.addf %23, %25 : vector<1x64xf32>
    %c1_24 = arith.constant 1 : index
    %c0_25 = arith.constant 0 : index
    %c0_26 = arith.constant 0 : index
    %27 = vector.load %arg4[%c1_24, %c0_25, %c0_26] : memref<3x1x64xf32, #tpu.memory_space<vmem>>, vector<1x1x64xf32>
    %28 = vector.shape_cast %27 : vector<1x1x64xf32> to vector<1x64xf32>
    %29 = vector.shape_cast %26 : vector<1x64xf32> to vector<1x1x64xf32>
    tpu.vector_store %arg4[%c1_24, %c0_25, %c0_26], %29 {strides = array<i32>} : memref<3x1x64xf32, #tpu.memory_space<vmem>>, vector<1x1x64xf32>,
    %c2 = arith.constant 2 : index
    %c0_27 = arith.constant 0 : index
    %c0_28 = arith.constant 0 : index
    %30 = vector.load %arg1[%c2, %c0_27, %c0_28] : memref<3x1x64xf32, #tpu.memory_space<vmem>>, vector<1x1x64xf32>
    %31 = vector.shape_cast %30 : vector<1x1x64xf32> to vector<1x64xf32>
    %cst_29 = arith.constant dense<0.000000e+00> : vector<64xf32>
    %32 = vector.multi_reduction <add>, %31, %cst_29 [0] : vector<1x64xf32> to vector<64xf32>
    %33 = vector.shape_cast %32 : vector<64xf32> to vector<1x64xf32>
    %cst_30 = arith.constant 1.000000e+00 : f32
    %34 = vector.broadcast %cst_30 : f32 to vector<1x64xf32>
    %35 = arith.divf %33, %34 : vector<1x64xf32>
    %c2_31 = arith.constant 2 : index
    %c0_32 = arith.constant 0 : index
    %c0_33 = arith.constant 0 : index
    %36 = vector.load %arg2[%c2_31, %c0_32, %c0_33] : memref<3x64x64xf32, #tpu.memory_space<vmem>>, vector<1x64x64xf32>
    %37 = vector.shape_cast %36 : vector<1x64x64xf32> to vector<64x64xf32>
    %cst_34 = arith.constant dense<0.000000e+00> : vector<1x64xf32>
    %38 = tpu.matmul %35, %37, %cst_34 {dimension_numbers = #tpu.dot_dimension_numbers<[1], [0], [0], [1], [0, 0, 1, 1], [], []>} : vector<1x64xf32>, vector<64x64xf32>, vector<1x64xf32> -> vector<1x64xf32>
    %c2_35 = arith.constant 2 : index
    %c0_36 = arith.constant 0 : index
    %c0_37 = arith.constant 0 : index
    %39 = vector.load %arg3[%c2_35, %c0_36, %c0_37] : memref<3x1x64xf32, #tpu.memory_space<vmem>>, vector<1x1x64xf32>
    %40 = vector.shape_cast %39 : vector<1x1x64xf32> to vector<1x64xf32>
    %41 = arith.addf %38, %40 : vector<1x64xf32>
    %c2_38 = arith.constant 2 : index
    %c0_39 = arith.constant 0 : index
    %c0_40 = arith.constant 0 : index
    %42 = vector.load %arg4[%c2_38, %c0_39, %c0_40] : memref<3x1x64xf32, #tpu.memory_space<vmem>>, vector<1x1x64xf32>
    %43 = vector.shape_cast %42 : vector<1x1x64xf32> to vector<1x64xf32>
    %44 = vector.shape_cast %41 : vector<1x64xf32> to vector<1x1x64xf32>
    tpu.vector_store %arg4[%c2_38, %c0_39, %c0_40], %44 {strides = array<i32>} : memref<3x1x64xf32, #tpu.memory_space<vmem>>, vector<1x1x64xf32>,
    return
  }
  func.func @transform_0(%arg0: i32) -> (i32, i32, i32) {
    %c0_i32 = arith.constant 0 : i32
    %c0_i32_0 = arith.constant 0 : i32
    %c0_i32_1 = arith.constant 0 : i32
    %c0_i32_2 = arith.constant 0 : i32
    return %c0_i32, %c0_i32_0, %c0_i32_1 : i32, i32, i32
  }
  func.func @transform_1(%arg0: i32) -> (i32, i32, i32) {
    %c0_i32 = arith.constant 0 : i32
    %c0_i32_0 = arith.constant 0 : i32
    %c0_i32_1 = arith.constant 0 : i32
    %c0_i32_2 = arith.constant 0 : i32
    return %c0_i32, %c0_i32_0, %c0_i32_1 : i32, i32, i32
  }
  func.func @transform_2(%arg0: i32) -> (i32, i32, i32) {
    %c0_i32 = arith.constant 0 : i32
    %c0_i32_0 = arith.constant 0 : i32
    %c0_i32_1 = arith.constant 0 : i32
    %c0_i32_2 = arith.constant 0 : i32
    return %c0_i32, %c0_i32_0, %c0_i32_1 : i32, i32, i32
  }
  func.func @transform_3(%arg0: i32) -> (i32, i32, i32) {
    %c0_i32 = arith.constant 0 : i32
    %c0_i32_0 = arith.constant 0 : i32
    %c0_i32_1 = arith.constant 0 : i32
    %c0_i32_2 = arith.constant 0 : i32
    return %c0_i32, %c0_i32_0, %c0_i32_1 : i32, i32, i32
  }
}

</mosaic_0001>

<bundles_post_ra>
// kernel: curlnet_forward.6
= control target key start
LH: loop header
LB: loop body
LE: loop exit
PB: predicated region body
PF: predicated region fallthrough
CT: control target
= control target key end

     0   :  { %s1383_s12 = smov 0   ;;  %s1675_s0 = inlined_call_operand.vmem [shape: bf16[4096,27], index: 0, kind: input, shape index: {}]   ;;  %s1676_s1 = inlined_call_operand.vmem [shape: bf16[27,64], index: 1, kind: input, shape index: {}]   ;;  %s1677_s2 = inlined_call_operand.vmem [shape: f32[1,64], index: 2, kind: input, shape index: {}]   ;;  %s1678_s3 = inlined_call_operand.vmem [shape: f32[4096,64], index: 3, kind: output, shape index: {}]  }
   0x1 LB: > { %s1127_s13 = sadd.s32 4294967295, %s1360_s12   ;;  %p1131_p0 = scmp.ge.s32.totalorder %s1360_s12, 1  ;;  %s1360_s12 = sphi %s1383_s12, %s13_s12  }
   0x2   : > { %p138_p1 = scmp.lt.s32.totalorder %s1360_s12, 9 }
   0x4   : > { %p139_p2 = pnand %p1131_p0, %p138_p1 }
   0x5   : > { %s1132_s16 = sshll.u32 (!%p139_p2), %s1127_s13, 6 }
   0x6   : > { %142 = sbr.rel (%p139_p2) target bundleno = 286 (0x11e), region = 32  ;;  %p163_p3 = scmp.lt.s32.totalorder (!%p139_p2), %s1132_s16, 511 }
   0xb   : > { %v1320_v0 = vld [vmem:[%s1676_s1 + $0x8] sm:$0x3f]   ;;  %vm518_vm0 = vcmask 1044480   ;;  %vm519_vm1 = vcmask 1045504   ;;  %v1362_v1 = vmov 65535   ;;  %v1321_v5 = vld [vmem:[%s1676_s1] sm:$0xff]  }
   0xc   : > { %v520_v2 = vsel %vm518_vm0, 4294967295, %v1362_v1  ;;  %s1680_s16 = smov (!%p163_p3, %s1132_s16), 511  ;;  %vm421_vm2 = vcmask 220160   ;;  %v1472_v38 = vld [vmem:[%s1677_s2] ss:$0 sm:$0xff]  ;;  %vm1006_vm3 = vcmask 523264  }
   0xd   : > { %v521_v3 = vsel %vm519_vm1, %v520_v2, 0  ;;  %s1133_s19 = sshll.u32 %s1680_s16, 2  ;;  %s1135_s25 = sshll.u32 %s1680_s16, 3 }
   0xe   : > { %v523_v4 = vand.u32 %v1320_v0, %v521_v3  ;;  %s1403_s22 = scalar_lea.vmem %s1675_s0, %s1133_s19  ;;  %s1480_s28 = scalar_lea.vmem %s1678_s3, %s1135_s25 }
   0xf   : > { %v1322_v6 = vld [vmem:[%s1403_s22] sm:$0xff]   ;;  %v1324_v8 = vld [vmem:[%s1403_s22 + $0x8] sm:$0xff]   ;;  %v1326_v10 = vld [vmem:[%s1403_s22 + $0x10] sm:$0xff]  }
  0x10   : > { %1239 = vmatprep.subr.bf16.mxu0 %v523_v4  ;;  %1307 = vmatprep.subr.bf16.mxu1 %v523_v4  ;;  %v1323_v7 = vld [vmem:[%s1403_s22 + $0x80] sm:$0xff]   ;;  %v1325_v9 = vld [vmem:[%s1403_s22 + $0x88] sm:$0xff]   ;;  %v1327_v11 = vld [vmem:[%s1403_s22 + $0x90] sm:$0xff]  }
  0x11   : > { %1240 = vmatpush3.bf16.msra.mxu0 %v523_v4  ;;  %1309 = vmatpush3.bf16.msra.mxu1 %v523_v4  ;;  %v1328_v12 = vld [vmem:[%s1403_s22 + $0x18] sm:$0xff]   ;;  %v1330_v14 = vld [vmem:[%s1403_s22 + $0x20] sm:$0xff]   ;;  %v1332_v16 = vld [vmem:[%s1403_s22 + $0x28] sm:$0xff]  }
  0x12   : > { %1241 = vmatprep.subr.bf16.mxu0 %v1321_v5  ;;  %1308 = vmatprep.subr.bf16.mxu1 %v1321_v5  ;;  %v1329_v13 = vld [vmem:[%s1403_s22 + $0x98] sm:$0xff]   ;;  %v1331_v15 = vld [vmem:[%s1403_s22 + $0xa0] sm:$0xff]   ;;  %v1333_v17 = vld [vmem:[%s1403_s22 + $0xa8] sm:$0xff]  }
  0x13   : > { %1243 = vmatprep.mubr.msk.bf16.mxu0 %vm421_vm2, %v1322_v6  ;;  %1275 = vmatprep.mubr.msk.bf16.mxu1 %vm421_vm2, %v1323_v7  ;;  %v1334_v18 = vld [vmem:[%s1403_s22 + $0x30] sm:$0xff]   ;;  %v1336_v20 = vld [vmem:[%s1403_s22 + $0x38] sm:$0xff]   ;;  %v1338_v22 = vld [vmem:[%s1403_s22 + $0x40] sm:$0xff]  }
  0x14   : > { %v1335_v19 = vld [vmem:[%s1403_s22 + $0xb0] sm:$0xff]   ;;  %v1337_v21 = vld [vmem:[%s1403_s22 + $0xb8] sm:$0xff]   ;;  %v1339_v23 = vld [vmem:[%s1403_s22 + $0xc0] sm:$0xff]  }
  0x15   : > { %1242 = vmatpush3.bf16.msra.mxu0 %v1321_v5  ;;  %1310 = vmatpush3.bf16.msra.mxu1 %v1321_v5  ;;  %v1340_v24 = vld [vmem:[%s1403_s22 + $0x48] sm:$0xff]   ;;  %v1342_v26 = vld [vmem:[%s1403_s22 + $0x50] sm:$0xff]   ;;  %v1344_v28 = vld [vmem:[%s1403_s22 + $0x58] sm:$0xff]  }
  0x16   : > { %v1341_v25 = vld [vmem:[%s1403_s22 + $0xc8] sm:$0xff]   ;;  %v1343_v27 = vld [vmem:[%s1403_s22 + $0xd0] sm:$0xff]   ;;  %v1345_v29 = vld [vmem:[%s1403_s22 + $0xd8] sm:$0xff]  }
  0x17   : > { %v1346_v30 = vld [vmem:[%s1403_s22 + $0x60] sm:$0xff]   ;;  %v1348_v32 = vld [vmem:[%s1403_s22 + $0x68] sm:$0xff]   ;;  %v1350_v34 = vld [vmem:[%s1403_s22 + $0x70] sm:$0xff]  }
  0x18   : > { %1244 = vmatmul.mubr.msk.bf16.vlgmr.msra.gmra.mxu0 %vm421_vm2, %v1324_v8  ;;  %1276 = vmatmul.mubr.msk.bf16.vlgmr.msra.gmra.mxu1 %vm421_vm2, %v1325_v9  ;;  %v1347_v31 = vld [vmem:[%s1403_s22 + $0xe0] sm:$0xff]   ;;  %v1349_v33 = vld [vmem:[%s1403_s22 + $0xe8] sm:$0xff]   ;;  %v1351_v35 = vld [vmem:[%s1403_s22 + $0xf0] sm:$0xff]  }
  0x19   : > { %1247 = vmatprep.mubr.msk.bf16.mxu0 %vm421_vm2, %v1326_v10  ;;  %1279 = vmatprep.mubr.msk.bf16.mxu1 %vm421_vm2, %v1327_v11  ;;  %v1352_v36 = vld [vmem:[%s1403_s22 + $0x78] sm:$0xff]  }
  0x1a   : > { %v1353_v37 = vld [vmem:[%s1403_s22 + $0xf8] sm:$0xff]  }
  0x20   : > { %1248 = vmatmul.mubr.msk.bf16.gmra.mxu0 %vm421_vm2, %v1328_v12  ;;  %1280 = vmatmul.mubr.msk.bf16.gmra.mxu1 %vm421_vm2, %v1329_v13 }
  0x21   : > { %1251 = vmatprep.mubr.msk.bf16.mxu0 %vm421_vm2, %v1330_v14  ;;  %1283 = vmatprep.mubr.msk.bf16.mxu1 %vm421_vm2, %v1331_v15 }
  0x28   : > { %1252 = vmatmul.mubr.msk.bf16.gmra.mxu0 %vm421_vm2, %v1332_v16  ;;  %1284 = vmatmul.mubr.msk.bf16.gmra.mxu1 %vm421_vm2, %v1333_v17 }
  0x29   : > { %1255 = vmatprep.mubr.msk.bf16.mxu0 %vm421_vm2, %v1334_v18  ;;  %1287 = vmatprep.mubr.msk.bf16.mxu1 %vm421_vm2, %v1335_v19 }
  0x30   : > { %1256 = vmatmul.mubr.msk.bf16.gmra.mxu0 %vm421_vm2, %v1336_v20  ;;  %1288 = vmatmul.mubr.msk.bf16.gmra.mxu1 %vm421_vm2, %v1337_v21 }
  0x31   : > { %1259 = vmatprep.mubr.msk.bf16.mxu0 %vm421_vm2, %v1338_v22  ;;  %1291 = vmatprep.mubr.msk.bf16.mxu1 %vm421_vm2, %v1339_v23 }
  0x38   : > { %1260 = vmatmul.mubr.msk.bf16.gmra.mxu0 %vm421_vm2, %v1340_v24  ;;  %1292 = vmatmul.mubr.msk.bf16.gmra.mxu1 %vm421_vm2, %v1341_v25 }
  0x39   : > { %1263 = vmatprep.mubr.msk.bf16.mxu0 %vm421_vm2, %v1342_v26  ;;  %1295 = vmatprep.mubr.msk.bf16.mxu1 %vm421_vm2, %v1343_v27 }
  0x40   : > { %1264 = vmatmul.mubr.msk.bf16.gmra.mxu0 %vm421_vm2, %v1344_v28  ;;  %1296 = vmatmul.mubr.msk.bf16.gmra.mxu1 %vm421_vm2, %v1345_v29 }
  0x41   : > { %1267 = vmatprep.mubr.msk.bf16.mxu0 %vm421_vm2, %v1346_v30  ;;  %1299 = vmatprep.mubr.msk.bf16.mxu1 %vm421_vm2, %v1347_v31 }
  0x48   : > { %1268 = vmatmul.mubr.msk.bf16.gmra.mxu0 %vm421_vm2, %v1348_v32  ;;  %1300 = vmatmul.mubr.msk.bf16.gmra.mxu1 %vm421_vm2, %v1349_v33 }
  0x49   : > { %1271 = vmatprep.mubr.msk.bf16.mxu0 %vm421_vm2, %v1350_v34  ;;  %1303 = vmatprep.mubr.msk.bf16.mxu1 %vm421_vm2, %v1351_v35 }
  0x50   : > { %1272 = vmatmul.mubr.msk.bf16.gmra.mxu0 %vm421_vm2, %v1352_v36  ;;  %1304 = vmatmul.mubr.msk.bf16.gmra.mxu1 %vm421_vm2, %v1353_v37 }
  0xd8   : > { %v1245_v39 = vpop.f32.mrf.mxu0  ;;  %v1277_v40 = vpop.f32.mrf.mxu1 }
  0xd9   : > { %v568_v41 = vadd.f32 %v1245_v39, %v1472_v38  ;;  %v696_v42 = vadd.f32 %v1277_v40, %v1472_v38 }
  0xda   : > { %v559_v43 = vpop.f32.mrf.mxu0  ;;  %v687_v44 = vpop.f32.mrf.mxu1 }
  0xdb   : > { %vm816_vm4 = vcmp.ge.f32.partialorder %v568_v41, 0.0  ;;  %v880_v45 = vmul.f32 0.01, %v568_v41  ;;  %vm848_vm5 = vcmp.ge.f32.partialorder %v696_v42, 0.0  ;;  %v912_v46 = vmul.f32 0.01, %v696_v42 }
  0xdc   : > { %v560_v47 = vadd.f32 %v1472_v38, %v559_v43  ;;  %v688_v48 = vadd.f32 %v1472_v38, %v687_v44  ;;  %v1246_v49 = vpop.f32.mrf.mxu0  ;;  %v1278_v50 = vpop.f32.mrf.mxu1 }
  0xdd   : > { %v944_v51 = vsel %vm816_vm4, %v568_v41, %v880_v45  ;;  %v976_v52 = vsel %vm848_vm5, %v696_v42, %v912_v46  ;;  %v571_v53 = vadd.f32 %v1246_v49, %v1472_v38  ;;  %v699_v54 = vadd.f32 %v1278_v50, %v1472_v38 }
  0xde   : > { %1009 = vst.msk [vmem:[%s1480_s28 + $0x10] sm:$0xff] %vm1006_vm3, %v944_v51  ;;  %1041 = vst.msk [vmem:[%s1480_s28 + $0x110] sm:$0xff] %vm1006_vm3, %v976_v52  ;;  %vm814_vm6 = vcmp.ge.f32.partialorder %v560_v47, 0.0  ;;  %v878_v55 = vmul.f32 0.01, %v560_v47  ;;  %vm846_vm7 = vcmp.ge.f32.partialorder %v688_v48, 0.0  ;;  %v562_v57 = vpop.f32.mrf.mxu0  ;;  %v690_v58 = vpop.f32.mrf.mxu1 }
  0xdf   : > { %v910_v56 = vmul.f32 0.01, %v688_v48  ;;  %vm817_vm8 = vcmp.ge.f32.partialorder %v571_v53, 0.0  ;;  %v881_v59 = vmul.f32 0.01, %v571_v53  ;;  %vm849_vm9 = vcmp.ge.f32.partialorder %v699_v54, 0.0 }
  0xe0   : > { %v913_v60 = vmul.f32 0.01, %v699_v54  ;;  %v942_v61 = vsel %vm814_vm6, %v560_v47, %v878_v55  ;;  %v563_v63 = vadd.f32 %v1472_v38, %v562_v57  ;;  %v691_v0 = vadd.f32 %v1472_v38, %v690_v58  ;;  %v1249_v1 = vpop.f32.mrf.mxu0  ;;  %v1281_v2 = vpop.f32.mrf.mxu1 }
  0xe1   : > { %v974_v62 = vsel %vm846_vm7, %v688_v48, %v910_v56  ;;  %1007 = vst.msk [vmem:[%s1480_s28] sm:$0xff] %vm1006_vm3, %v942_v61  ;;  %v945_v3 = vsel %vm817_vm8, %v571_v53, %v881_v59  ;;  %v584_v5 = vadd.f32 %v1249_v1, %v1472_v38  ;;  %v712_v6 = vadd.f32 %v1281_v2, %v1472_v38 }
  0xe2   : > { %1039 = vst.msk [vmem:[%s1480_s28 + $0x100] sm:$0xff] %vm1006_vm3, %v974_v62  ;;  %v977_v4 = vsel %vm849_vm9, %v699_v54, %v913_v60  ;;  %1010 = vst.msk [vmem:[%s1480_s28 + $0x18] sm:$0xff] %vm1006_vm3, %v945_v3  ;;  %vm815_vm10 = vcmp.ge.f32.partialorder %v563_v63, 0.0  ;;  %v879_v7 = vmul.f32 0.01, %v563_v63  ;;  %vm847_vm11 = vcmp.ge.f32.partialorder %v691_v0, 0.0  ;;  %v575_v9 = vpop.f32.mrf.mxu0  ;;  %v703_v10 = vpop.f32.mrf.mxu1 }
  0xe3   : > { %1042 = vst.msk [vmem:[%s1480_s28 + $0x118] sm:$0xff] %vm1006_vm3, %v977_v4  ;;  %v911_v8 = vmul.f32 0.01, %v691_v0  ;;  %vm820_vm12 = vcmp.ge.f32.partialorder %v584_v5, 0.0  ;;  %v884_v11 = vmul.f32 0.01, %v584_v5  ;;  %v576_v15 = vadd.f32 %v1472_v38, %v575_v9 }
  0xe4   : > { %vm852_vm13 = vcmp.ge.f32.partialorder %v712_v6, 0.0  ;;  %v916_v12 = vmul.f32 0.01, %v712_v6  ;;  %v943_v13 = vsel %vm815_vm10, %v563_v63, %v879_v7  ;;  %v704_v16 = vadd.f32 %v1472_v38, %v703_v10  ;;  %v1250_v17 = vpop.f32.mrf.mxu0  ;;  %v1282_v18 = vpop.f32.mrf.mxu1 }
  0xe5   : > { %v975_v14 = vsel %vm847_vm11, %v691_v0, %v911_v8  ;;  %1008 = vst.msk [vmem:[%s1480_s28 + $0x8] sm:$0xff] %vm1006_vm3, %v943_v13  ;;  %v948_v19 = vsel %vm820_vm12, %v584_v5, %v884_v11  ;;  %v587_v21 = vadd.f32 %v1250_v17, %v1472_v38  ;;  %v715_v22 = vadd.f32 %v1282_v18, %v1472_v38 }
  0xe6   : > { %1040 = vst.msk [vmem:[%s1480_s28 + $0x108] sm:$0xff] %vm1006_vm3, %v975_v14  ;;  %v980_v20 = vsel %vm852_vm13, %v712_v6, %v916_v12  ;;  %1013 = vst.msk [vmem:[%s1480_s28 + $0x30] sm:$0xff] %vm1006_vm3, %v948_v19  ;;  %vm818_vm14 = vcmp.ge.f32.partialorder %v576_v15, 0.0  ;;  %v882_v23 = vmul.f32 0.01, %v576_v15  ;;  %vm850_vm15 = vcmp.ge.f32.partialorder %v704_v16, 0.0  ;;  %v578_v25 = vpop.f32.mrf.mxu0  ;;  %v706_v26 = vpop.f32.mrf.mxu1 }
  0xe7   : > { %1045 = vst.msk [vmem:[%s1480_s28 + $0x130] sm:$0xff] %vm1006_vm3, %v980_v20  ;;  %v914_v24 = vmul.f32 0.01, %v704_v16  ;;  %vm821_vm0 = vcmp.ge.f32.partialorder %v587_v21, 0.0  ;;  %v885_v27 = vmul.f32 0.01, %v587_v21  ;;  %v579_v31 = vadd.f32 %v1472_v38, %v578_v25 }
  0xe8   : > { %vm853_vm1 = vcmp.ge.f32.partialorder %v715_v22, 0.0  ;;  %v917_v28 = vmul.f32 0.01, %v715_v22  ;;  %v946_v29 = vsel %vm818_vm14, %v576_v15, %v882_v23  ;;  %v707_v32 = vadd.f32 %v1472_v38, %v706_v26  ;;  %v1253_v33 = vpop.f32.mrf.mxu0  ;;  %v1285_v34 = vpop.f32.mrf.mxu1 }
  0xe9   : > { %v978_v30 = vsel %vm850_vm15, %v704_v16, %v914_v24  ;;  %1011 = vst.msk [vmem:[%s1480_s28 + $0x20] sm:$0xff] %vm1006_vm3, %v946_v29  ;;  %v949_v35 = vsel %vm821_vm0, %v587_v21, %v885_v27  ;;  %v600_v37 = vadd.f32 %v1253_v33, %v1472_v38  ;;  %v728_v39 = vadd.f32 %v1285_v34, %v1472_v38 }
  0xea   : > { %1043 = vst.msk [vmem:[%s1480_s28 + $0x120] sm:$0xff] %vm1006_vm3, %v978_v30  ;;  %v981_v36 = vsel %vm853_vm1, %v715_v22, %v917_v28  ;;  %1014 = vst.msk [vmem:[%s1480_s28 + $0x38] sm:$0xff] %vm1006_vm3, %v949_v35  ;;  %vm819_vm2 = vcmp.ge.f32.partialorder %v579_v31, 0.0  ;;  %v883_v40 = vmul.f32 0.01, %v579_v31  ;;  %vm851_vm4 = vcmp.ge.f32.partialorder %v707_v32, 0.0  ;;  %v591_v42 = vpop.f32.mrf.mxu0  ;;  %v719_v43 = vpop.f32.mrf.mxu1 }
  0xeb   : > { %1046 = vst.msk [vmem:[%s1480_s28 + $0x138] sm:$0xff] %vm1006_vm3, %v981_v36  ;;  %v915_v41 = vmul.f32 0.01, %v707_v32  ;;  %vm824_vm5 = vcmp.ge.f32.partialorder %v600_v37, 0.0  ;;  %v888_v44 = vmul.f32 0.01, %v600_v37  ;;  %v592_v48 = vadd.f32 %v1472_v38, %v591_v42 }
  0xec   : > { %vm856_vm6 = vcmp.ge.f32.partialorder %v728_v39, 0.0  ;;  %v920_v45 = vmul.f32 0.01, %v728_v39  ;;  %v947_v46 = vsel %vm819_vm2, %v579_v31, %v883_v40  ;;  %v720_v49 = vadd.f32 %v1472_v38, %v719_v43  ;;  %v1254_v50 = vpop.f32.mrf.mxu0  ;;  %v1286_v51 = vpop.f32.mrf.mxu1 }
  0xed   : > { %v979_v47 = vsel %vm851_vm4, %v707_v32, %v915_v41  ;;  %1012 = vst.msk [vmem:[%s1480_s28 + $0x28] sm:$0xff] %vm1006_vm3, %v947_v46  ;;  %v952_v52 = vsel %vm824_vm5, %v600_v37, %v888_v44  ;;  %v603_v54 = vadd.f32 %v1254_v50, %v1472_v38  ;;  %v731_v55 = vadd.f32 %v1286_v51, %v1472_v38 }
  0xee   : > { %1044 = vst.msk [vmem:[%s1480_s28 + $0x128] sm:$0xff] %vm1006_vm3, %v979_v47  ;;  %v984_v53 = vsel %vm856_vm6, %v728_v39, %v920_v45  ;;  %1017 = vst.msk [vmem:[%s1480_s28 + $0x50] sm:$0xff] %vm1006_vm3, %v952_v52  ;;  %vm822_vm7 = vcmp.ge.f32.partialorder %v592_v48, 0.0  ;;  %v886_v56 = vmul.f32 0.01, %v592_v48  ;;  %vm854_vm8 = vcmp.ge.f32.partialorder %v720_v49, 0.0  ;;  %v594_v58 = vpop.f32.mrf.mxu0  ;;  %v722_v59 = vpop.f32.mrf.mxu1 }
  0xef   : > { %1049 = vst.msk [vmem:[%s1480_s28 + $0x150] sm:$0xff] %vm1006_vm3, %v984_v53  ;;  %v918_v57 = vmul.f32 0.01, %v720_v49  ;;  %vm825_vm9 = vcmp.ge.f32.partialorder %v603_v54, 0.0  ;;  %v889_v60 = vmul.f32 0.01, %v603_v54  ;;  %v595_v0 = vadd.f32 %v1472_v38, %v594_v58 }
  0xf0   : > { %vm857_vm10 = vcmp.ge.f32.partialorder %v731_v55, 0.0  ;;  %v921_v61 = vmul.f32 0.01, %v731_v55  ;;  %v950_v62 = vsel %vm822_vm7, %v592_v48, %v886_v56  ;;  %v723_v1 = vadd.f32 %v1472_v38, %v722_v59  ;;  %v1257_v2 = vpop.f32.mrf.mxu0  ;;  %v1289_v3 = vpop.f32.mrf.mxu1 }
  0xf1   : > { %v982_v63 = vsel %vm854_vm8, %v720_v49, %v918_v57  ;;  %1015 = vst.msk [vmem:[%s1480_s28 + $0x40] sm:$0xff] %vm1006_vm3, %v950_v62  ;;  %v953_v4 = vsel %vm825_vm9, %v603_v54, %v889_v60  ;;  %v616_v6 = vadd.f32 %v1257_v2, %v1472_v38  ;;  %v744_v7 = vadd.f32 %v1289_v3, %v1472_v38 }
  0xf2   : > { %1047 = vst.msk [vmem:[%s1480_s28 + $0x140] sm:$0xff] %vm1006_vm3, %v982_v63  ;;  %v985_v5 = vsel %vm857_vm10, %v731_v55, %v921_v61  ;;  %1018 = vst.msk [vmem:[%s1480_s28 + $0x58] sm:$0xff] %vm1006_vm3, %v953_v4  ;;  %vm823_vm11 = vcmp.ge.f32.partialorder %v595_v0, 0.0  ;;  %v887_v8 = vmul.f32 0.01, %v595_v0  ;;  %vm855_vm12 = vcmp.ge.f32.partialorder %v723_v1, 0.0  ;;  %v607_v10 = vpop.f32.mrf.mxu0  ;;  %v735_v11 = vpop.f32.mrf.mxu1 }
  0xf3   : > { %1050 = vst.msk [vmem:[%s1480_s28 + $0x158] sm:$0xff] %vm1006_vm3, %v985_v5  ;;  %v919_v9 = vmul.f32 0.01, %v723_v1  ;;  %vm828_vm13 = vcmp.ge.f32.partialorder %v616_v6, 0.0  ;;  %v892_v12 = vmul.f32 0.01, %v616_v6  ;;  %v608_v16 = vadd.f32 %v1472_v38, %v607_v10 }
  0xf4   : > { %vm860_vm14 = vcmp.ge.f32.partialorder %v744_v7, 0.0  ;;  %v924_v13 = vmul.f32 0.01, %v744_v7  ;;  %v951_v14 = vsel %vm823_vm11, %v595_v0, %v887_v8  ;;  %v736_v17 = vadd.f32 %v1472_v38, %v735_v11  ;;  %v1258_v18 = vpop.f32.mrf.mxu0  ;;  %v1290_v19 = vpop.f32.mrf.mxu1 }
  0xf5   : > { %v983_v15 = vsel %vm855_vm12, %v723_v1, %v919_v9  ;;  %1016 = vst.msk [vmem:[%s1480_s28 + $0x48] sm:$0xff] %vm1006_vm3, %v951_v14  ;;  %v956_v20 = vsel %vm828_vm13, %v616_v6, %v892_v12  ;;  %v619_v22 = vadd.f32 %v1258_v18, %v1472_v38  ;;  %v747_v23 = vadd.f32 %v1290_v19, %v1472_v38 }
  0xf6   : > { %1048 = vst.msk [vmem:[%s1480_s28 + $0x148] sm:$0xff] %vm1006_vm3, %v983_v15  ;;  %v988_v21 = vsel %vm860_vm14, %v744_v7, %v924_v13  ;;  %1021 = vst.msk [vmem:[%s1480_s28 + $0x70] sm:$0xff] %vm1006_vm3, %v956_v20  ;;  %vm826_vm15 = vcmp.ge.f32.partialorder %v608_v16, 0.0  ;;  %v890_v24 = vmul.f32 0.01, %v608_v16  ;;  %vm858_vm0 = vcmp.ge.f32.partialorder %v736_v17, 0.0  ;;  %v610_v26 = vpop.f32.mrf.mxu0  ;;  %v738_v27 = vpop.f32.mrf.mxu1 }
  0xf7   : > { %1053 = vst.msk [vmem:[%s1480_s28 + $0x170] sm:$0xff] %vm1006_vm3, %v988_v21  ;;  %v922_v25 = vmul.f32 0.01, %v736_v17  ;;  %vm829_vm1 = vcmp.ge.f32.partialorder %v619_v22, 0.0  ;;  %v893_v28 = vmul.f32 0.01, %v619_v22  ;;  %v611_v32 = vadd.f32 %v1472_v38, %v610_v26 }
  0xf8   : > { %vm861_vm2 = vcmp.ge.f32.partialorder %v747_v23, 0.0  ;;  %v925_v29 = vmul.f32 0.01, %v747_v23  ;;  %v954_v30 = vsel %vm826_vm15, %v608_v16, %v890_v24  ;;  %v739_v33 = vadd.f32 %v1472_v38, %v738_v27  ;;  %v1261_v34 = vpop.f32.mrf.mxu0  ;;  %v1293_v35 = vpop.f32.mrf.mxu1 }
  0xf9   : > { %v986_v31 = vsel %vm858_vm0, %v736_v17, %v922_v25  ;;  %1019 = vst.msk [vmem:[%s1480_s28 + $0x60] sm:$0xff] %vm1006_vm3, %v954_v30  ;;  %v957_v36 = vsel %vm829_vm1, %v619_v22, %v893_v28  ;;  %v632_v39 = vadd.f32 %v1261_v34, %v1472_v38  ;;  %v760_v40 = vadd.f32 %v1293_v35, %v1472_v38 }
  0xfa   : > { %1051 = vst.msk [vmem:[%s1480_s28 + $0x160] sm:$0xff] %vm1006_vm3, %v986_v31  ;;  %v989_v37 = vsel %vm861_vm2, %v747_v23, %v925_v29  ;;  %1022 = vst.msk [vmem:[%s1480_s28 + $0x78] sm:$0xff] %vm1006_vm3, %v957_v36  ;;  %vm827_vm4 = vcmp.ge.f32.partialorder %v611_v32, 0.0  ;;  %v891_v41 = vmul.f32 0.01, %v611_v32  ;;  %vm859_vm5 = vcmp.ge.f32.partialorder %v739_v33, 0.0  ;;  %v623_v43 = vpop.f32.mrf.mxu0  ;;  %v751_v44 = vpop.f32.mrf.mxu1 }
  0xfb   : > { %1054 = vst.msk [vmem:[%s1480_s28 + $0x178] sm:$0xff] %vm1006_vm3, %v989_v37  ;;  %v923_v42 = vmul.f32 0.01, %v739_v33  ;;  %vm832_vm6 = vcmp.ge.f32.partialorder %v632_v39, 0.0  ;;  %v896_v45 = vmul.f32 0.01, %v632_v39  ;;  %v624_v49 = vadd.f32 %v1472_v38, %v623_v43 }
  0xfc   : > { %vm864_vm7 = vcmp.ge.f32.partialorder %v760_v40, 0.0  ;;  %v928_v46 = vmul.f32 0.01, %v760_v40  ;;  %v955_v47 = vsel %vm827_vm4, %v611_v32, %v891_v41  ;;  %v752_v50 = vadd.f32 %v1472_v38, %v751_v44  ;;  %v1262_v51 = vpop.f32.mrf.mxu0  ;;  %v1294_v52 = vpop.f32.mrf.mxu1 }
  0xfd   : > { %v987_v48 = vsel %vm859_vm5, %v739_v33, %v923_v42  ;;  %1020 = vst.msk [vmem:[%s1480_s28 + $0x68] sm:$0xff] %vm1006_vm3, %v955_v47  ;;  %v960_v53 = vsel %vm832_vm6, %v632_v39, %v896_v45  ;;  %v635_v55 = vadd.f32 %v1262_v51, %v1472_v38  ;;  %v763_v56 = vadd.f32 %v1294_v52, %v1472_v38 }
  0xfe   : > { %1052 = vst.msk [vmem:[%s1480_s28 + $0x168] sm:$0xff] %vm1006_vm3, %v987_v48  ;;  %v992_v54 = vsel %vm864_vm7, %v760_v40, %v928_v46  ;;  %1025 = vst.msk [vmem:[%s1480_s28 + $0x90] sm:$0xff] %vm1006_vm3, %v960_v53  ;;  %vm830_vm8 = vcmp.ge.f32.partialorder %v624_v49, 0.0  ;;  %v894_v57 = vmul.f32 0.01, %v624_v49  ;;  %vm862_vm9 = vcmp.ge.f32.partialorder %v752_v50, 0.0  ;;  %v626_v59 = vpop.f32.mrf.mxu0  ;;  %v754_v60 = vpop.f32.mrf.mxu1 }
  0xff   : > { %1057 = vst.msk [vmem:[%s1480_s28 + $0x190] sm:$0xff] %vm1006_vm3, %v992_v54  ;;  %v926_v58 = vmul.f32 0.01, %v752_v50  ;;  %vm833_vm10 = vcmp.ge.f32.partialorder %v635_v55, 0.0  ;;  %v897_v61 = vmul.f32 0.01, %v635_v55  ;;  %v627_v1 = vadd.f32 %v1472_v38, %v626_v59 }
 0x100   : > { %vm865_vm11 = vcmp.ge.f32.partialorder %v763_v56, 0.0  ;;  %v929_v62 = vmul.f32 0.01, %v763_v56  ;;  %v958_v63 = vsel %vm830_vm8, %v624_v49, %v894_v57  ;;  %v755_v2 = vadd.f32 %v1472_v38, %v754_v60  ;;  %v1265_v3 = vpop.f32.mrf.mxu0  ;;  %v1297_v4 = vpop.f32.mrf.mxu1 }
 0x101   : > { %v990_v0 = vsel %vm862_vm9, %v752_v50, %v926_v58  ;;  %1023 = vst.msk [vmem:[%s1480_s28 + $0x80] sm:$0xff] %vm1006_vm3, %v958_v63  ;;  %v961_v5 = vsel %vm833_vm10, %v635_v55, %v897_v61  ;;  %v648_v7 = vadd.f32 %v1265_v3, %v1472_v38  ;;  %v776_v8 = vadd.f32 %v1297_v4, %v1472_v38 }
 0x102   : > { %1055 = vst.msk [vmem:[%s1480_s28 + $0x180] sm:$0xff] %vm1006_vm3, %v990_v0  ;;  %v993_v6 = vsel %vm865_vm11, %v763_v56, %v929_v62  ;;  %1026 = vst.msk [vmem:[%s1480_s28 + $0x98] sm:$0xff] %vm1006_vm3, %v961_v5  ;;  %vm831_vm12 = vcmp.ge.f32.partialorder %v627_v1, 0.0  ;;  %v895_v9 = vmul.f32 0.01, %v627_v1  ;;  %vm863_vm13 = vcmp.ge.f32.partialorder %v755_v2, 0.0  ;;  %v639_v11 = vpop.f32.mrf.mxu0  ;;  %v767_v12 = vpop.f32.mrf.mxu1 }
 0x103   : > { %1058 = vst.msk [vmem:[%s1480_s28 + $0x198] sm:$0xff] %vm1006_vm3, %v993_v6  ;;  %v927_v10 = vmul.f32 0.01, %v755_v2  ;;  %vm836_vm14 = vcmp.ge.f32.partialorder %v648_v7, 0.0  ;;  %v900_v13 = vmul.f32 0.01, %v648_v7  ;;  %v640_v17 = vadd.f32 %v1472_v38, %v639_v11 }
 0x104   : > { %vm868_vm15 = vcmp.ge.f32.partialorder %v776_v8, 0.0  ;;  %v932_v14 = vmul.f32 0.01, %v776_v8  ;;  %v959_v15 = vsel %vm831_vm12, %v627_v1, %v895_v9  ;;  %v768_v18 = vadd.f32 %v1472_v38, %v767_v12  ;;  %v1266_v19 = vpop.f32.mrf.mxu0  ;;  %v1298_v20 = vpop.f32.mrf.mxu1 }
 0x105   : > { %v991_v16 = vsel %vm863_vm13, %v755_v2, %v927_v10  ;;  %1024 = vst.msk [vmem:[%s1480_s28 + $0x88] sm:$0xff] %vm1006_vm3, %v959_v15  ;;  %v964_v21 = vsel %vm836_vm14, %v648_v7, %v900_v13  ;;  %v651_v23 = vadd.f32 %v1266_v19, %v1472_v38  ;;  %v779_v24 = vadd.f32 %v1298_v20, %v1472_v38 }
 0x106   : > { %1056 = vst.msk [vmem:[%s1480_s28 + $0x188] sm:$0xff] %vm1006_vm3, %v991_v16  ;;  %v996_v22 = vsel %vm868_vm15, %v776_v8, %v932_v14  ;;  %1029 = vst.msk [vmem:[%s1480_s28 + $0xb0] sm:$0xff] %vm1006_vm3, %v964_v21  ;;  %vm834_vm0 = vcmp.ge.f32.partialorder %v640_v17, 0.0  ;;  %v898_v25 = vmul.f32 0.01, %v640_v17  ;;  %vm866_vm1 = vcmp.ge.f32.partialorder %v768_v18, 0.0  ;;  %v642_v27 = vpop.f32.mrf.mxu0  ;;  %v770_v28 = vpop.f32.mrf.mxu1 }
 0x107   : > { %1061 = vst.msk [vmem:[%s1480_s28 + $0x1b0] sm:$0xff] %vm1006_vm3, %v996_v22  ;;  %v930_v26 = vmul.f32 0.01, %v768_v18  ;;  %vm837_vm2 = vcmp.ge.f32.partialorder %v651_v23, 0.0  ;;  %v901_v29 = vmul.f32 0.01, %v651_v23  ;;  %v643_v33 = vadd.f32 %v1472_v38, %v642_v27 }
 0x108   : > { %vm869_vm4 = vcmp.ge.f32.partialorder %v779_v24, 0.0  ;;  %v933_v30 = vmul.f32 0.01, %v779_v24  ;;  %v962_v31 = vsel %vm834_vm0, %v640_v17, %v898_v25  ;;  %v771_v34 = vadd.f32 %v1472_v38, %v770_v28  ;;  %v1269_v35 = vpop.f32.mrf.mxu0  ;;  %v1301_v36 = vpop.f32.mrf.mxu1 }
 0x109   : > { %v994_v32 = vsel %vm866_vm1, %v768_v18, %v930_v26  ;;  %1027 = vst.msk [vmem:[%s1480_s28 + $0xa0] sm:$0xff] %vm1006_vm3, %v962_v31  ;;  %v965_v37 = vsel %vm837_vm2, %v651_v23, %v901_v29  ;;  %v664_v40 = vadd.f32 %v1269_v35, %v1472_v38  ;;  %v792_v41 = vadd.f32 %v1301_v36, %v1472_v38 }
 0x10a   : > { %1059 = vst.msk [vmem:[%s1480_s28 + $0x1a0] sm:$0xff] %vm1006_vm3, %v994_v32  ;;  %v997_v39 = vsel %vm869_vm4, %v779_v24, %v933_v30  ;;  %1030 = vst.msk [vmem:[%s1480_s28 + $0xb8] sm:$0xff] %vm1006_vm3, %v965_v37  ;;  %vm835_vm5 = vcmp.ge.f32.partialorder %v643_v33, 0.0  ;;  %v899_v42 = vmul.f32 0.01, %v643_v33  ;;  %vm867_vm6 = vcmp.ge.f32.partialorder %v771_v34, 0.0  ;;  %v655_v44 = vpop.f32.mrf.mxu0  ;;  %v783_v45 = vpop.f32.mrf.mxu1 }
 0x10b   : > { %1062 = vst.msk [vmem:[%s1480_s28 + $0x1b8] sm:$0xff] %vm1006_vm3, %v997_v39  ;;  %v931_v43 = vmul.f32 0.01, %v771_v34  ;;  %vm840_vm7 = vcmp.ge.f32.partialorder %v664_v40, 0.0  ;;  %v904_v46 = vmul.f32 0.01, %v664_v40  ;;  %v656_v50 = vadd.f32 %v1472_v38, %v655_v44 }
 0x10c   : > { %vm872_vm8 = vcmp.ge.f32.partialorder %v792_v41, 0.0  ;;  %v936_v47 = vmul.f32 0.01, %v792_v41  ;;  %v963_v48 = vsel %vm835_vm5, %v643_v33, %v899_v42  ;;  %v784_v51 = vadd.f32 %v1472_v38, %v783_v45  ;;  %v1270_v52 = vpop.f32.mrf.mxu0  ;;  %v1302_v53 = vpop.f32.mrf.mxu1 }
 0x10d   : > { %v995_v49 = vsel %vm867_vm6, %v771_v34, %v931_v43  ;;  %1028 = vst.msk [vmem:[%s1480_s28 + $0xa8] sm:$0xff] %vm1006_vm3, %v963_v48  ;;  %v968_v54 = vsel %vm840_vm7, %v664_v40, %v904_v46  ;;  %v667_v56 = vadd.f32 %v1270_v52, %v1472_v38  ;;  %v795_v57 = vadd.f32 %v1302_v53, %v1472_v38 }
 0x10e   : > { %1060 = vst.msk [vmem:[%s1480_s28 + $0x1a8] sm:$0xff] %vm1006_vm3, %v995_v49  ;;  %v1000_v55 = vsel %vm872_vm8, %v792_v41, %v936_v47  ;;  %1033 = vst.msk [vmem:[%s1480_s28 + $0xd0] sm:$0xff] %vm1006_vm3, %v968_v54  ;;  %vm838_vm9 = vcmp.ge.f32.partialorder %v656_v50, 0.0  ;;  %v902_v58 = vmul.f32 0.01, %v656_v50  ;;  %vm870_vm10 = vcmp.ge.f32.partialorder %v784_v51, 0.0  ;;  %v658_v60 = vpop.f32.mrf.mxu0  ;;  %v786_v61 = vpop.f32.mrf.mxu1 }
 0x10f   : > { %1065 = vst.msk [vmem:[%s1480_s28 + $0x1d0] sm:$0xff] %vm1006_vm3, %v1000_v55  ;;  %v934_v59 = vmul.f32 0.01, %v784_v51  ;;  %vm841_vm11 = vcmp.ge.f32.partialorder %v667_v56, 0.0  ;;  %v905_v62 = vmul.f32 0.01, %v667_v56  ;;  %v659_v2 = vadd.f32 %v1472_v38, %v658_v60 }
 0x110   : > { %vm873_vm12 = vcmp.ge.f32.partialorder %v795_v57, 0.0  ;;  %v937_v63 = vmul.f32 0.01, %v795_v57  ;;  %v966_v0 = vsel %vm838_vm9, %v656_v50, %v902_v58  ;;  %v787_v3 = vadd.f32 %v1472_v38, %v786_v61  ;;  %v1273_v4 = vpop.f32.mrf.mxu0  ;;  %v1305_v5 = vpop.f32.mrf.mxu1 }
 0x111   : > { %v998_v1 = vsel %vm870_vm10, %v784_v51, %v934_v59  ;;  %1031 = vst.msk [vmem:[%s1480_s28 + $0xc0] sm:$0xff] %vm1006_vm3, %v966_v0  ;;  %v969_v6 = vsel %vm841_vm11, %v667_v56, %v905_v62  ;;  %v680_v8 = vadd.f32 %v1273_v4, %v1472_v38  ;;  %v808_v9 = vadd.f32 %v1305_v5, %v1472_v38 }
 0x112   : > { %1063 = vst.msk [vmem:[%s1480_s28 + $0x1c0] sm:$0xff] %vm1006_vm3, %v998_v1  ;;  %v1001_v7 = vsel %vm873_vm12, %v795_v57, %v937_v63  ;;  %1034 = vst.msk [vmem:[%s1480_s28 + $0xd8] sm:$0xff] %vm1006_vm3, %v969_v6  ;;  %vm839_vm13 = vcmp.ge.f32.partialorder %v659_v2, 0.0  ;;  %v903_v10 = vmul.f32 0.01, %v659_v2  ;;  %vm871_vm14 = vcmp.ge.f32.partialorder %v787_v3, 0.0  ;;  %v671_v12 = vpop.f32.mrf.mxu0  ;;  %v799_v13 = vpop.f32.mrf.mxu1 }
 0x113   : > { %1066 = vst.msk [vmem:[%s1480_s28 + $0x1d8] sm:$0xff] %vm1006_vm3, %v1001_v7  ;;  %v935_v11 = vmul.f32 0.01, %v787_v3  ;;  %vm844_vm15 = vcmp.ge.f32.partialorder %v680_v8, 0.0  ;;  %v908_v14 = vmul.f32 0.01, %v680_v8  ;;  %v672_v18 = vadd.f32 %v1472_v38, %v671_v12 }
 0x114   : > { %vm876_vm0 = vcmp.ge.f32.partialorder %v808_v9, 0.0  ;;  %v940_v15 = vmul.f32 0.01, %v808_v9  ;;  %v967_v16 = vsel %vm839_vm13, %v659_v2, %v903_v10  ;;  %v800_v19 = vadd.f32 %v1472_v38, %v799_v13  ;;  %v1274_v20 = vpop.f32.mrf.mxu0  ;;  %v1306_v21 = vpop.f32.mrf.mxu1 }
 0x115   : > { %v999_v17 = vsel %vm871_vm14, %v787_v3, %v935_v11  ;;  %1032 = vst.msk [vmem:[%s1480_s28 + $0xc8] sm:$0xff] %vm1006_vm3, %v967_v16  ;;  %v972_v22 = vsel %vm844_vm15, %v680_v8, %v908_v14  ;;  %v683_v24 = vadd.f32 %v1274_v20, %v1472_v38  ;;  %v811_v25 = vadd.f32 %v1306_v21, %v1472_v38 }
 0x116   : > { %1064 = vst.msk [vmem:[%s1480_s28 + $0x1c8] sm:$0xff] %vm1006_vm3, %v999_v17  ;;  %v1004_v23 = vsel %vm876_vm0, %v808_v9, %v940_v15  ;;  %1037 = vst.msk [vmem:[%s1480_s28 + $0xf0] sm:$0xff] %vm1006_vm3, %v972_v22  ;;  %vm842_vm1 = vcmp.ge.f32.partialorder %v672_v18, 0.0  ;;  %v906_v26 = vmul.f32 0.01, %v672_v18  ;;  %vm874_vm2 = vcmp.ge.f32.partialorder %v800_v19, 0.0  ;;  %v674_v28 = vpop.f32.mrf.mxu0  ;;  %v802_v29 = vpop.f32.mrf.mxu1 }
 0x117   : > { %1069 = vst.msk [vmem:[%s1480_s28 + $0x1f0] sm:$0xff] %vm1006_vm3, %v1004_v23  ;;  %v938_v27 = vmul.f32 0.01, %v800_v19  ;;  %vm845_vm4 = vcmp.ge.f32.partialorder %v683_v24, 0.0  ;;  %v909_v30 = vmul.f32 0.01, %v683_v24  ;;  %v675_v34 = vadd.f32 %v1472_v38, %v674_v28 }
 0x118   : > { %vm877_vm5 = vcmp.ge.f32.partialorder %v811_v25, 0.0  ;;  %v941_v31 = vmul.f32 0.01, %v811_v25  ;;  %v970_v32 = vsel %vm842_vm1, %v672_v18, %v906_v26  ;;  %v803_v35 = vadd.f32 %v1472_v38, %v802_v29 }
 0x119   : > { %v1002_v33 = vsel %vm874_vm2, %v800_v19, %v938_v27  ;;  %1035 = vst.msk [vmem:[%s1480_s28 + $0xe0] sm:$0xff] %vm1006_vm3, %v970_v32  ;;  %v973_v36 = vsel %vm845_vm4, %v683_v24, %v909_v30  ;;  %vm843_vm6 = vcmp.ge.f32.partialorder %v675_v34, 0.0  ;;  %v907_v39 = vmul.f32 0.01, %v675_v34 }
 0x11a   : > { %1067 = vst.msk [vmem:[%s1480_s28 + $0x1e0] sm:$0xff] %vm1006_vm3, %v1002_v33  ;;  %v1005_v37 = vsel %vm877_vm5, %v811_v25, %v941_v31  ;;  %1038 = vst.msk [vmem:[%s1480_s28 + $0xf8] sm:$0xff] %vm1006_vm3, %v973_v36  ;;  %vm875_vm7 = vcmp.ge.f32.partialorder %v803_v35, 0.0  ;;  %v939_v40 = vmul.f32 0.01, %v803_v35 }
 0x11b   : > { %1070 = vst.msk [vmem:[%s1480_s28 + $0x1f8] sm:$0xff] %vm1006_vm3, %v1005_v37  ;;  %v971_v41 = vsel %vm843_vm6, %v675_v34, %v907_v39 }
 0x11c   : > { %v1003_v42 = vsel %vm875_vm7, %v803_v35, %v939_v40  ;;  %1036 = vst.msk [vmem:[%s1480_s28 + $0xe8] sm:$0xff] %vm1006_vm3, %v971_v41 }
 0x11d   : > { %1068 = vst.msk [vmem:[%s1480_s28 + $0x1e8] sm:$0xff] %vm1006_vm3, %v1003_v42 }
 0x11e PF: > { %s13_s12 = sadd.s32 1, %s1360_s12  }
 0x11f   : > { %p10_p4 = scmp.ge.s32.totalorder %s13_s12, 10  }
 0x121   :  { %12 = sbr.rel (!%p10_p4) target bundleno = 1 (0x1), region = 62 }

// kernel: curlnet_forward.7
= control target key start
LH: loop header
LB: loop body
LE: loop exit
PB: predicated region body
PF: predicated region fallthrough
CT: control target
= control target key end

     0   :  { %s5088_s12 = smov 0   ;;  %s5090_s13 = smov 0   ;;  %s7998_s0 = inlined_call_operand.vmem [shape: bf16[4,256,576], index: 0, kind: input, shape index: {}]   ;;  %s7999_s1 = inlined_call_operand.vmem [shape: bf16[576,192], index: 1, kind: input, shape index: {}]   ;;  %s8000_s2 = inlined_call_operand.vmem [shape: f32[1,192], index: 2, kind: input, shape index: {}]   ;;  %s8001_s3 = inlined_call_operand.vmem [shape: f32[256,192], index: 3, kind: output, shape index: {}]  }
   0x1   :  { %s5092_s14 = smov 0  }
   0x2 LB: > { %s4061_s15 = sadd.s32 4294967295, %s5065_s14   ;;  %s5105_s16 = sadd.s32 1, %s5065_s14   ;;  %s5065_s14 = sphi %s5092_s14, %s8372_s14   ;;  %s5061_s13 = sphi %s5090_s13, %s8371_s13   ;;  %s5057_s12 = sphi %s5088_s12, %s8370_s12  }
   0x3   : > { %s17_s17 = ssub.s32 %s5065_s14, %s5105_s16  ;;  %s20_s18 = sadd.s32 1, %s5061_s13 }
   0x4   : > { %p18_p0 = scmp.eq.s32.totalorder %s17_s17, 0  ;;  %p27_p1 = scmp.ne.s32.totalorder %s5061_s13, %s5057_s12 }
   0x5   : > { %p28_p2 = scmp.eq.s32.totalorder %s5065_s14, 0  ;;  %p4064_p4 = scmp.ge.s32.totalorder %s5065_s14, 2 }
   0x6   : > { %s5114_s19 = scalar_select %p18_p0, %s5061_s13, %s20_s18  }
   0x7   : > { %p29_p3 = por %p28_p2, %p27_p1  ;;  %127 = sbr.rel (%p4064_p4) target bundleno = 123 (0x7b), region = 24 }
   0xc   : > { %130 = sbr.rel (!%p29_p3) target bundleno = 123 (0x7b), region = 28  ;;  %s132_s20 = sand.u32 (%p29_p3), 1, %s5061_s13  }
   0xd   : > { %s4612_s21 = smul.u32 (%p29_p3), 320, %s5065_s14 }
   0xe   : > { %s4611_s22 = smul.u32 (%p29_p3), 1280, %s132_s20 }
   0xf   : > { %s5122_s25 = scalar_lea.vmem (%p29_p3), %s7998_s0, %s4612_s21 }
  0x10   : > { %v153_v0 = vld [vmem:[%s5122_s25] sm:$0xff] (%p29_p3)  ;;  %v155_v1 = vld [vmem:[%s5122_s25 + $0x8] sm:$0xff] (%p29_p3)  ;;  %v157_v2 = vld [vmem:[%s5122_s25 + $0x14] sm:$0xff] (%p29_p3)  ;;  %s5127_s26 = scalar_lea.vmem (%p29_p3), [#allocation2], %s4611_s22 }
  0x11   : > { %154 = vst [vmem:[%s5127_s26] sm:$0xff] %v153_v0  ;;  %156 = vst [vmem:[%s5127_s26 + $0x8] sm:$0xff] %v155_v1  ;;  %v159_v3 = vld [vmem:[%s5122_s25 + $0x1c] sm:$0xff]  ;;  %v161_v4 = vld [vmem:[%s5122_s25 + $0x28] sm:$0xff] }
  0x12   : > { %158 = vst [vmem:[%s5127_s26 + $0x14] sm:$0xff] %v157_v2  ;;  %v163_v5 = vld [vmem:[%s5122_s25 + $0x30] sm:$0xff]  ;;  %160 = vst [vmem:[%s5127_s26 + $0x1c] sm:$0xff] %v159_v3  ;;  %v165_v6 = vld [vmem:[%s5122_s25 + $0x3c] sm:$0xff] }
  0x13   : > { %162 = vst [vmem:[%s5127_s26 + $0x28] sm:$0xff] %v161_v4  ;;  %164 = vst [vmem:[%s5127_s26 + $0x30] sm:$0xff] %v163_v5  ;;  %v167_v7 = vld [vmem:[%s5122_s25 + $0x44] sm:$0xff]  ;;  %v169_v8 = vld [vmem:[%s5122_s25 + $0x50] sm:$0xff] }
  0x14   : > { %166 = vst [vmem:[%s5127_s26 + $0x3c] sm:$0xff] %v165_v6  ;;  %168 = vst [vmem:[%s5127_s26 + $0x44] sm:$0xff] %v167_v7  ;;  %v171_v9 = vld [vmem:[%s5122_s25 + $0x58] sm:$0xff]  ;;  %v173_v10 = vld [vmem:[%s5122_s25 + $0x64] sm:$0xff] }
  0x15   : > { %170 = vst [vmem:[%s5127_s26 + $0x50] sm:$0xff] %v169_v8  ;;  %v175_v11 = vld [vmem:[%s5122_s25 + $0x6c] sm:$0xff]  ;;  %172 = vst [vmem:[%s5127_s26 + $0x58] sm:$0xff] %v171_v9  ;;  %v177_v12 = vld [vmem:[%s5122_s25 + $0x78] sm:$0xff] }
  0x16   : > { %174 = vst [vmem:[%s5127_s26 + $0x64] sm:$0xff] %v173_v10  ;;  %176 = vst [vmem:[%s5127_s26 + $0x6c] sm:$0xff] %v175_v11  ;;  %v179_v13 = vld [vmem:[%s5122_s25 + $0x80] sm:$0xff]  ;;  %v181_v14 = vld [vmem:[%s5122_s25 + $0x8c] sm:$0xff] }
  0x17   : > { %178 = vst [vmem:[%s5127_s26 + $0x78] sm:$0xff] %v177_v12  ;;  %180 = vst [vmem:[%s5127_s26 + $0x80] sm:$0xff] %v179_v13  ;;  %v183_v15 = vld [vmem:[%s5122_s25 + $0x94] sm:$0xff]  ;;  %v185_v16 = vld [vmem:[%s5122_s25 + $0xa0] sm:$0xff] }
  0x18   : > { %182 = vst [vmem:[%s5127_s26 + $0x8c] sm:$0xff] %v181_v14  ;;  %v187_v17 = vld [vmem:[%s5122_s25 + $0xa8] sm:$0xff]  ;;  %184 = vst [vmem:[%s5127_s26 + $0x94] sm:$0xff] %v183_v15  ;;  %v189_v18 = vld [vmem:[%s5122_s25 + $0xb4] sm:$0xff] }
  0x19   : > { %186 = vst [vmem:[%s5127_s26 + $0xa0] sm:$0xff] %v185_v16  ;;  %188 = vst [vmem:[%s5127_s26 + $0xa8] sm:$0xff] %v187_v17  ;;  %v191_v19 = vld [vmem:[%s5122_s25 + $0xbc] sm:$0xff]  ;;  %v193_v20 = vld [vmem:[%s5122_s25 + $0xc8] sm:$0xff] }
  0x1a   : > { %190 = vst [vmem:[%s5127_s26 + $0xb4] sm:$0xff] %v189_v18  ;;  %192 = vst [vmem:[%s5127_s26 + $0xbc] sm:$0xff] %v191_v19  ;;  %v195_v21 = vld [vmem:[%s5122_s25 + $0xd0] sm:$0xff]  ;;  %v197_v22 = vld [vmem:[%s5122_s25 + $0xdc] sm:$0xff] }
  0x1b   : > { %194 = vst [vmem:[%s5127_s26 + $0xc8] sm:$0xff] %v193_v20  ;;  %v199_v23 = vld [vmem:[%s5122_s25 + $0xe4] sm:$0xff]  ;;  %196 = vst [vmem:[%s5127_s26 + $0xd0] sm:$0xff] %v195_v21  ;;  %v201_v24 = vld [vmem:[%s5122_s25 + $0xf0] sm:$0xff] }
  0x1c   : > { %198 = vst [vmem:[%s5127_s26 + $0xdc] sm:$0xff] %v197_v22  ;;  %200 = vst [vmem:[%s5127_s26 + $0xe4] sm:$0xff] %v199_v23  ;;  %v203_v25 = vld [vmem:[%s5122_s25 + $0xf8] sm:$0xff]  ;;  %v205_v26 = vld [vmem:[%s5122_s25 + $0x104] sm:$0xff] }
  0x1d   : > { %202 = vst [vmem:[%s5127_s26 + $0xf0] sm:$0xff] %v201_v24  ;;  %204 = vst [vmem:[%s5127_s26 + $0xf8] sm:$0xff] %v203_v25  ;;  %v207_v27 = vld [vmem:[%s5122_s25 + $0x10c] sm:$0xff]  ;;  %v209_v28 = vld [vmem:[%s5122_s25 + $0x118] sm:$0xff] }
  0x1e   : > { %206 = vst [vmem:[%s5127_s26 + $0x104] sm:$0xff] %v205_v26  ;;  %v211_v29 = vld [vmem:[%s5122_s25 + $0x120] sm:$0xff]  ;;  %208 = vst [vmem:[%s5127_s26 + $0x10c] sm:$0xff] %v207_v27  ;;  %v213_v30 = vld [vmem:[%s5122_s25 + $0x12c] sm:$0xff] }
  0x1f   : > { %210 = vst [vmem:[%s5127_s26 + $0x118] sm:$0xff] %v209_v28  ;;  %212 = vst [vmem:[%s5127_s26 + $0x120] sm:$0xff] %v211_v29  ;;  %v215_v31 = vld [vmem:[%s5122_s25 + $0x134] sm:$0xff]  ;;  %v217_v32 = vld [vmem:[%s5122_s25 + $0x280] sm:$0xff] }
  0x20   : > { %214 = vst [vmem:[%s5127_s26 + $0x12c] sm:$0xff] %v213_v30  ;;  %216 = vst [vmem:[%s5127_s26 + $0x134] sm:$0xff] %v215_v31  ;;  %v219_v33 = vld [vmem:[%s5122_s25 + $0x288] sm:$0xff]  ;;  %v221_v34 = vld [vmem:[%s5122_s25 + $0x294] sm:$0xff] }
  0x21   : > { %218 = vst [vmem:[%s5127_s26 + $0x140] sm:$0xff] %v217_v32  ;;  %v223_v35 = vld [vmem:[%s5122_s25 + $0x29c] sm:$0xff]  ;;  %220 = vst [vmem:[%s5127_s26 + $0x148] sm:$0xff] %v219_v33  ;;  %v225_v36 = vld [vmem:[%s5122_s25 + $0x2a8] sm:$0xff] }
  0x22   : > { %222 = vst [vmem:[%s5127_s26 + $0x154] sm:$0xff] %v221_v34  ;;  %224 = vst [vmem:[%s5127_s26 + $0x15c] sm:$0xff] %v223_v35  ;;  %v227_v37 = vld [vmem:[%s5122_s25 + $0x2b0] sm:$0xff]  ;;  %v229_v38 = vld [vmem:[%s5122_s25 + $0x2bc] sm:$0xff] }
  0x23   : > { %226 = vst [vmem:[%s5127_s26 + $0x168] sm:$0xff] %v225_v36  ;;  %228 = vst [vmem:[%s5127_s26 + $0x170] sm:$0xff] %v227_v37  ;;  %v231_v39 = vld [vmem:[%s5122_s25 + $0x2c4] sm:$0xff]  ;;  %v233_v40 = vld [vmem:[%s5122_s25 + $0x2d0] sm:$0xff] }
  0x24   : > { %230 = vst [vmem:[%s5127_s26 + $0x17c] sm:$0xff] %v229_v38  ;;  %v235_v41 = vld [vmem:[%s5122_s25 + $0x2d8] sm:$0xff]  ;;  %232 = vst [vmem:[%s5127_s26 + $0x184] sm:$0xff] %v231_v39  ;;  %v237_v42 = vld [vmem:[%s5122_s25 + $0x2e4] sm:$0xff] }
  0x25   : > { %234 = vst [vmem:[%s5127_s26 + $0x190] sm:$0xff] %v233_v40  ;;  %236 = vst [vmem:[%s5127_s26 + $0x198] sm:$0xff] %v235_v41  ;;  %v239_v43 = vld [vmem:[%s5122_s25 + $0x2ec] sm:$0xff]  ;;  %v241_v44 = vld [vmem:[%s5122_s25 + $0x2f8] sm:$0xff] }
  0x26   : > { %238 = vst [vmem:[%s5127_s26 + $0x1a4] sm:$0xff] %v237_v42  ;;  %240 = vst [vmem:[%s5127_s26 + $0x1ac] sm:$0xff] %v239_v43  ;;  %v243_v45 = vld [vmem:[%s5122_s25 + $0x300] sm:$0xff]  ;;  %v245_v46 = vld [vmem:[%s5122_s25 + $0x30c] sm:$0xff] }
  0x27   : > { %242 = vst [vmem:[%s5127_s26 + $0x1b8] sm:$0xff] %v241_v44  ;;  %v247_v47 = vld [vmem:[%s5122_s25 + $0x314] sm:$0xff]  ;;  %244 = vst [vmem:[%s5127_s26 + $0x1c0] sm:$0xff] %v243_v45  ;;  %v249_v48 = vld [vmem:[%s5122_s25 + $0x320] sm:$0xff] }
  0x28   : > { %246 = vst [vmem:[%s5127_s26 + $0x1cc] sm:$0xff] %v245_v46  ;;  %248 = vst [vmem:[%s5127_s26 + $0x1d4] sm:$0xff] %v247_v47  ;;  %v251_v49 = vld [vmem:[%s5122_s25 + $0x328] sm:$0xff]  ;;  %v253_v50 = vld [vmem:[%s5122_s25 + $0x334] sm:$0xff] }
  0x29   : > { %250 = vst [vmem:[%s5127_s26 + $0x1e0] sm:$0xff] %v249_v48  ;;  %252 = vst [vmem:[%s5127_s26 + $0x1e8] sm:$0xff] %v251_v49  ;;  %v255_v51 = vld [vmem:[%s5122_s25 + $0x33c] sm:$0xff]  ;;  %v257_v52 = vld [vmem:[%s5122_s25 + $0x348] sm:$0xff] }
  0x2a   : > { %254 = vst [vmem:[%s5127_s26 + $0x1f4] sm:$0xff] %v253_v50  ;;  %v259_v53 = vld [vmem:[%s5122_s25 + $0x350] sm:$0xff]  ;;  %256 = vst [vmem:[%s5127_s26 + $0x1fc] sm:$0xff] %v255_v51  ;;  %v261_v54 = vld [vmem:[%s5122_s25 + $0x35c] sm:$0xff] }
  0x2b   : > { %258 = vst [vmem:[%s5127_s26 + $0x208] sm:$0xff] %v257_v52  ;;  %260 = vst [vmem:[%s5127_s26 + $0x210] sm:$0xff] %v259_v53  ;;  %v263_v55 = vld [vmem:[%s5122_s25 + $0x364] sm:$0xff]  ;;  %v265_v56 = vld [vmem:[%s5122_s25 + $0x370] sm:$0xff] }
  0x2c   : > { %262 = vst [vmem:[%s5127_s26 + $0x21c] sm:$0xff] %v261_v54  ;;  %264 = vst [vmem:[%s5127_s26 + $0x224] sm:$0xff] %v263_v55  ;;  %v267_v57 = vld [vmem:[%s5122_s25 + $0x378] sm:$0xff]  ;;  %v269_v58 = vld [vmem:[%s5122_s25 + $0x384] sm:$0xff] }
  0x2d   : > { %266 = vst [vmem:[%s5127_s26 + $0x230] sm:$0xff] %v265_v56  ;;  %v271_v59 = vld [vmem:[%s5122_s25 + $0x38c] sm:$0xff]  ;;  %268 = vst [vmem:[%s5127_s26 + $0x238] sm:$0xff] %v267_v57  ;;  %v273_v60 = vld [vmem:[%s5122_s25 + $0x398] sm:$0xff] }
  0x2e   : > { %270 = vst [vmem:[%s5127_s26 + $0x244] sm:$0xff] %v269_v58  ;;  %272 = vst [vmem:[%s5127_s26 + $0x24c] sm:$0xff] %v271_v59  ;;  %v275_v61 = vld [vmem:[%s5122_s25 + $0x3a0] sm:$0xff]  ;;  %v277_v62 = vld [vmem:[%s5122_s25 + $0x3ac] sm:$0xff] }
  0x2f   : > { %274 = vst [vmem:[%s5127_s26 + $0x258] sm:$0xff] %v273_v60  ;;  %276 = vst [vmem:[%s5127_s26 + $0x260] sm:$0xff] %v275_v61  ;;  %v279_v63 = vld [vmem:[%s5122_s25 + $0x3b4] sm:$0xff]  ;;  %v281_v0 = vld [vmem:[%s5122_s25 + $0x500] sm:$0xff] }
  0x30   : > { %278 = vst [vmem:[%s5127_s26 + $0x26c] sm:$0xff] %v277_v62  ;;  %v283_v1 = vld [vmem:[%s5122_s25 + $0x508] sm:$0xff]  ;;  %280 = vst [vmem:[%s5127_s26 + $0x274] sm:$0xff] %v279_v63  ;;  %v285_v2 = vld [vmem:[%s5122_s25 + $0x514] sm:$0xff] }
  0x31   : > { %282 = vst [vmem:[%s5127_s26 + $0x280] sm:$0xff] %v281_v0  ;;  %284 = vst [vmem:[%s5127_s26 + $0x288] sm:$0xff] %v283_v1  ;;  %v287_v3 = vld [vmem:[%s5122_s25 + $0x51c] sm:$0xff]  ;;  %v289_v4 = vld [vmem:[%s5122_s25 + $0x528] sm:$0xff] }
  0x32   : > { %286 = vst [vmem:[%s5127_s26 + $0x294] sm:$0xff] %v285_v2  ;;  %288 = vst [vmem:[%s5127_s26 + $0x29c] sm:$0xff] %v287_v3  ;;  %v291_v5 = vld [vmem:[%s5122_s25 + $0x530] sm:$0xff]  ;;  %v293_v6 = vld [vmem:[%s5122_s25 + $0x53c] sm:$0xff] }
  0x33   : > { %290 = vst [vmem:[%s5127_s26 + $0x2a8] sm:$0xff] %v289_v4  ;;  %v295_v7 = vld [vmem:[%s5122_s25 + $0x544] sm:$0xff]  ;;  %292 = vst [vmem:[%s5127_s26 + $0x2b0] sm:$0xff] %v291_v5  ;;  %v297_v8 = vld [vmem:[%s5122_s25 + $0x550] sm:$0xff] }
  0x34   : > { %294 = vst [vmem:[%s5127_s26 + $0x2bc] sm:$0xff] %v293_v6  ;;  %296 = vst [vmem:[%s5127_s26 + $0x2c4] sm:$0xff] %v295_v7  ;;  %v299_v9 = vld [vmem:[%s5122_s25 + $0x558] sm:$0xff]  ;;  %v301_v10 = vld [vmem:[%s5122_s25 + $0x564] sm:$0xff] }
  0x35   : > { %298 = vst [vmem:[%s5127_s26 + $0x2d0] sm:$0xff] %v297_v8  ;;  %300 = vst [vmem:[%s5127_s26 + $0x2d8] sm:$0xff] %v299_v9  ;;  %v303_v11 = vld [vmem:[%s5122_s25 + $0x56c] sm:$0xff]  ;;  %v305_v12 = vld [vmem:[%s5122_s25 + $0x578] sm:$0xff] }
  0x36   : > { %302 = vst [vmem:[%s5127_s26 + $0x2e4] sm:$0xff] %v301_v10  ;;  %v307_v13 = vld [vmem:[%s5122_s25 + $0x580] sm:$0xff]  ;;  %304 = vst [vmem:[%s5127_s26 + $0x2ec] sm:$0xff] %v303_v11  ;;  %v309_v14 = vld [vmem:[%s5122_s25 + $0x58c] sm:$0xff] }
  0x37   : > { %306 = vst [vmem:[%s5127_s26 + $0x2f8] sm:$0xff] %v305_v12  ;;  %308 = vst [vmem:[%s5127_s26 + $0x300] sm:$0xff] %v307_v13  ;;  %v311_v15 = vld [vmem:[%s5122_s25 + $0x594] sm:$0xff]  ;;  %v313_v16 = vld [vmem:[%s5122_s25 + $0x5a0] sm:$0xff] }
  0x38   : > { %310 = vst [vmem:[%s5127_s26 + $0x30c] sm:$0xff] %v309_v14  ;;  %312 = vst [vmem:[%s5127_s26 + $0x314] sm:$0xff] %v311_v15  ;;  %v315_v17 = vld [vmem:[%s5122_s25 + $0x5a8] sm:$0xff]  ;;  %v317_v18 = vld [vmem:[%s5122_s25 + $0x5b4] sm:$0xff] }
  0x39   : > { %314 = vst [vmem:[%s5127_s26 + $0x320] sm:$0xff] %v313_v16  ;;  %v319_v19 = vld [vmem:[%s5122_s25 + $0x5bc] sm:$0xff]  ;;  %316 = vst [vmem:[%s5127_s26 + $0x328] sm:$0xff] %v315_v17  ;;  %v321_v20 = vld [vmem:[%s5122_s25 + $0x5c8] sm:$0xff] }
  0x3a   : > { %318 = vst [vmem:[%s5127_s26 + $0x334] sm:$0xff] %v317_v18  ;;  %320 = vst [vmem:[%s5127_s26 + $0x33c] sm:$0xff] %v319_v19  ;;  %v323_v21 = vld [vmem:[%s5122_s25 + $0x5d0] sm:$0xff]  ;;  %v325_v22 = vld [vmem:[%s5122_s25 + $0x5dc] sm:$0xff] }
  0x3b   : > { %322 = vst [vmem:[%s5127_s26 + $0x348] sm:$0xff] %v321_v20  ;;  %324 = vst [vmem:[%s5127_s26 + $0x350] sm:$0xff] %v323_v21  ;;  %v327_v23 = vld [vmem:[%s5122_s25 + $0x5e4] sm:$0xff]  ;;  %v329_v24 = vld [vmem:[%s5122_s25 + $0x5f0] sm:$0xff] }
  0x3c   : > { %326 = vst [vmem:[%s5127_s26 + $0x35c] sm:$0xff] %v325_v22  ;;  %v331_v25 = vld [vmem:[%s5122_s25 + $0x5f8] sm:$0xff]  ;;  %328 = vst [vmem:[%s5127_s26 + $0x364] sm:$0xff] %v327_v23  ;;  %v333_v26 = vld [vmem:[%s5122_s25 + $0x604] sm:$0xff] }
  0x3d   : > { %330 = vst [vmem:[%s5127_s26 + $0x370] sm:$0xff] %v329_v24  ;;  %332 = vst [vmem:[%s5127_s26 + $0x378] sm:$0xff] %v331_v25  ;;  %v335_v27 = vld [vmem:[%s5122_s25 + $0x60c] sm:$0xff]  ;;  %v337_v28 = vld [vmem:[%s5122_s25 + $0x618] sm:$0xff] }
  0x3e   : > { %334 = vst [vmem:[%s5127_s26 + $0x384] sm:$0xff] %v333_v26  ;;  %336 = vst [vmem:[%s5127_s26 + $0x38c] sm:$0xff] %v335_v27  ;;  %v339_v29 = vld [vmem:[%s5122_s25 + $0x620] sm:$0xff]  ;;  %v341_v30 = vld [vmem:[%s5122_s25 + $0x62c] sm:$0xff] }
  0x3f   : > { %338 = vst [vmem:[%s5127_s26 + $0x398] sm:$0xff] %v337_v28  ;;  %v343_v31 = vld [vmem:[%s5122_s25 + $0x634] sm:$0xff]  ;;  %340 = vst [vmem:[%s5127_s26 + $0x3a0] sm:$0xff] %v339_v29  ;;  %v345_v32 = vld [vmem:[%s5122_s25 + $0x780] sm:$0xff] }
  0x40   : > { %342 = vst [vmem:[%s5127_s26 + $0x3ac] sm:$0xff] %v341_v30  ;;  %344 = vst [vmem:[%s5127_s26 + $0x3b4] sm:$0xff] %v343_v31  ;;  %v347_v33 = vld [vmem:[%s5122_s25 + $0x788] sm:$0xff]  ;;  %v349_v34 = vld [vmem:[%s5122_s25 + $0x794] sm:$0xff] }
  0x41   : > { %346 = vst [vmem:[%s5127_s26 + $0x3c0] sm:$0xff] %v345_v32  ;;  %348 = vst [vmem:[%s5127_s26 + $0x3c8] sm:$0xff] %v347_v33  ;;  %v351_v35 = vld [vmem:[%s5122_s25 + $0x79c] sm:$0xff]  ;;  %v353_v36 = vld [vmem:[%s5122_s25 + $0x7a8] sm:$0xff] }
  0x42   : > { %350 = vst [vmem:[%s5127_s26 + $0x3d4] sm:$0xff] %v349_v34  ;;  %v355_v37 = vld [vmem:[%s5122_s25 + $0x7b0] sm:$0xff]  ;;  %352 = vst [vmem:[%s5127_s26 + $0x3dc] sm:$0xff] %v351_v35  ;;  %v357_v38 = vld [vmem:[%s5122_s25 + $0x7bc] sm:$0xff] }
  0x43   : > { %354 = vst [vmem:[%s5127_s26 + $0x3e8] sm:$0xff] %v353_v36  ;;  %356 = vst [vmem:[%s5127_s26 + $0x3f0] sm:$0xff] %v355_v37  ;;  %v359_v39 = vld [vmem:[%s5122_s25 + $0x7c4] sm:$0xff]  ;;  %v361_v40 = vld [vmem:[%s5122_s25 + $0x7d0] sm:$0xff] }
  0x44   : > { %358 = vst [vmem:[%s5127_s26 + $0x3fc] sm:$0xff] %v357_v38  ;;  %360 = vst [vmem:[%s5127_s26 + $0x404] sm:$0xff] %v359_v39  ;;  %v363_v41 = vld [vmem:[%s5122_s25 + $0x7d8] sm:$0xff]  ;;  %v365_v42 = vld [vmem:[%s5122_s25 + $0x7e4] sm:$0xff] }
  0x45   : > { %362 = vst [vmem:[%s5127_s26 + $0x410] sm:$0xff] %v361_v40  ;;  %v367_v43 = vld [vmem:[%s5122_s25 + $0x7ec] sm:$0xff]  ;;  %364 = vst [vmem:[%s5127_s26 + $0x418] sm:$0xff] %v363_v41  ;;  %v369_v44 = vld [vmem:[%s5122_s25 + $0x7f8] sm:$0xff] }
  0x46   : > { %366 = vst [vmem:[%s5127_s26 + $0x424] sm:$0xff] %v365_v42  ;;  %368 = vst [vmem:[%s5127_s26 + $0x42c] sm:$0xff] %v367_v43  ;;  %v371_v45 = vld [vmem:[%s5122_s25 + $0x800] sm:$0xff]  ;;  %v373_v46 = vld [vmem:[%s5122_s25 + $0x80c] sm:$0xff] }
  0x47   : > { %370 = vst [vmem:[%s5127_s26 + $0x438] sm:$0xff] %v369_v44  ;;  %372 = vst [vmem:[%s5127_s26 + $0x440] sm:$0xff] %v371_v45  ;;  %v375_v47 = vld [vmem:[%s5122_s25 + $0x814] sm:$0xff]  ;;  %v377_v48 = vld [vmem:[%s5122_s25 + $0x820] sm:$0xff] }
  0x48   : > { %374 = vst [vmem:[%s5127_s26 + $0x44c] sm:$0xff] %v373_v46  ;;  %v379_v49 = vld [vmem:[%s5122_s25 + $0x828] sm:$0xff]  ;;  %376 = vst [vmem:[%s5127_s26 + $0x454] sm:$0xff] %v375_v47  ;;  %v381_v50 = vld [vmem:[%s5122_s25 + $0x834] sm:$0xff] }
  0x49   : > { %378 = vst [vmem:[%s5127_s26 + $0x460] sm:$0xff] %v377_v48  ;;  %380 = vst [vmem:[%s5127_s26 + $0x468] sm:$0xff] %v379_v49  ;;  %v383_v51 = vld [vmem:[%s5122_s25 + $0x83c] sm:$0xff]  ;;  %v385_v52 = vld [vmem:[%s5122_s25 + $0x848] sm:$0xff] }
  0x4a   : > { %382 = vst [vmem:[%s5127_s26 + $0x474] sm:$0xff] %v381_v50  ;;  %384 = vst [vmem:[%s5127_s26 + $0x47c] sm:$0xff] %v383_v51  ;;  %v387_v53 = vld [vmem:[%s5122_s25 + $0x850] sm:$0xff]  ;;  %v389_v54 = vld [vmem:[%s5122_s25 + $0x85c] sm:$0xff] }
  0x4b   : > { %386 = vst [vmem:[%s5127_s26 + $0x488] sm:$0xff] %v385_v52  ;;  %v391_v55 = vld [vmem:[%s5122_s25 + $0x864] sm:$0xff]  ;;  %388 = vst [vmem:[%s5127_s26 + $0x490] sm:$0xff] %v387_v53  ;;  %v393_v56 = vld [vmem:[%s5122_s25 + $0x870] sm:$0xff] }
  0x4c   : > { %390 = vst [vmem:[%s5127_s26 + $0x49c] sm:$0xff] %v389_v54  ;;  %392 = vst [vmem:[%s5127_s26 + $0x4a4] sm:$0xff] %v391_v55  ;;  %v395_v57 = vld [vmem:[%s5122_s25 + $0x878] sm:$0xff]  ;;  %v397_v58 = vld [vmem:[%s5122_s25 + $0x884] sm:$0xff] }
  0x4d   : > { %394 = vst [vmem:[%s5127_s26 + $0x4b0] sm:$0xff] %v393_v56  ;;  %396 = vst [vmem:[%s5127_s26 + $0x4b8] sm:$0xff] %v395_v57  ;;  %v399_v59 = vld [vmem:[%s5122_s25 + $0x88c] sm:$0xff]  ;;  %v401_v60 = vld [vmem:[%s5122_s25 + $0x898] sm:$0xff] }
  0x4e   : > { %398 = vst [vmem:[%s5127_s26 + $0x4c4] sm:$0xff] %v397_v58  ;;  %v403_v61 = vld [vmem:[%s5122_s25 + $0x8a0] sm:$0xff]  ;;  %400 = vst [vmem:[%s5127_s26 + $0x4cc] sm:$0xff] %v399_v59  ;;  %v405_v62 = vld [vmem:[%s5122_s25 + $0x8ac] sm:$0xff] }
  0x4f   : > { %402 = vst [vmem:[%s5127_s26 + $0x4d8] sm:$0xff] %v401_v60  ;;  %404 = vst [vmem:[%s5127_s26 + $0x4e0] sm:$0xff] %v403_v61  ;;  %v407_v63 = vld [vmem:[%s5122_s25 + $0x8b4] sm:$0xff]  ;;  %v4068_v0 = vld [vmem:[%s5122_s25 + $0x10] sm:$0xf] }
  0x50   : > { %406 = vst [vmem:[%s5127_s26 + $0x4ec] sm:$0xff] %v405_v62  ;;  %408 = vst [vmem:[%s5127_s26 + $0x4f4] sm:$0xff] %v407_v63  ;;  %v4070_v1 = vld [vmem:[%s5122_s25 + $0x24] sm:$0xf]  ;;  %v4072_v2 = vld [vmem:[%s5122_s25 + $0x38] sm:$0xf] }
  0x51   : > { %4069 = vst [vmem:[%s5127_s26 + $0x10] sm:$0xf] %v4068_v0  ;;  %v4074_v3 = vld [vmem:[%s5122_s25 + $0x4c] sm:$0xf]  ;;  %4071 = vst [vmem:[%s5127_s26 + $0x24] sm:$0xf] %v4070_v1 }
  0x52   : > { %4073 = vst [vmem:[%s5127_s26 + $0x38] sm:$0xf] %v4072_v2  ;;  %4075 = vst [vmem:[%s5127_s26 + $0x4c] sm:$0xf] %v4074_v3  ;;  %v4076_v4 = vld [vmem:[%s5122_s25 + $0x60] sm:$0xf] }
  0x53   : > { %v4078_v5 = vld [vmem:[%s5122_s25 + $0x74] sm:$0xf]  ;;  %v4080_v6 = vld [vmem:[%s5122_s25 + $0x88] sm:$0xf]  ;;  %4077 = vst [vmem:[%s5127_s26 + $0x60] sm:$0xf] %v4076_v4 }
  0x54   : > { %4079 = vst [vmem:[%s5127_s26 + $0x74] sm:$0xf] %v4078_v5  ;;  %4081 = vst [vmem:[%s5127_s26 + $0x88] sm:$0xf] %v4080_v6  ;;  %v4082_v7 = vld [vmem:[%s5122_s25 + $0x9c] sm:$0xf] }
  0x55   : > { %v4084_v8 = vld [vmem:[%s5122_s25 + $0xb0] sm:$0xf]  ;;  %v4086_v9 = vld [vmem:[%s5122_s25 + $0xc4] sm:$0xf]  ;;  %4083 = vst [vmem:[%s5127_s26 + $0x9c] sm:$0xf] %v4082_v7 }
  0x56   : > { %4085 = vst [vmem:[%s5127_s26 + $0xb0] sm:$0xf] %v4084_v8  ;;  %4087 = vst [vmem:[%s5127_s26 + $0xc4] sm:$0xf] %v4086_v9  ;;  %v4088_v10 = vld [vmem:[%s5122_s25 + $0xd8] sm:$0xf] }
  0x57   : > { %v4090_v11 = vld [vmem:[%s5122_s25 + $0xec] sm:$0xf]  ;;  %v4092_v12 = vld [vmem:[%s5122_s25 + $0x100] sm:$0xf]  ;;  %4089 = vst [vmem:[%s5127_s26 + $0xd8] sm:$0xf] %v4088_v10 }
  0x58   : > { %4091 = vst [vmem:[%s5127_s26 + $0xec] sm:$0xf] %v4090_v11  ;;  %4093 = vst [vmem:[%s5127_s26 + $0x100] sm:$0xf] %v4092_v12  ;;  %v4094_v13 = vld [vmem:[%s5122_s25 + $0x114] sm:$0xf] }
  0x59   : > { %v4096_v14 = vld [vmem:[%s5122_s25 + $0x128] sm:$0xf]  ;;  %v4098_v15 = vld [vmem:[%s5122_s25 + $0x13c] sm:$0xf]  ;;  %4095 = vst [vmem:[%s5127_s26 + $0x114] sm:$0xf] %v4094_v13 }
  0x5a   : > { %4097 = vst [vmem:[%s5127_s26 + $0x128] sm:$0xf] %v4096_v14  ;;  %4099 = vst [vmem:[%s5127_s26 + $0x13c] sm:$0xf] %v4098_v15  ;;  %v4100_v16 = vld [vmem:[%s5122_s25 + $0x290] sm:$0xf] }
  0x5b   : > { %v4102_v17 = vld [vmem:[%s5122_s25 + $0x2a4] sm:$0xf]  ;;  %v4104_v18 = vld [vmem:[%s5122_s25 + $0x2b8] sm:$0xf]  ;;  %4101 = vst [vmem:[%s5127_s26 + $0x150] sm:$0xf] %v4100_v16 }
  0x5c   : > { %4103 = vst [vmem:[%s5127_s26 + $0x164] sm:$0xf] %v4102_v17  ;;  %4105 = vst [vmem:[%s5127_s26 + $0x178] sm:$0xf] %v4104_v18  ;;  %v4106_v19 = vld [vmem:[%s5122_s25 + $0x2cc] sm:$0xf] }
  0x5d   : > { %v4108_v20 = vld [vmem:[%s5122_s25 + $0x2e0] sm:$0xf]  ;;  %v4110_v21 = vld [vmem:[%s5122_s25 + $0x2f4] sm:$0xf]  ;;  %4107 = vst [vmem:[%s5127_s26 + $0x18c] sm:$0xf] %v4106_v19 }
  0x5e   : > { %4109 = vst [vmem:[%s5127_s26 + $0x1a0] sm:$0xf] %v4108_v20  ;;  %4111 = vst [vmem:[%s5127_s26 + $0x1b4] sm:$0xf] %v4110_v21  ;;  %v4112_v22 = vld [vmem:[%s5122_s25 + $0x308] sm:$0xf] }
  0x5f   : > { %v4114_v23 = vld [vmem:[%s5122_s25 + $0x31c] sm:$0xf]  ;;  %v4116_v24 = vld [vmem:[%s5122_s25 + $0x330] sm:$0xf]  ;;  %4113 = vst [vmem:[%s5127_s26 + $0x1c8] sm:$0xf] %v4112_v22 }
  0x60   : > { %4115 = vst [vmem:[%s5127_s26 + $0x1dc] sm:$0xf] %v4114_v23  ;;  %4117 = vst [vmem:[%s5127_s26 + $0x1f0] sm:$0xf] %v4116_v24  ;;  %v4118_v25 = vld [vmem:[%s5122_s25 + $0x344] sm:$0xf] }
  0x61   : > { %v4120_v26 = vld [vmem:[%s5122_s25 + $0x358] sm:$0xf]  ;;  %v4122_v27 = vld [vmem:[%s5122_s25 + $0x36c] sm:$0xf]  ;;  %4119 = vst [vmem:[%s5127_s26 + $0x204] sm:$0xf] %v4118_v25 }
  0x62   : > { %4121 = vst [vmem:[%s5127_s26 + $0x218] sm:$0xf] %v4120_v26  ;;  %4123 = vst [vmem:[%s5127_s26 + $0x22c] sm:$0xf] %v4122_v27  ;;  %v4124_v28 = vld [vmem:[%s5122_s25 + $0x380] sm:$0xf] }
  0x63   : > { %v4126_v29 = vld [vmem:[%s5122_s25 + $0x394] sm:$0xf]  ;;  %v4128_v30 = vld [vmem:[%s5122_s25 + $0x3a8] sm:$0xf]  ;;  %4125 = vst [vmem:[%s5127_s26 + $0x240] sm:$0xf] %v4124_v28 }
  0x64   : > { %4127 = vst [vmem:[%s5127_s26 + $0x254] sm:$0xf] %v4126_v29  ;;  %4129 = vst [vmem:[%s5127_s26 + $0x268] sm:$0xf] %v4128_v30  ;;  %v4130_v31 = vld [vmem:[%s5122_s25 + $0x3bc] sm:$0xf] }
  0x65   : > { %v4132_v32 = vld [vmem:[%s5122_s25 + $0x510] sm:$0xf]  ;;  %v4134_v33 = vld [vmem:[%s5122_s25 + $0x524] sm:$0xf]  ;;  %4131 = vst [vmem:[%s5127_s26 + $0x27c] sm:$0xf] %v4130_v31 }
  0x66   : > { %4133 = vst [vmem:[%s5127_s26 + $0x290] sm:$0xf] %v4132_v32  ;;  %4135 = vst [vmem:[%s5127_s26 + $0x2a4] sm:$0xf] %v4134_v33  ;;  %v4136_v34 = vld [vmem:[%s5122_s25 + $0x538] sm:$0xf] }
  0x67   : > { %v4138_v35 = vld [vmem:[%s5122_s25 + $0x54c] sm:$0xf]  ;;  %v4140_v36 = vld [vmem:[%s5122_s25 + $0x560] sm:$0xf]  ;;  %4137 = vst [vmem:[%s5127_s26 + $0x2b8] sm:$0xf] %v4136_v34 }
  0x68   : > { %4139 = vst [vmem:[%s5127_s26 + $0x2cc] sm:$0xf] %v4138_v35  ;;  %4141 = vst [vmem:[%s5127_s26 + $0x2e0] sm:$0xf] %v4140_v36  ;;  %v4142_v37 = vld [vmem:[%s5122_s25 + $0x574] sm:$0xf] }
  0x69   : > { %v4144_v38 = vld [vmem:[%s5122_s25 + $0x588] sm:$0xf]  ;;  %v4146_v39 = vld [vmem:[%s5122_s25 + $0x59c] sm:$0xf]  ;;  %4143 = vst [vmem:[%s5127_s26 + $0x2f4] sm:$0xf] %v4142_v37 }
  0x6a   : > { %4145 = vst [vmem:[%s5127_s26 + $0x308] sm:$0xf] %v4144_v38  ;;  %4147 = vst [vmem:[%s5127_s26 + $0x31c] sm:$0xf] %v4146_v39  ;;  %v4148_v40 = vld [vmem:[%s5122_s25 + $0x5b0] sm:$0xf] }
  0x6b   : > { %v4150_v41 = vld [vmem:[%s5122_s25 + $0x5c4] sm:$0xf]  ;;  %v4152_v42 = vld [vmem:[%s5122_s25 + $0x5d8] sm:$0xf]  ;;  %4149 = vst [vmem:[%s5127_s26 + $0x330] sm:$0xf] %v4148_v40 }
  0x6c   : > { %4151 = vst [vmem:[%s5127_s26 + $0x344] sm:$0xf] %v4150_v41  ;;  %4153 = vst [vmem:[%s5127_s26 + $0x358] sm:$0xf] %v4152_v42  ;;  %v4154_v43 = vld [vmem:[%s5122_s25 + $0x5ec] sm:$0xf] }
  0x6d   : > { %v4156_v44 = vld [vmem:[%s5122_s25 + $0x600] sm:$0xf]  ;;  %v4158_v45 = vld [vmem:[%s5122_s25 + $0x614] sm:$0xf]  ;;  %4155 = vst [vmem:[%s5127_s26 + $0x36c] sm:$0xf] %v4154_v43 }
  0x6e   : > { %4157 = vst [vmem:[%s5127_s26 + $0x380] sm:$0xf] %v4156_v44  ;;  %4159 = vst [vmem:[%s5127_s26 + $0x394] sm:$0xf] %v4158_v45  ;;  %v4160_v46 = vld [vmem:[%s5122_s25 + $0x628] sm:$0xf] }
  0x6f   : > { %v4162_v47 = vld [vmem:[%s5122_s25 + $0x63c] sm:$0xf]  ;;  %v4164_v48 = vld [vmem:[%s5122_s25 + $0x790] sm:$0xf]  ;;  %4161 = vst [vmem:[%s5127_s26 + $0x3a8] sm:$0xf] %v4160_v46 }
  0x70   : > { %4163 = vst [vmem:[%s5127_s26 + $0x3bc] sm:$0xf] %v4162_v47  ;;  %4165 = vst [vmem:[%s5127_s26 + $0x3d0] sm:$0xf] %v4164_v48  ;;  %v4166_v49 = vld [vmem:[%s5122_s25 + $0x7a4] sm:$0xf] }
  0x71   : > { %v4168_v50 = vld [vmem:[%s5122_s25 + $0x7b8] sm:$0xf]  ;;  %v4170_v51 = vld [vmem:[%s5122_s25 + $0x7cc] sm:$0xf]  ;;  %4167 = vst [vmem:[%s5127_s26 + $0x3e4] sm:$0xf] %v4166_v49 }
  0x72   : > { %4169 = vst [vmem:[%s5127_s26 + $0x3f8] sm:$0xf] %v4168_v50  ;;  %4171 = vst [vmem:[%s5127_s26 + $0x40c] sm:$0xf] %v4170_v51  ;;  %v4172_v52 = vld [vmem:[%s5122_s25 + $0x7e0] sm:$0xf] }
  0x73   : > { %v4174_v53 = vld [vmem:[%s5122_s25 + $0x7f4] sm:$0xf]  ;;  %v4176_v54 = vld [vmem:[%s5122_s25 + $0x808] sm:$0xf]  ;;  %4173 = vst [vmem:[%s5127_s26 + $0x420] sm:$0xf] %v4172_v52 }
  0x74   : > { %4175 = vst [vmem:[%s5127_s26 + $0x434] sm:$0xf] %v4174_v53  ;;  %4177 = vst [vmem:[%s5127_s26 + $0x448] sm:$0xf] %v4176_v54  ;;  %v4178_v55 = vld [vmem:[%s5122_s25 + $0x81c] sm:$0xf] }
  0x75   : > { %v4180_v56 = vld [vmem:[%s5122_s25 + $0x830] sm:$0xf]  ;;  %v4182_v57 = vld [vmem:[%s5122_s25 + $0x844] sm:$0xf]  ;;  %4179 = vst [vmem:[%s5127_s26 + $0x45c] sm:$0xf] %v4178_v55 }
  0x76   : > { %4181 = vst [vmem:[%s5127_s26 + $0x470] sm:$0xf] %v4180_v56  ;;  %4183 = vst [vmem:[%s5127_s26 + $0x484] sm:$0xf] %v4182_v57  ;;  %v4184_v58 = vld [vmem:[%s5122_s25 + $0x858] sm:$0xf] }
  0x77   : > { %v4186_v59 = vld [vmem:[%s5122_s25 + $0x86c] sm:$0xf]  ;;  %v4188_v60 = vld [vmem:[%s5122_s25 + $0x880] sm:$0xf]  ;;  %4185 = vst [vmem:[%s5127_s26 + $0x498] sm:$0xf] %v4184_v58 }
  0x78   : > { %4187 = vst [vmem:[%s5127_s26 + $0x4ac] sm:$0xf] %v4186_v59  ;;  %4189 = vst [vmem:[%s5127_s26 + $0x4c0] sm:$0xf] %v4188_v60  ;;  %v4190_v61 = vld [vmem:[%s5122_s25 + $0x894] sm:$0xf] }
  0x79   : > { %v4192_v62 = vld [vmem:[%s5122_s25 + $0x8a8] sm:$0xf]  ;;  %v4194_v63 = vld [vmem:[%s5122_s25 + $0x8bc] sm:$0xf]  ;;  %4191 = vst [vmem:[%s5127_s26 + $0x4d4] sm:$0xf] %v4190_v61 }
  0x7a   : > { %4193 = vst [vmem:[%s5127_s26 + $0x4e8] sm:$0xf] %v4192_v62  ;;  %4195 = vst [vmem:[%s5127_s26 + $0x4fc] sm:$0xf] %v4194_v63 }
  0x7b PF: > { %p4196_p5 = scmp.ge.s32.totalorder %s5065_s14, 1  ;;  %p549_p6 = scmp.lt.s32.totalorder %s5065_s14, 3 }
  0x7d   : > { %p550_p7 = pnand %p4196_p5, %p549_p6 }
  0x7f   : > { %553 = sbr.rel (%p550_p7) target bundleno = 783 (0x30f), region = 54 }
  0x84   : > { %v5515_v0 = vld [vmem:[%s7999_s1 + $0x74] ss:$8 sps:$4 sm:$0xff]   ;;  %v5526_v2 = vld [vmem:[%s7999_s1 + $0x70] ss:$8 sps:$4 sm:$0xff]   ;;  %v5537_v4 = vld [vmem:[%s7999_s1 + $0x64] ss:$8 sps:$4 sm:$0xff]  }
  0x85   : > { %v5520_v1 = vld [vmem:[%s7999_s1 + $0x174] ss:$8 sps:$4 sm:$0xff]   ;;  %1306 = vmatprep.subr.bf16.mxu0 %v5515_v0  ;;  %v5531_v3 = vld [vmem:[%s7999_s1 + $0x170] ss:$8 sps:$4 sm:$0xff]   ;;  %v5544_v5 = vld [vmem:[%s7999_s1 + $0x164] ss:$8 sps:$4 sm:$0xff]  }
  0x86   : > { %1419 = vmatprep.subr.bf16.mxu1 %v5520_v1  ;;  %1307 = vmatpush1.bf16.msra.mxu0 %v5526_v2  ;;  %v5549_v6 = vld [vmem:[%s7999_s1 + $0x60] ss:$8 sps:$4 sm:$0xff]   ;;  %v5561_v8 = vld [vmem:[%s7999_s1 + $0x54] ss:$8 sps:$4 sm:$0xff]   ;;  %v5571_v10 = vld [vmem:[%s7999_s1 + $0x50] ss:$8 sps:$4 sm:$0xff]  }
  0x87   : > { %1420 = vmatpush1.bf16.msra.mxu1 %v5531_v3  ;;  %1308 = vmatprep.subr.bf16.mxu0 %v5537_v4  ;;  %v5555_v7 = vld [vmem:[%s7999_s1 + $0x160] ss:$8 sps:$4 sm:$0xff]   ;;  %v5566_v9 = vld [vmem:[%s7999_s1 + $0x154] ss:$8 sps:$4 sm:$0xff]   ;;  %v5576_v11 = vld [vmem:[%s7999_s1 + $0x150] ss:$8 sps:$4 sm:$0xff]  }
  0x88   : > { %1421 = vmatprep.subr.bf16.mxu1 %v5544_v5  ;;  %v5583_v12 = vld [vmem:[%s7999_s1 + $0x44] ss:$8 sps:$4 sm:$0xff]   ;;  %v5595_v14 = vld [vmem:[%s7999_s1 + $0x40] ss:$8 sps:$4 sm:$0xff]   ;;  %v5607_v16 = vld [vmem:[%s7999_s1 + $0x34] ss:$8 sps:$4 sm:$0xff]  }
  0x89   : > { %v5590_v13 = vld [vmem:[%s7999_s1 + $0x144] ss:$8 sps:$4 sm:$0xff]   ;;  %v5602_v15 = vld [vmem:[%s7999_s1 + $0x140] ss:$8 sps:$4 sm:$0xff]   ;;  %v5614_v17 = vld [vmem:[%s7999_s1 + $0x134] ss:$8 sps:$4 sm:$0xff]  }
  0x8a   : > { %1309 = vmatpush1.bf16.msra.mxu0 %v5549_v6  ;;  %v5619_v18 = vld [vmem:[%s7999_s1 + $0x30] ss:$8 sps:$4 sm:$0xff]   ;;  %v5631_v20 = vld [vmem:[%s7999_s1 + $0x24] ss:$8 sps:$4 sm:$0xff]   ;;  %v5643_v22 = vld [vmem:[%s7999_s1 + $0x20] ss:$8 sps:$4 sm:$0xff]  }
  0x8b   : > { %1422 = vmatpush1.bf16.msra.mxu1 %v5555_v7  ;;  %1310 = vmatprep.subr.bf16.mxu0 %v5561_v8  ;;  %v5624_v19 = vld [vmem:[%s7999_s1 + $0x130] ss:$8 sps:$4 sm:$0xff]   ;;  %v5638_v21 = vld [vmem:[%s7999_s1 + $0x124] ss:$8 sps:$4 sm:$0xff]   ;;  %v5650_v23 = vld [vmem:[%s7999_s1 + $0x120] ss:$8 sps:$4 sm:$0xff]  }
  0x8c   : > { %1423 = vmatprep.subr.bf16.mxu1 %v5566_v9  ;;  %v5655_v24 = vld [vmem:[%s7999_s1 + $0x14] ss:$8 sps:$4 sm:$0xff]   ;;  %v5667_v26 = vld [vmem:[%s7999_s1 + $0x10] ss:$8 sps:$4 sm:$0xff]   ;;  %v5679_v28 = vld [vmem:[%s7999_s1 + $0x4] ss:$8 sps:$4 sm:$0xff]  }
  0x8d   : > { %v5662_v25 = vld [vmem:[%s7999_s1 + $0x114] ss:$8 sps:$4 sm:$0xff]   ;;  %v5672_v27 = vld [vmem:[%s7999_s1 + $0x110] ss:$8 sps:$4 sm:$0xff]   ;;  %v5686_v29 = vld [vmem:[%s7999_s1 + $0x104] ss:$8 sps:$4 sm:$0xff]  }
  0x8e   : > { %1311 = vmatpush1.bf16.msra.mxu0 %v5571_v10  ;;  %v5691_v30 = vld [vmem:[%s7999_s1] ss:$8 sps:$4 sm:$0xff]   ;;  %v5703_v32 = vld [vmem:[%s7999_s1 + $0xf4] ss:$8 sps:$4 sm:$0xff]   ;;  %v5715_v34 = vld [vmem:[%s7999_s1 + $0xf0] ss:$8 sps:$4 sm:$0xff]  }
  0x8f   : > { %1424 = vmatpush1.bf16.msra.mxu1 %v5576_v11  ;;  %1312 = vmatprep.subr.bf16.mxu0 %v5583_v12  ;;  %v5698_v31 = vld [vmem:[%s7999_s1 + $0x100] ss:$8 sps:$4 sm:$0xff]   ;;  %v5710_v33 = vld [vmem:[%s7999_s1 + $0x1f4] ss:$8 sps:$4 sm:$0xff]   ;;  %v5720_v35 = vld [vmem:[%s7999_s1 + $0x1f0] ss:$8 sps:$4 sm:$0xff]  }
  0x90   : > { %1425 = vmatprep.subr.bf16.mxu1 %v5590_v13  ;;  %v5727_v36 = vld [vmem:[%s7999_s1 + $0xe4] ss:$8 sps:$4 sm:$0xff]   ;;  %s556_s18 = sand.u32 1, %s5057_s12   ;;  %v5740_v38 = vld [vmem:[%s7999_s1 + $0xe0] ss:$8 sps:$4 sm:$0xff]   ;;  %vm1281_vm0 = vcmask 523264  }
  0x91   : > { %v5734_v37 = vld [vmem:[%s7999_s1 + $0x1e4] ss:$8 sps:$4 sm:$0xff]   ;;  %v5747_v39 = vld [vmem:[%s7999_s1 + $0x1e0] ss:$8 sps:$4 sm:$0xff]   ;;  %v5752_v40 = vld [vmem:[%s7999_s1 + $0xd4] ss:$8 sps:$4 sm:$0xff]  }
  0x92   : > { %1313 = vmatpush1.bf16.msra.mxu0 %v5595_v14  ;;  %s4613_s12 = smul.u32 1280, %s556_s18  ;;  %v5759_v41 = vld [vmem:[%s7999_s1 + $0x1d4] ss:$8 sps:$4 sm:$0xff]   ;;  %v5764_v42 = vld [vmem:[%s7999_s1 + $0xd0] ss:$8 sps:$4 sm:$0xff]  }
  0x93   : > { %1426 = vmatpush1.bf16.msra.mxu1 %v5602_v15  ;;  %1314 = vmatprep.subr.bf16.mxu0 %v5607_v16  ;;  %v5769_v43 = vld [vmem:[%s7999_s1 + $0x1d0] ss:$8 sps:$4 sm:$0xff]   ;;  %v5776_v44 = vld [vmem:[%s7999_s1 + $0xc4] ss:$8 sps:$4 sm:$0xff]   ;;  %v5788_v46 = vld [vmem:[%s7999_s1 + $0xc0] ss:$8 sps:$4 sm:$0xff]  }
  0x94   : > { %1427 = vmatprep.subr.bf16.mxu1 %v5614_v17  ;;  %v5783_v45 = vld [vmem:[%s7999_s1 + $0x1c4] ss:$8 sps:$4 sm:$0xff]   ;;  %v5793_v47 = vld [vmem:[%s7999_s1 + $0x1c0] ss:$8 sps:$4 sm:$0xff]   ;;  %s5795_s18 = scalar_lea.vmem [#allocation2], %s4613_s12 }
  0x95   : > { %v5800_v48 = vld [vmem:[%s7999_s1 + $0xb4] ss:$8 sps:$4 sm:$0xff]   ;;  %v4737_v49 = vld [vmem:[%s5795_s18 + $0x4] ss:$20 sps:$4 sm:$0xff]   ;;  %v4740_v51 = vld [vmem:[%s5795_s18 + $0xc] ss:$20 sps:$4 sm:$0xff]  }
  0x96   : > { %1315 = vmatpush1.bf16.msra.mxu0 %v5619_v18  ;;  %v5808_v50 = vld [vmem:[%s7999_s1 + $0x1b4] ss:$8 sps:$4 sm:$0xff]   ;;  %1338 = vmatprep.mubr.bf16.mxu0 %v4737_v49  ;;  %v5816_v52 = vld [vmem:[%s7999_s1 + $0xb0] ss:$8 sps:$4 sm:$0xff]   ;;  %v5828_v54 = vld [vmem:[%s7999_s1 + $0xa4] ss:$8 sps:$4 sm:$0xff]  }
  0x97   : > { %1428 = vmatpush1.bf16.msra.mxu1 %v5624_v19  ;;  %1316 = vmatprep.subr.bf16.mxu0 %v5631_v20  ;;  %8089 = vst [vmem:[#allocation3_spill] sm:$0xff] %v5808_v50  ;;  %v5823_v53 = vld [vmem:[%s7999_s1 + $0x1b0] ss:$8 sps:$4 sm:$0xff]   ;;  %v5835_v55 = vld [vmem:[%s7999_s1 + $0x1a4] ss:$8 sps:$4 sm:$0xff]  }
  0x98   : > { %1429 = vmatprep.subr.bf16.mxu1 %v5638_v21  ;;  %1451 = vmatprep.mubr.bf16.mxu1 %v4740_v51  ;;  %8090 = vst [vmem:[#allocation4_spill] sm:$0xff] %v5823_v53  ;;  %8091 = vst [vmem:[#allocation5_spill] sm:$0xff] %v5835_v55  ;;  %v5840_v56 = vld [vmem:[%s7999_s1 + $0xa0] ss:$8 sps:$4 sm:$0xff]   ;;  %v5852_v58 = vld [vmem:[%s7999_s1 + $0x94] ss:$8 sps:$4 sm:$0xff]  }
  0x99   : > { %v5845_v57 = vld [vmem:[%s7999_s1 + $0x1a0] ss:$8 sps:$4 sm:$0xff]   ;;  %v5859_v59 = vld [vmem:[%s7999_s1 + $0x194] ss:$8 sps:$4 sm:$0xff]   ;;  %v5864_v60 = vld [vmem:[%s7999_s1 + $0x90] ss:$8 sps:$4 sm:$0xff]  }
  0x9a   : > { %1317 = vmatpush1.bf16.msra.mxu0 %v5643_v22  ;;  %8092 = vst [vmem:[#allocation6_spill] sm:$0xff] %v5845_v57  ;;  %8093 = vst [vmem:[#allocation7_spill] sm:$0xff] %v5859_v59  ;;  %v5869_v61 = vld [vmem:[%s7999_s1 + $0x190] ss:$8 sps:$4 sm:$0xff]   ;;  %v5876_v62 = vld [vmem:[%s7999_s1 + $0x84] ss:$8 sps:$4 sm:$0xff]  }
  0x9b   : > { %1430 = vmatpush1.bf16.msra.mxu1 %v5650_v23  ;;  %1318 = vmatprep.subr.bf16.mxu0 %v5655_v24  ;;  %8094 = vst [vmem:[#allocation8_spill] sm:$0xff] %v5869_v61  ;;  %v5883_v63 = vld [vmem:[%s7999_s1 + $0x184] ss:$8 sps:$4 sm:$0xff]   ;;  %v5888_v49 = vld [vmem:[%s7999_s1 + $0x80] ss:$8 sps:$4 sm:$0xff]  }
  0x9c   : > { %1431 = vmatprep.subr.bf16.mxu1 %v5662_v25  ;;  %8095 = vst [vmem:[#allocation9_spill] sm:$0xff] %v5883_v63  ;;  %v5895_v51 = vld [vmem:[%s7999_s1 + $0x180] ss:$8 sps:$4 sm:$0xff]  }
  0x9d   : > { %8096 = vst [vmem:[#allocation10_spill] sm:$0xff] %v5895_v51 }
  0x9e   : > { %1319 = vmatpush1.bf16.msra.mxu0 %v5667_v26 }
  0x9f   : > { %1432 = vmatpush1.bf16.msra.mxu1 %v5672_v27  ;;  %1320 = vmatprep.subr.bf16.mxu0 %v5679_v28 }
  0xa0   : > { %1433 = vmatprep.subr.bf16.mxu1 %v5686_v29 }
  0xa2   : > { %1321 = vmatpush1.bf16.msra.mxu0 %v5691_v30 }
  0xa3   : > { %1434 = vmatpush1.bf16.msra.mxu1 %v5698_v31  ;;  %1322 = vmatprep.subr.bf16.mxu0 %v5703_v32 }
  0xa4   : > { %1435 = vmatprep.subr.bf16.mxu1 %v5710_v33 }
  0xa6   : > { %1323 = vmatpush2.bf16.msra.mxu0 %v5715_v34 }
  0xa7   : > { %1436 = vmatpush2.bf16.msra.mxu1 %v5720_v35  ;;  %1324 = vmatprep.subr.bf16.mxu0 %v5727_v36 }
  0xa8   : > { %1437 = vmatprep.subr.bf16.mxu1 %v5734_v37 }
  0xaa   : > { %1325 = vmatpush2.bf16.msra.mxu0 %v5740_v38 }
  0xab   : > { %1438 = vmatpush2.bf16.msra.mxu1 %v5747_v39  ;;  %1326 = vmatprep.subr.bf16.mxu0 %v5752_v40 }
  0xac   : > { %1439 = vmatprep.subr.bf16.mxu1 %v5759_v41 }
  0xae   : > { %1327 = vmatpush2.bf16.msra.mxu0 %v5764_v42 }
  0xaf   : > { %1440 = vmatpush2.bf16.msra.mxu1 %v5769_v43  ;;  %1328 = vmatprep.subr.bf16.mxu0 %v5776_v44 }
  0xb0   : > { %1441 = vmatprep.subr.bf16.mxu1 %v5783_v45 }
  0xb2   : > { %1329 = vmatpush2.bf16.msra.mxu0 %v5788_v46 }
  0xb3   : > { %1442 = vmatpush2.bf16.msra.mxu1 %v5793_v47  ;;  %1330 = vmatprep.subr.bf16.mxu0 %v5800_v48 }
  0xb4   : > { %1443 = vmatprep.subr.bf16.mxu1 %v5808_v50  ;;  %v5920_v50 = vld [vmem:[%s7999_s1 + $0x224] ss:$8 sps:$4 sm:$0xff]  }
  0xb6   : > { %1331 = vmatpush2.bf16.msra.mxu0 %v5816_v52 }
  0xb7   : > { %1444 = vmatpush2.bf16.msra.mxu1 %v5823_v53  ;;  %1332 = vmatprep.subr.bf16.mxu0 %v5828_v54  ;;  %v4746_v53 = vld [vmem:[%s5795_s18 + $0x34] ss:$20 sps:$4 sm:$0xff]  }
  0xb8   : > { %1445 = vmatprep.subr.bf16.mxu1 %v5835_v55  ;;  %v4738_v55 = vld [vmem:[%s5795_s18 + $0x8] ss:$20 sps:$4 sm:$0xff]  }
  0xba   : > { %1333 = vmatpush2.bf16.msra.mxu0 %v5840_v56 }
  0xbb   : > { %1446 = vmatpush2.bf16.msra.mxu1 %v5845_v57  ;;  %1334 = vmatprep.subr.bf16.mxu0 %v5852_v58  ;;  %v4735_v57 = vld [vmem:[%s5795_s18] ss:$20 sps:$4 sm:$0xff]  }
  0xbc   : > { %1447 = vmatprep.subr.bf16.mxu1 %v5859_v59  ;;  %v5902_v59 = vld [vmem:[%s7999_s1 + $0x234] ss:$8 sps:$4 sm:$0xff]  }
  0xbe   : > { %1335 = vmatpush2.bf16.msra.mxu0 %v5864_v60 }
  0xbf   : > { %1448 = vmatpush2.bf16.msra.mxu1 %v5869_v61  ;;  %1336 = vmatprep.subr.bf16.mxu0 %v5876_v62  ;;  %v5911_v61 = vld [vmem:[%s7999_s1 + $0x230] ss:$8 sps:$4 sm:$0xff]  }
  0xc0   : > { %1449 = vmatprep.subr.bf16.mxu1 %v5883_v63  ;;  %v4744_v63 = vld [vmem:[%s5795_s18 + $0x2c] ss:$20 sps:$4 sm:$0xff]  }
  0xc2   : > { %1337 = vmatpush2.bf16.msra.mxu0 %v5888_v49 }
  0xc3   : > { %1450 = vmatpush2.bf16.msra.mxu1 %v5895_v51  ;;  %1540 = vmatprep.subr.bf16.mxu0 %v5902_v59  ;;  %v5927_v51 = vld [vmem:[%s7999_s1 + $0x220] ss:$8 sps:$4 sm:$0xff]  }
  0xc4   : > { %2014 = vmatprep.subr.bf16.mxu1 %v5515_v0  ;;  %v5933_v0 = vld [vmem:[%s7999_s1 + $0x214] ss:$8 sps:$4 sm:$0xff]  }
  0xc5   : > { %1339 = vmatmul.mubr.bf16.vlgmr.msra.gmra.mxu0 %v4735_v57  ;;  %v4748_v57 = vld [vmem:[%s5795_s18 + $0x28] ss:$20 sps:$4 sm:$0xff]  }
  0xc6   : > { %1452 = vmatmul.mubr.bf16.vlgmr.msra.gmra.mxu1 %v4738_v55  ;;  %1541 = vmatpush1.bf16.msra.mxu0 %v5911_v61  ;;  %v4749_v55 = vld [vmem:[%s5795_s18 + $0x30] ss:$20 sps:$4 sm:$0xff]  }
  0xc7   : > { %2015 = vmatpush1.bf16.msra.mxu1 %v5526_v2  ;;  %1348 = vmatprep.mubr.bf16.mxu0 %v4744_v63  ;;  %v4750_v2 = vld [vmem:[%s5795_s18 + $0x54] ss:$20 sps:$4 sm:$0xff]  }
  0xc8   : > { %2016 = vmatprep.subr.bf16.mxu1 %v5537_v4  ;;  %1461 = vmatprep.mubr.bf16.mxu1 %v4746_v53  ;;  %v4752_v4 = vld [vmem:[%s5795_s18 + $0x5c] ss:$20 sps:$4 sm:$0xff]   ;;  %v5961_v63 = vld [vmem:[%s7999_s1 + $0x200] ss:$8 sps:$4 sm:$0xff]  }
  0xc9   : > { %1542 = vmatprep.subr.bf16.mxu0 %v5920_v50  ;;  %v5947_v53 = vld [vmem:[%s7999_s1 + $0x210] ss:$8 sps:$4 sm:$0xff]  }
  0xca   : > { %1543 = vmatpush1.bf16.msra.mxu0 %v5927_v51 }
  0xcb   : > { %2017 = vmatpush1.bf16.msra.mxu1 %v5549_v6  ;;  %1544 = vmatprep.subr.bf16.mxu0 %v5933_v0  ;;  %v5952_v6 = vld [vmem:[%s7999_s1 + $0x204] ss:$8 sps:$4 sm:$0xff]  }
  0xcc   : > { %2018 = vmatprep.subr.bf16.mxu1 %v5561_v8  ;;  %v4754_v8 = vld [vmem:[%s5795_s18 + $0x50] ss:$20 sps:$4 sm:$0xff]  }
  0xcd   : > { %1349 = vmatmul.mubr.bf16.gmra.mxu0 %v4748_v57  ;;  %v4755_v57 = vld [vmem:[%s5795_s18 + $0x58] ss:$20 sps:$4 sm:$0xff]  }
  0xce   : > { %1462 = vmatmul.mubr.bf16.gmra.mxu1 %v4749_v55  ;;  %1358 = vmatprep.mubr.bf16.mxu0 %v4750_v2  ;;  %v4764_v55 = vld [vmem:[%s5795_s18 + $0x80] ss:$20 sps:$4 sm:$0xff]  }
  0xcf   : > { %2019 = vmatpush1.bf16.msra.mxu1 %v5571_v10  ;;  %1471 = vmatprep.mubr.bf16.mxu1 %v4752_v4  ;;  %v4759_v10 = vld [vmem:[%s5795_s18 + $0x7c] ss:$20 sps:$4 sm:$0xff]   ;;  %v4767_v2 = vld [vmem:[%s5795_s18 + $0xac] ss:$20 sps:$4 sm:$0xff]   ;;  %v4831_v4 = vld [vmem:[%s5795_s18 + $0x174] ss:$20 sps:$4 sm:$0xff]  }
  0xd0   : > { %2020 = vmatprep.subr.bf16.mxu1 %v5583_v12  ;;  %1545 = vmatpush1.bf16.msra.mxu0 %v5947_v53  ;;  %v4761_v12 = vld [vmem:[%s5795_s18 + $0x84] ss:$20 sps:$4 sm:$0xff]  }
  0xd1   : > { %1546 = vmatprep.subr.bf16.mxu0 %v5952_v6 }
  0xd3   : > { %2021 = vmatpush1.bf16.msra.mxu1 %v5595_v14  ;;  %v4763_v14 = vld [vmem:[%s5795_s18 + $0x78] ss:$20 sps:$4 sm:$0xff]  }
  0xd4   : > { %2022 = vmatprep.subr.bf16.mxu1 %v5607_v16  ;;  %1547 = vmatpush1.bf16.msra.mxu0 %v5961_v63  ;;  %v4765_v16 = vld [vmem:[%s5795_s18 + $0xa4] ss:$20 sps:$4 sm:$0xff]  }
  0xd5   : > { %1359 = vmatmul.mubr.bf16.gmra.mxu0 %v4754_v8  ;;  %2127 = vmatprep.subr.bf16.mxu0 %v5520_v1  ;;  %v4769_v1 = vld [vmem:[%s5795_s18 + $0xa0] ss:$20 sps:$4 sm:$0xff]   ;;  %v6124_v8 = vld [vmem:[%s7999_s1 + $0x64] ss:$8 sps:$4 sm:$0xff]  }
  0xd6   : > { %1472 = vmatmul.mubr.bf16.gmra.mxu1 %v4755_v57  ;;  %1368 = vmatprep.mubr.bf16.mxu0 %v4759_v10  ;;  %v6130_v57 = vld [vmem:[%s7999_s1 + $0x164] ss:$8 sps:$4 sm:$0xff]  }
  0xd7   : > { %2023 = vmatpush1.bf16.msra.mxu1 %v5619_v18  ;;  %1481 = vmatprep.mubr.bf16.mxu1 %v4761_v12  ;;  %v4770_v18 = vld [vmem:[%s5795_s18 + $0xa8] ss:$20 sps:$4 sm:$0xff]   ;;  %v4833_v10 = vld [vmem:[%s5795_s18 + $0x170] ss:$20 sps:$4 sm:$0xff]   ;;  %v4834_v12 = vld [vmem:[%s5795_s18 + $0x178] ss:$20 sps:$4 sm:$0xff]  }
  0xd8   : > { %2024 = vmatprep.subr.bf16.mxu1 %v5631_v20  ;;  %v4774_v20 = vld [vmem:[%s5795_s18 + $0xcc] ss:$20 sps:$4 sm:$0xff]  }
  0xdb   : > { %2025 = vmatpush1.bf16.msra.mxu1 %v5643_v22  ;;  %v4776_v22 = vld [vmem:[%s5795_s18 + $0xd4] ss:$20 sps:$4 sm:$0xff]  }
  0xdc   : > { %2026 = vmatprep.subr.bf16.mxu1 %v5655_v24  ;;  %v4778_v24 = vld [vmem:[%s5795_s18 + $0xc8] ss:$20 sps:$4 sm:$0xff]  }
  0xdd   : > { %1369 = vmatmul.mubr.bf16.gmra.mxu0 %v4763_v14  ;;  %v6139_v14 = vld [vmem:[%s7999_s1 + $0x60] ss:$8 sps:$4 sm:$0xff]  }
  0xde   : > { %1482 = vmatmul.mubr.bf16.gmra.mxu1 %v4764_v55  ;;  %1378 = vmatprep.mubr.bf16.mxu0 %v4765_v16  ;;  %v6145_v55 = vld [vmem:[%s7999_s1 + $0x160] ss:$8 sps:$4 sm:$0xff]   ;;  %v6151_v16 = vld [vmem:[%s7999_s1 + $0x54] ss:$8 sps:$4 sm:$0xff]  }
  0xdf   : > { %2027 = vmatpush1.bf16.msra.mxu1 %v5667_v26  ;;  %1491 = vmatprep.mubr.bf16.mxu1 %v4767_v2  ;;  %v4779_v26 = vld [vmem:[%s5795_s18 + $0xd0] ss:$20 sps:$4 sm:$0xff]   ;;  %v6157_v2 = vld [vmem:[%s7999_s1 + $0x154] ss:$8 sps:$4 sm:$0xff]  }
  0xe0   : > { %2028 = vmatprep.subr.bf16.mxu1 %v5679_v28  ;;  %v4780_v28 = vld [vmem:[%s5795_s18 + $0xf4] ss:$20 sps:$4 sm:$0xff]  }
  0xe3   : > { %2029 = vmatpush1.bf16.msra.mxu1 %v5691_v30  ;;  %v4782_v30 = vld [vmem:[%s5795_s18 + $0xfc] ss:$20 sps:$4 sm:$0xff]  }
  0xe4   : > { %2030 = vmatprep.subr.bf16.mxu1 %v5703_v32  ;;  %v4784_v32 = vld [vmem:[%s5795_s18 + $0xf0] ss:$20 sps:$4 sm:$0xff]  }
  0xe5   : > { %1379 = vmatmul.mubr.bf16.gmra.mxu0 %v4769_v1  ;;  %v4835_v1 = vld [vmem:[%s5795_s18 + $0x19c] ss:$20 sps:$4 sm:$0xff]  }
  0xe6   : > { %1492 = vmatmul.mubr.bf16.gmra.mxu1 %v4770_v18  ;;  %1388 = vmatprep.mubr.bf16.mxu0 %v4774_v20  ;;  %v6165_v18 = vld [vmem:[%s7999_s1 + $0x50] ss:$8 sps:$4 sm:$0xff]  }
  0xe7   : > { %2031 = vmatpush2.bf16.msra.mxu1 %v5715_v34  ;;  %1501 = vmatprep.mubr.bf16.mxu1 %v4776_v22  ;;  %v4785_v34 = vld [vmem:[%s5795_s18 + $0xf8] ss:$20 sps:$4 sm:$0xff]  }
  0xe8   : > { %2032 = vmatprep.subr.bf16.mxu1 %v5727_v36  ;;  %v4789_v36 = vld [vmem:[%s5795_s18 + $0x11c] ss:$20 sps:$4 sm:$0xff]   ;;  %v6177_v22 = vld [vmem:[%s7999_s1 + $0x44] ss:$8 sps:$4 sm:$0xff]  }
  0xe9   : > { %v6171_v20 = vld [vmem:[%s7999_s1 + $0x150] ss:$8 sps:$4 sm:$0xff]  }
  0xeb   : > { %2033 = vmatpush2.bf16.msra.mxu1 %v5740_v38  ;;  %v4791_v38 = vld [vmem:[%s5795_s18 + $0x124] ss:$20 sps:$4 sm:$0xff]  }
  0xec   : > { %2034 = vmatprep.subr.bf16.mxu1 %v5752_v40  ;;  %v4793_v40 = vld [vmem:[%s5795_s18 + $0x118] ss:$20 sps:$4 sm:$0xff]  }
  0xed   : > { %1389 = vmatmul.mubr.bf16.gmra.mxu0 %v4778_v24  ;;  %v6183_v24 = vld [vmem:[%s7999_s1 + $0x144] ss:$8 sps:$4 sm:$0xff]  }
  0xee   : > { %1502 = vmatmul.mubr.bf16.gmra.mxu1 %v4779_v26  ;;  %1398 = vmatprep.mubr.bf16.mxu0 %v4780_v28  ;;  %v4837_v26 = vld [vmem:[%s5795_s18 + $0x198] ss:$20 sps:$4 sm:$0xff]   ;;  %v4838_v28 = vld [vmem:[%s5795_s18 + $0x1a0] ss:$20 sps:$4 sm:$0xff]  }
  0xef   : > { %2035 = vmatpush2.bf16.msra.mxu1 %v5764_v42  ;;  %1511 = vmatprep.mubr.bf16.mxu1 %v4782_v30  ;;  %v4794_v42 = vld [vmem:[%s5795_s18 + $0x120] ss:$20 sps:$4 sm:$0xff]  }
  0xf0   : > { %2036 = vmatprep.subr.bf16.mxu1 %v5776_v44  ;;  %v4797_v44 = vld [vmem:[%s5795_s18 + $0x144] ss:$20 sps:$4 sm:$0xff]   ;;  %v6192_v30 = vld [vmem:[%s7999_s1 + $0x40] ss:$8 sps:$4 sm:$0xff]  }
  0xf3   : > { %2037 = vmatpush2.bf16.msra.mxu1 %v5788_v46  ;;  %v8010_v46 = vmov 0  }
  0xf4   : > { %2038 = vmatprep.subr.bf16.mxu1 %v5800_v48  ;;  %v4795_v48 = vld [vmem:[%s5795_s18 + $0x140] ss:$20 sps:$4 sm:$0xff]  }
  0xf5   : > { %1399 = vmatmul.mubr.bf16.gmra.mxu0 %v4784_v32  ;;  %v6198_v32 = vld [vmem:[%s7999_s1 + $0x140] ss:$8 sps:$4 sm:$0xff]  }
  0xf6   : > { %1512 = vmatmul.mubr.bf16.gmra.mxu1 %v4785_v34  ;;  %1408 = vmatprep.mubr.bf16.mxu0 %v4789_v36  ;;  %v6204_v34 = vld [vmem:[%s7999_s1 + $0x34] ss:$8 sps:$4 sm:$0xff]  }
  0xf7   : > { %2039 = vmatpush2.bf16.msra.mxu1 %v5816_v52  ;;  %1521 = vmatprep.mubr.bf16.mxu1 %v4791_v38  ;;  %v4798_v52 = vld [vmem:[%s5795_s18 + $0x10] ss:$20 sps:$4 sm:$0xff]   ;;  %v6210_v36 = vld [vmem:[%s7999_s1 + $0x134] ss:$8 sps:$4 sm:$0xff]  }
  0xf8   : > { %2040 = vmatprep.subr.bf16.mxu1 %v5828_v54  ;;  %v4799_v54 = vld [vmem:[%s5795_s18 + $0x16c] ss:$20 sps:$4 sm:$0xff]   ;;  %v4839_v38 = vld [vmem:[%s5795_s18 + $0x1c4] ss:$20 sps:$4 sm:$0xff]  }
  0xfb   : > { %2041 = vmatpush2.bf16.msra.mxu1 %v5840_v56  ;;  %v4801_v56 = vld [vmem:[%s5795_s18 + $0x38] ss:$20 sps:$4 sm:$0xff]  }
  0xfc   : > { %2042 = vmatprep.subr.bf16.mxu1 %v5852_v58  ;;  %v4802_v58 = vld [vmem:[%s5795_s18 + $0x168] ss:$20 sps:$4 sm:$0xff]  }
  0xfd   : > { %1409 = vmatmul.mubr.bf16.gmra.mxu0 %v4793_v40  ;;  %v6218_v40 = vld [vmem:[%s7999_s1 + $0x30] ss:$8 sps:$4 sm:$0xff]  }
  0xfe   : > { %1522 = vmatmul.mubr.bf16.gmra.mxu1 %v4794_v42  ;;  %1564 = vmatprep.mubr.bf16.mxu0 %v8010_v46  ;;  %v6224_v42 = vld [vmem:[%s7999_s1 + $0x130] ss:$8 sps:$4 sm:$0xff]  }
  0xff   : > { %2043 = vmatpush2.bf16.msra.mxu1 %v5864_v60  ;;  %2046 = vmatprep.mubr.bf16.mxu1 %v4797_v44  ;;  %v8102_v60 = vld [vmem:[#allocation8_spill] sm:$0xff] }
 0x100   : > { %2044 = vmatprep.subr.bf16.mxu1 %v5876_v62  ;;  %v4827_v62 = vld [vmem:[%s5795_s18 + $0x148] ss:$20 sps:$4 sm:$0xff]   ;;  %v6230_v44 = vld [vmem:[%s7999_s1 + $0x24] ss:$8 sps:$4 sm:$0xff]  }
 0x103   : > { %2045 = vmatpush2.bf16.msra.mxu1 %v5888_v49  ;;  %v4830_v49 = vld [vmem:[%s5795_s18 + $0x150] ss:$20 sps:$4 sm:$0xff]  }
 0x104   : > { %2248 = vmatprep.subr.bf16.mxu1 %v5902_v59  ;;  %v8101_v59 = vld [vmem:[#allocation7_spill] sm:$0xff] }
 0x105   : > { %4312 = vmatmul.mubr.msk.bf16.vlgmr.msra.gmra.mxu0 %vm1281_vm0, %v4798_v52  ;;  %v4841_v52 = vld [vmem:[%s5795_s18 + $0x1c0] ss:$20 sps:$4 sm:$0xff]  }
 0x106   : > { %2047 = vmatmul.mubr.bf16.vlgmr.msra.gmra.mxu1 %v4795_v48  ;;  %2128 = vmatpush1.bf16.msra.mxu0 %v5531_v3  ;;  %v4803_v3 = vld [vmem:[%s5795_s18 + $0x194] ss:$20 sps:$4 sm:$0xff]   ;;  %v6236_v48 = vld [vmem:[%s7999_s1 + $0x124] ss:$8 sps:$4 sm:$0xff]  }
 0x107   : > { %2249 = vmatpush1.bf16.msra.mxu1 %v5911_v61  ;;  %2129 = vmatprep.subr.bf16.mxu0 %v5544_v5  ;;  %v4805_v5 = vld [vmem:[%s5795_s18 + $0x60] ss:$20 sps:$4 sm:$0xff]  }
 0x108   : > { %1574 = vmatprep.mubr.bf16.mxu0 %v8010_v46  ;;  %2056 = vmatprep.mubr.bf16.mxu1 %v4799_v54  ;;  %v8103_v61 = vld [vmem:[#allocation9_spill] sm:$0xff]  ;;  %v4842_v54 = vld [vmem:[%s5795_s18 + $0x1c8] ss:$20 sps:$4 sm:$0xff]  }
 0x109   : > { %2250 = vmatprep.subr.bf16.mxu1 %v5920_v50  ;;  %v8100_v50 = vld [vmem:[#allocation6_spill] sm:$0xff] }
 0x10a   : > { %2130 = vmatpush1.bf16.msra.mxu0 %v5555_v7  ;;  %v4806_v7 = vld [vmem:[%s5795_s18 + $0x190] ss:$20 sps:$4 sm:$0xff]  }
 0x10b   : > { %2251 = vmatpush1.bf16.msra.mxu1 %v5927_v51  ;;  %2131 = vmatprep.subr.bf16.mxu0 %v5566_v9  ;;  %v4807_v9 = vld [vmem:[%s5795_s18 + $0x1bc] ss:$20 sps:$4 sm:$0xff]  }
 0x10c   : > { %2252 = vmatprep.subr.bf16.mxu1 %v5933_v0  ;;  %v8104_v51 = vld [vmem:[#allocation10_spill] sm:$0xff] }
 0x10d   : > { %4313 = vmatmul.mubr.msk.bf16.gmra.mxu0 %vm1281_vm0, %v4801_v56  ;;  %v6104_v0 = vld [vmem:[%s7999_s1 + $0x74] ss:$8 sps:$4 sm:$0xff]   ;;  %v6245_v56 = vld [vmem:[%s7999_s1 + $0x20] ss:$8 sps:$4 sm:$0xff]  }
 0x10e   : > { %2057 = vmatmul.mubr.bf16.gmra.mxu1 %v4802_v58  ;;  %2132 = vmatpush1.bf16.msra.mxu0 %v5576_v11  ;;  %v6050_v11 = vld [vmem:[%s7999_s1 + $0x174] ss:$8 sps:$4 sm:$0xff]   ;;  %v6251_v58 = vld [vmem:[%s7999_s1 + $0x120] ss:$8 sps:$4 sm:$0xff]  }
 0x10f   : > { %1584 = vmatprep.mubr.bf16.mxu0 %v8010_v46  ;;  %2133 = vmatprep.subr.bf16.mxu0 %v5590_v13  ;;  %v4809_v13 = vld [vmem:[%s5795_s18 + $0x88] ss:$20 sps:$4 sm:$0xff]   ;;  %8108 = vst [vmem:[#allocation6_spill] sm:$0xff] %v6251_v58 }
 0x110   : > { %2066 = vmatprep.mubr.bf16.mxu1 %v4803_v3  ;;  %2253 = vmatpush1.bf16.msra.mxu1 %v5947_v53  ;;  %v6112_v53 = vld [vmem:[%s7999_s1 + $0x70] ss:$8 sps:$4 sm:$0xff]   ;;  %v6257_v3 = vld [vmem:[%s7999_s1 + $0x14] ss:$8 sps:$4 sm:$0xff]  }
 0x111   : > { %2254 = vmatprep.subr.bf16.mxu1 %v5952_v6  ;;  %v6118_v6 = vld [vmem:[%s7999_s1 + $0x170] ss:$8 sps:$4 sm:$0xff]  }
 0x112   : > { %2134 = vmatpush1.bf16.msra.mxu0 %v5602_v15  ;;  %v4810_v15 = vld [vmem:[%s5795_s18 + $0x1b8] ss:$20 sps:$4 sm:$0xff]  }
 0x113   : > { %2135 = vmatprep.subr.bf16.mxu0 %v5614_v17  ;;  %v4811_v17 = vld [vmem:[%s5795_s18 + $0x1e4] ss:$20 sps:$4 sm:$0xff]  }
 0x114   : > { %2255 = vmatpush1.bf16.msra.mxu1 %v5961_v63 }
 0x115   : > { %4314 = vmatmul.mubr.msk.bf16.gmra.mxu0 %vm1281_vm0, %v4805_v5  ;;  %2867 = vmatprep.subr.bf16.mxu1 %v6050_v11  ;;  %v6263_v5 = vld [vmem:[%s7999_s1 + $0x114] ss:$8 sps:$4 sm:$0xff]  }
 0x116   : > { %2067 = vmatmul.mubr.bf16.gmra.mxu1 %v4806_v7  ;;  %2136 = vmatpush1.bf16.msra.mxu0 %v5624_v19  ;;  %v4813_v19 = vld [vmem:[%s5795_s18 + $0xb0] ss:$20 sps:$4 sm:$0xff]   ;;  %8109 = vst [vmem:[#allocation7_spill] sm:$0xff] %v6263_v5  ;;  %v4843_v7 = vld [vmem:[%s5795_s18 + $0x1ec] ss:$20 sps:$4 sm:$0xff]  }
 0x117   : > { %1594 = vmatprep.mubr.bf16.mxu0 %v8010_v46  ;;  %2137 = vmatprep.subr.bf16.mxu0 %v5638_v21  ;;  %v4814_v21 = vld [vmem:[%s5795_s18 + $0x1e0] ss:$20 sps:$4 sm:$0xff]  }
 0x118   : > { %2076 = vmatprep.mubr.bf16.mxu1 %v4807_v9  ;;  %v6271_v9 = vld [vmem:[%s7999_s1 + $0x10] ss:$8 sps:$4 sm:$0xff]  }
 0x11a   : > { %2138 = vmatpush1.bf16.msra.mxu0 %v5650_v23  ;;  %v4815_v23 = vld [vmem:[%s5795_s18 + $0x20c] ss:$20 sps:$4 sm:$0xff]  }
 0x11b   : > { %2139 = vmatprep.subr.bf16.mxu0 %v5662_v25  ;;  %v4817_v25 = vld [vmem:[%s5795_s18 + $0xd8] ss:$20 sps:$4 sm:$0xff]  }
 0x11d   : > { %4315 = vmatmul.mubr.msk.bf16.gmra.mxu0 %vm1281_vm0, %v4809_v13  ;;  %v6277_v13 = vld [vmem:[%s7999_s1 + $0x110] ss:$8 sps:$4 sm:$0xff]  }
 0x11e   : > { %2077 = vmatmul.mubr.bf16.gmra.mxu1 %v4810_v15  ;;  %2140 = vmatpush1.bf16.msra.mxu0 %v5672_v27  ;;  %v4818_v27 = vld [vmem:[%s5795_s18 + $0x208] ss:$20 sps:$4 sm:$0xff]   ;;  %8110 = vst [vmem:[#allocation8_spill] sm:$0xff] %v6277_v13  ;;  %v6283_v15 = vld [vmem:[%s7999_s1 + $0x4] ss:$8 sps:$4 sm:$0xff]  }
 0x11f   : > { %1604 = vmatprep.mubr.bf16.mxu0 %v8010_v46  ;;  %2141 = vmatprep.subr.bf16.mxu0 %v5686_v29  ;;  %v4819_v29 = vld [vmem:[%s5795_s18 + $0x234] ss:$20 sps:$4 sm:$0xff]  }
 0x120   : > { %2086 = vmatprep.mubr.bf16.mxu1 %v4811_v17  ;;  %v6289_v17 = vld [vmem:[%s7999_s1 + $0x104] ss:$8 sps:$4 sm:$0xff]  }
 0x121   : > { %8111 = vst [vmem:[#allocation9_spill] sm:$0xff] %v6289_v17 }
 0x122   : > { %2142 = vmatpush1.bf16.msra.mxu0 %v5698_v31  ;;  %v4821_v31 = vld [vmem:[%s5795_s18 + $0x100] ss:$20 sps:$4 sm:$0xff]  }
 0x123   : > { %2143 = vmatprep.subr.bf16.mxu0 %v5710_v33  ;;  %v4822_v33 = vld [vmem:[%s5795_s18 + $0x230] ss:$20 sps:$4 sm:$0xff]  }
 0x125   : > { %4316 = vmatmul.mubr.msk.bf16.gmra.mxu0 %vm1281_vm0, %v4813_v19  ;;  %v4845_v19 = vld [vmem:[%s5795_s18 + $0x1e8] ss:$20 sps:$4 sm:$0xff]  }
 0x126   : > { %2087 = vmatmul.mubr.bf16.gmra.mxu1 %v4814_v21  ;;  %2144 = vmatpush2.bf16.msra.mxu0 %v5720_v35  ;;  %v8097_v35 = vld [vmem:[#allocation3_spill] sm:$0xff] }
 0x127   : > { %1614 = vmatprep.mubr.bf16.mxu0 %v8010_v46  ;;  %2145 = vmatprep.subr.bf16.mxu0 %v5734_v37  ;;  %v4823_v37 = vld [vmem:[%s5795_s18 + $0x25c] ss:$20 sps:$4 sm:$0xff]   ;;  %8105 = vst [vmem:[#allocation3_spill] sm:$0xff] %v6210_v36 }
 0x128   : > { %2096 = vmatprep.mubr.bf16.mxu1 %v4815_v23  ;;  %v4846_v21 = vld [vmem:[%s5795_s18 + $0x1f0] ss:$20 sps:$4 sm:$0xff]   ;;  %v6298_v23 = vld [vmem:[%s7999_s1] ss:$8 sps:$4 sm:$0xff]  }
 0x12a   : > { %2146 = vmatpush2.bf16.msra.mxu0 %v5747_v39  ;;  %v8098_v39 = vld [vmem:[#allocation4_spill] sm:$0xff] }
 0x12b   : > { %2147 = vmatprep.subr.bf16.mxu0 %v5759_v41  ;;  %v8099_v41 = vld [vmem:[#allocation5_spill] sm:$0xff]  ;;  %8106 = vst [vmem:[#allocation4_spill] sm:$0xff] %v6224_v42 }
 0x12c   : > { %8107 = vst [vmem:[#allocation5_spill] sm:$0xff] %v6236_v48 }
 0x12d   : > { %4317 = vmatmul.mubr.msk.bf16.gmra.mxu0 %vm1281_vm0, %v4817_v25  ;;  %v6304_v25 = vld [vmem:[%s7999_s1 + $0x100] ss:$8 sps:$4 sm:$0xff]  }
 0x12e   : > { %2097 = vmatmul.mubr.bf16.gmra.mxu1 %v4818_v27  ;;  %2148 = vmatpush2.bf16.msra.mxu0 %v5769_v43  ;;  %v4825_v43 = vld [vmem:[%s5795_s18 + $0x128] ss:$20 sps:$4 sm:$0xff]   ;;  %8112 = vst [vmem:[#allocation10_spill] sm:$0xff] %v6304_v25 }
 0x12f   : > { %1624 = vmatprep.mubr.bf16.mxu0 %v8010_v46  ;;  %2149 = vmatprep.subr.bf16.mxu0 %v5783_v45  ;;  %v4826_v45 = vld [vmem:[%s5795_s18 + $0x258] ss:$20 sps:$4 sm:$0xff]   ;;  %v6310_v27 = vld [vmem:[%s7999_s1 + $0xf4] ss:$8 sps:$4 sm:$0xff]  }
 0x130   : > { %2106 = vmatprep.mubr.bf16.mxu1 %v4819_v29  ;;  %v6316_v29 = vld [vmem:[%s7999_s1 + $0x1f4] ss:$8 sps:$4 sm:$0xff]  }
 0x131   : > { %8113 = vst [vmem:[#allocation11_spill] sm:$0xff] %v6316_v29 }
 0x132   : > { %2150 = vmatpush2.bf16.msra.mxu0 %v5793_v47  ;;  %v4829_v47 = vld [vmem:[%s5795_s18 + $0x14c] ss:$20 sps:$4 sm:$0xff]  }
 0x133   : > { %2151 = vmatprep.subr.bf16.mxu0 %v8097_v35  ;;  %v6330_v35 = vld [vmem:[%s7999_s1 + $0x1f0] ss:$8 sps:$4 sm:$0xff]  }
 0x134   : > { %8114 = vst [vmem:[#allocation12_spill] sm:$0xff] %v6330_v35 }
 0x135   : > { %4318 = vmatmul.mubr.msk.bf16.gmra.mxu0 %vm1281_vm0, %v4821_v31  ;;  %v4847_v31 = vld [vmem:[%s5795_s18 + $0x214] ss:$20 sps:$4 sm:$0xff]  }
 0x136   : > { %2107 = vmatmul.mubr.bf16.gmra.mxu1 %v4822_v33  ;;  %2152 = vmatpush2.bf16.msra.mxu0 %v8098_v39  ;;  %v6324_v33 = vld [vmem:[%s7999_s1 + $0xf0] ss:$8 sps:$4 sm:$0xff]   ;;  %v6342_v39 = vld [vmem:[%s7999_s1 + $0x1e4] ss:$8 sps:$4 sm:$0xff]  }
 0x137   : > { %1634 = vmatprep.mubr.bf16.mxu0 %v8010_v46  ;;  %2153 = vmatprep.subr.bf16.mxu0 %v8099_v41  ;;  %8115 = vst [vmem:[#allocation13_spill] sm:$0xff] %v6342_v39  ;;  %v4849_v41 = vld [vmem:[%s5795_s18 + $0x210] ss:$20 sps:$4 sm:$0xff]  }
 0x138   : > { %2116 = vmatprep.mubr.bf16.mxu1 %v4823_v37  ;;  %v6336_v37 = vld [vmem:[%s7999_s1 + $0xe4] ss:$8 sps:$4 sm:$0xff]  }
 0x13a   : > { %2154 = vmatpush2.bf16.msra.mxu0 %v8100_v50  ;;  %v6357_v50 = vld [vmem:[%s7999_s1 + $0x1e0] ss:$8 sps:$4 sm:$0xff]  }
 0x13b   : > { %2155 = vmatprep.subr.bf16.mxu0 %v8101_v59  ;;  %8116 = vst [vmem:[#allocation14_spill] sm:$0xff] %v6357_v50  ;;  %v6369_v59 = vld [vmem:[%s7999_s1 + $0x1d4] ss:$8 sps:$4 sm:$0xff]  }
 0x13c   : > { %8117 = vst [vmem:[#allocation15_spill] sm:$0xff] %v6369_v59 }
 0x13d   : > { %4319 = vmatmul.mubr.msk.bf16.gmra.mxu0 %vm1281_vm0, %v4825_v43  ;;  %v4850_v43 = vld [vmem:[%s5795_s18 + $0x218] ss:$20 sps:$4 sm:$0xff]  }
 0x13e   : > { %2117 = vmatmul.mubr.bf16.gmra.mxu1 %v4826_v45  ;;  %2156 = vmatpush2.bf16.msra.mxu0 %v8102_v60  ;;  %v6351_v45 = vld [vmem:[%s7999_s1 + $0xe0] ss:$8 sps:$4 sm:$0xff]   ;;  %v4851_v60 = vld [vmem:[%s5795_s18 + $0x23c] ss:$20 sps:$4 sm:$0xff]  }
 0x13f   : > { %2159 = vmatprep.mubr.bf16.mxu0 %v4829_v47  ;;  %2157 = vmatprep.subr.bf16.mxu0 %v8103_v61  ;;  %v6363_v47 = vld [vmem:[%s7999_s1 + $0xd4] ss:$8 sps:$4 sm:$0xff]   ;;  %v6377_v61 = vld [vmem:[%s7999_s1 + $0xd0] ss:$8 sps:$4 sm:$0xff]  }
 0x140   : > { %2272 = vmatprep.mubr.bf16.mxu1 %v8010_v46 }
 0x142   : > { %2158 = vmatpush2.bf16.msra.mxu0 %v8104_v51  ;;  %v6395_v51 = vld [vmem:[%s7999_s1 + $0x1c4] ss:$8 sps:$4 sm:$0xff]  }
 0x143   : > { %2754 = vmatprep.subr.bf16.mxu0 %v6104_v0  ;;  %8119 = vst [vmem:[#allocation17_spill] sm:$0xff] %v6395_v51 }
 0x145   : > { %2160 = vmatmul.mubr.bf16.vlgmr.msra.gmra.mxu0 %v4827_v62  ;;  %v6383_v62 = vld [vmem:[%s7999_s1 + $0x1d0] ss:$8 sps:$4 sm:$0xff]  }
 0x146   : > { %4408 = vmatmul.mubr.msk.bf16.vlgmr.msra.gmra.mxu1 %vm1281_vm0, %v4830_v49  ;;  %2755 = vmatpush1.bf16.msra.mxu0 %v6112_v53  ;;  %8118 = vst [vmem:[#allocation16_spill] sm:$0xff] %v6383_v62  ;;  %v6389_v49 = vld [vmem:[%s7999_s1 + $0xc4] ss:$8 sps:$4 sm:$0xff]  }
 0x147   : > { %2868 = vmatpush1.bf16.msra.mxu1 %v6118_v6  ;;  %2756 = vmatprep.subr.bf16.mxu0 %v6124_v8 }
 0x148   : > { %2869 = vmatprep.subr.bf16.mxu1 %v6130_v57  ;;  %2169 = vmatprep.mubr.bf16.mxu0 %v4831_v4  ;;  %v4853_v4 = vld [vmem:[%s5795_s18 + $0x238] ss:$20 sps:$4 sm:$0xff]  }
 0x149   : > { %2282 = vmatprep.mubr.bf16.mxu1 %v8010_v46 }
 0x14a   : > { %2757 = vmatpush1.bf16.msra.mxu0 %v6139_v14 }
 0x14b   : > { %2870 = vmatpush1.bf16.msra.mxu1 %v6145_v55  ;;  %2758 = vmatprep.subr.bf16.mxu0 %v6151_v16 }
 0x14c   : > { %2871 = vmatprep.subr.bf16.mxu1 %v6157_v2 }
 0x14d   : > { %2170 = vmatmul.mubr.bf16.gmra.mxu0 %v4833_v10  ;;  %v4854_v10 = vld [vmem:[%s5795_s18 + $0x240] ss:$20 sps:$4 sm:$0xff]  }
 0x14e   : > { %4409 = vmatmul.mubr.msk.bf16.gmra.mxu1 %vm1281_vm0, %v4834_v12  ;;  %2759 = vmatpush1.bf16.msra.mxu0 %v6165_v18  ;;  %v6404_v12 = vld [vmem:[%s7999_s1 + $0xc0] ss:$8 sps:$4 sm:$0xff]  }
 0x14f   : > { %2872 = vmatpush1.bf16.msra.mxu1 %v6171_v20  ;;  %2760 = vmatprep.subr.bf16.mxu0 %v6177_v22 }
 0x150   : > { %2873 = vmatprep.subr.bf16.mxu1 %v6183_v24  ;;  %2179 = vmatprep.mubr.bf16.mxu0 %v4835_v1  ;;  %v6410_v1 = vld [vmem:[%s7999_s1 + $0x1c0] ss:$8 sps:$4 sm:$0xff]  }
 0x151   : > { %2292 = vmatprep.mubr.bf16.mxu1 %v8010_v46  ;;  %8120 = vst [vmem:[#allocation18_spill] sm:$0xff] %v6410_v1 }
 0x152   : > { %2761 = vmatpush1.bf16.msra.mxu0 %v6192_v30 }
 0x153   : > { %2874 = vmatpush1.bf16.msra.mxu1 %v6198_v32  ;;  %2762 = vmatprep.subr.bf16.mxu0 %v6204_v34 }
 0x154   : > { %2875 = vmatprep.subr.bf16.mxu1 %v6210_v36 }
 0x155   : > { %2180 = vmatmul.mubr.bf16.gmra.mxu0 %v4837_v26  ;;  %v6416_v26 = vld [vmem:[%s7999_s1 + $0xb4] ss:$8 sps:$4 sm:$0xff]  }
 0x156   : > { %4410 = vmatmul.mubr.msk.bf16.gmra.mxu1 %vm1281_vm0, %v4838_v28  ;;  %2763 = vmatpush1.bf16.msra.mxu0 %v6218_v40  ;;  %v6422_v28 = vld [vmem:[%s7999_s1 + $0x1b4] ss:$8 sps:$4 sm:$0xff]  }
 0x157   : > { %2876 = vmatpush1.bf16.msra.mxu1 %v6224_v42  ;;  %2764 = vmatprep.subr.bf16.mxu0 %v6230_v44  ;;  %8121 = vst [vmem:[#allocation19_spill] sm:$0xff] %v6422_v28 }
 0x158   : > { %2877 = vmatprep.subr.bf16.mxu1 %v6236_v48  ;;  %2189 = vmatprep.mubr.bf16.mxu0 %v4839_v38  ;;  %v4855_v38 = vld [vmem:[%s5795_s18 + $0x264] ss:$20 sps:$4 sm:$0xff]  }
 0x159   : > { %2302 = vmatprep.mubr.bf16.mxu1 %v8010_v46 }
 0x15a   : > { %2765 = vmatpush1.bf16.msra.mxu0 %v6245_v56 }
 0x15b   : > { %2878 = vmatpush1.bf16.msra.mxu1 %v6251_v58  ;;  %2766 = vmatprep.subr.bf16.mxu0 %v6257_v3 }
 0x15c   : > { %2879 = vmatprep.subr.bf16.mxu1 %v6263_v5 }
 0x15d   : > { %2190 = vmatmul.mubr.bf16.gmra.mxu0 %v4841_v52  ;;  %v6430_v52 = vld [vmem:[%s7999_s1 + $0xb0] ss:$8 sps:$4 sm:$0xff]  }
 0x15e   : > { %4411 = vmatmul.mubr.msk.bf16.gmra.mxu1 %vm1281_vm0, %v4842_v54  ;;  %2767 = vmatpush1.bf16.msra.mxu0 %v6271_v9  ;;  %v6436_v54 = vld [vmem:[%s7999_s1 + $0x1b0] ss:$8 sps:$4 sm:$0xff]  }
 0x15f   : > { %2880 = vmatpush1.bf16.msra.mxu1 %v6277_v13  ;;  %2768 = vmatprep.subr.bf16.mxu0 %v6283_v15  ;;  %8122 = vst [vmem:[#allocation20_spill] sm:$0xff] %v6436_v54 }
 0x160   : > { %2881 = vmatprep.subr.bf16.mxu1 %v6289_v17  ;;  %2199 = vmatprep.mubr.bf16.mxu0 %v4843_v7  ;;  %v711_v7 = vlaneseq }
 0x161   : > { %2312 = vmatprep.mubr.bf16.mxu1 %v8010_v46 }
 0x162   : > { %2769 = vmatpush1.bf16.msra.mxu0 %v6298_v23 }
 0x163   : > { %2882 = vmatpush1.bf16.msra.mxu1 %v6304_v25  ;;  %2770 = vmatprep.subr.bf16.mxu0 %v6310_v27 }
 0x164   : > { %2883 = vmatprep.subr.bf16.mxu1 %v6316_v29  ;;  %v4870_v29 = vld [vmem:[%s5795_s18 + $0x2b0] ss:$20 sps:$4 sm:$0xff]  }
 0x165   : > { %2200 = vmatmul.mubr.bf16.gmra.mxu0 %v4845_v19  ;;  %v6442_v19 = vld [vmem:[%s7999_s1 + $0xa4] ss:$8 sps:$4 sm:$0xff]  }
 0x166   : > { %4412 = vmatmul.mubr.msk.bf16.gmra.mxu1 %vm1281_vm0, %v4846_v21  ;;  %2771 = vmatpush2.bf16.msra.mxu0 %v6324_v33  ;;  %v6448_v21 = vld [vmem:[%s7999_s1 + $0x1a4] ss:$8 sps:$4 sm:$0xff]  }
 0x167   : > { %2884 = vmatpush2.bf16.msra.mxu1 %v6330_v35  ;;  %2772 = vmatprep.subr.bf16.mxu0 %v6336_v37  ;;  %8123 = vst [vmem:[#allocation21_spill] sm:$0xff] %v6448_v21  ;;  %v4869_v35 = vld [vmem:[%s5795_s18 + $0x2a8] ss:$20 sps:$4 sm:$0xff]  }
 0x168   : > { %2885 = vmatprep.subr.bf16.mxu1 %v6342_v39  ;;  %2209 = vmatprep.mubr.bf16.mxu0 %v4847_v31  ;;  %v4857_v31 = vld [vmem:[%s5795_s18 + $0x260] ss:$20 sps:$4 sm:$0xff]  }
 0x169   : > { %2322 = vmatprep.mubr.bf16.mxu1 %v8010_v46 }
 0x16a   : > { %2773 = vmatpush2.bf16.msra.mxu0 %v6351_v45 }
 0x16b   : > { %2886 = vmatpush2.bf16.msra.mxu1 %v6357_v50  ;;  %2774 = vmatprep.subr.bf16.mxu0 %v6363_v47 }
 0x16c   : > { %2887 = vmatprep.subr.bf16.mxu1 %v6369_v59  ;;  %v4867_v59 = vld [vmem:[%s5795_s18 + $0x2b4] ss:$20 sps:$4 sm:$0xff]  }
 0x16d   : > { %2210 = vmatmul.mubr.bf16.gmra.mxu0 %v4849_v41  ;;  %v4858_v41 = vld [vmem:[%s5795_s18 + $0x268] ss:$20 sps:$4 sm:$0xff]  }
 0x16e   : > { %4413 = vmatmul.mubr.msk.bf16.gmra.mxu1 %vm1281_vm0, %v4850_v43  ;;  %2775 = vmatpush2.bf16.msra.mxu0 %v6377_v61  ;;  %v6457_v43 = vld [vmem:[%s7999_s1 + $0xa0] ss:$8 sps:$4 sm:$0xff]  }
 0x16f   : > { %2888 = vmatpush2.bf16.msra.mxu1 %v6383_v62  ;;  %2776 = vmatprep.subr.bf16.mxu0 %v6389_v49 }
 0x170   : > { %2889 = vmatprep.subr.bf16.mxu1 %v6395_v51  ;;  %2219 = vmatprep.mubr.bf16.mxu0 %v4851_v60  ;;  %v6463_v60 = vld [vmem:[%s7999_s1 + $0x1a0] ss:$8 sps:$4 sm:$0xff]  }
 0x171   : > { %2332 = vmatprep.mubr.bf16.mxu1 %v8010_v46  ;;  %8124 = vst [vmem:[#allocation22_spill] sm:$0xff] %v6463_v60  ;;  %v6513_v51 = vld [vmem:[%s7999_s1 + $0x80] ss:$8 sps:$4 sm:$0xff]  }
 0x172   : > { %2777 = vmatpush2.bf16.msra.mxu0 %v6404_v12 }
 0x173   : > { %2890 = vmatpush2.bf16.msra.mxu1 %v6410_v1  ;;  %2778 = vmatprep.subr.bf16.mxu0 %v6416_v26  ;;  %v4862_v1 = vld [vmem:[%s5795_s18 + $0x288] ss:$20 sps:$4 sm:$0xff]  }
 0x174   : > { %2891 = vmatprep.subr.bf16.mxu1 %v6422_v28  ;;  %v4859_v28 = vld [vmem:[%s5795_s18 + $0x280] ss:$20 sps:$4 sm:$0xff]  }
 0x175   : > { %2220 = vmatmul.mubr.bf16.gmra.mxu0 %v4853_v4  ;;  %v712_v4 = vshrl.u32 %v711_v7, 7  ;;  %v6484_v7 = vld [vmem:[%s7999_s1 + $0x90] ss:$8 sps:$4 sm:$0xff]  }
 0x176   : > { %4414 = vmatmul.mubr.msk.bf16.gmra.mxu1 %vm1281_vm0, %v4854_v10  ;;  %2779 = vmatpush2.bf16.msra.mxu0 %v6430_v52  ;;  %v6469_v10 = vld [vmem:[%s7999_s1 + $0x94] ss:$8 sps:$4 sm:$0xff]  }
 0x177   : > { %2892 = vmatpush2.bf16.msra.mxu1 %v6436_v54  ;;  %2780 = vmatprep.subr.bf16.mxu0 %v6442_v19  ;;  %v717_v54 = vsub.s32 1, %v712_v4 }
 0x178   : > { %2893 = vmatprep.subr.bf16.mxu1 %v6448_v21  ;;  %2229 = vmatprep.mubr.bf16.mxu0 %v4855_v38  ;;  %v6475_v38 = vld [vmem:[%s7999_s1 + $0x194] ss:$8 sps:$4 sm:$0xff]   ;;  %v4864_v21 = vld [vmem:[%s5795_s18 + $0x28c] ss:$20 sps:$4 sm:$0xff]  }
 0x179   : > { %2342 = vmatprep.mubr.bf16.mxu1 %v8010_v46  ;;  %8125 = vst [vmem:[#allocation23_spill] sm:$0xff] %v6475_v38  ;;  %v4861_v46 = vld [vmem:[%s5795_s18 + $0x284] ss:$20 sps:$4 sm:$0xff]  }
 0x17a   : > { %2781 = vmatpush2.bf16.msra.mxu0 %v6457_v43 }
 0x17b   : > { %2894 = vmatpush2.bf16.msra.mxu1 %v6463_v60  ;;  %2782 = vmatprep.subr.bf16.mxu0 %v6469_v10  ;;  %v6490_v60 = vld [vmem:[%s7999_s1 + $0x190] ss:$8 sps:$4 sm:$0xff]  }
 0x17c   : > { %2895 = vmatprep.subr.bf16.mxu1 %v6475_v38  ;;  %8126 = vst [vmem:[#allocation24_spill] sm:$0xff] %v6490_v60  ;;  %v713_v38 = vsub.s32 0, %v712_v4 }
 0x17d   : > { %2230 = vmatmul.mubr.bf16.gmra.mxu0 %v4857_v31  ;;  %v6496_v31 = vld [vmem:[%s7999_s1 + $0x84] ss:$8 sps:$4 sm:$0xff]  }
 0x17e   : > { %4415 = vmatmul.mubr.msk.bf16.gmra.mxu1 %vm1281_vm0, %v4858_v41  ;;  %2783 = vmatpush2.bf16.msra.mxu0 %v6484_v7  ;;  %v6502_v41 = vld [vmem:[%s7999_s1 + $0x184] ss:$8 sps:$4 sm:$0xff]  }
 0x17f   : > { %2896 = vmatpush2.bf16.msra.mxu1 %v6490_v60  ;;  %2784 = vmatprep.subr.bf16.mxu0 %v6496_v31  ;;  %8127 = vst [vmem:[#allocation25_spill] sm:$0xff] %v6502_v41  ;;  %v661_v60 = vld [vmem:[%s8000_s2] sm:$0x3] }
 0x180   : > { %2897 = vmatprep.subr.bf16.mxu1 %v6502_v41  ;;  %2786 = vmatprep.mubr.bf16.mxu0 %v4861_v46  ;;  %v6519_v41 = vld [vmem:[%s7999_s1 + $0x180] ss:$8 sps:$4 sm:$0xff]   ;;  %v6522_v62 = vrot.slane %v661_v60, %v713_v38  ;;  %v6527_v46 = vld [vmem:[%s7999_s1 + $0x234] ss:$8 sps:$4 sm:$0xff]   ;;  %v6532_v4 = vrot.slane %v661_v60, %v717_v54 }
 0x181   : > { %2899 = vmatprep.mubr.bf16.mxu1 %v4864_v21  ;;  %8128 = vst [vmem:[#allocation26_spill] sm:$0xff] %v6519_v41  ;;  %v4865_v21 = vld [vmem:[%s5795_s18 + $0x2ac] ss:$20 sps:$4 sm:$0xff]  }
 0x182   : > { %2785 = vmatpush2.bf16.msra.mxu0 %v6513_v51  ;;  %8129 = vst [vmem:[#allocation27_spill] sm:$0xff] %v6522_v62  ;;  %8130 = vst [vmem:[#allocation28_spill] sm:$0xff] %v6532_v4 }
 0x183   : > { %2898 = vmatpush2.bf16.msra.mxu1 %v6519_v41  ;;  %2988 = vmatprep.subr.bf16.mxu0 %v6527_v46  ;;  %v6539_v41 = vld [vmem:[%s7999_s1 + $0x230] ss:$8 sps:$4 sm:$0xff]  }
 0x184   : > { %3494 = vmatprep.subr.bf16.mxu1 %v6104_v0 }
 0x185   : > { %v1340_v50 = vpop.f32.mrf.mxu0  ;;  %2787 = vmatmul.mubr.bf16.vlgmr.msra.gmra.mxu0 %v4859_v28  ;;  %v6550_v28 = vld [vmem:[%s7999_s1 + $0x224] ss:$8 sps:$4 sm:$0xff]  }
 0x186   : > { %v1453_v39 = vpop.f32.mrf.mxu1  ;;  %2900 = vmatmul.mubr.bf16.vlgmr.msra.gmra.mxu1 %v4862_v1  ;;  %v1341_v38 = vadd.f32 %v1340_v50, %v6522_v62  ;;  %2989 = vmatpush1.bf16.msra.mxu0 %v6539_v41 }
 0x187   : > { %3495 = vmatpush1.bf16.msra.mxu1 %v6112_v53  ;;  %v1342_v0 = vpop.f32.mrf.mxu0  ;;  %2796 = vmatprep.mubr.bf16.mxu0 %v4865_v21 }
 0x188   : > { %v1455_v54 = vpop.f32.mrf.mxu1  ;;  %3496 = vmatprep.subr.bf16.mxu1 %v6124_v8  ;;  %v6544_v1 = vadd.f32 %v1453_v39, %v1341_v38  ;;  %v1343_v50 = vadd.f32 %v1342_v0, %v6532_v4  ;;  %2909 = vmatprep.mubr.bf16.mxu1 %v4867_v59  ;;  %v4871_v39 = vld [vmem:[%s5795_s18 + $0x2d4] ss:$20 sps:$4 sm:$0xff]   ;;  %v4873_v0 = vld [vmem:[%s5795_s18 + $0x2dc] ss:$20 sps:$4 sm:$0xff]  }
 0x189   : > { %2990 = vmatprep.subr.bf16.mxu0 %v6550_v28  ;;  %v1344_v53 = vpop.f32.mrf.mxu0  ;;  %v6563_v59 = vld [vmem:[%s7999_s1 + $0x220] ss:$8 sps:$4 sm:$0xff]  }
 0x18a   : > { %v1457_v60 = vpop.f32.mrf.mxu1  ;;  %v6555_v25 = vadd.f32 %v1455_v54, %v1343_v50  ;;  %v1345_v8 = vadd.f32 %v1344_v53, %v6522_v62  ;;  %2991 = vmatpush1.bf16.msra.mxu0 %v6563_v59  ;;  %v6571_v54 = vld [vmem:[%s7999_s1 + $0x214] ss:$8 sps:$4 sm:$0xff]  }
 0x18b   : > { %3497 = vmatpush1.bf16.msra.mxu1 %v6139_v14  ;;  %v1346_v21 = vpop.f32.mrf.mxu0  ;;  %2992 = vmatprep.subr.bf16.mxu0 %v6571_v54 }
 0x18c   : > { %v1459_v38 = vpop.f32.mrf.mxu1  ;;  %3498 = vmatprep.subr.bf16.mxu1 %v6151_v16  ;;  %v6574_v14 = vadd.f32 %v1457_v60, %v1345_v8  ;;  %v1347_v50 = vadd.f32 %v1346_v21, %v6532_v4  ;;  %v4876_v21 = vld [vmem:[%s5795_s18 + $0x2d8] ss:$20 sps:$4 sm:$0xff]  }
 0x18d   : > { %v1350_v53 = vpop.f32.mrf.mxu0  ;;  %2797 = vmatmul.mubr.bf16.gmra.mxu0 %v4869_v35 }
 0x18e   : > { %v1463_v17 = vpop.f32.mrf.mxu1  ;;  %2910 = vmatmul.mubr.bf16.gmra.mxu1 %v4870_v29  ;;  %v6577_v13 = vadd.f32 %v1459_v38, %v1347_v50  ;;  %v1351_v16 = vadd.f32 %v1350_v53, %v6522_v62  ;;  %2806 = vmatprep.mubr.bf16.mxu0 %v4871_v39  ;;  %v6588_v29 = vld [vmem:[%s7999_s1 + $0x210] ss:$8 sps:$4 sm:$0xff]  }
 0x18f   : > { %3499 = vmatpush1.bf16.msra.mxu1 %v6165_v18  ;;  %v1352_v5 = vpop.f32.mrf.mxu0  ;;  %2919 = vmatprep.mubr.bf16.mxu1 %v4873_v0  ;;  %v4875_v39 = vld [vmem:[%s5795_s18 + $0x2d0] ss:$20 sps:$4 sm:$0xff]  }
 0x190   : > { %v1465_v58 = vpop.f32.mrf.mxu1  ;;  %3500 = vmatprep.subr.bf16.mxu1 %v6177_v22  ;;  %v6582_v60 = vadd.f32 %v1463_v17, %v1351_v16  ;;  %v1353_v35 = vadd.f32 %v1352_v5, %v6532_v4  ;;  %2993 = vmatpush1.bf16.msra.mxu0 %v6588_v29  ;;  %v6596_v22 = vld [vmem:[%s7999_s1 + $0x204] ss:$8 sps:$4 sm:$0xff]   ;;  %v4877_v38 = vld [vmem:[%s5795_s18 + $0x2fc] ss:$20 sps:$4 sm:$0xff]  }
 0x191   : > { %v1354_v18 = vpop.f32.mrf.mxu0  ;;  %2994 = vmatprep.subr.bf16.mxu0 %v6596_v22  ;;  %v4879_v53 = vld [vmem:[%s5795_s18 + $0x304] ss:$20 sps:$4 sm:$0xff]  }
 0x192   : > { %v1467_v8 = vpop.f32.mrf.mxu1  ;;  %v6599_v5 = vadd.f32 %v1465_v58, %v1353_v35  ;;  %v1355_v17 = vadd.f32 %v1354_v18, %v6522_v62 }
 0x193   : > { %3501 = vmatpush1.bf16.msra.mxu1 %v6192_v30  ;;  %v1356_v0 = vpop.f32.mrf.mxu0 }
 0x194   : > { %v1469_v50 = vpop.f32.mrf.mxu1  ;;  %3502 = vmatprep.subr.bf16.mxu1 %v6204_v34  ;;  %v6606_v16 = vadd.f32 %v1467_v8, %v1355_v17  ;;  %v1357_v48 = vadd.f32 %v1356_v0, %v6532_v4  ;;  %2995 = vmatpush1.bf16.msra.mxu0 %v5961_v63  ;;  %v4885_v17 = vld [vmem:[%s5795_s18 + $0x324] ss:$20 sps:$4 sm:$0xff]  }
 0x195   : > { %v1360_v42 = vpop.f32.mrf.mxu0  ;;  %2807 = vmatmul.mubr.bf16.gmra.mxu0 %v4875_v39  ;;  %3607 = vmatprep.subr.bf16.mxu0 %v6050_v11  ;;  %v4881_v39 = vld [vmem:[%s5795_s18 + $0x2f8] ss:$20 sps:$4 sm:$0xff]  }
 0x196   : > { %v1473_v36 = vpop.f32.mrf.mxu1  ;;  %2920 = vmatmul.mubr.bf16.gmra.mxu1 %v4876_v21  ;;  %v6610_v58 = vadd.f32 %v1469_v50, %v1357_v48  ;;  %v1361_v30 = vadd.f32 %v1360_v42, %v6522_v62  ;;  %2816 = vmatprep.mubr.bf16.mxu0 %v4877_v38  ;;  %v4882_v42 = vld [vmem:[%s5795_s18 + $0x300] ss:$20 sps:$4 sm:$0xff]  }
 0x197   : > { %3503 = vmatpush1.bf16.msra.mxu1 %v6218_v40  ;;  %v1362_v34 = vpop.f32.mrf.mxu0  ;;  %2929 = vmatprep.mubr.bf16.mxu1 %v4879_v53 }
 0x198   : > { %v1475_v35 = vpop.f32.mrf.mxu1  ;;  %3504 = vmatprep.subr.bf16.mxu1 %v6230_v44  ;;  %v6615_v63 = vadd.f32 %v1473_v36, %v1361_v30  ;;  %v1363_v18 = vadd.f32 %v1362_v34, %v6532_v4  ;;  %v4888_v36 = vld [vmem:[%s5795_s18 + $0x32c] ss:$20 sps:$4 sm:$0xff]  }
 0x199   : > { %v1364_v48 = vpop.f32.mrf.mxu0 }
 0x19a   : > { %v1477_v8 = vpop.f32.mrf.mxu1  ;;  %v6621_v21 = vadd.f32 %v1475_v35, %v1363_v18  ;;  %v1365_v40 = vadd.f32 %v1364_v48, %v6522_v62 }
 0x19b   : > { %3505 = vmatpush1.bf16.msra.mxu1 %v6245_v56  ;;  %v1366_v44 = vpop.f32.mrf.mxu0 }
 0x19c   : > { %v1479_v38 = vpop.f32.mrf.mxu1  ;;  %3506 = vmatprep.subr.bf16.mxu1 %v6257_v3  ;;  %v6628_v0 = vadd.f32 %v1477_v8, %v1365_v40  ;;  %v1367_v11 = vadd.f32 %v1366_v44, %v6532_v4 }
 0x19d   : > { %v1370_v50 = vpop.f32.mrf.mxu0  ;;  %2817 = vmatmul.mubr.bf16.gmra.mxu0 %v4881_v39  ;;  %v4883_v39 = vld [vmem:[%s5795_s18 + $0x320] ss:$20 sps:$4 sm:$0xff]  }
 0x19e   : > { %v1483_v53 = vpop.f32.mrf.mxu1  ;;  %2930 = vmatmul.mubr.bf16.gmra.mxu1 %v4882_v42  ;;  %v6631_v30 = vadd.f32 %v1479_v38, %v1367_v11  ;;  %v1371_v56 = vadd.f32 %v1370_v50, %v6522_v62  ;;  %2826 = vmatprep.mubr.bf16.mxu0 %v4885_v17  ;;  %v4886_v42 = vld [vmem:[%s5795_s18 + $0x328] ss:$20 sps:$4 sm:$0xff]  }
 0x19f   : > { %3507 = vmatpush1.bf16.msra.mxu1 %v6271_v9  ;;  %v1372_v3 = vpop.f32.mrf.mxu0  ;;  %2939 = vmatprep.mubr.bf16.mxu1 %v4888_v36  ;;  %v4891_v9 = vld [vmem:[%s5795_s18 + $0x34c] ss:$20 sps:$4 sm:$0xff]  }
 0x1a0   : > { %v1485_v34 = vpop.f32.mrf.mxu1  ;;  %3508 = vmatprep.subr.bf16.mxu1 %v6283_v15  ;;  %v6636_v35 = vadd.f32 %v1483_v53, %v1371_v56  ;;  %v1373_v18 = vadd.f32 %v1372_v3, %v6532_v4  ;;  %v4894_v15 = vld [vmem:[%s5795_s18 + $0x354] ss:$20 sps:$4 sm:$0xff]  }
 0x1a1   : > { %v1374_v48 = vpop.f32.mrf.mxu0 }
 0x1a2   : > { %v1487_v8 = vpop.f32.mrf.mxu1  ;;  %v6641_v40 = vadd.f32 %v1485_v34, %v1373_v18  ;;  %v1375_v44 = vadd.f32 %v1374_v48, %v6522_v62 }
 0x1a3   : > { %3509 = vmatpush1.bf16.msra.mxu1 %v6298_v23  ;;  %v1376_v17 = vpop.f32.mrf.mxu0 }
 0x1a4   : > { %v1489_v38 = vpop.f32.mrf.mxu1  ;;  %3510 = vmatprep.subr.bf16.mxu1 %v6310_v27  ;;  %v6648_v36 = vadd.f32 %v1487_v8, %v1375_v44  ;;  %v1377_v11 = vadd.f32 %v1376_v17, %v6532_v4 }
 0x1a5   : > { %v1380_v50 = vpop.f32.mrf.mxu0  ;;  %2827 = vmatmul.mubr.bf16.gmra.mxu0 %v4883_v39  ;;  %v4889_v39 = vld [vmem:[%s5795_s18 + $0x348] ss:$20 sps:$4 sm:$0xff]  }
 0x1a6   : > { %v1493_v53 = vpop.f32.mrf.mxu1  ;;  %2940 = vmatmul.mubr.bf16.gmra.mxu1 %v4886_v42  ;;  %v6651_v56 = vadd.f32 %v1489_v38, %v1377_v11  ;;  %v1381_v23 = vadd.f32 %v1380_v50, %v6522_v62  ;;  %2836 = vmatprep.mubr.bf16.mxu0 %v4891_v9  ;;  %v4892_v42 = vld [vmem:[%s5795_s18 + $0x350] ss:$20 sps:$4 sm:$0xff]  }
 0x1a7   : > { %3511 = vmatpush2.bf16.msra.mxu1 %v6324_v33  ;;  %v1382_v27 = vpop.f32.mrf.mxu0  ;;  %2949 = vmatprep.mubr.bf16.mxu1 %v4894_v15  ;;  %v4897_v33 = vld [vmem:[%s5795_s18 + $0x374] ss:$20 sps:$4 sm:$0xff]  }
 0x1a8   : > { %v1495_v3 = vpop.f32.mrf.mxu1  ;;  %3512 = vmatprep.subr.bf16.mxu1 %v6336_v37  ;;  %v6656_v34 = vadd.f32 %v1493_v53, %v1381_v23  ;;  %v1383_v18 = vadd.f32 %v1382_v27, %v6532_v4  ;;  %v4900_v37 = vld [vmem:[%s5795_s18 + $0x37c] ss:$20 sps:$4 sm:$0xff]  }
 0x1a9   : > { %v1384_v48 = vpop.f32.mrf.mxu0 }
 0x1aa   : > { %v1497_v8 = vpop.f32.mrf.mxu1  ;;  %v6661_v44 = vadd.f32 %v1495_v3, %v1383_v18  ;;  %v1385_v17 = vadd.f32 %v1384_v48, %v6522_v62 }
 0x1ab   : > { %3513 = vmatpush2.bf16.msra.mxu1 %v6351_v45  ;;  %v1386_v9 = vpop.f32.mrf.mxu0 }
 0x1ac   : > { %v1499_v38 = vpop.f32.mrf.mxu1  ;;  %3514 = vmatprep.subr.bf16.mxu1 %v6363_v47  ;;  %v6668_v15 = vadd.f32 %v1497_v8, %v1385_v17  ;;  %v1387_v11 = vadd.f32 %v1386_v9, %v6532_v4 }
 0x1ad   : > { %v1390_v50 = vpop.f32.mrf.mxu0  ;;  %2837 = vmatmul.mubr.bf16.gmra.mxu0 %v4889_v39  ;;  %v4895_v39 = vld [vmem:[%s5795_s18 + $0x370] ss:$20 sps:$4 sm:$0xff]  }
 0x1ae   : > { %v1503_v53 = vpop.f32.mrf.mxu1  ;;  %2950 = vmatmul.mubr.bf16.gmra.mxu1 %v4892_v42  ;;  %v6671_v23 = vadd.f32 %v1499_v38, %v1387_v11  ;;  %v1391_v45 = vadd.f32 %v1390_v50, %v6522_v62  ;;  %2846 = vmatprep.mubr.bf16.mxu0 %v4897_v33  ;;  %v4898_v42 = vld [vmem:[%s5795_s18 + $0x378] ss:$20 sps:$4 sm:$0xff]  }
 0x1af   : > { %3515 = vmatpush2.bf16.msra.mxu1 %v6377_v61  ;;  %v1392_v47 = vpop.f32.mrf.mxu0  ;;  %2959 = vmatprep.mubr.bf16.mxu1 %v4900_v37  ;;  %v4903_v61 = vld [vmem:[%s5795_s18 + $0x39c] ss:$20 sps:$4 sm:$0xff]  }
 0x1b0   : > { %v1505_v27 = vpop.f32.mrf.mxu1  ;;  %3516 = vmatprep.subr.bf16.mxu1 %v6389_v49  ;;  %v6676_v3 = vadd.f32 %v1503_v53, %v1391_v45  ;;  %v1393_v18 = vadd.f32 %v1392_v47, %v6532_v4  ;;  %v4906_v49 = vld [vmem:[%s5795_s18 + $0x3a4] ss:$20 sps:$4 sm:$0xff]  }
 0x1b1   : > { %v1394_v48 = vpop.f32.mrf.mxu0 }
 0x1b2   : > { %v1507_v8 = vpop.f32.mrf.mxu1  ;;  %v6681_v17 = vadd.f32 %v1505_v27, %v1393_v18  ;;  %v1395_v9 = vadd.f32 %v1394_v48, %v6522_v62 }
 0x1b3   : > { %3517 = vmatpush2.bf16.msra.mxu1 %v6404_v12  ;;  %v1396_v33 = vpop.f32.mrf.mxu0 }
 0x1b4   : > { %v1509_v38 = vpop.f32.mrf.mxu1  ;;  %3518 = vmatprep.subr.bf16.mxu1 %v6416_v26  ;;  %v6688_v37 = vadd.f32 %v1507_v8, %v1395_v9  ;;  %v1397_v11 = vadd.f32 %v1396_v33, %v6532_v4 }
 0x1b5   : > { %v1400_v50 = vpop.f32.mrf.mxu0  ;;  %2847 = vmatmul.mubr.bf16.gmra.mxu0 %v4895_v39  ;;  %v4901_v39 = vld [vmem:[%s5795_s18 + $0x398] ss:$20 sps:$4 sm:$0xff]  }
 0x1b6   : > { %v1513_v53 = vpop.f32.mrf.mxu1  ;;  %2960 = vmatmul.mubr.bf16.gmra.mxu1 %v4898_v42  ;;  %v6691_v45 = vadd.f32 %v1509_v38, %v1397_v11  ;;  %v1401_v12 = vadd.f32 %v1400_v50, %v6522_v62  ;;  %2856 = vmatprep.mubr.bf16.mxu0 %v4903_v61  ;;  %v4904_v42 = vld [vmem:[%s5795_s18 + $0x3a0] ss:$20 sps:$4 sm:$0xff]  }
 0x1b7   : > { %3519 = vmatpush2.bf16.msra.mxu1 %v6430_v52  ;;  %v1402_v47 = vpop.f32.mrf.mxu0  ;;  %2969 = vmatprep.mubr.bf16.mxu1 %v4906_v49 }
 0x1b8   : > { %v1515_v26 = vpop.f32.mrf.mxu1  ;;  %3520 = vmatprep.subr.bf16.mxu1 %v6442_v19  ;;  %v6696_v27 = vadd.f32 %v1513_v53, %v1401_v12  ;;  %v1403_v18 = vadd.f32 %v1402_v47, %v6532_v4  ;;  %v4909_v19 = vld [vmem:[%s5795_s18 + $0x3c4] ss:$20 sps:$4 sm:$0xff]  }
 0x1b9   : > { %v1404_v48 = vpop.f32.mrf.mxu0 }
 0x1ba   : > { %v1517_v8 = vpop.f32.mrf.mxu1  ;;  %v6701_v9 = vadd.f32 %v1515_v26, %v1403_v18  ;;  %v1405_v33 = vadd.f32 %v1404_v48, %v6522_v62 }
 0x1bb   : > { %3521 = vmatpush2.bf16.msra.mxu1 %v6457_v43  ;;  %v1406_v52 = vpop.f32.mrf.mxu0  ;;  %v8131_v43 = vmov 0  }
 0x1bc   : > { %v1519_v61 = vpop.f32.mrf.mxu1  ;;  %3522 = vmatprep.subr.bf16.mxu1 %v6469_v10  ;;  %v6707_v38 = vadd.f32 %v1517_v8, %v1405_v33  ;;  %v1407_v49 = vadd.f32 %v1406_v52, %v6532_v4 }
 0x1bd   : > { %v1410_v11 = vpop.f32.mrf.mxu0  ;;  %2857 = vmatmul.mubr.bf16.gmra.mxu0 %v4901_v39  ;;  %v4907_v39 = vld [vmem:[%s5795_s18 + $0x3c0] ss:$20 sps:$4 sm:$0xff]  }
 0x1be   : > { %v1523_v50 = vpop.f32.mrf.mxu1  ;;  %2970 = vmatmul.mubr.bf16.gmra.mxu1 %v4904_v42  ;;  %v6710_v53 = vadd.f32 %v1519_v61, %v1407_v49  ;;  %v1411_v12 = vadd.f32 %v1410_v11, %v6522_v62  ;;  %3012 = vmatprep.mubr.bf16.mxu0 %v8131_v43  ;;  %v4910_v42 = vld [vmem:[%s5795_s18 + $0x290] ss:$20 sps:$4 sm:$0xff]   ;;  %v4913_v49 = vld [vmem:[%s5795_s18 + $0x3ec] ss:$20 sps:$4 sm:$0xff]  }
 0x1bf   : > { %3523 = vmatpush2.bf16.msra.mxu1 %v6484_v7  ;;  %v1412_v10 = vpop.f32.mrf.mxu0  ;;  %3526 = vmatprep.mubr.bf16.mxu1 %v4909_v19 }
 0x1c0   : > { %v1525_v47 = vpop.f32.mrf.mxu1  ;;  %3524 = vmatprep.subr.bf16.mxu1 %v6496_v31  ;;  %v6716_v26 = vadd.f32 %v1523_v50, %v1411_v12  ;;  %v1413_v18 = vadd.f32 %v1412_v10, %v6532_v4 }
 0x1c1   : > { %v1414_v48 = vpop.f32.mrf.mxu0 }
 0x1c2   : > { %v1527_v8 = vpop.f32.mrf.mxu1  ;;  %v6721_v33 = vadd.f32 %v1525_v47, %v1413_v18  ;;  %v1415_v7 = vadd.f32 %v1414_v48, %v6522_v62  ;;  %v4914_v48 = vld [vmem:[%s5795_s18 + $0x2b8] ss:$20 sps:$4 sm:$0xff]  }
 0x1c3   : > { %3525 = vmatpush2.bf16.msra.mxu1 %v6513_v51  ;;  %v1416_v52 = vpop.f32.mrf.mxu0 }
 0x1c4   : > { %v1529_v61 = vpop.f32.mrf.mxu1  ;;  %3728 = vmatprep.subr.bf16.mxu1 %v6527_v46  ;;  %v6726_v31 = vadd.f32 %v1527_v8, %v1415_v7  ;;  %v1417_v19 = vadd.f32 %v1416_v52, %v6532_v4  ;;  %v4918_v7 = vld [vmem:[%s5795_s18 + $0x2e0] ss:$20 sps:$4 sm:$0xff]  }
 0x1c5   : > { %v1566_v11 = vpop.f32.mrf.mxu0  ;;  %4504 = vmatmul.mubr.msk.bf16.vlgmr.msra.gmra.mxu0 %vm1281_vm0, %v4910_v42 }
 0x1c6   : > { %v6730_v50 = vpop.f32.mrf.mxu1  ;;  %3527 = vmatmul.mubr.bf16.vlgmr.msra.gmra.mxu1 %v4907_v39  ;;  %v6733_v12 = vadd.f32 %v1529_v61, %v1417_v19  ;;  %v6736_v51 = vadd.f32 %v1566_v11, %v6544_v1  ;;  %3608 = vmatpush1.bf16.msra.mxu0 %v6118_v6  ;;  %v4911_v6 = vld [vmem:[%s5795_s18 + $0x3e8] ss:$20 sps:$4 sm:$0xff]   ;;  %v8132_v61 = vld [vmem:[#allocation3_spill] sm:$0xff] }
 0x1c7   : > { %3729 = vmatpush1.bf16.msra.mxu1 %v6539_v41  ;;  %v1568_v46 = vpop.f32.mrf.mxu0  ;;  %3609 = vmatprep.subr.bf16.mxu0 %v6130_v57  ;;  %v5042_v19 = vld [vmem:[%s7999_s1 + $0x200] ss:$8 sps:$4 sm:$0xff]  }
 0x1c8   : > { %v6740_v10 = vpop.f32.mrf.mxu1  ;;  %3022 = vmatprep.mubr.bf16.mxu0 %v8131_v43  ;;  %v6745_v47 = vadd.f32 %v1568_v46, %v6555_v25  ;;  %3536 = vmatprep.mubr.bf16.mxu1 %v4913_v49  ;;  %v4917_v25 = vld [vmem:[%s5795_s18 + $0x414] ss:$20 sps:$4 sm:$0xff]   ;;  %vm1645_vm1 = vcmp.ge.f32.partialorder %v6736_v51, 0.0 }
 0x1c9   : > { %3730 = vmatprep.subr.bf16.mxu1 %v6550_v28  ;;  %v1570_v1 = vpop.f32.mrf.mxu0  ;;  %v8133_v49 = vld [vmem:[#allocation4_spill] sm:$0xff]  ;;  %v8134_v46 = vld [vmem:[#allocation5_spill] sm:$0xff] }
 0x1ca   : > { %v6748_v18 = vpop.f32.mrf.mxu1  ;;  %v6753_v41 = vadd.f32 %v1570_v1, %v6574_v14  ;;  %3610 = vmatpush1.bf16.msra.mxu0 %v6145_v55  ;;  %vm1646_vm2 = vcmp.ge.f32.partialorder %v6745_v47, 0.0 }
 0x1cb   : > { %3731 = vmatpush1.bf16.msra.mxu1 %v6563_v59  ;;  %v1572_v57 = vpop.f32.mrf.mxu0  ;;  %3611 = vmatprep.subr.bf16.mxu0 %v6157_v2 }
 0x1cc   : > { %v6757_v8 = vpop.f32.mrf.mxu1  ;;  %3732 = vmatprep.subr.bf16.mxu1 %v6571_v54  ;;  %v6763_v28 = vadd.f32 %v1572_v57, %v6577_v13  ;;  %v4919_v57 = vld [vmem:[%s5795_s18 + $0x438] ss:$20 sps:$4 sm:$0xff]   ;;  %vm1647_vm3 = vcmp.ge.f32.partialorder %v6753_v41, 0.0 }
 0x1cd   : > { %v1576_v39 = vpop.f32.mrf.mxu0  ;;  %4505 = vmatmul.mubr.msk.bf16.gmra.mxu0 %vm1281_vm0, %v4914_v48 }
 0x1ce   : > { %v6765_v14 = vpop.f32.mrf.mxu1  ;;  %3537 = vmatmul.mubr.bf16.gmra.mxu1 %v4911_v6  ;;  %v6769_v55 = vadd.f32 %v1576_v39, %v6582_v60  ;;  %3612 = vmatpush1.bf16.msra.mxu0 %v6171_v20  ;;  %v4915_v60 = vld [vmem:[%s5795_s18 + $0x410] ss:$20 sps:$4 sm:$0xff]   ;;  %v8135_v39 = vld [vmem:[#allocation6_spill] sm:$0xff]  ;;  %vm1648_vm4 = vcmp.ge.f32.partialorder %v6763_v28, 0.0 }
 0x1cf   : > { %3032 = vmatprep.mubr.bf16.mxu0 %v8131_v43  ;;  %v1578_v2 = vpop.f32.mrf.mxu0  ;;  %3613 = vmatprep.subr.bf16.mxu0 %v6183_v24 }
 0x1d0   : > { %v6773_v59 = vpop.f32.mrf.mxu1  ;;  %3546 = vmatprep.mubr.bf16.mxu1 %v4917_v25  ;;  %v6777_v13 = vadd.f32 %v1578_v2, %v6599_v5  ;;  %3733 = vmatpush1.bf16.msra.mxu1 %v6588_v29  ;;  %v4921_v5 = vld [vmem:[%s5795_s18 + $0x43c] ss:$20 sps:$4 sm:$0xff]   ;;  %vm1649_vm5 = vcmp.ge.f32.partialorder %v6769_v55, 0.0 }
 0x1d1   : > { %v1580_v54 = vpop.f32.mrf.mxu0  ;;  %3734 = vmatprep.subr.bf16.mxu1 %v6596_v22 }
 0x1d2   : > { %v6780_v42 = vpop.f32.mrf.mxu1  ;;  %v6786_v20 = vadd.f32 %v1580_v54, %v6606_v16  ;;  %3614 = vmatpush1.bf16.msra.mxu0 %v6198_v32  ;;  %vm1650_vm6 = vcmp.ge.f32.partialorder %v6777_v13, 0.0 }
 0x1d3   : > { %v1582_v52 = vpop.f32.mrf.mxu0  ;;  %3615 = vmatprep.subr.bf16.mxu0 %v8132_v61 }
 0x1d4   : > { %v6789_v24 = vpop.f32.mrf.mxu1  ;;  %v6794_v29 = vadd.f32 %v1582_v52, %v6610_v58  ;;  %3735 = vmatpush1.bf16.msra.mxu1 %v5042_v19  ;;  %vm1651_vm7 = vcmp.ge.f32.partialorder %v6786_v20, 0.0 }
 0x1d5   : > { %v1586_v22 = vpop.f32.mrf.mxu0  ;;  %4506 = vmatmul.mubr.msk.bf16.gmra.mxu0 %vm1281_vm0, %v4918_v7  ;;  %v4925_v7 = vld [vmem:[%s5795_s18 + $0x464] ss:$20 sps:$4 sm:$0xff]  }
 0x1d6   : > { %v6799_v16 = vpop.f32.mrf.mxu1  ;;  %3547 = vmatmul.mubr.bf16.gmra.mxu1 %v4915_v60  ;;  %v6803_v32 = vadd.f32 %v1586_v22, %v6615_v63  ;;  %3616 = vmatpush1.bf16.msra.mxu0 %v8133_v49  ;;  %v4922_v63 = vld [vmem:[%s5795_s18 + $0x308] ss:$20 sps:$4 sm:$0xff]   ;;  %v8136_v60 = vld [vmem:[#allocation7_spill] sm:$0xff]  ;;  %vm1652_vm8 = vcmp.ge.f32.partialorder %v6794_v29, 0.0 }
 0x1d7   : > { %3042 = vmatprep.mubr.bf16.mxu0 %v8131_v43  ;;  %v1588_v58 = vpop.f32.mrf.mxu0  ;;  %3617 = vmatprep.subr.bf16.mxu0 %v8134_v46 }
 0x1d8   : > { %v6807_v11 = vpop.f32.mrf.mxu1  ;;  %3556 = vmatprep.mubr.bf16.mxu1 %v4921_v5  ;;  %v6811_v1 = vadd.f32 %v1588_v58, %v6621_v21  ;;  %v8137_v5 = vld [vmem:[#allocation8_spill] sm:$0xff]  ;;  %vm1653_vm9 = vcmp.ge.f32.partialorder %v6803_v32, 0.0 }
 0x1d9   : > { %v1590_v6 = vpop.f32.mrf.mxu0 }
 0x1da   : > { %v6813_v48 = vpop.f32.mrf.mxu1  ;;  %v6818_v25 = vadd.f32 %v1590_v6, %v6628_v0  ;;  %3618 = vmatpush1.bf16.msra.mxu0 %v8135_v39  ;;  %v4923_v6 = vld [vmem:[%s5795_s18 + $0x460] ss:$20 sps:$4 sm:$0xff]   ;;  %vm1654_vm10 = vcmp.ge.f32.partialorder %v6811_v1, 0.0 }
 0x1db   : > { %v1592_v2 = vpop.f32.mrf.mxu0  ;;  %3619 = vmatprep.subr.bf16.mxu0 %v8136_v60  ;;  %v8140_v60 = vld [vmem:[#allocation11_spill] sm:$0xff] }
 0x1dc   : > { %v6821_v54 = vpop.f32.mrf.mxu1  ;;  %v6826_v21 = vadd.f32 %v1592_v2, %v6631_v30  ;;  %v8138_v30 = vld [vmem:[#allocation9_spill] sm:$0xff]  ;;  %vm1655_vm11 = vcmp.ge.f32.partialorder %v6818_v25, 0.0 }
 0x1dd   : > { %v1596_v52 = vpop.f32.mrf.mxu0  ;;  %4507 = vmatmul.mubr.msk.bf16.gmra.mxu0 %vm1281_vm0, %v4922_v63  ;;  %v8139_v63 = vld [vmem:[#allocation10_spill] sm:$0xff] }
 0x1de   : > { %v6828_v61 = vpop.f32.mrf.mxu1  ;;  %3557 = vmatmul.mubr.bf16.gmra.mxu1 %v4919_v57  ;;  %v6832_v0 = vadd.f32 %v1596_v52, %v6636_v35  ;;  %3620 = vmatpush1.bf16.msra.mxu0 %v8137_v5  ;;  %v4926_v35 = vld [vmem:[%s5795_s18 + $0x330] ss:$20 sps:$4 sm:$0xff]   ;;  %v4929_v52 = vld [vmem:[%s5795_s18 + $0x48c] ss:$20 sps:$4 sm:$0xff]   ;;  %vm1656_vm12 = vcmp.ge.f32.partialorder %v6826_v21, 0.0 }
 0x1df   : > { %3052 = vmatprep.mubr.bf16.mxu0 %v8131_v43  ;;  %v1598_v19 = vpop.f32.mrf.mxu0  ;;  %3621 = vmatprep.subr.bf16.mxu0 %v8138_v30 }
 0x1e0   : > { %v6836_v22 = vpop.f32.mrf.mxu1  ;;  %3566 = vmatprep.mubr.bf16.mxu1 %v4925_v7  ;;  %v6840_v49 = vadd.f32 %v1598_v19, %v6641_v40  ;;  %v8142_v19 = vld [vmem:[#allocation12_spill] sm:$0xff]  ;;  %vm1657_vm13 = vcmp.ge.f32.partialorder %v6832_v0, 0.0 }
 0x1e1   : > { %v1600_v58 = vpop.f32.mrf.mxu0 }
 0x1e2   : > { %v6842_v46 = vpop.f32.mrf.mxu1  ;;  %v6847_v57 = vadd.f32 %v1600_v58, %v6648_v36  ;;  %3622 = vmatpush1.bf16.msra.mxu0 %v8139_v63  ;;  %vm1658_vm14 = vcmp.ge.f32.partialorder %v6840_v49, 0.0 }
 0x1e3   : > { %v1602_v39 = vpop.f32.mrf.mxu0  ;;  %3623 = vmatprep.subr.bf16.mxu0 %v8140_v60 }
 0x1e4   : > { %v6850_v2 = vpop.f32.mrf.mxu1  ;;  %v6855_v40 = vadd.f32 %v1602_v39, %v6651_v56  ;;  %v8144_v56 = vld [vmem:[#allocation13_spill] sm:$0xff]  ;;  %vm1659_vm15 = vcmp.ge.f32.partialorder %v6847_v57, 0.0 }
 0x1e5   : > { %v1606_v7 = vpop.f32.mrf.mxu0  ;;  %4508 = vmatmul.mubr.msk.bf16.gmra.mxu0 %vm1281_vm0, %v4926_v35 }
 0x1e6   : > { %v6857_v5 = vpop.f32.mrf.mxu1  ;;  %3567 = vmatmul.mubr.bf16.gmra.mxu1 %v4923_v6  ;;  %v6861_v36 = vadd.f32 %v1606_v7, %v6656_v34  ;;  %3624 = vmatpush2.bf16.msra.mxu0 %v8142_v19  ;;  %v4927_v6 = vld [vmem:[%s5795_s18 + $0x488] ss:$20 sps:$4 sm:$0xff]   ;;  %v4930_v34 = vld [vmem:[%s5795_s18 + $0x358] ss:$20 sps:$4 sm:$0xff]  }
 0x1e7   : > { %3062 = vmatprep.mubr.bf16.mxu0 %v8131_v43  ;;  %v1608_v30 = vpop.f32.mrf.mxu0  ;;  %3625 = vmatprep.subr.bf16.mxu0 %v8144_v56  ;;  %v8145_v7 = vld [vmem:[#allocation14_spill] sm:$0xff]  ;;  %v4933_v56 = vld [vmem:[%s5795_s18 + $0x4b4] ss:$20 sps:$4 sm:$0xff]  }
 0x1e8   : > { %8141 = vst [vmem:[#allocation3_spill] sm:$0xff] %v6861_v36  ;;  %v6865_v58 = vpop.f32.mrf.mxu1  ;;  %3576 = vmatprep.mubr.bf16.mxu1 %v4929_v52  ;;  %v6869_v63 = vadd.f32 %v1608_v30, %v6661_v44 }
 0x1e9   : > { %8143 = vst [vmem:[#allocation4_spill] sm:$0xff] %v6865_v58  ;;  %v1610_v39 = vpop.f32.mrf.mxu0  ;;  %v8147_v58 = vld [vmem:[#allocation15_spill] sm:$0xff] }
 0x1ea   : > { %v6871_v35 = vpop.f32.mrf.mxu1  ;;  %v6876_v60 = vadd.f32 %v1610_v39, %v6668_v15  ;;  %3626 = vmatpush2.bf16.msra.mxu0 %v8145_v7  ;;  %v8150_v39 = vld [vmem:[#allocation16_spill] sm:$0xff] }
 0x1eb   : > { %v1612_v19 = vpop.f32.mrf.mxu0  ;;  %3627 = vmatprep.subr.bf16.mxu0 %v8147_v58 }
 0x1ec   : > { %v6879_v36 = vpop.f32.mrf.mxu1  ;;  %v6884_v44 = vadd.f32 %v1612_v19, %v6671_v23  ;;  %v8152_v23 = vld [vmem:[#allocation17_spill] sm:$0xff] }
 0x1ed   : > { %8146 = vst [vmem:[#allocation5_spill] sm:$0xff] %v6879_v36  ;;  %v1616_v52 = vpop.f32.mrf.mxu0  ;;  %4509 = vmatmul.mubr.msk.bf16.gmra.mxu0 %vm1281_vm0, %v4930_v34 }
 0x1ee   : > { %v6886_v30 = vpop.f32.mrf.mxu1  ;;  %3577 = vmatmul.mubr.bf16.gmra.mxu1 %v4927_v6  ;;  %v6890_v15 = vadd.f32 %v1616_v52, %v6676_v3  ;;  %3628 = vmatpush2.bf16.msra.mxu0 %v8150_v39  ;;  %v4931_v6 = vld [vmem:[%s5795_s18 + $0x4b0] ss:$20 sps:$4 sm:$0xff]   ;;  %v4934_v3 = vld [vmem:[%s5795_s18 + $0x380] ss:$20 sps:$4 sm:$0xff]   ;;  %v8153_v39 = vld [vmem:[#allocation18_spill] sm:$0xff] }
 0x1ef   : > { %8148 = vst [vmem:[#allocation6_spill] sm:$0xff] %v6886_v30  ;;  %3072 = vmatprep.mubr.bf16.mxu0 %v8131_v43  ;;  %v1618_v58 = vpop.f32.mrf.mxu0  ;;  %3629 = vmatprep.subr.bf16.mxu0 %v8152_v23  ;;  %v4937_v23 = vld [vmem:[%s5795_s18 + $0x4dc] ss:$20 sps:$4 sm:$0xff]  }
 0x1f0   : > { %8149 = vst [vmem:[#allocation7_spill] sm:$0xff] %v6890_v15  ;;  %v6894_v7 = vpop.f32.mrf.mxu1  ;;  %3586 = vmatprep.mubr.bf16.mxu1 %v4933_v56  ;;  %v6898_v19 = vadd.f32 %v1618_v58, %v6681_v17 }
 0x1f1   : > { %8151 = vst [vmem:[#allocation8_spill] sm:$0xff] %v6894_v7  ;;  %v1620_v30 = vpop.f32.mrf.mxu0  ;;  %v8155_v7 = vld [vmem:[#allocation19_spill] sm:$0xff] }
 0x1f2   : > { %v6900_v34 = vpop.f32.mrf.mxu1  ;;  %v6905_v52 = vadd.f32 %v1620_v30, %v6688_v37  ;;  %3630 = vmatpush2.bf16.msra.mxu0 %v8153_v39  ;;  %v8159_v30 = vld [vmem:[#allocation20_spill] sm:$0xff] }
 0x1f3   : > { %v1622_v15 = vpop.f32.mrf.mxu0  ;;  %3631 = vmatprep.subr.bf16.mxu0 %v8155_v7  ;;  %v1677_v7 = vmul.f32 0.01, %v6736_v51 }
 0x1f4   : > { %v6908_v36 = vpop.f32.mrf.mxu1  ;;  %v6913_v56 = vadd.f32 %v1622_v15, %v6691_v45  ;;  %v8161_v15 = vld [vmem:[#allocation21_spill] sm:$0xff] }
 0x1f5   : > { %8154 = vst [vmem:[#allocation9_spill] sm:$0xff] %v6908_v36  ;;  %v1626_v17 = vpop.f32.mrf.mxu0  ;;  %4510 = vmatmul.mubr.msk.bf16.gmra.mxu0 %vm1281_vm0, %v4934_v3  ;;  %v4935_v3 = vld [vmem:[%s5795_s18 + $0x4d8] ss:$20 sps:$4 sm:$0xff]  }
 0x1f6   : > { %8156 = vst [vmem:[#allocation10_spill] sm:$0xff] %v6913_v56  ;;  %v6915_v58 = vpop.f32.mrf.mxu1  ;;  %3587 = vmatmul.mubr.bf16.gmra.mxu1 %v4931_v6  ;;  %v6919_v37 = vadd.f32 %v1626_v17, %v6696_v27  ;;  %3632 = vmatpush2.bf16.msra.mxu0 %v8159_v30  ;;  %v1678_v6 = vmul.f32 0.01, %v6745_v47  ;;  %v6935_v17 = vadd.f32 %v6730_v50, %v6522_v62  ;;  %v1679_v30 = vmul.f32 0.01, %v6753_v41  ;;  %v8164_v50 = vld [vmem:[#allocation22_spill] sm:$0xff] }
 0x1f7   : > { %8157 = vst [vmem:[#allocation11_spill] sm:$0xff] %v6915_v58  ;;  %3082 = vmatprep.mubr.bf16.mxu0 %v8131_v43  ;;  %v1628_v39 = vpop.f32.mrf.mxu0  ;;  %3633 = vmatprep.subr.bf16.mxu0 %v8161_v15  ;;  %v6956_v58 = vsel %vm1645_vm1, %v6736_v51, %v1677_v7  ;;  %v1682_v51 = vmul.f32 0.01, %v6777_v13  ;;  %vm1660_vm1 = vcmp.ge.f32.partialorder %v6855_v40, 0.0 }
 0x1f8   : > { %8158 = vst [vmem:[#allocation12_spill] sm:$0xff] %v6919_v37  ;;  %v6924_v45 = vpop.f32.mrf.mxu1  ;;  %3596 = vmatprep.mubr.bf16.mxu1 %v4937_v23  ;;  %v6930_v27 = vadd.f32 %v1628_v39, %v6701_v9  ;;  %v4938_v23 = vld [vmem:[%s5795_s18 + $0x3a8] ss:$20 sps:$4 sm:$0xff]   ;;  %v6944_v37 = vadd.f32 %v6740_v10, %v6532_v4  ;;  %v1680_v9 = vmul.f32 0.01, %v6763_v28  ;;  %v6980_v7 = vsel %vm1647_vm3, %v6753_v41, %v1679_v30 }
 0x1f9   : > { %8160 = vst [vmem:[#allocation13_spill] sm:$0xff] %v6924_v45  ;;  %v1630_v45 = vpop.f32.mrf.mxu0  ;;  %v1681_v10 = vmul.f32 0.01, %v6769_v55  ;;  %v6998_v41 = vadd.f32 %v6765_v14, %v6522_v62  ;;  %v7016_v14 = vadd.f32 %v6780_v42, %v6522_v62  ;;  %v1684_v30 = vmul.f32 0.01, %v6794_v29 }
 0x1fa   : > { %8162 = vst [vmem:[#allocation14_spill] sm:$0xff] %v6930_v27  ;;  %v6939_v15 = vpop.f32.mrf.mxu1  ;;  %v6949_v39 = vadd.f32 %v1630_v45, %v6707_v38  ;;  %3634 = vmatpush2.bf16.msra.mxu0 %v8164_v50  ;;  %v4941_v27 = vld [vmem:[%s5795_s18 + $0x3cc] ss:$20 sps:$4 sm:$0xff]   ;;  %v6970_v45 = vsel %vm1646_vm2, %v6745_v47, %v1678_v6  ;;  %v6984_v50 = vadd.f32 %v6757_v8, %v6532_v4  ;;  %v1683_v47 = vmul.f32 0.01, %v6786_v20 }
 0x1fb   : > { %8163 = vst [vmem:[#allocation15_spill] sm:$0xff] %v6939_v15  ;;  %v6960_v15 = vadd.f32 %v6748_v18, %v6522_v62  ;;  %v1632_v36 = vpop.f32.mrf.mxu0  ;;  %v8165_v38 = vld [vmem:[#allocation23_spill] sm:$0xff] }
 0x1fc   : > { %v6964_v56 = vpop.f32.mrf.mxu1  ;;  %3635 = vmatprep.subr.bf16.mxu0 %v8165_v38  ;;  %v6975_v18 = vadd.f32 %v1632_v36, %v6710_v53  ;;  %v6994_v53 = vsel %vm1648_vm4, %v6763_v28, %v1680_v9  ;;  %v8167_v36 = vld [vmem:[#allocation24_spill] sm:$0xff]  ;;  %v7012_v28 = vadd.f32 %v6773_v59, %v6532_v4  ;;  %v1685_v59 = vmul.f32 0.01, %v6803_v32 }
 0x1fd   : > { %v1636_v6 = vpop.f32.mrf.mxu0  ;;  %4511 = vmatmul.mubr.msk.bf16.gmra.mxu0 %vm1281_vm0, %v4938_v23  ;;  %v4939_v9 = vld [vmem:[%s5795_s18 + $0x3c8] ss:$20 sps:$4 sm:$0xff]  }
 0x1fe   : > { %v6988_v38 = vpop.f32.mrf.mxu1  ;;  %3597 = vmatmul.mubr.bf16.gmra.mxu1 %v4935_v3  ;;  %v7002_v8 = vadd.f32 %v1636_v6, %v6716_v26  ;;  %3636 = vmatpush2.bf16.msra.mxu0 %v8167_v36  ;;  %v7008_v3 = vsel %vm1649_vm5, %v6769_v55, %v1681_v10  ;;  %v7026_v55 = vsel %vm1650_vm6, %v6777_v13, %v1682_v51  ;;  %v1686_v13 = vmul.f32 0.01, %v6811_v1 }
 0x1ff   : > { %3639 = vmatprep.mubr.bf16.mxu0 %v4941_v27  ;;  %v1638_v26 = vpop.f32.mrf.mxu0  ;;  %v8169_v27 = vld [vmem:[#allocation25_spill] sm:$0xff]  ;;  %3752 = vmatprep.mubr.bf16.mxu1 %v8131_v43  ;;  %8170 = vst [vmem:[#allocation18_spill] sm:$0xff] %v7026_v55  ;;  %v7037_v10 = vsel %vm1651_vm7, %v6786_v20, %v1683_v47  ;;  %v7041_v6 = vadd.f32 %v6789_v24, %v6532_v4  ;;  %v1687_v20 = vmul.f32 0.01, %v6818_v25  ;;  %v8174_v24 = vld [vmem:[#allocation26_spill] sm:$0xff]  ;;  %vm1662_vm6 = vcmp.ge.f32.partialorder %v6869_v63, 0.0 }
 0x200   : > { %8166 = vst [vmem:[#allocation16_spill] sm:$0xff] %v7002_v8  ;;  %v7019_v23 = vpop.f32.mrf.mxu1  ;;  %3637 = vmatprep.subr.bf16.mxu0 %v8169_v27  ;;  %v7031_v42 = vadd.f32 %v1638_v26, %v6721_v33  ;;  %v4942_v27 = vld [vmem:[%s5795_s18 + $0x3d0] ss:$20 sps:$4 sm:$0xff]   ;;  %v7050_v33 = vadd.f32 %v6799_v16, %v6522_v62  ;;  %v4945_v26 = vld [vmem:[%s5795_s18 + $0x3f4] ss:$20 sps:$4 sm:$0xff]  }
 0x201   : > { %8168 = vst [vmem:[#allocation17_spill] sm:$0xff] %v7019_v23  ;;  %v1640_v51 = vpop.f32.mrf.mxu0  ;;  %v7062_v23 = vsel %vm1652_vm8, %v6794_v29, %v1684_v30  ;;  %v1688_v16 = vmul.f32 0.01, %v6826_v21  ;;  %v7079_v29 = vadd.f32 %v6813_v48, %v6522_v62  ;;  %v7086_v30 = vsel %vm1654_vm10, %v6811_v1, %v1686_v13 }
 0x202   : > { %8171 = vst [vmem:[#allocation19_spill] sm:$0xff] %v7031_v42  ;;  %v7045_v36 = vpop.f32.mrf.mxu1  ;;  %v7055_v47 = vadd.f32 %v1640_v51, %v6726_v31  ;;  %3638 = vmatpush2.bf16.msra.mxu0 %v8174_v24  ;;  %v7075_v31 = vsel %vm1653_vm9, %v6803_v32, %v1685_v59  ;;  %v7090_v51 = vadd.f32 %v6821_v54, %v6532_v4  ;;  %v1689_v24 = vmul.f32 0.01, %v6832_v0 }
 0x203   : > { %8172 = vst [vmem:[#allocation20_spill] sm:$0xff] %v7045_v36  ;;  %v7066_v36 = vadd.f32 %v6807_v11, %v6532_v4  ;;  %v1642_v42 = vpop.f32.mrf.mxu0  ;;  %v1690_v32 = vmul.f32 0.01, %v6840_v49  ;;  %v7107_v48 = vsel %vm1656_vm12, %v6826_v21, %v1688_v16  ;;  %v7111_v54 = vadd.f32 %v6828_v61, %v6522_v62 }
 0x204   : > { %8173 = vst [vmem:[#allocation21_spill] sm:$0xff] %v7055_v47  ;;  %v7070_v8 = vpop.f32.mrf.mxu1  ;;  %v7083_v11 = vadd.f32 %v1642_v42, %v6733_v12  ;;  %v7098_v12 = vsel %vm1655_vm11, %v6818_v25, %v1687_v20  ;;  %v1691_v25 = vmul.f32 0.01, %v6847_v57  ;;  %v1692_v42 = vmul.f32 0.01, %v6855_v40 }
 0x205   : > { %8175 = vst [vmem:[#allocation22_spill] sm:$0xff] %v7070_v8  ;;  %v2161_v59 = vpop.f32.mrf.mxu0  ;;  %3640 = vmatmul.mubr.bf16.vlgmr.msra.gmra.mxu0 %v4939_v9  ;;  %v7122_v61 = vsel %vm1658_vm14, %v6840_v49, %v1690_v32  ;;  %v7126_v20 = vadd.f32 %v6836_v22, %v6532_v4  ;;  %v7152_v32 = vadd.f32 %v6857_v5, %v6522_v62  ;;  %vm1663_vm10 = vcmp.ge.f32.partialorder %v6876_v60, 0.0 }
 0x206   : > { %8176 = vst [vmem:[#allocation23_spill] sm:$0xff] %v7083_v11  ;;  %v2274_v47 = vpop.f32.mrf.mxu1  ;;  %4600 = vmatmul.mubr.msk.bf16.vlgmr.msra.gmra.mxu1 %vm1281_vm0, %v4942_v27  ;;  %v2162_v1 = vadd.f32 %v2161_v59, %v6935_v17  ;;  %3649 = vmatprep.mubr.bf16.mxu0 %v4945_v26  ;;  %v7119_v27 = vsel %vm1657_vm13, %v6832_v0, %v1689_v24  ;;  %8177 = vst [vmem:[#allocation24_spill] sm:$0xff] %v7122_v61  ;;  %v4943_v11 = vld [vmem:[%s5795_s18 + $0x3f0] ss:$20 sps:$4 sm:$0xff]   ;;  %vm1664_vm12 = vcmp.ge.f32.partialorder %v6884_v44, 0.0 }
 0x207   : > { %3762 = vmatprep.mubr.bf16.mxu1 %v8131_v43  ;;  %v2163_v9 = vpop.f32.mrf.mxu0  ;;  %v7130_v26 = vadd.f32 %v6842_v46, %v6522_v62  ;;  %v4949_v24 = vld [vmem:[%s5795_s18 + $0x41c] ss:$20 sps:$4 sm:$0xff]   ;;  %v7139_v49 = vsel %vm1659_vm15, %v6847_v57, %v1691_v25  ;;  %v7144_v22 = vsel %vm1660_vm1, %v6855_v40, %v1692_v42  ;;  %v7148_v46 = vadd.f32 %v6850_v2, %v6532_v4 }
 0x208   : > { %v2276_v17 = vpop.f32.mrf.mxu1  ;;  %v2275_v13 = vadd.f32 %v2274_v47, %v2162_v1  ;;  %v2164_v21 = vadd.f32 %v2163_v9, %v6944_v37  ;;  %v4946_v47 = vld [vmem:[%s5795_s18 + $0x3f8] ss:$20 sps:$4 sm:$0xff]  }
 0x209   : > { %v2165_v16 = vpop.f32.mrf.mxu0 }
 0x20a   : > { %v2278_v59 = vpop.f32.mrf.mxu1  ;;  %vm2353_vm2 = vcmp.ge.f32.partialorder %v2275_v13, 0.0  ;;  %v2385_v37 = vmul.f32 0.01, %v2275_v13  ;;  %v2277_v1 = vadd.f32 %v2276_v17, %v2164_v21  ;;  %v2166_v0 = vadd.f32 %v2165_v16, %v6960_v15  ;;  %v8178_v21 = vld [vmem:[#allocation3_spill] sm:$0xff] }
 0x20b   : > { %v2167_v15 = vpop.f32.mrf.mxu0  ;;  %vm1661_vm4 = vcmp.ge.f32.partialorder %v8178_v21, 0.0  ;;  %v1693_v40 = vmul.f32 0.01, %v8178_v21 }
 0x20c   : > { %v2280_v9 = vpop.f32.mrf.mxu1  ;;  %v7154_v17 = vsel %vm2353_vm2, %v2275_v13, %v2385_v37  ;;  %vm2354_vm3 = vcmp.ge.f32.partialorder %v2277_v1, 0.0  ;;  %v2386_v57 = vmul.f32 0.01, %v2277_v1  ;;  %v2279_v25 = vadd.f32 %v2278_v59, %v2166_v0  ;;  %v8180_v0 = vld [vmem:[#allocation4_spill] sm:$0xff] }
 0x20d   : > { %v2168_v2 = vadd.f32 %v2167_v15, %v6984_v50  ;;  %v2171_v16 = vpop.f32.mrf.mxu0  ;;  %3650 = vmatmul.mubr.bf16.gmra.mxu0 %v4943_v11  ;;  %v1694_v37 = vmul.f32 0.01, %v6869_v63  ;;  %v7169_v50 = vadd.f32 %v8180_v0, %v6532_v4  ;;  %v7181_v0 = vsel %vm1661_vm4, %v8178_v21, %v1693_v40 }
 0x20e   : > { %v2284_v8 = vpop.f32.mrf.mxu1  ;;  %4601 = vmatmul.mubr.msk.bf16.gmra.mxu1 %vm1281_vm0, %v4946_v47  ;;  %v7162_v5 = vsel %vm2354_vm3, %v2277_v1, %v2386_v57  ;;  %vm2355_vm5 = vcmp.ge.f32.partialorder %v2279_v25, 0.0  ;;  %v2387_v13 = vmul.f32 0.01, %v2279_v25  ;;  %v2172_v59 = vadd.f32 %v2171_v16, %v6998_v41  ;;  %3659 = vmatprep.mubr.bf16.mxu0 %v4949_v24  ;;  %v4947_v16 = vld [vmem:[%s5795_s18 + $0x418] ss:$20 sps:$4 sm:$0xff]  }
 0x20f   : > { %8179 = vst [vmem:[#allocation25_spill] sm:$0xff] %v7162_v5  ;;  %3772 = vmatprep.mubr.bf16.mxu1 %v8131_v43  ;;  %v2281_v47 = vadd.f32 %v2280_v9, %v2168_v2  ;;  %v2173_v1 = vpop.f32.mrf.mxu0  ;;  %v4950_v5 = vld [vmem:[%s5795_s18 + $0x420] ss:$20 sps:$4 sm:$0xff]   ;;  %v1695_v21 = vmul.f32 0.01, %v6876_v60  ;;  %v7196_v40 = vadd.f32 %v6871_v35, %v6522_v62  ;;  %vm1666_vm3 = vcmp.ge.f32.partialorder %v6898_v19, 0.0 }
 0x210   : > { %v2286_v15 = vpop.f32.mrf.mxu1  ;;  %v7174_v41 = vsel %vm2355_vm5, %v2279_v25, %v2387_v13  ;;  %v2285_v24 = vadd.f32 %v2284_v8, %v2172_v59  ;;  %v2174_v57 = vadd.f32 %v2173_v1, %v7012_v28  ;;  %v4953_v28 = vld [vmem:[%s5795_s18 + $0x444] ss:$20 sps:$4 sm:$0xff]   ;;  %v7191_v59 = vsel %vm1662_vm6, %v6869_v63, %v1694_v37  ;;  %v4954_v63 = vld [vmem:[%s5795_s18 + $0x448] ss:$20 sps:$4 sm:$0xff]  }
 0x211   : > { %8181 = vst [vmem:[#allocation26_spill] sm:$0xff] %v7174_v41  ;;  %vm2356_vm7 = vcmp.ge.f32.partialorder %v2281_v47, 0.0  ;;  %v2388_v9 = vmul.f32 0.01, %v2281_v47  ;;  %v2175_v2 = vpop.f32.mrf.mxu0 }
 0x212   : > { %v2288_v42 = vpop.f32.mrf.mxu1  ;;  %vm2357_vm8 = vcmp.ge.f32.partialorder %v2285_v24, 0.0  ;;  %v2389_v25 = vmul.f32 0.01, %v2285_v24  ;;  %v2287_v13 = vadd.f32 %v2286_v15, %v2174_v57  ;;  %v2176_v8 = vadd.f32 %v2175_v2, %v7016_v14 }
 0x213   : > { %v7198_v1 = vsel %vm2356_vm7, %v2281_v47, %v2388_v9  ;;  %v2177_v11 = vpop.f32.mrf.mxu0  ;;  %v1696_v9 = vmul.f32 0.01, %v6884_v44  ;;  %vm1667_vm7 = vcmp.ge.f32.partialorder %v6905_v52, 0.0 }
 0x214   : > { %8182 = vst [vmem:[#allocation3_spill] sm:$0xff] %v7198_v1  ;;  %v2290_v41 = vpop.f32.mrf.mxu1  ;;  %v7202_v14 = vsel %vm2357_vm8, %v2285_v24, %v2389_v25  ;;  %vm2358_vm9 = vcmp.ge.f32.partialorder %v2287_v13, 0.0  ;;  %v2390_v57 = vmul.f32 0.01, %v2287_v13  ;;  %v2289_v37 = vadd.f32 %v2288_v42, %v2176_v8  ;;  %v8183_v24 = vld [vmem:[#allocation5_spill] sm:$0xff] }
 0x215   : > { %v2178_v35 = vadd.f32 %v2177_v11, %v7041_v6  ;;  %v2181_v2 = vpop.f32.mrf.mxu0  ;;  %3660 = vmatmul.mubr.bf16.gmra.mxu0 %v4947_v16  ;;  %v7212_v25 = vadd.f32 %v8183_v24, %v6532_v4  ;;  %v7223_v8 = vsel %vm1663_vm10, %v6876_v60, %v1695_v21 }
 0x216   : > { %v2294_v47 = vpop.f32.mrf.mxu1  ;;  %4602 = vmatmul.mubr.msk.bf16.gmra.mxu1 %vm1281_vm0, %v4950_v5  ;;  %v7214_v15 = vsel %vm2358_vm9, %v2287_v13, %v2390_v57  ;;  %v2182_v1 = vadd.f32 %v2181_v2, %v7050_v33  ;;  %3669 = vmatprep.mubr.bf16.mxu0 %v4953_v28  ;;  %vm2359_vm11 = vcmp.ge.f32.partialorder %v2289_v37, 0.0  ;;  %v2391_v42 = vmul.f32 0.01, %v2289_v37  ;;  %v4951_v28 = vld [vmem:[%s5795_s18 + $0x440] ss:$20 sps:$4 sm:$0xff]   ;;  %v8185_v57 = vld [vmem:[#allocation6_spill] sm:$0xff] }
 0x217   : > { %8184 = vst [vmem:[#allocation4_spill] sm:$0xff] %v7214_v15  ;;  %3782 = vmatprep.mubr.bf16.mxu1 %v8131_v43  ;;  %v2291_v5 = vadd.f32 %v2290_v41, %v2178_v35  ;;  %v2183_v11 = vpop.f32.mrf.mxu0  ;;  %v7230_v2 = vadd.f32 %v8185_v57, %v6522_v62 }
 0x218   : > { %v2296_v16 = vpop.f32.mrf.mxu1  ;;  %v2295_v33 = vadd.f32 %v2294_v47, %v2182_v1  ;;  %v2184_v13 = vadd.f32 %v2183_v11, %v7066_v36  ;;  %v7232_v24 = vsel %vm2359_vm11, %v2289_v37, %v2391_v42  ;;  %v4957_v47 = vld [vmem:[%s5795_s18 + $0x46c] ss:$20 sps:$4 sm:$0xff]   ;;  %v7241_v36 = vsel %vm1664_vm12, %v6884_v44, %v1696_v9 }
 0x219   : > { %8186 = vst [vmem:[#allocation5_spill] sm:$0xff] %v7232_v24  ;;  %vm2360_vm13 = vcmp.ge.f32.partialorder %v2291_v5, 0.0  ;;  %v2392_v41 = vmul.f32 0.01, %v2291_v5  ;;  %v2185_v35 = vpop.f32.mrf.mxu0  ;;  %8187 = vst [vmem:[#allocation6_spill] sm:$0xff] %v7241_v36  ;;  %v8188_v11 = vld [vmem:[#allocation7_spill] sm:$0xff] }
 0x21a   : > { %v2298_v6 = vpop.f32.mrf.mxu1  ;;  %vm2361_vm14 = vcmp.ge.f32.partialorder %v2295_v33, 0.0  ;;  %v2393_v21 = vmul.f32 0.01, %v2295_v33  ;;  %v2297_v1 = vadd.f32 %v2296_v16, %v2184_v13  ;;  %v1697_v37 = vmul.f32 0.01, %v8188_v11 }
 0x21b   : > { %v7244_v42 = vsel %vm2360_vm13, %v2291_v5, %v2392_v41  ;;  %v2186_v57 = vadd.f32 %v2185_v35, %v7079_v29  ;;  %v2187_v15 = vpop.f32.mrf.mxu0  ;;  %vm1665_vm1 = vcmp.ge.f32.partialorder %v8188_v11, 0.0  ;;  %v1698_v29 = vmul.f32 0.01, %v6898_v19 }
 0x21c   : > { %v2300_v55 = vpop.f32.mrf.mxu1  ;;  %v7249_v24 = vsel %vm2361_vm14, %v2295_v33, %v2393_v21  ;;  %vm2362_vm15 = vcmp.ge.f32.partialorder %v2297_v1, 0.0  ;;  %v2394_v16 = vmul.f32 0.01, %v2297_v1  ;;  %v2188_v5 = vadd.f32 %v2187_v15, %v7090_v51  ;;  %v8189_v33 = vld [vmem:[#allocation8_spill] sm:$0xff]  ;;  %v4958_v51 = vld [vmem:[%s5795_s18 + $0x470] ss:$20 sps:$4 sm:$0xff]  }
 0x21d   : > { %v2299_v9 = vadd.f32 %v2298_v6, %v2186_v57  ;;  %v2191_v13 = vpop.f32.mrf.mxu0  ;;  %3670 = vmatmul.mubr.bf16.gmra.mxu0 %v4951_v28  ;;  %v7259_v35 = vadd.f32 %v8189_v33, %v6532_v4  ;;  %v7270_v57 = vsel %vm1665_vm1, %v8188_v11, %v1697_v37 }
 0x21e   : > { %v2304_v41 = vpop.f32.mrf.mxu1  ;;  %4603 = vmatmul.mubr.msk.bf16.gmra.mxu1 %vm1281_vm0, %v4954_v63  ;;  %v7261_v21 = vsel %vm2362_vm15, %v2297_v1, %v2394_v16  ;;  %v2192_v60 = vadd.f32 %v2191_v13, %v7111_v54  ;;  %3679 = vmatprep.mubr.bf16.mxu0 %v4957_v47  ;;  %v2301_v63 = vadd.f32 %v2300_v55, %v2188_v5  ;;  %v4955_v47 = vld [vmem:[%s5795_s18 + $0x468] ss:$20 sps:$4 sm:$0xff]  }
 0x21f   : > { %3792 = vmatprep.mubr.bf16.mxu1 %v8131_v43  ;;  %vm2363_vm2 = vcmp.ge.f32.partialorder %v2299_v9, 0.0  ;;  %v2395_v15 = vmul.f32 0.01, %v2299_v9  ;;  %v2193_v6 = vpop.f32.mrf.mxu0  ;;  %8190 = vst [vmem:[#allocation7_spill] sm:$0xff] %v7270_v57  ;;  %v7277_v16 = vadd.f32 %v6900_v34, %v6522_v62  ;;  %v1699_v34 = vmul.f32 0.01, %v6905_v52 }
 0x220   : > { %v2306_v28 = vpop.f32.mrf.mxu1  ;;  %v2305_v54 = vadd.f32 %v2304_v41, %v2192_v60  ;;  %v2194_v1 = vadd.f32 %v2193_v6, %v7126_v20  ;;  %vm2364_vm4 = vcmp.ge.f32.partialorder %v2301_v63, 0.0  ;;  %v2396_v55 = vmul.f32 0.01, %v2301_v63  ;;  %v4961_v41 = vld [vmem:[%s5795_s18 + $0x494] ss:$20 sps:$4 sm:$0xff]  }
 0x221   : > { %v7279_v13 = vsel %vm2363_vm2, %v2299_v9, %v2395_v15  ;;  %v2195_v5 = vpop.f32.mrf.mxu0  ;;  %v7288_v20 = vsel %vm1666_vm3, %v6898_v19, %v1698_v29  ;;  %v4962_v19 = vld [vmem:[%s5795_s18 + $0x498] ss:$20 sps:$4 sm:$0xff]  }
 0x222   : > { %8191 = vst [vmem:[#allocation8_spill] sm:$0xff] %v7279_v13  ;;  %v2308_v33 = vpop.f32.mrf.mxu1  ;;  %vm2365_vm5 = vcmp.ge.f32.partialorder %v2305_v54, 0.0  ;;  %v2397_v37 = vmul.f32 0.01, %v2305_v54  ;;  %v2307_v60 = vadd.f32 %v2306_v28, %v2194_v1  ;;  %8192 = vst [vmem:[#allocation29_spill] sm:$0xff] %v7288_v20  ;;  %v7291_v9 = vsel %vm2364_vm4, %v2301_v63, %v2396_v55 }
 0x223   : > { %8193 = vst [vmem:[#allocation30_spill] sm:$0xff] %v7291_v9  ;;  %v2196_v15 = vadd.f32 %v2195_v5, %v7130_v26  ;;  %v2197_v6 = vpop.f32.mrf.mxu0  ;;  %v8194_v26 = vld [vmem:[#allocation10_spill] sm:$0xff]  ;;  %vm1671_vm4 = vcmp.ge.f32.partialorder %v6949_v39, 0.0 }
 0x224   : > { %v2310_v44 = vpop.f32.mrf.mxu1  ;;  %v7296_v13 = vsel %vm2365_vm5, %v2305_v54, %v2397_v37  ;;  %vm2366_vm6 = vcmp.ge.f32.partialorder %v2307_v60, 0.0  ;;  %v2398_v28 = vmul.f32 0.01, %v2307_v60  ;;  %v2198_v63 = vadd.f32 %v2197_v6, %v7148_v46  ;;  %v8195_v54 = vld [vmem:[#allocation9_spill] sm:$0xff] }
 0x225   : > { %v2309_v29 = vadd.f32 %v2308_v33, %v2196_v15  ;;  %v2201_v1 = vpop.f32.mrf.mxu0  ;;  %3680 = vmatmul.mubr.bf16.gmra.mxu0 %v4955_v47  ;;  %v1700_v5 = vmul.f32 0.01, %v8194_v26  ;;  %v7306_v37 = vadd.f32 %v8195_v54, %v6532_v4  ;;  %v7317_v6 = vsel %vm1667_vm7, %v6905_v52, %v1699_v34 }
 0x226   : > { %v2314_v55 = vpop.f32.mrf.mxu1  ;;  %4604 = vmatmul.mubr.msk.bf16.gmra.mxu1 %vm1281_vm0, %v4958_v51  ;;  %v7308_v11 = vsel %vm2366_vm6, %v2307_v60, %v2398_v28  ;;  %v2202_v9 = vadd.f32 %v2201_v1, %v7152_v32  ;;  %3689 = vmatprep.mubr.bf16.mxu0 %v4961_v41  ;;  %v2311_v47 = vadd.f32 %v2310_v44, %v2198_v63  ;;  %vm1668_vm9 = vcmp.ge.f32.partialorder %v8194_v26, 0.0  ;;  %v4959_v41 = vld [vmem:[%s5795_s18 + $0x490] ss:$20 sps:$4 sm:$0xff]  }
 0x227   : > { %8196 = vst [vmem:[#allocation10_spill] sm:$0xff] %v7308_v11  ;;  %3802 = vmatprep.mubr.bf16.mxu1 %v8131_v43  ;;  %vm2367_vm8 = vcmp.ge.f32.partialorder %v2309_v29, 0.0  ;;  %v2399_v51 = vmul.f32 0.01, %v2309_v29  ;;  %v2203_v33 = vpop.f32.mrf.mxu0  ;;  %8197 = vst [vmem:[#allocation9_spill] sm:$0xff] %v7317_v6  ;;  %v8198_v28 = vld [vmem:[#allocation11_spill] sm:$0xff] }
 0x228   : > { %v2316_v15 = vpop.f32.mrf.mxu1  ;;  %v2315_v32 = vadd.f32 %v2314_v55, %v2202_v9  ;;  %v2204_v60 = vadd.f32 %v2203_v33, %v7169_v50  ;;  %v7324_v1 = vadd.f32 %v8198_v28, %v6522_v62  ;;  %vm2368_vm10 = vcmp.ge.f32.partialorder %v2311_v47, 0.0  ;;  %v4965_v55 = vld [vmem:[%s5795_s18 + $0x4bc] ss:$20 sps:$4 sm:$0xff]   ;;  %v8201_v33 = vld [vmem:[#allocation12_spill] sm:$0xff] }
 0x229   : > { %v7326_v54 = vsel %vm2367_vm8, %v2309_v29, %v2399_v51  ;;  %v2400_v44 = vmul.f32 0.01, %v2311_v47  ;;  %v2205_v63 = vpop.f32.mrf.mxu0  ;;  %v7335_v50 = vsel %vm1668_vm9, %v8194_v26, %v1700_v5  ;;  %v1701_v29 = vmul.f32 0.01, %v8201_v33  ;;  %v4966_v26 = vld [vmem:[%s5795_s18 + $0x4c0] ss:$20 sps:$4 sm:$0xff]  }
 0x22a   : > { %8199 = vst [vmem:[#allocation11_spill] sm:$0xff] %v7326_v54  ;;  %v2318_v46 = vpop.f32.mrf.mxu1  ;;  %vm2369_vm11 = vcmp.ge.f32.partialorder %v2315_v32, 0.0  ;;  %v2401_v34 = vmul.f32 0.01, %v2315_v32  ;;  %v2317_v9 = vadd.f32 %v2316_v15, %v2204_v60  ;;  %8200 = vst [vmem:[#allocation31_spill] sm:$0xff] %v7335_v50  ;;  %v2206_v28 = vadd.f32 %v2205_v63, %v7196_v40  ;;  %v8203_v40 = vld [vmem:[#allocation14_spill] sm:$0xff] }
 0x22b   : > { %v7338_v51 = vsel %vm2368_vm10, %v2311_v47, %v2400_v44  ;;  %v2207_v11 = vpop.f32.mrf.mxu0  ;;  %vm1669_vm13 = vcmp.ge.f32.partialorder %v8201_v33, 0.0  ;;  %v1702_v63 = vmul.f32 0.01, %v8203_v40  ;;  %vm1670_vm15 = vcmp.ge.f32.partialorder %v8203_v40, 0.0 }
 0x22c   : > { %8202 = vst [vmem:[#allocation12_spill] sm:$0xff] %v7338_v51  ;;  %v2320_v61 = vpop.f32.mrf.mxu1  ;;  %v7343_v54 = vsel %vm2369_vm11, %v2315_v32, %v2401_v34  ;;  %vm2370_vm12 = vcmp.ge.f32.partialorder %v2317_v9, 0.0  ;;  %v2402_v15 = vmul.f32 0.01, %v2317_v9  ;;  %v2319_v5 = vadd.f32 %v2318_v46, %v2206_v28  ;;  %v8204_v32 = vld [vmem:[#allocation13_spill] sm:$0xff] }
 0x22d   : > { %v2208_v47 = vadd.f32 %v2207_v11, %v7212_v25  ;;  %v2211_v60 = vpop.f32.mrf.mxu0  ;;  %3690 = vmatmul.mubr.bf16.gmra.mxu0 %v4959_v41  ;;  %v2111_v34 = vadd.f32 %v8204_v32, %v6532_v4  ;;  %v7362_v28 = vsel %vm1669_vm13, %v8201_v33, %v1701_v29  ;;  %vm1672_vm6 = vcmp.ge.f32.partialorder %v6975_v18, 0.0 }
 0x22e   : > { %v2324_v44 = vpop.f32.mrf.mxu1  ;;  %4605 = vmatmul.mubr.msk.bf16.gmra.mxu1 %vm1281_vm0, %v4962_v19  ;;  %v7353_v52 = vsel %vm2370_vm12, %v2317_v9, %v2402_v15  ;;  %v2212_v51 = vadd.f32 %v2211_v60, %v7230_v2  ;;  %3699 = vmatprep.mubr.bf16.mxu0 %v4965_v55  ;;  %vm2371_vm14 = vcmp.ge.f32.partialorder %v2319_v5, 0.0  ;;  %v2403_v11 = vmul.f32 0.01, %v2319_v5  ;;  %8206 = vst [vmem:[#allocation13_spill] sm:$0xff] %v7362_v28  ;;  %v4963_v55 = vld [vmem:[%s5795_s18 + $0x4b8] ss:$20 sps:$4 sm:$0xff]  }
 0x22f   : > { %8205 = vst [vmem:[#allocation14_spill] sm:$0xff] %v7353_v52  ;;  %3812 = vmatprep.mubr.bf16.mxu1 %v8131_v43  ;;  %v2321_v19 = vadd.f32 %v2320_v61, %v2208_v47  ;;  %v2213_v46 = vpop.f32.mrf.mxu0  ;;  %v8207_v15 = vld [vmem:[#allocation15_spill] sm:$0xff] }
 0x230   : > { %v2326_v41 = vpop.f32.mrf.mxu1  ;;  %v2325_v2 = vadd.f32 %v2324_v44, %v2212_v51  ;;  %v2214_v9 = vadd.f32 %v2213_v46, %v7259_v35  ;;  %v2113_v60 = vadd.f32 %v8207_v15, %v6522_v62  ;;  %v7369_v32 = vsel %vm2371_vm14, %v2319_v5, %v2403_v11  ;;  %v4969_v51 = vld [vmem:[%s5795_s18 + $0x4e4] ss:$20 sps:$4 sm:$0xff]  }
 0x231   : > { %8208 = vst [vmem:[#allocation15_spill] sm:$0xff] %v7369_v32  ;;  %vm2372_vm1 = vcmp.ge.f32.partialorder %v2321_v19, 0.0  ;;  %v2404_v61 = vmul.f32 0.01, %v2321_v19  ;;  %v2215_v47 = vpop.f32.mrf.mxu0  ;;  %v7378_v35 = vsel %vm1670_vm15, %v8203_v40, %v1702_v63  ;;  %v1703_v5 = vmul.f32 0.01, %v6949_v39 }
 0x232   : > { %v2328_v25 = vpop.f32.mrf.mxu1  ;;  %vm2373_vm2 = vcmp.ge.f32.partialorder %v2325_v2, 0.0  ;;  %v2405_v29 = vmul.f32 0.01, %v2325_v2  ;;  %v2327_v52 = vadd.f32 %v2326_v41, %v2214_v9  ;;  %8209 = vst [vmem:[#allocation32_spill] sm:$0xff] %v7378_v35  ;;  %v2216_v11 = vadd.f32 %v2215_v47, %v7277_v16 }
 0x233   : > { %v7381_v44 = vsel %vm2372_vm1, %v2321_v19, %v2404_v61  ;;  %v2217_v46 = vpop.f32.mrf.mxu0  ;;  %v1704_v16 = vmul.f32 0.01, %v6975_v18 }
 0x234   : > { %8210 = vst [vmem:[#allocation33_spill] sm:$0xff] %v7381_v44  ;;  %v2330_v15 = vpop.f32.mrf.mxu1  ;;  %v7386_v32 = vsel %vm2373_vm2, %v2325_v2, %v2405_v29  ;;  %vm2374_vm3 = vcmp.ge.f32.partialorder %v2327_v52, 0.0  ;;  %v2406_v41 = vmul.f32 0.01, %v2327_v52  ;;  %v2329_v63 = vadd.f32 %v2328_v25, %v2216_v11 }
 0x235   : > { %8211 = vst [vmem:[#allocation34_spill] sm:$0xff] %v7386_v32  ;;  %v2218_v19 = vadd.f32 %v2217_v46, %v7306_v37  ;;  %v2221_v9 = vpop.f32.mrf.mxu0  ;;  %3700 = vmatmul.mubr.bf16.gmra.mxu0 %v4963_v55  ;;  %v2115_v2 = vadd.f32 %v6964_v56, %v6532_v4  ;;  %v7405_v56 = vsel %vm1671_vm4, %v6949_v39, %v1703_v5 }
 0x236   : > { %v2334_v61 = vpop.f32.mrf.mxu1  ;;  %4606 = vmatmul.mubr.msk.bf16.gmra.mxu1 %vm1281_vm0, %v4966_v26  ;;  %v7396_v47 = vsel %vm2374_vm3, %v2327_v52, %v2406_v41  ;;  %v2222_v29 = vadd.f32 %v2221_v9, %v7324_v1  ;;  %3709 = vmatprep.mubr.bf16.mxu0 %v4969_v51  ;;  %vm2375_vm5 = vcmp.ge.f32.partialorder %v2329_v63, 0.0  ;;  %v2407_v25 = vmul.f32 0.01, %v2329_v63  ;;  %8213 = vst [vmem:[#allocation36_spill] sm:$0xff] %v7405_v56  ;;  %v4967_v51 = vld [vmem:[%s5795_s18 + $0x4e0] ss:$20 sps:$4 sm:$0xff]  }
 0x237   : > { %8212 = vst [vmem:[#allocation35_spill] sm:$0xff] %v7396_v47  ;;  %3822 = vmatprep.mubr.bf16.mxu1 %v8131_v43  ;;  %v2331_v26 = vadd.f32 %v2330_v15, %v2218_v19  ;;  %v2223_v55 = vpop.f32.mrf.mxu0  ;;  %v2119_v43 = vadd.f32 %v6988_v38, %v6522_v62  ;;  %v4970_v9 = vld [vmem:[%s5795_s18 + $0x4e8] ss:$20 sps:$4 sm:$0xff]   ;;  %s4197_s18 = sshll.u32 %s4061_s15, 4 }
 0x238   : > { %v2336_v11 = vpop.f32.mrf.mxu1  ;;  %v2335_v1 = vadd.f32 %v2334_v61, %v2222_v29  ;;  %v2224_v52 = vadd.f32 %v2223_v55, %v2111_v34  ;;  %v7411_v46 = vsel %vm2375_vm5, %v2329_v63, %v2407_v25  ;;  %v7417_v61 = vsel %vm1672_vm6, %v6975_v18, %v1704_v16  ;;  %v8216_v34 = vld [vmem:[#allocation16_spill] sm:$0xff]  ;;  %p582_p8 = scmp.lt.s32.totalorder %s4197_s18, 31 }
 0x239   : > { %8214 = vst [vmem:[#allocation37_spill] sm:$0xff] %v7411_v46  ;;  %vm2376_vm7 = vcmp.ge.f32.partialorder %v2331_v26, 0.0  ;;  %v2408_v41 = vmul.f32 0.01, %v2331_v26  ;;  %v2225_v15 = vpop.f32.mrf.mxu0  ;;  %8215 = vst [vmem:[#allocation38_spill] sm:$0xff] %v7417_v61  ;;  %vm1673_vm10 = vcmp.ge.f32.partialorder %v8216_v34, 0.0 }
 0x23a   : > { %v2338_v19 = vpop.f32.mrf.mxu1  ;;  %vm2377_vm8 = vcmp.ge.f32.partialorder %v2335_v1, 0.0  ;;  %v2409_v39 = vmul.f32 0.01, %v2335_v1  ;;  %v2337_v5 = vadd.f32 %v2336_v11, %v2224_v52  ;;  %v1705_v29 = vmul.f32 0.01, %v8216_v34  ;;  %s8374_s18 = smov (!%p582_p8, %s4197_s18), 31 }
 0x23b   : > { %v7420_v55 = vsel %vm2376_vm7, %v2331_v26, %v2408_v41  ;;  %v2226_v38 = vadd.f32 %v2225_v15, %v2113_v60  ;;  %v2227_v63 = vpop.f32.mrf.mxu0  ;;  %v8219_v60 = vld [vmem:[#allocation19_spill] sm:$0xff]  ;;  %v8220_v15 = vld [vmem:[#allocation17_spill] sm:$0xff]  ;;  %s4610_s14 = sshll.u32 %s8374_s18, 4 }
 0x23c   : > { %8217 = vst [vmem:[#allocation16_spill] sm:$0xff] %v7420_v55  ;;  %v2340_v25 = vpop.f32.mrf.mxu1  ;;  %v7424_v33 = vsel %vm2377_vm8, %v2335_v1, %v2409_v39  ;;  %vm2378_vm9 = vcmp.ge.f32.partialorder %v2337_v5, 0.0  ;;  %v2410_v37 = vmul.f32 0.01, %v2337_v5  ;;  %v2228_v11 = vadd.f32 %v2227_v63, %v2115_v2  ;;  %s7852_s12 = scalar_lea.vmem %s8001_s3, %s4610_s14 }
 0x23d   : > { %8218 = vst [vmem:[#allocation39_spill] sm:$0xff] %v7424_v33  ;;  %v2339_v16 = vadd.f32 %v2338_v19, %v2226_v38  ;;  %v2231_v52 = vpop.f32.mrf.mxu0  ;;  %3710 = vmatmul.mubr.bf16.gmra.mxu0 %v4967_v51  ;;  %v1706_v41 = vmul.f32 0.01, %v8219_v60  ;;  %v2121_v1 = vadd.f32 %v8220_v15, %v6532_v4  ;;  %v7440_v51 = vsel %vm1673_vm10, %v8216_v34, %v1705_v29 }
 0x23e   : > { %v2344_v26 = vpop.f32.mrf.mxu1  ;;  %4607 = vmatmul.mubr.msk.bf16.gmra.mxu1 %vm1281_vm0, %v4970_v9  ;;  %v7433_v39 = vsel %vm2378_vm9, %v2337_v5, %v2410_v37  ;;  %v2232_v40 = vadd.f32 %v2231_v52, %v2119_v43  ;;  %v2341_v19 = vadd.f32 %v2340_v25, %v2228_v11  ;;  %8222 = vst [vmem:[#allocation17_spill] sm:$0xff] %v7440_v51  ;;  %vm1674_vm12 = vcmp.ge.f32.partialorder %v8219_v60, 0.0  ;;  %v8223_v37 = vld [vmem:[#allocation20_spill] sm:$0xff] }
 0x23f   : > { %8221 = vst [vmem:[#allocation19_spill] sm:$0xff] %v7433_v39  ;;  %vm2379_vm11 = vcmp.ge.f32.partialorder %v2339_v16, 0.0  ;;  %v2411_v18 = vmul.f32 0.01, %v2339_v16  ;;  %v2233_v2 = vpop.f32.mrf.mxu0  ;;  %v2123_v43 = vadd.f32 %v8223_v37, %v6522_v62  ;;  %v7450_v29 = vsel %vm1674_vm12, %v8219_v60, %v1706_v41 }
 0x240   : > { %v2346_v38 = vpop.f32.mrf.mxu1  ;;  %v2345_v9 = vadd.f32 %v2344_v26, %v2232_v40  ;;  %v2234_v63 = vadd.f32 %v2233_v2, %v2121_v1  ;;  %vm2380_vm13 = vcmp.ge.f32.partialorder %v2341_v19, 0.0  ;;  %v2412_v52 = vmul.f32 0.01, %v2341_v19  ;;  %8225 = vst [vmem:[#allocation40_spill] sm:$0xff] %v7450_v29  ;;  %v8226_v40 = vld [vmem:[#allocation22_spill] sm:$0xff] }
 0x241   : > { %v7445_v5 = vsel %vm2379_vm11, %v2339_v16, %v2411_v18  ;;  %v2235_v15 = vpop.f32.mrf.mxu0  ;;  %v2125_v26 = vadd.f32 %v8226_v40, %v6532_v4 }
 0x242   : > { %8224 = vst [vmem:[#allocation20_spill] sm:$0xff] %v7445_v5  ;;  %v2348_v25 = vpop.f32.mrf.mxu1  ;;  %vm2381_vm14 = vcmp.ge.f32.partialorder %v2345_v9, 0.0  ;;  %v2413_v55 = vmul.f32 0.01, %v2345_v9  ;;  %v2347_v34 = vadd.f32 %v2346_v38, %v2234_v63  ;;  %v7454_v1 = vsel %vm2380_vm13, %v2341_v19, %v2412_v52  ;;  %v8229_v5 = vld [vmem:[#allocation21_spill] sm:$0xff] }
 0x243   : > { %8227 = vst [vmem:[#allocation22_spill] sm:$0xff] %v7454_v1  ;;  %v2236_v18 = vadd.f32 %v2235_v15, %v2123_v43  ;;  %v2237_v16 = vpop.f32.mrf.mxu0  ;;  %v1707_v38 = vmul.f32 0.01, %v8229_v5  ;;  %vm1675_vm1 = vcmp.ge.f32.partialorder %v8229_v5, 0.0  ;;  %v8230_v43 = vld [vmem:[#allocation23_spill] sm:$0xff] }
 0x244   : > { %v2350_v2 = vpop.f32.mrf.mxu1  ;;  %v7458_v39 = vsel %vm2381_vm14, %v2345_v9, %v2413_v55  ;;  %vm2382_vm15 = vcmp.ge.f32.partialorder %v2347_v34, 0.0  ;;  %v2414_v11 = vmul.f32 0.01, %v2347_v34  ;;  %v2238_v63 = vadd.f32 %v2237_v16, %v2125_v26 }
 0x245   : > { %8228 = vst [vmem:[#allocation41_spill] sm:$0xff] %v7458_v39  ;;  %v2349_v41 = vadd.f32 %v2348_v25, %v2236_v18  ;;  %v2788_v40 = vpop.f32.mrf.mxu0  ;;  %v1708_v52 = vmul.f32 0.01, %v8230_v43  ;;  %vm1676_vm3 = vcmp.ge.f32.partialorder %v8230_v43, 0.0  ;;  %v7475_v18 = vsel %vm1675_vm1, %v8229_v5, %v1707_v38 }
 0x246   : > { %v2901_v19 = vpop.f32.mrf.mxu1  ;;  %v7465_v15 = vsel %vm2382_vm15, %v2347_v34, %v2414_v11  ;;  %v2789_v55 = vadd.f32 %v2788_v40, %v6522_v62  ;;  %v2351_v1 = vadd.f32 %v2350_v2, %v2238_v63  ;;  %8232 = vst [vmem:[#allocation23_spill] sm:$0xff] %v7475_v18 }
 0x247   : > { %8231 = vst [vmem:[#allocation21_spill] sm:$0xff] %v7465_v15  ;;  %vm2383_vm2 = vcmp.ge.f32.partialorder %v2349_v41, 0.0  ;;  %v2415_v37 = vmul.f32 0.01, %v2349_v41  ;;  %v2790_v61 = vpop.f32.mrf.mxu0 }
 0x248   : > { %v2903_v60 = vpop.f32.mrf.mxu1  ;;  %v7471_v25 = vadd.f32 %v2901_v19, %v2789_v55  ;;  %v2791_v26 = vadd.f32 %v2790_v61, %v6532_v4  ;;  %vm2384_vm4 = vcmp.ge.f32.partialorder %v2351_v1, 0.0  ;;  %v2416_v34 = vmul.f32 0.01, %v2351_v1 }
 0x249   : > { %v7477_v11 = vsel %vm2383_vm2, %v2349_v41, %v2415_v37  ;;  %v2792_v16 = vpop.f32.mrf.mxu0  ;;  %v7485_v19 = vsel %vm1676_vm3, %v8230_v43, %v1708_v52 }
 0x24a   : > { %8233 = vst [vmem:[#allocation42_spill] sm:$0xff] %v7477_v11  ;;  %v2905_v40 = vpop.f32.mrf.mxu1  ;;  %v7481_v63 = vadd.f32 %v2903_v60, %v2791_v26  ;;  %v2793_v9 = vadd.f32 %v2792_v16, %v6522_v62  ;;  %8234 = vst [vmem:[#allocation43_spill] sm:$0xff] %v7485_v19  ;;  %v7487_v61 = vsel %vm2384_vm4, %v2351_v1, %v2416_v34 }
 0x24b   : > { %8235 = vst [vmem:[#allocation44_spill] sm:$0xff] %v7487_v61  ;;  %v2794_v5 = vpop.f32.mrf.mxu0 }
 0x24c   : > { %v2907_v38 = vpop.f32.mrf.mxu1  ;;  %v7491_v41 = vadd.f32 %v2905_v40, %v2793_v9  ;;  %v2795_v55 = vadd.f32 %v2794_v5, %v6532_v4 }
 0x24d   : > { %v2798_v15 = vpop.f32.mrf.mxu0 }
 0x24e   : > { %v2911_v2 = vpop.f32.mrf.mxu1  ;;  %v7494_v60 = vadd.f32 %v2907_v38, %v2795_v55  ;;  %v2799_v26 = vadd.f32 %v2798_v15, %v6522_v62 }
 0x24f   : > { %v2800_v16 = vpop.f32.mrf.mxu0 }
 0x250   : > { %v2913_v43 = vpop.f32.mrf.mxu1  ;;  %v7497_v52 = vadd.f32 %v2911_v2, %v2799_v26  ;;  %v2801_v1 = vadd.f32 %v2800_v16, %v6532_v4 }
 0x251   : > { %v2802_v34 = vpop.f32.mrf.mxu0 }
 0x252   : > { %v2915_v11 = vpop.f32.mrf.mxu1  ;;  %v7500_v18 = vadd.f32 %v2913_v43, %v2801_v1  ;;  %v2803_v9 = vadd.f32 %v2802_v34, %v6522_v62 }
 0x253   : > { %v2804_v40 = vpop.f32.mrf.mxu0 }
 0x254   : > { %v2917_v5 = vpop.f32.mrf.mxu1  ;;  %v7503_v37 = vadd.f32 %v2915_v11, %v2803_v9  ;;  %v2805_v38 = vadd.f32 %v2804_v40, %v6532_v4 }
 0x255   : > { %v2808_v55 = vpop.f32.mrf.mxu0 }
 0x256   : > { %v2921_v15 = vpop.f32.mrf.mxu1  ;;  %v7506_v61 = vadd.f32 %v2917_v5, %v2805_v38  ;;  %v2809_v2 = vadd.f32 %v2808_v55, %v6522_v62 }
 0x257   : > { %v2810_v26 = vpop.f32.mrf.mxu0 }
 0x258   : > { %v2923_v16 = vpop.f32.mrf.mxu1  ;;  %v7509_v19 = vadd.f32 %v2921_v15, %v2809_v2  ;;  %v2811_v43 = vadd.f32 %v2810_v26, %v6532_v4 }
 0x259   : > { %v2812_v1 = vpop.f32.mrf.mxu0 }
 0x25a   : > { %v2925_v34 = vpop.f32.mrf.mxu1  ;;  %v7512_v29 = vadd.f32 %v2923_v16, %v2811_v43  ;;  %v2813_v11 = vadd.f32 %v2812_v1, %v6522_v62 }
 0x25b   : > { %v2814_v9 = vpop.f32.mrf.mxu0 }
 0x25c   : > { %v2927_v40 = vpop.f32.mrf.mxu1  ;;  %v7515_v39 = vadd.f32 %v2925_v34, %v2813_v11  ;;  %v2815_v5 = vadd.f32 %v2814_v9, %v6532_v4 }
 0x25d   : > { %v2818_v38 = vpop.f32.mrf.mxu0 }
 0x25e   : > { %v2931_v55 = vpop.f32.mrf.mxu1  ;;  %v7518_v51 = vadd.f32 %v2927_v40, %v2815_v5  ;;  %v2819_v15 = vadd.f32 %v2818_v38, %v6522_v62 }
 0x25f   : > { %v2820_v2 = vpop.f32.mrf.mxu0 }
 0x260   : > { %v2933_v26 = vpop.f32.mrf.mxu1  ;;  %v7521_v56 = vadd.f32 %v2931_v55, %v2819_v15  ;;  %v2821_v16 = vadd.f32 %v2820_v2, %v6532_v4 }
 0x261   : > { %v2822_v43 = vpop.f32.mrf.mxu0 }
 0x262   : > { %v2935_v1 = vpop.f32.mrf.mxu1  ;;  %v7524_v35 = vadd.f32 %v2933_v26, %v2821_v16  ;;  %v2823_v34 = vadd.f32 %v2822_v43, %v6522_v62 }
 0x263   : > { %v2824_v11 = vpop.f32.mrf.mxu0 }
 0x264   : > { %v2937_v9 = vpop.f32.mrf.mxu1  ;;  %v7527_v33 = vadd.f32 %v2935_v1, %v2823_v34  ;;  %v2825_v40 = vadd.f32 %v2824_v11, %v6532_v4 }
 0x265   : > { %v2828_v5 = vpop.f32.mrf.mxu0 }
 0x266   : > { %v2941_v38 = vpop.f32.mrf.mxu1  ;;  %v7530_v28 = vadd.f32 %v2937_v9, %v2825_v40  ;;  %v2829_v55 = vadd.f32 %v2828_v5, %v6522_v62 }
 0x267   : > { %v2830_v15 = vpop.f32.mrf.mxu0 }
 0x268   : > { %v2943_v2 = vpop.f32.mrf.mxu1  ;;  %v7533_v50 = vadd.f32 %v2941_v38, %v2829_v55  ;;  %v2831_v26 = vadd.f32 %v2830_v15, %v6532_v4 }
 0x269   : > { %v2832_v16 = vpop.f32.mrf.mxu0 }
 0x26a   : > { %v2945_v43 = vpop.f32.mrf.mxu1  ;;  %v7536_v46 = vadd.f32 %v2943_v2, %v2831_v26  ;;  %v2833_v1 = vadd.f32 %v2832_v16, %v6522_v62 }
 0x26b   : > { %v2834_v34 = vpop.f32.mrf.mxu0 }
 0x26c   : > { %v2947_v11 = vpop.f32.mrf.mxu1  ;;  %v7539_v6 = vadd.f32 %v2945_v43, %v2833_v1  ;;  %v2835_v9 = vadd.f32 %v2834_v34, %v6532_v4 }
 0x26d   : > { %v2838_v40 = vpop.f32.mrf.mxu0 }
 0x26e   : > { %v2951_v5 = vpop.f32.mrf.mxu1  ;;  %v7542_v47 = vadd.f32 %v2947_v11, %v2835_v9  ;;  %v2839_v38 = vadd.f32 %v2838_v40, %v6522_v62 }
 0x26f   : > { %v2840_v55 = vpop.f32.mrf.mxu0 }
 0x270   : > { %v2953_v15 = vpop.f32.mrf.mxu1  ;;  %v7545_v20 = vadd.f32 %v2951_v5, %v2839_v38  ;;  %v2841_v2 = vadd.f32 %v2840_v55, %v6532_v4 }
 0x271   : > { %v2842_v26 = vpop.f32.mrf.mxu0 }
 0x272   : > { %v2955_v16 = vpop.f32.mrf.mxu1  ;;  %v7548_v32 = vadd.f32 %v2953_v15, %v2841_v2  ;;  %v2843_v43 = vadd.f32 %v2842_v26, %v6522_v62 }
 0x273   : > { %v2844_v1 = vpop.f32.mrf.mxu0 }
 0x274   : > { %8236 = vst [vmem:[#allocation45_spill] sm:$0xff] %v7548_v32  ;;  %v2957_v34 = vpop.f32.mrf.mxu1  ;;  %v7551_v57 = vadd.f32 %v2955_v16, %v2843_v43  ;;  %v2845_v11 = vadd.f32 %v2844_v1, %v6532_v4 }
 0x275   : > { %v2848_v9 = vpop.f32.mrf.mxu0 }
 0x276   : > { %8237 = vst [vmem:[#allocation46_spill] sm:$0xff] %v7551_v57  ;;  %v2961_v40 = vpop.f32.mrf.mxu1  ;;  %v7554_v44 = vadd.f32 %v2957_v34, %v2845_v11  ;;  %v2849_v5 = vadd.f32 %v2848_v9, %v6522_v62 }
 0x277   : > { %v2850_v38 = vpop.f32.mrf.mxu0 }
 0x278   : > { %8238 = vst [vmem:[#allocation47_spill] sm:$0xff] %v7554_v44  ;;  %v2963_v55 = vpop.f32.mrf.mxu1  ;;  %v7557_v36 = vadd.f32 %v2961_v40, %v2849_v5  ;;  %v2851_v15 = vadd.f32 %v2850_v38, %v6532_v4 }
 0x279   : > { %v2852_v2 = vpop.f32.mrf.mxu0 }
 0x27a   : > { %8239 = vst [vmem:[#allocation48_spill] sm:$0xff] %v7557_v36  ;;  %v2965_v26 = vpop.f32.mrf.mxu1  ;;  %v7560_v32 = vadd.f32 %v2963_v55, %v2851_v15  ;;  %v2853_v16 = vadd.f32 %v2852_v2, %v6522_v62 }
 0x27b   : > { %v2854_v43 = vpop.f32.mrf.mxu0 }
 0x27c   : > { %8240 = vst [vmem:[#allocation49_spill] sm:$0xff] %v7560_v32  ;;  %v2967_v1 = vpop.f32.mrf.mxu1  ;;  %v7563_v57 = vadd.f32 %v2965_v26, %v2853_v16  ;;  %v2855_v34 = vadd.f32 %v2854_v43, %v6532_v4 }
 0x27d   : > { %v2858_v11 = vpop.f32.mrf.mxu0 }
 0x27e   : > { %8241 = vst [vmem:[#allocation50_spill] sm:$0xff] %v7563_v57  ;;  %v2971_v9 = vpop.f32.mrf.mxu1  ;;  %v7566_v44 = vadd.f32 %v2967_v1, %v2855_v34  ;;  %v2859_v40 = vadd.f32 %v2858_v11, %v6522_v62 }
 0x27f   : > { %v2860_v5 = vpop.f32.mrf.mxu0 }
 0x280   : > { %8242 = vst [vmem:[#allocation51_spill] sm:$0xff] %v7566_v44  ;;  %v2973_v38 = vpop.f32.mrf.mxu1  ;;  %v7569_v36 = vadd.f32 %v2971_v9, %v2859_v40  ;;  %v2861_v55 = vadd.f32 %v2860_v5, %v6532_v4 }
 0x281   : > { %v2862_v15 = vpop.f32.mrf.mxu0 }
 0x282   : > { %v2975_v2 = vpop.f32.mrf.mxu1  ;;  %v7572_v32 = vadd.f32 %v2973_v38, %v2861_v55  ;;  %v2863_v26 = vadd.f32 %v2862_v15, %v6522_v62 }
 0x283   : > { %v2864_v16 = vpop.f32.mrf.mxu0 }
 0x284   : > { %v2977_v43 = vpop.f32.mrf.mxu1  ;;  %v7575_v57 = vadd.f32 %v2975_v2, %v2863_v26  ;;  %v2865_v1 = vadd.f32 %v2864_v16, %v6532_v4 }
 0x285   : > { %v3014_v34 = vpop.f32.mrf.mxu0 }
 0x286   : > { %v7578_v11 = vpop.f32.mrf.mxu1  ;;  %v7580_v44 = vadd.f32 %v2977_v43, %v2865_v1  ;;  %v3015_v9 = vadd.f32 %v3014_v34, %v7471_v25  ;;  %v8245_v43 = vmax.f32 %v6956_v58, %v7154_v17 }
 0x287   : > { %v3016_v40 = vpop.f32.mrf.mxu0 }
 0x288   : > { %v7583_v5 = vpop.f32.mrf.mxu1  ;;  %vm3093_vm5 = vcmp.ge.f32.partialorder %v3015_v9, 0.0  ;;  %v3125_v38 = vmul.f32 0.01, %v3015_v9  ;;  %v3017_v55 = vadd.f32 %v3016_v40, %v7481_v63  ;;  %v8246_v40 = vld [vmem:[#allocation25_spill] sm:$0xff] }
 0x289   : > { %8243 = vst [vmem:[#allocation52_spill] sm:$0xff] %v7583_v5  ;;  %v3018_v15 = vpop.f32.mrf.mxu0 }
 0x28a   : > { %v7586_v62 = vpop.f32.mrf.mxu1  ;;  %v3157_v2 = vsel %vm3093_vm5, %v3015_v9, %v3125_v38  ;;  %vm3094_vm6 = vcmp.ge.f32.partialorder %v3017_v55, 0.0  ;;  %v3126_v26 = vmul.f32 0.01, %v3017_v55  ;;  %v3019_v16 = vadd.f32 %v3018_v15, %v7491_v41 }
 0x28b   : > { %8244 = vst [vmem:[#allocation53_spill] sm:$0xff] %v7586_v62  ;;  %v7592_v1 = vmax.f32 %v8245_v43, %v3157_v2  ;;  %v3020_v25 = vpop.f32.mrf.mxu0  ;;  %v8247_v9 = vmax.f32 %v6970_v45, %v8246_v40  ;;  %v8248_v2 = vld [vmem:[#allocation26_spill] sm:$0xff]  ;;  %v8250_v40 = vld [vmem:[#allocation3_spill] sm:$0xff] }
 0x28c   : > { %v7594_v34 = vpop.f32.mrf.mxu1  ;;  %v3158_v5 = vsel %vm3094_vm6, %v3017_v55, %v3126_v26  ;;  %vm3095_vm7 = vcmp.ge.f32.partialorder %v3019_v16, 0.0  ;;  %v3127_v4 = vmul.f32 0.01, %v3019_v16  ;;  %v3021_v63 = vadd.f32 %v3020_v25, %v7494_v60 }
 0x28d   : > { %v7600_v38 = vmax.f32 %v8247_v9, %v3158_v5  ;;  %v3024_v62 = vpop.f32.mrf.mxu0  ;;  %v8249_v55 = vmax.f32 %v6980_v7, %v8248_v2 }
 0x28e   : > { %v7602_v41 = vpop.f32.mrf.mxu1  ;;  %v3159_v15 = vsel %vm3095_vm7, %v3019_v16, %v3127_v4  ;;  %vm3096_vm8 = vcmp.ge.f32.partialorder %v3021_v63, 0.0  ;;  %v3128_v58 = vmul.f32 0.01, %v3021_v63  ;;  %v3025_v17 = vadd.f32 %v3024_v62, %v7497_v52 }
 0x28f   : > { %v7608_v26 = vmax.f32 %v8249_v55, %v3159_v15  ;;  %v3026_v43 = vpop.f32.mrf.mxu0  ;;  %v8251_v4 = vmax.f32 %v6994_v53, %v8250_v40  ;;  %v8254_v40 = vld [vmem:[#allocation4_spill] sm:$0xff] }
 0x290   : > { %v7610_v60 = vpop.f32.mrf.mxu1  ;;  %v3160_v25 = vsel %vm3096_vm8, %v3021_v63, %v3128_v58  ;;  %vm3097_vm9 = vcmp.ge.f32.partialorder %v3025_v17, 0.0  ;;  %v3129_v45 = vmul.f32 0.01, %v3025_v17  ;;  %v3027_v5 = vadd.f32 %v3026_v43, %v7500_v18 }
 0x291   : > { %v7616_v16 = vmax.f32 %v8251_v4, %v3160_v25  ;;  %v3028_v9 = vpop.f32.mrf.mxu0  ;;  %v8252_v63 = vmax.f32 %v7008_v3, %v7202_v14  ;;  %v8253_v25 = vld [vmem:[#allocation18_spill] sm:$0xff] }
 0x292   : > { %v7618_v62 = vpop.f32.mrf.mxu1  ;;  %v3161_v52 = vsel %vm3097_vm9, %v3025_v17, %v3129_v45  ;;  %vm3098_vm10 = vcmp.ge.f32.partialorder %v3027_v5, 0.0  ;;  %v3130_v7 = vmul.f32 0.01, %v3027_v5  ;;  %v3029_v15 = vadd.f32 %v3028_v9, %v7503_v37 }
 0x293   : > { %v7624_v58 = vmax.f32 %v8252_v63, %v3161_v52  ;;  %v3030_v2 = vpop.f32.mrf.mxu0  ;;  %v8255_v17 = vmax.f32 %v8253_v25, %v8254_v40  ;;  %v8256_v52 = vld [vmem:[#allocation5_spill] sm:$0xff] }
 0x294   : > { %v7626_v18 = vpop.f32.mrf.mxu1  ;;  %v3162_v55 = vsel %vm3098_vm10, %v3027_v5, %v3130_v7  ;;  %vm3099_vm11 = vcmp.ge.f32.partialorder %v3029_v15, 0.0  ;;  %v3131_v53 = vmul.f32 0.01, %v3029_v15  ;;  %v3031_v43 = vadd.f32 %v3030_v2, %v7506_v61 }
 0x295   : > { %v7632_v45 = vmax.f32 %v8255_v17, %v3162_v55  ;;  %v3034_v4 = vpop.f32.mrf.mxu0  ;;  %v8257_v5 = vmax.f32 %v7037_v10, %v8256_v52 }
 0x296   : > { %v7634_v37 = vpop.f32.mrf.mxu1  ;;  %v3163_v9 = vsel %vm3099_vm11, %v3029_v15, %v3131_v53  ;;  %vm3100_vm12 = vcmp.ge.f32.partialorder %v3031_v43, 0.0  ;;  %v3132_v3 = vmul.f32 0.01, %v3031_v43  ;;  %v3035_v14 = vadd.f32 %v3034_v4, %v7509_v19 }
 0x297   : > { %v7640_v7 = vmax.f32 %v8257_v5, %v3163_v9  ;;  %v3036_v63 = vpop.f32.mrf.mxu0  ;;  %v8258_v15 = vmax.f32 %v7062_v23, %v7244_v42 }
 0x298   : > { %v7642_v61 = vpop.f32.mrf.mxu1  ;;  %v3164_v2 = vsel %vm3100_vm12, %v3031_v43, %v3132_v3  ;;  %vm3101_vm13 = vcmp.ge.f32.partialorder %v3035_v14, 0.0  ;;  %v3133_v55 = vmul.f32 0.01, %v3035_v14  ;;  %v3037_v25 = vadd.f32 %v3036_v63, %v7512_v29 }
 0x299   : > { %v7648_v53 = vmax.f32 %v8258_v15, %v3164_v2  ;;  %v3038_v40 = vpop.f32.mrf.mxu0  ;;  %v8259_v43 = vmax.f32 %v7075_v31, %v7249_v24 }
 0x29a   : > { %v7650_v19 = vpop.f32.mrf.mxu1  ;;  %v3165_v17 = vsel %vm3101_vm13, %v3035_v14, %v3133_v55  ;;  %vm3102_vm14 = vcmp.ge.f32.partialorder %v3037_v25, 0.0  ;;  %v3134_v10 = vmul.f32 0.01, %v3037_v25  ;;  %v3039_v4 = vadd.f32 %v3038_v40, %v7515_v39  ;;  %v8261_v55 = vld [vmem:[#allocation8_spill] sm:$0xff] }
 0x29b   : > { %v7656_v9 = vmax.f32 %v8259_v43, %v3165_v17  ;;  %v3040_v3 = vpop.f32.mrf.mxu0  ;;  %v8260_v14 = vmax.f32 %v7086_v30, %v7261_v21 }
 0x29c   : > { %v7658_v29 = vpop.f32.mrf.mxu1  ;;  %v3166_v52 = vsel %vm3102_vm14, %v3037_v25, %v3134_v10  ;;  %vm3103_vm15 = vcmp.ge.f32.partialorder %v3039_v4, 0.0  ;;  %v3135_v23 = vmul.f32 0.01, %v3039_v4  ;;  %v3041_v42 = vadd.f32 %v3040_v3, %v7518_v51  ;;  %v8263_v10 = vld [vmem:[#allocation30_spill] sm:$0xff] }
 0x29d   : > { %v7664_v5 = vmax.f32 %v8260_v14, %v3166_v52  ;;  %v3044_v63 = vpop.f32.mrf.mxu0  ;;  %v8262_v25 = vmax.f32 %v7098_v12, %v8261_v55  ;;  %v8266_v55 = vld [vmem:[#allocation24_spill] sm:$0xff] }
 0x29e   : > { %v7666_v39 = vpop.f32.mrf.mxu1  ;;  %v3167_v2 = vsel %vm3103_vm15, %v3039_v4, %v3135_v23  ;;  %vm3104_vm1 = vcmp.ge.f32.partialorder %v3041_v42, 0.0  ;;  %v3136_v31 = vmul.f32 0.01, %v3041_v42  ;;  %v3045_v24 = vadd.f32 %v3044_v63, %v7521_v56 }
 0x29f   : > { %v7672_v15 = vmax.f32 %v8262_v25, %v3167_v2  ;;  %v3046_v40 = vpop.f32.mrf.mxu0  ;;  %v8264_v4 = vmax.f32 %v7107_v48, %v8263_v10  ;;  %v8267_v25 = vld [vmem:[#allocation10_spill] sm:$0xff]  ;;  %v8269_v10 = vld [vmem:[#allocation11_spill] sm:$0xff] }
 0x2a0   : > { %v7674_v51 = vpop.f32.mrf.mxu1  ;;  %v3168_v17 = vsel %vm3104_vm1, %v3041_v42, %v3136_v31  ;;  %vm3105_vm2 = vcmp.ge.f32.partialorder %v3045_v24, 0.0  ;;  %v3137_v30 = vmul.f32 0.01, %v3045_v24  ;;  %v3047_v21 = vadd.f32 %v3046_v40, %v7524_v35 }
 0x2a1   : > { %v7680_v43 = vmax.f32 %v8264_v4, %v3168_v17  ;;  %v3048_v3 = vpop.f32.mrf.mxu0  ;;  %v8265_v42 = vmax.f32 %v7119_v27, %v7296_v13 }
 0x2a2   : > { %v7682_v56 = vpop.f32.mrf.mxu1  ;;  %v3169_v52 = vsel %vm3105_vm2, %v3045_v24, %v3137_v30  ;;  %vm3106_vm3 = vcmp.ge.f32.partialorder %v3047_v21, 0.0  ;;  %v3138_v12 = vmul.f32 0.01, %v3047_v21  ;;  %v3049_v23 = vadd.f32 %v3048_v3, %v7527_v33 }
 0x2a3   : > { %v7688_v14 = vmax.f32 %v8265_v42, %v3169_v52  ;;  %v3050_v63 = vpop.f32.mrf.mxu0  ;;  %v8268_v24 = vmax.f32 %v8266_v55, %v8267_v25 }
 0x2a4   : > { %v7690_v35 = vpop.f32.mrf.mxu1  ;;  %v3170_v2 = vsel %vm3106_vm3, %v3047_v21, %v3138_v12  ;;  %vm3107_vm4 = vcmp.ge.f32.partialorder %v3049_v23, 0.0  ;;  %v3139_v48 = vmul.f32 0.01, %v3049_v23  ;;  %v3051_v31 = vadd.f32 %v3050_v63, %v7530_v28  ;;  %v8271_v63 = vld [vmem:[#allocation12_spill] sm:$0xff] }
 0x2a5   : > { %v7696_v40 = vmax.f32 %v8268_v24, %v3170_v2  ;;  %v3054_v17 = vpop.f32.mrf.mxu0  ;;  %v8270_v21 = vmax.f32 %v7139_v49, %v8269_v10  ;;  %v8274_v10 = vld [vmem:[#allocation14_spill] sm:$0xff] }
 0x2a6   : > { %v7698_v33 = vpop.f32.mrf.mxu1  ;;  %v3171_v30 = vsel %vm3107_vm4, %v3049_v23, %v3139_v48  ;;  %vm3108_vm5 = vcmp.ge.f32.partialorder %v3051_v31, 0.0  ;;  %v3140_v27 = vmul.f32 0.01, %v3051_v31  ;;  %v3055_v13 = vadd.f32 %v3054_v17, %v7533_v50 }
 0x2a7   : > { %v7704_v4 = vmax.f32 %v8270_v21, %v3171_v30  ;;  %v3056_v3 = vpop.f32.mrf.mxu0  ;;  %v8272_v23 = vmax.f32 %v7144_v22, %v8271_v63 }
 0x2a8   : > { %v7706_v28 = vpop.f32.mrf.mxu1  ;;  %v3172_v52 = vsel %vm3108_vm5, %v3051_v31, %v3140_v27  ;;  %vm3109_vm6 = vcmp.ge.f32.partialorder %v3055_v13, 0.0  ;;  %v3141_v12 = vmul.f32 0.01, %v3055_v13  ;;  %v3057_v42 = vadd.f32 %v3056_v3, %v7536_v46 }
 0x2a9   : > { %v7712_v2 = vmax.f32 %v8272_v23, %v3172_v52  ;;  %v3058_v48 = vpop.f32.mrf.mxu0  ;;  %v8273_v31 = vmax.f32 %v7181_v0, %v7343_v54 }
 0x2aa   : > { %v7714_v50 = vpop.f32.mrf.mxu1  ;;  %v3173_v55 = vsel %vm3109_vm6, %v3055_v13, %v3141_v12  ;;  %vm3110_vm7 = vcmp.ge.f32.partialorder %v3057_v42, 0.0  ;;  %v3142_v49 = vmul.f32 0.01, %v3057_v42  ;;  %v3059_v25 = vadd.f32 %v3058_v48, %v7539_v6  ;;  %v8276_v12 = vld [vmem:[#allocation15_spill] sm:$0xff] }
 0x2ab   : > { %v7720_v24 = vmax.f32 %v8273_v31, %v3173_v55  ;;  %v3060_v17 = vpop.f32.mrf.mxu0  ;;  %v8275_v13 = vmax.f32 %v7191_v59, %v8274_v10  ;;  %v8279_v55 = vld [vmem:[#allocation45_spill] sm:$0xff]  ;;  %v8280_v31 = vld [vmem:[#allocation6_spill] sm:$0xff] }
 0x2ac   : > { %v7722_v46 = vpop.f32.mrf.mxu1  ;;  %v3174_v30 = vsel %vm3110_vm7, %v3057_v42, %v3142_v49  ;;  %vm3111_vm8 = vcmp.ge.f32.partialorder %v3059_v25, 0.0  ;;  %v3143_v22 = vmul.f32 0.01, %v3059_v25  ;;  %v3061_v27 = vadd.f32 %v3060_v17, %v7542_v47  ;;  %v8281_v17 = vld [vmem:[#allocation33_spill] sm:$0xff] }
 0x2ad   : > { %v7728_v21 = vmax.f32 %v8275_v13, %v3174_v30  ;;  %v3064_v3 = vpop.f32.mrf.mxu0  ;;  %v8277_v42 = vmax.f32 %v7223_v8, %v8276_v12  ;;  %v8284_v13 = vld [vmem:[#allocation46_spill] sm:$0xff] }
 0x2ae   : > { %v7730_v6 = vpop.f32.mrf.mxu1  ;;  %v3175_v52 = vsel %vm3111_vm8, %v3059_v25, %v3143_v22  ;;  %vm3112_vm9 = vcmp.ge.f32.partialorder %v3061_v27, 0.0  ;;  %v3144_v0 = vmul.f32 0.01, %v3061_v27  ;;  %v3065_v54 = vadd.f32 %v3064_v3, %v7545_v20  ;;  %v8286_v12 = vld [vmem:[#allocation34_spill] sm:$0xff] }
 0x2af   : > { %v7736_v63 = vmax.f32 %v8277_v42, %v3175_v52  ;;  %v3066_v23 = vpop.f32.mrf.mxu0  ;;  %v8282_v25 = vmax.f32 %v8280_v31, %v8281_v17  ;;  %v8285_v52 = vld [vmem:[#allocation7_spill] sm:$0xff] }
 0x2b0   : > { %v7738_v47 = vpop.f32.mrf.mxu1  ;;  %v3176_v48 = vsel %vm3112_vm9, %v3061_v27, %v3144_v0  ;;  %vm3113_vm10 = vcmp.ge.f32.partialorder %v3065_v54, 0.0  ;;  %v3145_v59 = vmul.f32 0.01, %v3065_v54  ;;  %v3067_v49 = vadd.f32 %v3066_v23, %v8279_v55  ;;  %v8290_v31 = vld [vmem:[#allocation47_spill] sm:$0xff] }
 0x2b1   : > { %8278 = vst [vmem:[#allocation25_spill] sm:$0xff] %v7736_v63  ;;  %v7744_v30 = vmax.f32 %v8282_v25, %v3176_v48  ;;  %v3068_v22 = vpop.f32.mrf.mxu0  ;;  %v8287_v27 = vmax.f32 %v8285_v52, %v8286_v12  ;;  %v8291_v25 = vld [vmem:[#allocation29_spill] sm:$0xff]  ;;  %v8296_v52 = vld [vmem:[#allocation48_spill] sm:$0xff] }
 0x2b2   : > { %v7746_v20 = vpop.f32.mrf.mxu1  ;;  %v3177_v10 = vsel %vm3113_vm10, %v3065_v54, %v3145_v59  ;;  %vm3114_vm11 = vcmp.ge.f32.partialorder %v3067_v49, 0.0  ;;  %v3146_v8 = vmul.f32 0.01, %v3067_v49  ;;  %v3069_v3 = vadd.f32 %v3068_v22, %v8284_v13 }
 0x2b3   : > { %8283 = vst [vmem:[#allocation26_spill] sm:$0xff] %v7744_v30  ;;  %v7752_v0 = vmax.f32 %v8287_v27, %v3177_v10  ;;  %v3070_v42 = vpop.f32.mrf.mxu0  ;;  %v8292_v30 = vld [vmem:[#allocation35_spill] sm:$0xff]  ;;  %v8297_v27 = vld [vmem:[#allocation9_spill] sm:$0xff] }
 0x2b4   : > { %v7754_v23 = vpop.f32.mrf.mxu1  ;;  %v3178_v55 = vsel %vm3114_vm11, %v3067_v49, %v3146_v8  ;;  %vm3115_vm12 = vcmp.ge.f32.partialorder %v3069_v3, 0.0  ;;  %v3147_v48 = vmul.f32 0.01, %v3069_v3  ;;  %v3071_v17 = vadd.f32 %v3070_v42, %v8290_v31 }
 0x2b5   : > { %8288 = vst [vmem:[#allocation3_spill] sm:$0xff] %v7752_v0  ;;  %8289 = vst [vmem:[#allocation18_spill] sm:$0xff] %v7754_v23  ;;  %v8293_v54 = vmax.f32 %v8291_v25, %v8292_v30  ;;  %v3074_v63 = vpop.f32.mrf.mxu0  ;;  %v8298_v0 = vld [vmem:[#allocation37_spill] sm:$0xff] }
 0x2b6   : > { %v7762_v22 = vpop.f32.mrf.mxu1  ;;  %v3179_v13 = vsel %vm3115_vm12, %v3069_v3, %v3147_v48  ;;  %vm3116_vm13 = vcmp.ge.f32.partialorder %v3071_v17, 0.0  ;;  %v3148_v10 = vmul.f32 0.01, %v3071_v17  ;;  %v3075_v12 = vadd.f32 %v3074_v63, %v8296_v52 }
 0x2b7   : > { %v7760_v59 = vmax.f32 %v8293_v54, %v3178_v55  ;;  %8295 = vst [vmem:[#allocation5_spill] sm:$0xff] %v7762_v22  ;;  %v8299_v49 = vmax.f32 %v8297_v27, %v8298_v0  ;;  %v3076_v23 = vpop.f32.mrf.mxu0  ;;  %v8302_v55 = vld [vmem:[#allocation49_spill] sm:$0xff]  ;;  %v8303_v54 = vld [vmem:[#allocation31_spill] sm:$0xff] }
 0x2b8   : > { %v7770_v42 = vpop.f32.mrf.mxu1  ;;  %v3180_v31 = vsel %vm3116_vm13, %v3071_v17, %v3148_v10  ;;  %vm3117_vm14 = vcmp.ge.f32.partialorder %v3075_v12, 0.0  ;;  %v3149_v30 = vmul.f32 0.01, %v3075_v12  ;;  %v3077_v25 = vadd.f32 %v3076_v23, %v8302_v55  ;;  %v8310_v17 = vld [vmem:[#allocation39_spill] sm:$0xff] }
 0x2b9   : > { %8294 = vst [vmem:[#allocation4_spill] sm:$0xff] %v7760_v59  ;;  %v7768_v8 = vmax.f32 %v8299_v49, %v3179_v13  ;;  %8301 = vst [vmem:[#allocation30_spill] sm:$0xff] %v7770_v42  ;;  %v8304_v59 = vld [vmem:[#allocation16_spill] sm:$0xff]  ;;  %v3078_v22 = vpop.f32.mrf.mxu0  ;;  %v8308_v13 = vld [vmem:[#allocation50_spill] sm:$0xff] }
 0x2ba   : > { %v8305_v3 = vmax.f32 %v8303_v54, %v8304_v59  ;;  %v7778_v63 = vpop.f32.mrf.mxu1  ;;  %v3181_v52 = vsel %vm3117_vm14, %v3075_v12, %v3149_v30  ;;  %vm3118_vm15 = vcmp.ge.f32.partialorder %v3077_v25, 0.0  ;;  %v3150_v0 = vmul.f32 0.01, %v3077_v25  ;;  %v8309_v49 = vld [vmem:[#allocation13_spill] sm:$0xff]  ;;  %v8314_v54 = vld [vmem:[#allocation51_spill] sm:$0xff] }
 0x2bb   : > { %8300 = vst [vmem:[#allocation8_spill] sm:$0xff] %v7768_v8  ;;  %8307 = vst [vmem:[#allocation10_spill] sm:$0xff] %v7778_v63  ;;  %v3079_v27 = vadd.f32 %v3078_v22, %v8308_v13  ;;  %v8311_v10 = vmax.f32 %v8309_v49, %v8310_v17  ;;  %v3080_v23 = vpop.f32.mrf.mxu0  ;;  %v8316_v12 = vld [vmem:[#allocation19_spill] sm:$0xff] }
 0x2bc   : > { %v7776_v48 = vmax.f32 %v8305_v3, %v3180_v31  ;;  %v7786_v55 = vpop.f32.mrf.mxu1  ;;  %v3182_v59 = vsel %vm3118_vm15, %v3077_v25, %v3150_v0  ;;  %v3081_v3 = vadd.f32 %v3080_v23, %v8314_v54  ;;  %v8320_v25 = vld [vmem:[#allocation36_spill] sm:$0xff] }
 0x2bd   : > { %v7784_v8 = vmax.f32 %v8311_v10, %v3181_v52  ;;  %8313 = vst [vmem:[#allocation12_spill] sm:$0xff] %v7786_v55  ;;  %vm3119_vm1 = vcmp.ge.f32.partialorder %v3079_v27, 0.0  ;;  %v3151_v31 = vmul.f32 0.01, %v3079_v27  ;;  %v3084_v42 = vpop.f32.mrf.mxu0  ;;  %v8321_v0 = vld [vmem:[#allocation20_spill] sm:$0xff] }
 0x2be   : > { %8306 = vst [vmem:[#allocation24_spill] sm:$0xff] %v7776_v48  ;;  %v8315_v48 = vld [vmem:[#allocation32_spill] sm:$0xff]  ;;  %v7794_v22 = vpop.f32.mrf.mxu1  ;;  %vm3120_vm2 = vcmp.ge.f32.partialorder %v3081_v3, 0.0  ;;  %v3152_v52 = vmul.f32 0.01, %v3081_v3  ;;  %v3085_v49 = vadd.f32 %v3084_v42, %v7569_v36  ;;  %v8322_v17 = vmax.f32 %v8320_v25, %v8321_v0 }
 0x2bf   : > { %8312 = vst [vmem:[#allocation11_spill] sm:$0xff] %v7784_v8  ;;  %v8317_v30 = vmax.f32 %v8315_v48, %v8316_v12  ;;  %8319 = vst [vmem:[#allocation15_spill] sm:$0xff] %v7794_v22  ;;  %v3183_v13 = vsel %vm3119_vm1, %v3079_v27, %v3151_v31  ;;  %v3086_v23 = vpop.f32.mrf.mxu0  ;;  %v8325_v27 = vld [vmem:[#allocation38_spill] sm:$0xff]  ;;  %v8347_v22 = vld [vmem:[#allocation44_spill] sm:$0xff] }
 0x2c0   : > { %v7802_v10 = vmax.f32 %v8322_v17, %v3183_v13  ;;  %v7804_v54 = vpop.f32.mrf.mxu1  ;;  %v3184_v48 = vsel %vm3120_vm2, %v3081_v3, %v3152_v52  ;;  %vm3121_vm3 = vcmp.ge.f32.partialorder %v3085_v49, 0.0  ;;  %v3087_v12 = vadd.f32 %v3086_v23, %v7572_v32  ;;  %v8326_v31 = vld [vmem:[#allocation22_spill] sm:$0xff]  ;;  %v8330_v17 = vld [vmem:[#allocation27_spill] sm:$0xff]  ;;  %v8331_v52 = vld [vmem:[#allocation17_spill] sm:$0xff] }
 0x2c1   : > { %v7792_v63 = vmax.f32 %v8317_v30, %v3182_v59  ;;  %8324 = vst [vmem:[#allocation6_spill] sm:$0xff] %v7804_v54  ;;  %v3153_v59 = vmul.f32 0.01, %v3085_v49  ;;  %v8327_v30 = vmax.f32 %v8325_v27, %v8326_v31  ;;  %v3088_v36 = vpop.f32.mrf.mxu0  ;;  %v3529_v3 = vadd.f32 %v7578_v11, %v8330_v17 }
 0x2c2   : > { %8323 = vst [vmem:[#allocation45_spill] sm:$0xff] %v7802_v10  ;;  %v7812_v42 = vpop.f32.mrf.mxu1  ;;  %vm3122_vm4 = vcmp.ge.f32.partialorder %v3087_v12, 0.0  ;;  %v3154_v13 = vmul.f32 0.01, %v3087_v12  ;;  %v3089_v0 = vadd.f32 %v3088_v36, %v7575_v57  ;;  %v8332_v10 = vld [vmem:[#allocation41_spill] sm:$0xff]  ;;  %v8338_v57 = vld [vmem:[#allocation40_spill] sm:$0xff] }
 0x2c3   : > { %8318 = vst [vmem:[#allocation14_spill] sm:$0xff] %v7792_v63  ;;  %v7810_v63 = vmax.f32 %v8327_v30, %v3184_v48  ;;  %8329 = vst [vmem:[#allocation46_spill] sm:$0xff] %v7812_v42  ;;  %v3185_v25 = vsel %vm3121_vm3, %v3085_v49, %v3153_v59  ;;  %v8333_v32 = vmax.f32 %v8331_v52, %v8332_v10  ;;  %v3090_v27 = vpop.f32.mrf.mxu0  ;;  %v8336_v59 = vld [vmem:[#allocation28_spill] sm:$0xff]  ;;  %v8339_v36 = vld [vmem:[#allocation21_spill] sm:$0xff] }
 0x2c4   : > { %v7822_v48 = vpop.f32.mrf.mxu1  ;;  %v3186_v31 = vsel %vm3122_vm4, %v3087_v12, %v3154_v13  ;;  %vm3123_vm5 = vcmp.ge.f32.partialorder %v3089_v0, 0.0  ;;  %v3155_v30 = vmul.f32 0.01, %v3089_v0  ;;  %v3091_v49 = vadd.f32 %v3090_v27, %v7580_v44  ;;  %v8342_v13 = vld [vmem:[#allocation23_spill] sm:$0xff] }
 0x2c5   : > { %8328 = vst [vmem:[#allocation33_spill] sm:$0xff] %v7810_v63  ;;  %v7820_v23 = vmax.f32 %v8333_v32, %v3185_v25  ;;  %8335 = vst [vmem:[#allocation34_spill] sm:$0xff] %v7822_v48  ;;  %v8337_v63 = vld [vmem:[#allocation52_spill] sm:$0xff]  ;;  %v8340_v54 = vmax.f32 %v8338_v57, %v8339_v36  ;;  %v3641_v8 = vpop.f32.mrf.mxu0  ;;  %v8343_v32 = vld [vmem:[#allocation42_spill] sm:$0xff] }
 0x2c6   : > { %v3531_v42 = vadd.f32 %v8337_v63, %v8336_v59  ;;  %v3754_v10 = vpop.f32.mrf.mxu1  ;;  %v3187_v25 = vsel %vm3123_vm5, %v3089_v0, %v3155_v30  ;;  %vm3124_vm6 = vcmp.ge.f32.partialorder %v3091_v49, 0.0  ;;  %v3156_v52 = vmul.f32 0.01, %v3091_v49  ;;  %v8345_v48 = vld [vmem:[#allocation53_spill] sm:$0xff] }
 0x2c7   : > { %8334 = vst [vmem:[#allocation7_spill] sm:$0xff] %v7820_v23  ;;  %v7830_v11 = vmax.f32 %v8340_v54, %v3186_v31  ;;  %v3642_v12 = vadd.f32 %v3641_v8, %v3529_v3  ;;  %v8344_v23 = vmax.f32 %v8342_v13, %v8343_v32  ;;  %v3643_v27 = vpop.f32.mrf.mxu0  ;;  %v3533_v57 = vadd.f32 %v8345_v48, %v8330_v17 }
 0x2c8   : > { %v3756_v63 = vpop.f32.mrf.mxu1  ;;  %v3188_v54 = vsel %vm3124_vm6, %v3091_v49, %v3156_v52  ;;  %v3644_v36 = vadd.f32 %v3643_v27, %v3531_v42  ;;  %v3535_v13 = vadd.f32 %v7594_v34, %v8336_v59  ;;  %v3539_v48 = vadd.f32 %v7602_v41, %v8330_v17 }
 0x2c9   : > { %8341 = vst [vmem:[#allocation47_spill] sm:$0xff] %v7830_v11  ;;  %v7836_v44 = vmax.f32 %v8344_v23, %v3187_v25  ;;  %v3755_v31 = vadd.f32 %v3754_v10, %v3642_v12  ;;  %v8346_v11 = vld [vmem:[#allocation43_spill] sm:$0xff]  ;;  %v3645_v8 = vpop.f32.mrf.mxu0  ;;  %v3541_v10 = vadd.f32 %v7610_v60, %v8336_v59 }
 0x2ca   : > { %v8348_v55 = vmax.f32 %v8346_v11, %v8347_v22  ;;  %v3758_v3 = vpop.f32.mrf.mxu1  ;;  %v3757_v23 = vadd.f32 %v3756_v63, %v3644_v36  ;;  %v3646_v25 = vadd.f32 %v3645_v8, %v3533_v57  ;;  %v3543_v8 = vadd.f32 %v7618_v62, %v8330_v17 }
 0x2cb   : > { %vm3833_vm7 = vcmp.ge.f32.partialorder %v3755_v31, 0.0  ;;  %v3865_v30 = vmul.f32 0.01, %v3755_v31  ;;  %v3647_v49 = vpop.f32.mrf.mxu0  ;;  %v3549_v62 = vadd.f32 %v7634_v37, %v8330_v17  ;;  %v3551_v37 = vadd.f32 %v7642_v61, %v8336_v59 }
 0x2cc   : > { %v7843_v0 = vmax.f32 %v8348_v55, %v3188_v54  ;;  %v3760_v42 = vpop.f32.mrf.mxu1  ;;  %vm3834_vm8 = vcmp.ge.f32.partialorder %v3757_v23, 0.0  ;;  %v3866_v22 = vmul.f32 0.01, %v3757_v23  ;;  %v3759_v11 = vadd.f32 %v3758_v3, %v3646_v25 }
 0x2cd   : > { %v3897_v55 = vsel %vm3833_vm7, %v3755_v31, %v3865_v30  ;;  %v3648_v52 = vadd.f32 %v3647_v49, %v3535_v13  ;;  %v3651_v41 = vpop.f32.mrf.mxu0 }
 0x2ce   : > { %v3929_v34 = vmax.f32 %v7592_v1, %v3897_v55  ;;  %v3764_v12 = vpop.f32.mrf.mxu1  ;;  %v3898_v32 = vsel %vm3834_vm8, %v3757_v23, %v3866_v22  ;;  %vm3835_vm9 = vcmp.ge.f32.partialorder %v3759_v11, 0.0  ;;  %v3867_v27 = vmul.f32 0.01, %v3759_v11 }
 0x2cf   : > { %v3652_v63 = vadd.f32 %v3651_v41, %v3539_v48  ;;  %v3930_v57 = vmax.f32 %v7600_v38, %v3898_v32  ;;  %v3761_v54 = vadd.f32 %v3760_v42, %v3648_v52  ;;  %v3653_v31 = vpop.f32.mrf.mxu0  ;;  %v3545_v42 = vadd.f32 %v7626_v18, %v8336_v59 }
 0x2d0   : > { %3961 = vst [vmem:[%s7852_s12] sm:$0xff] %v3929_v34  ;;  %v3766_v36 = vpop.f32.mrf.mxu1  ;;  %v3899_v60 = vsel %vm3835_vm9, %v3759_v11, %v3867_v27  ;;  %v3654_v3 = vadd.f32 %v3653_v31, %v3541_v10 }
 0x2d1   : > { %v3765_v1 = vadd.f32 %v3764_v12, %v3652_v63  ;;  %3962 = vst.msk [vmem:[%s7852_s12 + $0x8] sm:$0xff] %vm1281_vm0, %v3930_v57  ;;  %v3931_v30 = vmax.f32 %v7608_v26, %v3899_v60  ;;  %vm3836_vm10 = vcmp.ge.f32.partialorder %v3761_v54, 0.0  ;;  %v3868_v23 = vmul.f32 0.01, %v3761_v54  ;;  %v3655_v25 = vpop.f32.mrf.mxu0 }
 0x2d2   : > { %v3768_v13 = vpop.f32.mrf.mxu1  ;;  %v3767_v48 = vadd.f32 %v3766_v36, %v3654_v3  ;;  %v3656_v49 = vadd.f32 %v3655_v25, %v3543_v8  ;;  %v3553_v60 = vadd.f32 %v7650_v19, %v8330_v17 }
 0x2d3   : > { %vm3837_vm11 = vcmp.ge.f32.partialorder %v3765_v1, 0.0  ;;  %v3869_v38 = vmul.f32 0.01, %v3765_v1  ;;  %3963 = vst [vmem:[%s7852_s12 + $0x10] sm:$0xff] %v3931_v30  ;;  %v3900_v55 = vsel %vm3836_vm10, %v3761_v54, %v3868_v23  ;;  %v3657_v22 = vpop.f32.mrf.mxu0 }
 0x2d4   : > { %v3770_v26 = vpop.f32.mrf.mxu1  ;;  %v3932_v11 = vmax.f32 %v7616_v16, %v3900_v55  ;;  %vm3838_vm12 = vcmp.ge.f32.partialorder %v3767_v48, 0.0  ;;  %v3870_v34 = vmul.f32 0.01, %v3767_v48  ;;  %v3769_v41 = vadd.f32 %v3768_v13, %v3656_v49 }
 0x2d5   : > { %v3901_v10 = vsel %vm3837_vm11, %v3765_v1, %v3869_v38  ;;  %v3658_v12 = vadd.f32 %v3657_v22, %v3545_v42  ;;  %v3661_v32 = vpop.f32.mrf.mxu0  ;;  %v3555_v13 = vadd.f32 %v7658_v29, %v8336_v59  ;;  %v3559_v38 = vadd.f32 %v7666_v39, %v8330_v17 }
 0x2d6   : > { %v3933_v52 = vmax.f32 %v7624_v58, %v3901_v10  ;;  %v3774_v18 = vpop.f32.mrf.mxu1  ;;  %3964 = vst.msk [vmem:[%s7852_s12 + $0x18] sm:$0xff] %vm1281_vm0, %v3932_v11  ;;  %v3902_v27 = vsel %vm3838_vm12, %v3767_v48, %v3870_v34  ;;  %v3662_v63 = vadd.f32 %v3661_v32, %v3549_v62  ;;  %vm3839_vm13 = vcmp.ge.f32.partialorder %v3769_v41, 0.0 }
 0x2d7   : > { %v3934_v16 = vmax.f32 %v7632_v45, %v3902_v27  ;;  %v3871_v57 = vmul.f32 0.01, %v3769_v41  ;;  %v3771_v54 = vadd.f32 %v3770_v26, %v3658_v12  ;;  %v3663_v31 = vpop.f32.mrf.mxu0  ;;  %v3561_v39 = vadd.f32 %v7674_v51, %v8336_v59 }
 0x2d8   : > { %3965 = vst [vmem:[%s7852_s12 + $0x20] sm:$0xff] %v3933_v52  ;;  %v3776_v58 = vpop.f32.mrf.mxu1  ;;  %v3775_v36 = vadd.f32 %v3774_v18, %v3662_v63  ;;  %v3664_v8 = vadd.f32 %v3663_v31, %v3551_v37  ;;  %v3563_v27 = vadd.f32 %v7682_v56, %v8330_v17 }
 0x2d9   : > { %3966 = vst.msk [vmem:[%s7852_s12 + $0x28] sm:$0xff] %vm1281_vm0, %v3934_v16  ;;  %v3903_v61 = vsel %vm3839_vm13, %v3769_v41, %v3871_v57  ;;  %vm3840_vm14 = vcmp.ge.f32.partialorder %v3771_v54, 0.0  ;;  %v3872_v1 = vmul.f32 0.01, %v3771_v54  ;;  %v3665_v3 = vpop.f32.mrf.mxu0 }
 0x2da   : > { %v3778_v30 = vpop.f32.mrf.mxu1  ;;  %v3935_v45 = vmax.f32 %v7640_v7, %v3903_v61  ;;  %vm3841_vm15 = vcmp.ge.f32.partialorder %v3775_v36, 0.0  ;;  %v3873_v23 = vmul.f32 0.01, %v3775_v36  ;;  %v3777_v25 = vadd.f32 %v3776_v58, %v3664_v8 }
 0x2db   : > { %v3904_v19 = vsel %vm3840_vm14, %v3771_v54, %v3872_v1  ;;  %v3666_v48 = vadd.f32 %v3665_v3, %v3553_v60  ;;  %v3667_v49 = vpop.f32.mrf.mxu0  ;;  %v3565_v58 = vadd.f32 %v7690_v35, %v8336_v59 }
 0x2dc   : > { %v3780_v42 = vpop.f32.mrf.mxu1  ;;  %3967 = vst [vmem:[%s7852_s12 + $0x30] sm:$0xff] %v3935_v45  ;;  %v3936_v62 = vmax.f32 %v7648_v53, %v3904_v19  ;;  %v3905_v55 = vsel %vm3841_vm15, %v3775_v36, %v3873_v23  ;;  %vm3842_vm1 = vcmp.ge.f32.partialorder %v3777_v25, 0.0  ;;  %v3874_v7 = vmul.f32 0.01, %v3777_v25 }
 0x2dd   : > { %v3937_v22 = vmax.f32 %v7656_v9, %v3905_v55  ;;  %v3779_v26 = vadd.f32 %v3778_v30, %v3666_v48  ;;  %v3668_v11 = vadd.f32 %v3667_v49, %v3555_v13  ;;  %v3671_v29 = vpop.f32.mrf.mxu0  ;;  %v3569_v36 = vadd.f32 %v7698_v33, %v8330_v17 }
 0x2de   : > { %v3784_v10 = vpop.f32.mrf.mxu1  ;;  %3968 = vst.msk [vmem:[%s7852_s12 + $0x38] sm:$0xff] %vm1281_vm0, %v3936_v62  ;;  %v3906_v34 = vsel %vm3842_vm1, %v3777_v25, %v3874_v7  ;;  %v3672_v52 = vadd.f32 %v3671_v29, %v3559_v38  ;;  %v3571_v33 = vadd.f32 %v7706_v28, %v8336_v59  ;;  %v3573_v55 = vadd.f32 %v7714_v50, %v8330_v17 }
 0x2df   : > { %3969 = vst [vmem:[%s7852_s12 + $0x40] sm:$0xff] %v3937_v22  ;;  %v3938_v53 = vmax.f32 %v7664_v5, %v3906_v34  ;;  %vm3843_vm2 = vcmp.ge.f32.partialorder %v3779_v26, 0.0  ;;  %v3875_v41 = vmul.f32 0.01, %v3779_v26  ;;  %v3781_v12 = vadd.f32 %v3780_v42, %v3668_v11  ;;  %v3673_v32 = vpop.f32.mrf.mxu0 }
 0x2e0   : > { %v3786_v9 = vpop.f32.mrf.mxu1  ;;  %v3785_v18 = vadd.f32 %v3784_v10, %v3672_v52  ;;  %v3674_v37 = vadd.f32 %v3673_v32, %v3561_v39  ;;  %v3575_v10 = vadd.f32 %v7722_v46, %v8336_v59  ;;  %v3579_v39 = vadd.f32 %v7730_v6, %v8330_v17 }
 0x2e1   : > { %3970 = vst.msk [vmem:[%s7852_s12 + $0x48] sm:$0xff] %vm1281_vm0, %v3938_v53  ;;  %v3907_v51 = vsel %vm3843_vm2, %v3779_v26, %v3875_v41  ;;  %vm3844_vm3 = vcmp.ge.f32.partialorder %v3781_v12, 0.0  ;;  %v3876_v63 = vmul.f32 0.01, %v3781_v12  ;;  %v3675_v16 = vpop.f32.mrf.mxu0  ;;  %v3581_v6 = vadd.f32 %v7738_v47, %v8336_v59 }
 0x2e2   : > { %v3788_v57 = vpop.f32.mrf.mxu1  ;;  %v3939_v5 = vmax.f32 %v7672_v15, %v3907_v51  ;;  %vm3845_vm4 = vcmp.ge.f32.partialorder %v3785_v18, 0.0  ;;  %v3877_v54 = vmul.f32 0.01, %v3785_v18  ;;  %v3787_v31 = vadd.f32 %v3786_v9, %v3674_v37 }
 0x2e3   : > { %v3908_v56 = vsel %vm3844_vm3, %v3781_v12, %v3876_v63  ;;  %v3676_v8 = vadd.f32 %v3675_v16, %v3563_v27  ;;  %v3677_v60 = vpop.f32.mrf.mxu0 }
 0x2e4   : > { %v3790_v61 = vpop.f32.mrf.mxu1  ;;  %3971 = vst [vmem:[%s7852_s12 + $0x50] sm:$0xff] %v3939_v5  ;;  %v3940_v1 = vmax.f32 %v7680_v43, %v3908_v56  ;;  %v3909_v3 = vsel %vm3845_vm4, %v3785_v18, %v3877_v54  ;;  %vm3846_vm5 = vcmp.ge.f32.partialorder %v3787_v31, 0.0  ;;  %v3878_v15 = vmul.f32 0.01, %v3787_v31 }
 0x2e5   : > { %v3941_v30 = vmax.f32 %v7688_v14, %v3909_v3  ;;  %v3789_v45 = vadd.f32 %v3788_v57, %v3676_v8  ;;  %v3678_v23 = vadd.f32 %v3677_v60, %v3565_v58  ;;  %v3681_v35 = vpop.f32.mrf.mxu0  ;;  %v8349_v8 = vld [vmem:[#allocation25_spill] sm:$0xff] }
 0x2e6   : > { %v3794_v25 = vpop.f32.mrf.mxu1  ;;  %3972 = vst.msk [vmem:[%s7852_s12 + $0x58] sm:$0xff] %vm1281_vm0, %v3940_v1  ;;  %v3910_v13 = vsel %vm3846_vm5, %v3787_v31, %v3878_v15  ;;  %v3682_v38 = vadd.f32 %v3681_v35, %v3569_v36  ;;  %v3583_v31 = vadd.f32 %v7746_v20, %v8330_v17  ;;  %v8350_v1 = vld [vmem:[#allocation18_spill] sm:$0xff]  ;;  %v8351_v15 = vld [vmem:[#allocation5_spill] sm:$0xff] }
 0x2e7   : > { %3973 = vst [vmem:[%s7852_s12 + $0x60] sm:$0xff] %v3941_v30  ;;  %v3942_v43 = vmax.f32 %v7696_v40, %v3910_v13  ;;  %vm3847_vm6 = vcmp.ge.f32.partialorder %v3789_v45, 0.0  ;;  %v3879_v19 = vmul.f32 0.01, %v3789_v45  ;;  %v3791_v48 = vadd.f32 %v3790_v61, %v3678_v23  ;;  %v3683_v49 = vpop.f32.mrf.mxu0 }
 0x2e8   : > { %v3796_v14 = vpop.f32.mrf.mxu1  ;;  %v3795_v42 = vadd.f32 %v3794_v25, %v3682_v38  ;;  %v3684_v62 = vadd.f32 %v3683_v49, %v3571_v33  ;;  %v3585_v3 = vadd.f32 %v8350_v1, %v8336_v59  ;;  %v3589_v30 = vadd.f32 %v8351_v15, %v8330_v17  ;;  %v8352_v25 = vld [vmem:[#allocation26_spill] sm:$0xff] }
 0x2e9   : > { %3974 = vst.msk [vmem:[%s7852_s12 + $0x68] sm:$0xff] %vm1281_vm0, %v3942_v43  ;;  %v3911_v28 = vsel %vm3847_vm6, %v3789_v45, %v3879_v19  ;;  %vm3848_vm7 = vcmp.ge.f32.partialorder %v3791_v48, 0.0  ;;  %v3880_v7 = vmul.f32 0.01, %v3791_v48  ;;  %v3685_v22 = vpop.f32.mrf.mxu0  ;;  %v8353_v43 = vld [vmem:[#allocation3_spill] sm:$0xff]  ;;  %v8363_v15 = vld [vmem:[#allocation14_spill] sm:$0xff] }
 0x2ea   : > { %v3798_v26 = vpop.f32.mrf.mxu1  ;;  %v3943_v40 = vmax.f32 %v7704_v4, %v3911_v28  ;;  %vm3849_vm8 = vcmp.ge.f32.partialorder %v3795_v42, 0.0  ;;  %v3881_v11 = vmul.f32 0.01, %v3795_v42  ;;  %v3797_v29 = vadd.f32 %v3796_v14, %v3684_v62  ;;  %v8354_v62 = vld [vmem:[#allocation30_spill] sm:$0xff] }
 0x2eb   : > { %v3912_v50 = vsel %vm3848_vm7, %v3791_v48, %v3880_v7  ;;  %v3686_v34 = vadd.f32 %v3685_v22, %v3573_v55  ;;  %v3687_v52 = vpop.f32.mrf.mxu0  ;;  %v3591_v55 = vadd.f32 %v8354_v62, %v8336_v59  ;;  %v8355_v22 = vld [vmem:[#allocation4_spill] sm:$0xff] }
 0x2ec   : > { %v3800_v53 = vpop.f32.mrf.mxu1  ;;  %3975 = vst [vmem:[%s7852_s12 + $0x70] sm:$0xff] %v3943_v40  ;;  %v3944_v41 = vmax.f32 %v7712_v2, %v3912_v50  ;;  %v3913_v12 = vsel %vm3849_vm8, %v3795_v42, %v3881_v11  ;;  %vm3850_vm9 = vcmp.ge.f32.partialorder %v3797_v29, 0.0  ;;  %v3882_v4 = vmul.f32 0.01, %v3797_v29 }
 0x2ed   : > { %v3945_v32 = vmax.f32 %v7720_v24, %v3913_v12  ;;  %v3799_v9 = vadd.f32 %v3798_v26, %v3686_v34  ;;  %v3688_v18 = vadd.f32 %v3687_v52, %v3575_v10  ;;  %v3691_v46 = vpop.f32.mrf.mxu0  ;;  %v8356_v34 = vld [vmem:[#allocation10_spill] sm:$0xff] }
 0x2ee   : > { %v3804_v37 = vpop.f32.mrf.mxu1  ;;  %3976 = vst.msk [vmem:[%s7852_s12 + $0x78] sm:$0xff] %vm1281_vm0, %v3944_v41  ;;  %v3914_v27 = vsel %vm3850_vm9, %v3797_v29, %v3882_v4  ;;  %v3692_v51 = vadd.f32 %v3691_v46, %v3579_v39  ;;  %v3593_v52 = vadd.f32 %v8356_v34, %v8330_v17 }
 0x2ef   : > { %3977 = vst [vmem:[%s7852_s12 + $0x80] sm:$0xff] %v3945_v32  ;;  %v3946_v2 = vmax.f32 %v7728_v21, %v3914_v27  ;;  %vm3851_vm10 = vcmp.ge.f32.partialorder %v3799_v9, 0.0  ;;  %v3883_v63 = vmul.f32 0.01, %v3799_v9  ;;  %v3801_v16 = vadd.f32 %v3800_v53, %v3688_v18  ;;  %v3693_v57 = vpop.f32.mrf.mxu0  ;;  %v8357_v32 = vld [vmem:[#allocation8_spill] sm:$0xff]  ;;  %v8359_v27 = vld [vmem:[#allocation15_spill] sm:$0xff] }
 0x2f0   : > { %v3806_v24 = vpop.f32.mrf.mxu1  ;;  %v3805_v5 = vadd.f32 %v3804_v37, %v3692_v51  ;;  %v3694_v54 = vadd.f32 %v3693_v57, %v3581_v6  ;;  %v8358_v37 = vld [vmem:[#allocation12_spill] sm:$0xff]  ;;  %v3599_v51 = vadd.f32 %v8359_v27, %v8330_v17 }
 0x2f1   : > { %3978 = vst.msk [vmem:[%s7852_s12 + $0x88] sm:$0xff] %vm1281_vm0, %v3946_v2  ;;  %v3915_v47 = vsel %vm3851_vm10, %v3799_v9, %v3883_v63  ;;  %vm3852_vm11 = vcmp.ge.f32.partialorder %v3801_v16, 0.0  ;;  %v3884_v58 = vmul.f32 0.01, %v3801_v16  ;;  %v3695_v36 = vpop.f32.mrf.mxu0  ;;  %v3595_v6 = vadd.f32 %v8358_v37, %v8336_v59 }
 0x2f2   : > { %v3808_v56 = vpop.f32.mrf.mxu1  ;;  %v3947_v21 = vmax.f32 %v8349_v8, %v3915_v47  ;;  %vm3853_vm12 = vcmp.ge.f32.partialorder %v3805_v5, 0.0  ;;  %v3885_v60 = vmul.f32 0.01, %v3805_v5  ;;  %v3807_v61 = vadd.f32 %v3806_v24, %v3694_v54  ;;  %v8360_v24 = vld [vmem:[#allocation24_spill] sm:$0xff]  ;;  %v8361_v47 = vld [vmem:[#allocation11_spill] sm:$0xff] }
 0x2f3   : > { %v3916_v20 = vsel %vm3852_vm11, %v3801_v16, %v3884_v58  ;;  %v3696_v45 = vadd.f32 %v3695_v36, %v3583_v31  ;;  %v3697_v23 = vpop.f32.mrf.mxu0 }
 0x2f4   : > { %v3810_v35 = vpop.f32.mrf.mxu1  ;;  %3979 = vst [vmem:[%s7852_s12 + $0x90] sm:$0xff] %v3947_v21  ;;  %v3948_v33 = vmax.f32 %v8352_v25, %v3916_v20  ;;  %v3917_v13 = vsel %vm3853_vm12, %v3805_v5, %v3885_v60  ;;  %vm3854_vm13 = vcmp.ge.f32.partialorder %v3807_v61, 0.0  ;;  %v3886_v38 = vmul.f32 0.01, %v3807_v61  ;;  %v8362_v60 = vld [vmem:[#allocation6_spill] sm:$0xff] }
 0x2f5   : > { %v3949_v19 = vmax.f32 %v8353_v43, %v3917_v13  ;;  %v3809_v48 = vadd.f32 %v3808_v56, %v3696_v45  ;;  %v3698_v49 = vadd.f32 %v3697_v23, %v3585_v3  ;;  %v3701_v14 = vpop.f32.mrf.mxu0  ;;  %v8364_v13 = vld [vmem:[#allocation46_spill] sm:$0xff] }
 0x2f6   : > { %v3814_v42 = vpop.f32.mrf.mxu1  ;;  %3980 = vst.msk [vmem:[%s7852_s12 + $0x98] sm:$0xff] %vm1281_vm0, %v3948_v33  ;;  %v3918_v28 = vsel %vm3854_vm13, %v3807_v61, %v3886_v38  ;;  %v3702_v7 = vadd.f32 %v3701_v14, %v3589_v30  ;;  %v3601_v61 = vadd.f32 %v8362_v60, %v8336_v59  ;;  %v3603_v38 = vadd.f32 %v8364_v13, %v8330_v17 }
 0x2f7   : > { %3981 = vst [vmem:[%s7852_s12 + $0xa0] sm:$0xff] %v3949_v19  ;;  %v3950_v26 = vmax.f32 %v8355_v22, %v3918_v28  ;;  %vm3855_vm14 = vcmp.ge.f32.partialorder %v3809_v48, 0.0  ;;  %v3887_v40 = vmul.f32 0.01, %v3809_v48  ;;  %v3811_v11 = vadd.f32 %v3810_v35, %v3698_v49  ;;  %v3703_v29 = vpop.f32.mrf.mxu0  ;;  %v8365_v49 = vld [vmem:[#allocation45_spill] sm:$0xff]  ;;  %v8366_v28 = vld [vmem:[#allocation34_spill] sm:$0xff] }
 0x2f8   : > { %v3816_v10 = vpop.f32.mrf.mxu1  ;;  %v3815_v39 = vadd.f32 %v3814_v42, %v3702_v7  ;;  %v3704_v50 = vadd.f32 %v3703_v29, %v3591_v55  ;;  %v3605_v7 = vadd.f32 %v8366_v28, %v8336_v59 }
 0x2f9   : > { %3982 = vst.msk [vmem:[%s7852_s12 + $0xa8] sm:$0xff] %vm1281_vm0, %v3950_v26  ;;  %v3919_v53 = vsel %vm3855_vm14, %v3809_v48, %v3887_v40  ;;  %vm3856_vm15 = vcmp.ge.f32.partialorder %v3811_v11, 0.0  ;;  %v3888_v41 = vmul.f32 0.01, %v3811_v11  ;;  %v3705_v12 = vpop.f32.mrf.mxu0  ;;  %v8367_v40 = vld [vmem:[#allocation33_spill] sm:$0xff] }
 0x2fa   : > { %v3818_v4 = vpop.f32.mrf.mxu1  ;;  %v3951_v9 = vmax.f32 %v8357_v32, %v3919_v53  ;;  %vm3857_vm1 = vcmp.ge.f32.partialorder %v3815_v39, 0.0  ;;  %v3889_v18 = vmul.f32 0.01, %v3815_v39  ;;  %v3817_v46 = vadd.f32 %v3816_v10, %v3704_v50 }
 0x2fb   : > { %v3920_v2 = vsel %vm3856_vm15, %v3811_v11, %v3888_v41  ;;  %v3706_v63 = vadd.f32 %v3705_v12, %v3593_v52  ;;  %v3707_v16 = vpop.f32.mrf.mxu0  ;;  %v8369_v41 = vld [vmem:[#allocation47_spill] sm:$0xff] }
 0x2fc   : > { %v3820_v57 = vpop.f32.mrf.mxu1  ;;  %3983 = vst [vmem:[%s7852_s12 + $0xb0] sm:$0xff] %v3951_v9  ;;  %v3952_v5 = vmax.f32 %v8360_v24, %v3920_v2  ;;  %v3921_v54 = vsel %vm3857_vm1, %v3815_v39, %v3889_v18  ;;  %vm3858_vm2 = vcmp.ge.f32.partialorder %v3817_v46, 0.0  ;;  %v3890_v31 = vmul.f32 0.01, %v3817_v46  ;;  %v8368_v39 = vld [vmem:[#allocation7_spill] sm:$0xff] }
 0x2fd   : > { %v3953_v58 = vmax.f32 %v8361_v47, %v3921_v54  ;;  %v3819_v36 = vadd.f32 %v3818_v4, %v3706_v63  ;;  %v3708_v56 = vadd.f32 %v3707_v16, %v3595_v6  ;;  %v3711_v8 = vpop.f32.mrf.mxu0 }
 0x2fe   : > { %v3824_v21 = vpop.f32.mrf.mxu1  ;;  %3984 = vst.msk [vmem:[%s7852_s12 + $0xb8] sm:$0xff] %vm1281_vm0, %v3952_v5  ;;  %v3922_v1 = vsel %vm3858_vm2, %v3817_v46, %v3890_v31  ;;  %v3712_v3 = vadd.f32 %v3711_v8, %v3599_v51 }
 0x2ff   : > { %3985 = vst [vmem:[%s7852_s12 + $0xc0] sm:$0xff] %v3953_v58  ;;  %v3954_v30 = vmax.f32 %v8363_v15, %v3922_v1  ;;  %vm3859_vm3 = vcmp.ge.f32.partialorder %v3819_v36, 0.0  ;;  %v3891_v20 = vmul.f32 0.01, %v3819_v36  ;;  %v3821_v45 = vadd.f32 %v3820_v57, %v3708_v56  ;;  %v3713_v23 = vpop.f32.mrf.mxu0 }
 0x300   : > { %v3826_v35 = vpop.f32.mrf.mxu1  ;;  %v3825_v25 = vadd.f32 %v3824_v21, %v3712_v3  ;;  %v3714_v33 = vadd.f32 %v3713_v23, %v3601_v61 }
 0x301   : > { %3986 = vst.msk [vmem:[%s7852_s12 + $0xc8] sm:$0xff] %vm1281_vm0, %v3954_v30  ;;  %v3923_v43 = vsel %vm3859_vm3, %v3819_v36, %v3891_v20  ;;  %vm3860_vm4 = vcmp.ge.f32.partialorder %v3821_v45, 0.0  ;;  %v3892_v19 = vmul.f32 0.01, %v3821_v45  ;;  %v3715_v48 = vpop.f32.mrf.mxu0 }
 0x302   : > { %v3955_v14 = vmax.f32 %v8365_v49, %v3923_v43  ;;  %vm3861_vm5 = vcmp.ge.f32.partialorder %v3825_v25, 0.0  ;;  %v3893_v42 = vmul.f32 0.01, %v3825_v25  ;;  %v3827_v62 = vadd.f32 %v3826_v35, %v3714_v33  ;;  %v3828_v55 = vpop.f32.mrf.mxu1 }
 0x303   : > { %v3924_v22 = vsel %vm3860_vm4, %v3821_v45, %v3892_v19  ;;  %v3716_v26 = vadd.f32 %v3715_v48, %v3603_v38  ;;  %v3717_v17 = vpop.f32.mrf.mxu0 }
 0x304   : > { %3987 = vst [vmem:[%s7852_s12 + $0xd0] sm:$0xff] %v3955_v14  ;;  %v3956_v11 = vmax.f32 %v8367_v40, %v3924_v22  ;;  %v3925_v29 = vsel %vm3861_vm5, %v3825_v25, %v3893_v42  ;;  %vm3862_vm6 = vcmp.ge.f32.partialorder %v3827_v62, 0.0  ;;  %v3894_v10 = vmul.f32 0.01, %v3827_v62  ;;  %v3830_v59 = vpop.f32.mrf.mxu1 }
 0x305   : > { %v3957_v50 = vmax.f32 %v8368_v39, %v3925_v29  ;;  %v3829_v34 = vadd.f32 %v3828_v55, %v3716_v26  ;;  %v3718_v52 = vadd.f32 %v3717_v17, %v3605_v7 }
 0x306   : > { %3988 = vst.msk [vmem:[%s7852_s12 + $0xd8] sm:$0xff] %vm1281_vm0, %v3956_v11  ;;  %v3926_v53 = vsel %vm3862_vm6, %v3827_v62, %v3894_v10 }
 0x307   : > { %3989 = vst [vmem:[%s7852_s12 + $0xe0] sm:$0xff] %v3957_v50  ;;  %v3958_v12 = vmax.f32 %v8369_v41, %v3926_v53  ;;  %vm3863_vm7 = vcmp.ge.f32.partialorder %v3829_v34, 0.0  ;;  %v3895_v4 = vmul.f32 0.01, %v3829_v34  ;;  %v3831_v32 = vadd.f32 %v3830_v59, %v3718_v52 }
 0x309   : > { %3990 = vst.msk [vmem:[%s7852_s12 + $0xe8] sm:$0xff] %vm1281_vm0, %v3958_v12  ;;  %v3927_v9 = vsel %vm3863_vm7, %v3829_v34, %v3895_v4  ;;  %vm3864_vm8 = vcmp.ge.f32.partialorder %v3831_v32, 0.0  ;;  %v3896_v18 = vmul.f32 0.01, %v3831_v32 }
 0x30a   : > { %v3959_v46 = vmax.f32 %v7836_v44, %v3927_v9 }
 0x30b   : > { %v3928_v37 = vsel %vm3864_vm8, %v3831_v32, %v3896_v18 }
 0x30c   : > { %3991 = vst [vmem:[%s7852_s12 + $0xf0] sm:$0xff] %v3959_v46  ;;  %v3960_v6 = vmax.f32 %v7843_v0, %v3928_v37 }
 0x30e   : > { %3992 = vst.msk [vmem:[%s7852_s12 + $0xf8] sm:$0xff] %vm1281_vm0, %v3960_v6 }
 0x30f PF: > { %p10_p9 = scmp.ge.s32.totalorder %s5105_s16, 4   ;;  %s8370_s12 = smov %s5061_s13 }
 0x310   : > { %s8371_s13 = smov %s5114_s19  ;;  %s8372_s14 = smov %s5105_s16 }
 0x311   :  { %12 = sbr.rel (!%p10_p9) target bundleno = 2 (0x2), region = 102 }

// kernel: curlnet_forward.8
= control target key start
LH: loop header
LB: loop body
LE: loop exit
PB: predicated region body
PF: predicated region fallthrough
CT: control target
= control target key end

     0   :  { %v4227_v34 = vmov 0.0   ;;  %vm4228_vm0 = vmmov 0   ;;  %vm341_vm1 = vcmask 523264   ;;  %s5622_s1 = inlined_call_operand.vmem [shape: bf16[3,576,64], index: 1, kind: input, shape index: {}]   ;;  %s5623_s0 = inlined_call_operand.vmem [shape: bf16[12,16,576], index: 0, kind: input, shape index: {}]   ;;  %s5624_s2 = inlined_call_operand.vmem [shape: f32[3,1,64], index: 2, kind: input, shape index: {}]   ;;  %s5625_s3 = inlined_call_operand.vmem [shape: f32[3,16,64], index: 3, kind: output, shape index: {}]  }
   0x1   :  { %v4252_v0 = vld [vmem:[%s5622_s1 + $0x78] sm:$0xff]   ;;  %v4275_v4 = vld [vmem:[%s5622_s1 + $0x70] sm:$0xff]   ;;  %v4299_v8 = vld [vmem:[%s5622_s1 + $0x68] sm:$0xff]  }
   0x2   :  { %v4257_v1 = vld [vmem:[%s5622_s1 + $0xf8] sm:$0xff]   ;;  %3301 = vmatprep.subr.bf16.mxu0 %v4252_v0  ;;  %v4281_v5 = vld [vmem:[%s5622_s1 + $0xf0] sm:$0xff]   ;;  %v4305_v9 = vld [vmem:[%s5622_s1 + $0xe8] sm:$0xff]  }
   0x3   :  { %v4263_v2 = vld [vmem:[%s5622_s1 + $0x38] sm:$0xff]   ;;  %3323 = vmatprep.subr.bf16.mxu1 %v4257_v1  ;;  %v4287_v6 = vld [vmem:[%s5622_s1 + $0x30] sm:$0xff]   ;;  %v4311_v10 = vld [vmem:[%s5622_s1 + $0x28] sm:$0xff]  }
   0x4   :  { %v4269_v3 = vld [vmem:[%s5622_s1 + $0xb8] sm:$0xff]   ;;  %3302 = vmatpush3.bf16.msra.mxu0 %v4263_v2  ;;  %v4293_v7 = vld [vmem:[%s5622_s1 + $0xb0] sm:$0xff]   ;;  %v4317_v11 = vld [vmem:[%s5622_s1 + $0xa8] sm:$0xff]  }
   0x5   :  { %3324 = vmatpush3.bf16.msra.mxu1 %v4269_v3  ;;  %3303 = vmatprep.subr.bf16.mxu0 %v4275_v4  ;;  %v4323_v12 = vld [vmem:[%s5622_s1 + $0x60] sm:$0xff]   ;;  %v4347_v16 = vld [vmem:[%s5622_s1 + $0x58] sm:$0xff]   ;;  %v4371_v20 = vld [vmem:[%s5622_s1 + $0x50] sm:$0xff]  }
   0x6   :  { %3325 = vmatprep.subr.bf16.mxu1 %v4281_v5  ;;  %v4329_v13 = vld [vmem:[%s5622_s1 + $0xe0] sm:$0xff]   ;;  %v4353_v17 = vld [vmem:[%s5622_s1 + $0xd8] sm:$0xff]   ;;  %v4377_v21 = vld [vmem:[%s5622_s1 + $0xd0] sm:$0xff]  }
   0x7   :  { %v4335_v14 = vld [vmem:[%s5622_s1 + $0x20] sm:$0xff]   ;;  %v4359_v18 = vld [vmem:[%s5622_s1 + $0x18] sm:$0xff]   ;;  %v4383_v22 = vld [vmem:[%s5622_s1 + $0x10] sm:$0xff]  }
   0x8   :  { %3304 = vmatpush3.bf16.msra.mxu0 %v4287_v6  ;;  %v4341_v15 = vld [vmem:[%s5622_s1 + $0xa0] sm:$0xff]   ;;  %v4365_v19 = vld [vmem:[%s5622_s1 + $0x98] sm:$0xff]   ;;  %v4389_v23 = vld [vmem:[%s5622_s1 + $0x90] sm:$0xff]  }
   0x9   :  { %3326 = vmatpush3.bf16.msra.mxu1 %v4293_v7  ;;  %3305 = vmatprep.subr.bf16.mxu0 %v4299_v8  ;;  %v4395_v24 = vld [vmem:[%s5622_s1 + $0x48] sm:$0xff]   ;;  %v4419_v28 = vld [vmem:[%s5622_s1 + $0x40] sm:$0xff]   ;;  %v4458_v37 = vld [vmem:[%s5622_s1 + $0x118] sm:$0xff]  }
   0xa   :  { %3327 = vmatprep.subr.bf16.mxu1 %v4305_v9  ;;  %v4401_v25 = vld [vmem:[%s5622_s1 + $0xc8] sm:$0xff]   ;;  %v4425_v29 = vld [vmem:[%s5622_s1 + $0xc0] sm:$0xff]   ;;  %v4464_v38 = vld [vmem:[%s5622_s1 + $0x110] sm:$0xff]  }
   0xb   :  { %v4407_v26 = vld [vmem:[%s5622_s1 + $0x8] sm:$0xff]   ;;  %v4431_v30 = vld [vmem:[%s5622_s1] sm:$0xff]   ;;  %v4090_v48 = vld [vmem:[%s5623_s0 + $0x5c] ss:$20 sps:$4 sm:$0xff]  }
   0xc   :  { %3306 = vmatpush3.bf16.msra.mxu0 %v4311_v10  ;;  %v4413_v27 = vld [vmem:[%s5622_s1 + $0x88] sm:$0xff]   ;;  %v4437_v31 = vld [vmem:[%s5622_s1 + $0x80] sm:$0xff]   ;;  %v4094_v51 = vld [vmem:[%s5623_s0 + $0x7c] ss:$20 sps:$4 sm:$0xff]  }
   0xd   :  { %3328 = vmatpush3.bf16.msra.mxu1 %v4317_v11  ;;  %3307 = vmatprep.subr.bf16.mxu0 %v4323_v12  ;;  %v4067_v32 = vld [vmem:[%s5623_s0] ss:$20 sps:$4 sm:$0xff]   ;;  %v4069_v33 = vld [vmem:[%s5623_s0 + $0x4] ss:$20 sps:$4 sm:$0xff]   ;;  %v4070_v35 = vld [vmem:[%s5623_s0 + $0x8] ss:$20 sps:$4 sm:$0xff]  }
   0xe   :  { %3329 = vmatprep.subr.bf16.mxu1 %v4329_v13  ;;  %v4072_v36 = vld [vmem:[%s5623_s0 + $0xc] ss:$20 sps:$4 sm:$0xff]   ;;  %377 = vmatprep.mubr.bf16.mxu0 %v4069_v33  ;;  %v4077_v42 = vld [vmem:[%s5623_s0 + $0x10] ss:$20 sps:$4 sm:$0xff]   ;;  %v4083_v43 = vld [vmem:[%s5623_s0 + $0x34] ss:$20 sps:$4 sm:$0xff]  }
   0xf   :  { %418 = vmatprep.mubr.bf16.mxu1 %v4072_v36  ;;  %v4080_v39 = vld [vmem:[%s5623_s0 + $0x2c] ss:$20 sps:$4 sm:$0xff]   ;;  %v4078_v44 = vld [vmem:[%s5623_s0 + $0x28] ss:$20 sps:$4 sm:$0xff]   ;;  %v4081_v45 = vld [vmem:[%s5623_s0 + $0x30] ss:$20 sps:$4 sm:$0xff]  }
  0x10   :  { %3308 = vmatpush3.bf16.msra.mxu0 %v4335_v14  ;;  %v4478_v40 = vld [vmem:[%s5622_s1 + $0x108] sm:$0xff]   ;;  %v4487_v41 = vld [vmem:[%s5622_s1 + $0x100] sm:$0xff]   ;;  %v4654_v55 = vld [vmem:[%s5622_s1 + $0x198] sm:$0xff]  }
  0x11   :  { %3330 = vmatpush3.bf16.msra.mxu1 %v4341_v15  ;;  %3309 = vmatprep.subr.bf16.mxu0 %v4347_v16  ;;  %v4084_v46 = vld [vmem:[%s5623_s0 + $0x38] ss:$20 sps:$4 sm:$0xff]   ;;  %v4087_v47 = vld [vmem:[%s5623_s0 + $0x54] ss:$20 sps:$4 sm:$0xff]   ;;  %v4085_v49 = vld [vmem:[%s5623_s0 + $0x50] ss:$20 sps:$4 sm:$0xff]  }
  0x12   :  { %3331 = vmatprep.subr.bf16.mxu1 %v4353_v17  ;;  %v4088_v50 = vld [vmem:[%s5623_s0 + $0x58] ss:$20 sps:$4 sm:$0xff]   ;;  %v4091_v52 = vld [vmem:[%s5623_s0 + $0x60] ss:$20 sps:$4 sm:$0xff]   ;;  %v4100_v58 = vld [vmem:[%s5623_s0 + $0x88] ss:$20 sps:$4 sm:$0xff]  }
  0x13   :  { %v4097_v53 = vld [vmem:[%s5623_s0 + $0x84] ss:$20 sps:$4 sm:$0xff]   ;;  %v4095_v57 = vld [vmem:[%s5623_s0 + $0x80] ss:$20 sps:$4 sm:$0xff]  }
  0x14   :  { %3310 = vmatpush3.bf16.msra.mxu0 %v4359_v18  ;;  %v4092_v54 = vld [vmem:[%s5623_s0 + $0x78] ss:$20 sps:$4 sm:$0xff]   ;;  %v4684_v61 = vld [vmem:[%s5622_s1 + $0x190] sm:$0xff]   ;;  %v4899_v33 = vld [vmem:[%s5622_s1 + $0x220] sm:$0xff]  }
  0x15   :  { %3332 = vmatpush3.bf16.msra.mxu1 %v4365_v19  ;;  %3311 = vmatprep.subr.bf16.mxu0 %v4371_v20  ;;  %v4660_v56 = vld [vmem:[%s5622_s1 + $0x218] sm:$0xff]   ;;  %v4690_v62 = vld [vmem:[%s5622_s1 + $0x210] sm:$0xff]  }
  0x16   :  { %3333 = vmatprep.subr.bf16.mxu1 %v4377_v21  ;;  %v4672_v59 = vld [vmem:[%s5622_s1 + $0x158] sm:$0xff]   ;;  %v4147_v36 = vld [vmem:[%s5623_s0 + $0xd4] ss:$20 sps:$4 sm:$0xff]  }
  0x17   :  { %v4679_v60 = vld [vmem:[%s5622_s1 + $0x1d8] sm:$0xff]  }
  0x18   :  { %3312 = vmatpush3.bf16.msra.mxu0 %v4383_v22  ;;  %v4133_v63 = vld [vmem:[%s5623_s0 + $0xa4] ss:$20 sps:$4 sm:$0xff]  }
  0x19   :  { %3334 = vmatpush3.bf16.msra.mxu1 %v4389_v23  ;;  %3313 = vmatprep.subr.bf16.mxu0 %v4395_v24 }
  0x1a   :  { %3335 = vmatprep.subr.bf16.mxu1 %v4401_v25 }
  0x1c   :  { %3314 = vmatpush3.bf16.msra.mxu0 %v4407_v26 }
  0x1d   :  { %3336 = vmatpush3.bf16.msra.mxu1 %v4413_v27  ;;  %3315 = vmatprep.subr.bf16.mxu0 %v4419_v28 }
  0x1e   :  { %3337 = vmatprep.subr.bf16.mxu1 %v4425_v29 }
  0x20   :  { %3316 = vmatpush3.bf16.msra.mxu0 %v4431_v30 }
  0x21   :  { %3338 = vmatpush3.bf16.msra.mxu1 %v4437_v31  ;;  %3889 = vmatprep.subr.bf16.mxu0 %v4227_v34 }
  0x22   :  { %3350 = vmatprep.subr.bf16.mxu1 %v4252_v0 }
  0x23   :  { %378 = vmatmul.mubr.bf16.vlgmr.msra.gmra.mxu0 %v4067_v32  ;;  %v4890_v32 = vld [vmem:[%s5622_s1 + $0x228] sm:$0xff]  }
  0x24   :  { %419 = vmatmul.mubr.bf16.vlgmr.msra.gmra.mxu1 %v4070_v35  ;;  %3890 = vmatpush3.bf16.msra.mxu0 %v4458_v37  ;;  %v4141_v35 = vld [vmem:[%s5623_s0 + $0xb0] ss:$20 sps:$4 sm:$0xff]  }
  0x25   :  { %3351 = vmatpush3.bf16.msra.mxu1 %v4263_v2  ;;  %3891 = vmatprep.subr.bf16.mxu0 %v4227_v34 }
  0x26   :  { %3352 = vmatprep.subr.bf16.mxu1 %v4275_v4  ;;  %3897 = vmatprep.mubr.msk.bf16.mxu0 %vm4228_vm0, %v4227_v34 }
  0x27   :  { %541 = vmatprep.mubr.bf16.mxu1 %v4080_v39 }
  0x28   :  { %3892 = vmatpush3.bf16.msra.mxu0 %v4464_v38 }
  0x29   :  { %3353 = vmatpush3.bf16.msra.mxu1 %v4287_v6  ;;  %3893 = vmatprep.subr.bf16.mxu0 %v4227_v34 }
  0x2a   :  { %3354 = vmatprep.subr.bf16.mxu1 %v4299_v8 }
  0x2c   :  { %3894 = vmatpush3.bf16.msra.mxu0 %v4478_v40 }
  0x2d   :  { %3355 = vmatpush3.bf16.msra.mxu1 %v4311_v10  ;;  %3895 = vmatprep.subr.bf16.mxu0 %v4227_v34 }
  0x2e   :  { %3356 = vmatprep.subr.bf16.mxu1 %v4323_v12 }
  0x30   :  { %3896 = vmatpush3.bf16.msra.mxu0 %v4487_v41 }
  0x31   :  { %3357 = vmatpush3.bf16.msra.mxu1 %v4335_v14  ;;  %3372 = vmatprep.subr.bf16.mxu0 %v4257_v1 }
  0x32   :  { %3358 = vmatprep.subr.bf16.mxu1 %v4347_v16 }
  0x33   :  { %3898 = vmatmul.mubr.msk.bf16.vlgmr.msra.gmra.mxu0 %vm341_vm1, %v4077_v42 }
  0x34   :  { %3373 = vmatpush3.bf16.msra.mxu0 %v4269_v3  ;;  %582 = vmatprep.mubr.bf16.mxu0 %v4083_v43 }
  0x35   :  { %3359 = vmatpush3.bf16.msra.mxu1 %v4359_v18  ;;  %3374 = vmatprep.subr.bf16.mxu0 %v4281_v5 }
  0x36   :  { %3360 = vmatprep.subr.bf16.mxu1 %v4371_v20 }
  0x38   :  { %3375 = vmatpush3.bf16.msra.mxu0 %v4293_v7 }
  0x39   :  { %3361 = vmatpush3.bf16.msra.mxu1 %v4383_v22  ;;  %3376 = vmatprep.subr.bf16.mxu0 %v4305_v9 }
  0x3a   :  { %3362 = vmatprep.subr.bf16.mxu1 %v4395_v24 }
  0x3c   :  { %3377 = vmatpush3.bf16.msra.mxu0 %v4317_v11 }
  0x3d   :  { %3363 = vmatpush3.bf16.msra.mxu1 %v4407_v26  ;;  %3378 = vmatprep.subr.bf16.mxu0 %v4329_v13 }
  0x3e   :  { %3364 = vmatprep.subr.bf16.mxu1 %v4419_v28 }
  0x40   :  { %3379 = vmatpush3.bf16.msra.mxu0 %v4341_v15 }
  0x41   :  { %3365 = vmatpush3.bf16.msra.mxu1 %v4431_v30  ;;  %3380 = vmatprep.subr.bf16.mxu0 %v4353_v17 }
  0x42   :  { %3901 = vmatprep.subr.bf16.mxu1 %v4227_v34 }
  0x44   :  { %542 = vmatmul.mubr.bf16.vlgmr.msra.gmra.mxu1 %v4078_v44  ;;  %3381 = vmatpush3.bf16.msra.mxu0 %v4365_v19 }
  0x45   :  { %3902 = vmatpush3.bf16.msra.mxu1 %v4458_v37  ;;  %3382 = vmatprep.subr.bf16.mxu0 %v4377_v21 }
  0x46   :  { %3903 = vmatprep.subr.bf16.mxu1 %v4227_v34  ;;  %3909 = vmatprep.mubr.msk.bf16.mxu1 %vm4228_vm0, %v4227_v34 }
  0x48   :  { %3383 = vmatpush3.bf16.msra.mxu0 %v4389_v23 }
  0x49   :  { %3904 = vmatpush3.bf16.msra.mxu1 %v4464_v38  ;;  %3384 = vmatprep.subr.bf16.mxu0 %v4401_v25 }
  0x4a   :  { %3905 = vmatprep.subr.bf16.mxu1 %v4227_v34 }
  0x4c   :  { %3385 = vmatpush3.bf16.msra.mxu0 %v4413_v27 }
  0x4d   :  { %3906 = vmatpush3.bf16.msra.mxu1 %v4478_v40  ;;  %3386 = vmatprep.subr.bf16.mxu0 %v4425_v29 }
  0x4e   :  { %3907 = vmatprep.subr.bf16.mxu1 %v4227_v34 }
  0x50   :  { %3387 = vmatpush3.bf16.msra.mxu0 %v4437_v31 }
  0x51   :  { %3908 = vmatpush3.bf16.msra.mxu1 %v4487_v41  ;;  %3399 = vmatprep.subr.bf16.mxu0 %v4252_v0 }
  0x52   :  { %3421 = vmatprep.subr.bf16.mxu1 %v4257_v1 }
  0x53   :  { %583 = vmatmul.mubr.bf16.vlgmr.msra.gmra.mxu0 %v4081_v45 }
  0x54   :  { %3910 = vmatmul.mubr.msk.bf16.vlgmr.msra.gmra.mxu1 %vm341_vm1, %v4084_v46  ;;  %3400 = vmatpush3.bf16.msra.mxu0 %v4263_v2 }
  0x55   :  { %3422 = vmatpush3.bf16.msra.mxu1 %v4269_v3  ;;  %3401 = vmatprep.subr.bf16.mxu0 %v4275_v4 }
  0x56   :  { %3423 = vmatprep.subr.bf16.mxu1 %v4281_v5  ;;  %707 = vmatprep.mubr.bf16.mxu0 %v4087_v47 }
  0x57   :  { %748 = vmatprep.mubr.bf16.mxu1 %v4090_v48 }
  0x58   :  { %3402 = vmatpush3.bf16.msra.mxu0 %v4287_v6 }
  0x59   :  { %3424 = vmatpush3.bf16.msra.mxu1 %v4293_v7  ;;  %3403 = vmatprep.subr.bf16.mxu0 %v4299_v8 }
  0x5a   :  { %3425 = vmatprep.subr.bf16.mxu1 %v4305_v9 }
  0x5c   :  { %3404 = vmatpush3.bf16.msra.mxu0 %v4311_v10 }
  0x5d   :  { %3426 = vmatpush3.bf16.msra.mxu1 %v4317_v11  ;;  %3405 = vmatprep.subr.bf16.mxu0 %v4323_v12 }
  0x5e   :  { %3427 = vmatprep.subr.bf16.mxu1 %v4329_v13 }
  0x60   :  { %3406 = vmatpush3.bf16.msra.mxu0 %v4335_v14 }
  0x61   :  { %3428 = vmatpush3.bf16.msra.mxu1 %v4341_v15  ;;  %3407 = vmatprep.subr.bf16.mxu0 %v4347_v16 }
  0x62   :  { %3429 = vmatprep.subr.bf16.mxu1 %v4353_v17 }
  0x64   :  { %3408 = vmatpush3.bf16.msra.mxu0 %v4359_v18 }
  0x65   :  { %3430 = vmatpush3.bf16.msra.mxu1 %v4365_v19  ;;  %3409 = vmatprep.subr.bf16.mxu0 %v4371_v20 }
  0x66   :  { %3431 = vmatprep.subr.bf16.mxu1 %v4377_v21 }
  0x68   :  { %3410 = vmatpush3.bf16.msra.mxu0 %v4383_v22 }
  0x69   :  { %3432 = vmatpush3.bf16.msra.mxu1 %v4389_v23  ;;  %3411 = vmatprep.subr.bf16.mxu0 %v4395_v24 }
  0x6a   :  { %3433 = vmatprep.subr.bf16.mxu1 %v4401_v25 }
  0x6c   :  { %3412 = vmatpush3.bf16.msra.mxu0 %v4407_v26 }
  0x6d   :  { %3434 = vmatpush3.bf16.msra.mxu1 %v4413_v27  ;;  %3413 = vmatprep.subr.bf16.mxu0 %v4419_v28 }
  0x6e   :  { %3435 = vmatprep.subr.bf16.mxu1 %v4425_v29 }
  0x70   :  { %3414 = vmatpush3.bf16.msra.mxu0 %v4431_v30 }
  0x71   :  { %3436 = vmatpush3.bf16.msra.mxu1 %v4437_v31  ;;  %3913 = vmatprep.subr.bf16.mxu0 %v4227_v34 }
  0x72   :  { %3448 = vmatprep.subr.bf16.mxu1 %v4252_v0  ;;  %v4136_v0 = vld [vmem:[%s5623_s0 + $0xac] ss:$20 sps:$4 sm:$0xff]  }
  0x73   :  { %708 = vmatmul.mubr.bf16.vlgmr.msra.gmra.mxu0 %v4085_v49 }
  0x74   :  { %749 = vmatmul.mubr.bf16.vlgmr.msra.gmra.mxu1 %v4088_v50  ;;  %3914 = vmatpush3.bf16.msra.mxu0 %v4458_v37 }
  0x75   :  { %3449 = vmatpush3.bf16.msra.mxu1 %v4263_v2  ;;  %3915 = vmatprep.subr.bf16.mxu0 %v4227_v34  ;;  %v4710_v2 = vld [vmem:[%s5622_s1 + $0x1d0] sm:$0xff]  }
  0x76   :  { %3450 = vmatprep.subr.bf16.mxu1 %v4275_v4  ;;  %3921 = vmatprep.mubr.msk.bf16.mxu0 %vm4228_vm0, %v4227_v34  ;;  %v4721_v4 = vld [vmem:[%s5622_s1 + $0x208] sm:$0xff]  }
  0x77   :  { %873 = vmatprep.mubr.bf16.mxu1 %v4094_v51 }
  0x78   :  { %3916 = vmatpush3.bf16.msra.mxu0 %v4464_v38 }
  0x79   :  { %3451 = vmatpush3.bf16.msra.mxu1 %v4287_v6  ;;  %3917 = vmatprep.subr.bf16.mxu0 %v4227_v34  ;;  %v4734_v6 = vld [vmem:[%s5622_s1 + $0x1c8] sm:$0xff]  }
  0x7a   :  { %3452 = vmatprep.subr.bf16.mxu1 %v4299_v8  ;;  %v4745_v8 = vld [vmem:[%s5622_s1 + $0x200] sm:$0xff]  }
  0x7c   :  { %3918 = vmatpush3.bf16.msra.mxu0 %v4478_v40 }
  0x7d   :  { %3453 = vmatpush3.bf16.msra.mxu1 %v4311_v10  ;;  %3919 = vmatprep.subr.bf16.mxu0 %v4227_v34  ;;  %v4758_v10 = vld [vmem:[%s5622_s1 + $0x1c0] sm:$0xff]  }
  0x7e   :  { %3454 = vmatprep.subr.bf16.mxu1 %v4323_v12  ;;  %v4769_v12 = vld [vmem:[%s5622_s1 + $0x1f8] sm:$0xff]  }
  0x80   :  { %3920 = vmatpush3.bf16.msra.mxu0 %v4487_v41 }
  0x81   :  { %3455 = vmatpush3.bf16.msra.mxu1 %v4335_v14  ;;  %3470 = vmatprep.subr.bf16.mxu0 %v4257_v1  ;;  %v4703_v1 = vld [vmem:[%s5622_s1 + $0x150] sm:$0xff]   ;;  %v4782_v14 = vld [vmem:[%s5622_s1 + $0x1b8] sm:$0xff]  }
  0x82   :  { %3456 = vmatprep.subr.bf16.mxu1 %v4347_v16  ;;  %v4793_v16 = vld [vmem:[%s5622_s1 + $0x1f0] sm:$0xff]  }
  0x83   :  { %3922 = vmatmul.mubr.msk.bf16.vlgmr.msra.gmra.mxu0 %vm341_vm1, %v4091_v52 }
  0x84   :  { %3471 = vmatpush3.bf16.msra.mxu0 %v4269_v3  ;;  %914 = vmatprep.mubr.bf16.mxu0 %v4097_v53  ;;  %v4715_v3 = vld [vmem:[%s5622_s1 + $0x188] sm:$0xff]  }
  0x85   :  { %3457 = vmatpush3.bf16.msra.mxu1 %v4359_v18  ;;  %3472 = vmatprep.subr.bf16.mxu0 %v4281_v5  ;;  %v4727_v5 = vld [vmem:[%s5622_s1 + $0x148] sm:$0xff]   ;;  %v4806_v18 = vld [vmem:[%s5622_s1 + $0x1b0] sm:$0xff]  }
  0x86   :  { %3458 = vmatprep.subr.bf16.mxu1 %v4371_v20  ;;  %v4817_v20 = vld [vmem:[%s5622_s1 + $0x1e8] sm:$0xff]  }
  0x88   :  { %3473 = vmatpush3.bf16.msra.mxu0 %v4293_v7  ;;  %v4739_v7 = vld [vmem:[%s5622_s1 + $0x180] sm:$0xff]  }
  0x89   :  { %3459 = vmatpush3.bf16.msra.mxu1 %v4383_v22  ;;  %3474 = vmatprep.subr.bf16.mxu0 %v4305_v9  ;;  %v4751_v9 = vld [vmem:[%s5622_s1 + $0x140] sm:$0xff]   ;;  %v4830_v22 = vld [vmem:[%s5622_s1 + $0x1a8] sm:$0xff]  }
  0x8a   :  { %3460 = vmatprep.subr.bf16.mxu1 %v4395_v24  ;;  %v4841_v24 = vld [vmem:[%s5622_s1 + $0x1e0] sm:$0xff]  }
  0x8c   :  { %3475 = vmatpush3.bf16.msra.mxu0 %v4317_v11  ;;  %v4763_v11 = vld [vmem:[%s5622_s1 + $0x178] sm:$0xff]  }
  0x8d   :  { %3461 = vmatpush3.bf16.msra.mxu1 %v4407_v26  ;;  %3476 = vmatprep.subr.bf16.mxu0 %v4329_v13  ;;  %v4775_v13 = vld [vmem:[%s5622_s1 + $0x138] sm:$0xff]   ;;  %v4854_v26 = vld [vmem:[%s5622_s1 + $0x1a0] sm:$0xff]  }
  0x8e   :  { %3462 = vmatprep.subr.bf16.mxu1 %v4419_v28  ;;  %v4134_v28 = vld [vmem:[%s5623_s0 + $0xa8] ss:$20 sps:$4 sm:$0xff]  }
  0x90   :  { %3477 = vmatpush3.bf16.msra.mxu0 %v4341_v15  ;;  %v4787_v15 = vld [vmem:[%s5622_s1 + $0x170] sm:$0xff]  }
  0x91   :  { %3463 = vmatpush3.bf16.msra.mxu1 %v4431_v30  ;;  %3478 = vmatprep.subr.bf16.mxu0 %v4353_v17  ;;  %v4799_v17 = vld [vmem:[%s5622_s1 + $0x130] sm:$0xff]   ;;  %v4144_v30 = vld [vmem:[%s5623_s0 + $0xcc] ss:$20 sps:$4 sm:$0xff]  }
  0x92   :  { %3925 = vmatprep.subr.bf16.mxu1 %v4227_v34 }
  0x94   :  { %874 = vmatmul.mubr.bf16.vlgmr.msra.gmra.mxu1 %v4092_v54  ;;  %3479 = vmatpush3.bf16.msra.mxu0 %v4365_v19  ;;  %v4811_v19 = vld [vmem:[%s5622_s1 + $0x168] sm:$0xff]  }
  0x95   :  { %3926 = vmatpush3.bf16.msra.mxu1 %v4458_v37  ;;  %3480 = vmatprep.subr.bf16.mxu0 %v4377_v21  ;;  %v4823_v21 = vld [vmem:[%s5622_s1 + $0x128] sm:$0xff]  }
  0x96   :  { %3927 = vmatprep.subr.bf16.mxu1 %v4227_v34  ;;  %3933 = vmatprep.mubr.msk.bf16.mxu1 %vm4228_vm0, %v4227_v34  ;;  %v4142_v37 = vld [vmem:[%s5623_s0 + $0xc8] ss:$20 sps:$4 sm:$0xff]  }
  0x98   :  { %3481 = vmatpush3.bf16.msra.mxu0 %v4389_v23  ;;  %v4835_v23 = vld [vmem:[%s5622_s1 + $0x160] sm:$0xff]  }
  0x99   :  { %3928 = vmatpush3.bf16.msra.mxu1 %v4464_v38  ;;  %3482 = vmatprep.subr.bf16.mxu0 %v4401_v25  ;;  %v4847_v25 = vld [vmem:[%s5622_s1 + $0x120] sm:$0xff]  }
  0x9a   :  { %3929 = vmatprep.subr.bf16.mxu1 %v4227_v34 }
  0x9c   :  { %3483 = vmatpush3.bf16.msra.mxu0 %v4413_v27  ;;  %v4131_v27 = vld [vmem:[%s5623_s0 + $0xa0] ss:$20 sps:$4 sm:$0xff]  }
  0x9d   :  { %3930 = vmatpush3.bf16.msra.mxu1 %v4478_v40  ;;  %3484 = vmatprep.subr.bf16.mxu0 %v4425_v29  ;;  %v4867_v29 = vld [vmem:[%s5622_s1 + $0x238] sm:$0xff]   ;;  %v4939_v40 = vld [vmem:[%s5624_s2] ss:$0 sm:$0xff] }
  0x9e   :  { %3931 = vmatprep.subr.bf16.mxu1 %v4227_v34 }
  0xa0   :  { %3485 = vmatpush3.bf16.msra.mxu0 %v4437_v31  ;;  %v4879_v31 = vld [vmem:[%s5622_s1 + $0x230] sm:$0xff]  }
  0xa1   :  { %3932 = vmatpush3.bf16.msra.mxu1 %v4487_v41  ;;  %3497 = vmatprep.subr.bf16.mxu0 %v4654_v55 }
  0xa2   :  { %3519 = vmatprep.subr.bf16.mxu1 %v4660_v56 }
  0xa3   :  { %915 = vmatmul.mubr.bf16.vlgmr.msra.gmra.mxu0 %v4095_v57  ;;  %v4145_v57 = vld [vmem:[%s5623_s0 + $0xd0] ss:$20 sps:$4 sm:$0xff]  }
  0xa4   :  { %3934 = vmatmul.mubr.msk.bf16.vlgmr.msra.gmra.mxu1 %vm341_vm1, %v4100_v58  ;;  %3498 = vmatpush3.bf16.msra.mxu0 %v4672_v59  ;;  %v4148_v58 = vld [vmem:[%s5623_s0 + $0xd8] ss:$20 sps:$4 sm:$0xff]  }
  0xa5   :  { %3520 = vmatpush3.bf16.msra.mxu1 %v4679_v60  ;;  %3499 = vmatprep.subr.bf16.mxu0 %v4684_v61 }
  0xa6   :  { %3521 = vmatprep.subr.bf16.mxu1 %v4690_v62  ;;  %1338 = vmatprep.mubr.bf16.mxu0 %v4133_v63  ;;  %v4151_v63 = vld [vmem:[%s5623_s0 + $0xf4] ss:$20 sps:$4 sm:$0xff]  }
  0xa7   :  { %1379 = vmatprep.mubr.bf16.mxu1 %v4136_v0 }
  0xa8   :  { %3500 = vmatpush3.bf16.msra.mxu0 %v4703_v1 }
  0xa9   :  { %3522 = vmatpush3.bf16.msra.mxu1 %v4710_v2  ;;  %3501 = vmatprep.subr.bf16.mxu0 %v4715_v3 }
  0xaa   :  { %3523 = vmatprep.subr.bf16.mxu1 %v4721_v4 }
  0xac   :  { %3502 = vmatpush3.bf16.msra.mxu0 %v4727_v5 }
  0xad   :  { %3524 = vmatpush3.bf16.msra.mxu1 %v4734_v6  ;;  %3503 = vmatprep.subr.bf16.mxu0 %v4739_v7 }
  0xae   :  { %3525 = vmatprep.subr.bf16.mxu1 %v4745_v8 }
  0xb0   :  { %3504 = vmatpush3.bf16.msra.mxu0 %v4751_v9 }
  0xb1   :  { %3526 = vmatpush3.bf16.msra.mxu1 %v4758_v10  ;;  %3505 = vmatprep.subr.bf16.mxu0 %v4763_v11 }
  0xb2   :  { %3527 = vmatprep.subr.bf16.mxu1 %v4769_v12 }
  0xb4   :  { %3506 = vmatpush3.bf16.msra.mxu0 %v4775_v13 }
  0xb5   :  { %3528 = vmatpush3.bf16.msra.mxu1 %v4782_v14  ;;  %3507 = vmatprep.subr.bf16.mxu0 %v4787_v15 }
  0xb6   :  { %3529 = vmatprep.subr.bf16.mxu1 %v4793_v16 }
  0xb8   :  { %3508 = vmatpush3.bf16.msra.mxu0 %v4799_v17 }
  0xb9   :  { %3530 = vmatpush3.bf16.msra.mxu1 %v4806_v18  ;;  %3509 = vmatprep.subr.bf16.mxu0 %v4811_v19 }
  0xba   :  { %3531 = vmatprep.subr.bf16.mxu1 %v4817_v20 }
  0xbc   :  { %3510 = vmatpush3.bf16.msra.mxu0 %v4823_v21 }
  0xbd   :  { %3532 = vmatpush3.bf16.msra.mxu1 %v4830_v22  ;;  %3511 = vmatprep.subr.bf16.mxu0 %v4835_v23 }
  0xbe   :  { %3533 = vmatprep.subr.bf16.mxu1 %v4841_v24 }
  0xc0   :  { %3512 = vmatpush3.bf16.msra.mxu0 %v4847_v25 }
  0xc1   :  { %3534 = vmatpush3.bf16.msra.mxu1 %v4854_v26  ;;  %3937 = vmatprep.subr.bf16.mxu0 %v4227_v34 }
  0xc2   :  { %3546 = vmatprep.subr.bf16.mxu1 %v4654_v55 }
  0xc3   :  { %1339 = vmatmul.mubr.bf16.vlgmr.msra.gmra.mxu0 %v4131_v27  ;;  %v4154_v27 = vld [vmem:[%s5623_s0 + $0xfc] ss:$20 sps:$4 sm:$0xff]  }
  0xc4   :  { %1380 = vmatmul.mubr.bf16.vlgmr.msra.gmra.mxu1 %v4134_v28  ;;  %3938 = vmatpush3.bf16.msra.mxu0 %v4867_v29 }
  0xc5   :  { %3547 = vmatpush3.bf16.msra.mxu1 %v4672_v59  ;;  %3939 = vmatprep.subr.bf16.mxu0 %v4227_v34 }
  0xc6   :  { %3548 = vmatprep.subr.bf16.mxu1 %v4684_v61  ;;  %3945 = vmatprep.mubr.msk.bf16.mxu0 %vm4228_vm0, %v4227_v34 }
  0xc7   :  { %1502 = vmatprep.mubr.bf16.mxu1 %v4144_v30 }
  0xc8   :  { %3940 = vmatpush3.bf16.msra.mxu0 %v4879_v31 }
  0xc9   :  { %3549 = vmatpush3.bf16.msra.mxu1 %v4703_v1  ;;  %3941 = vmatprep.subr.bf16.mxu0 %v4227_v34 }
  0xca   :  { %3550 = vmatprep.subr.bf16.mxu1 %v4715_v3 }
  0xcc   :  { %3942 = vmatpush3.bf16.msra.mxu0 %v4890_v32 }
  0xcd   :  { %3551 = vmatpush3.bf16.msra.mxu1 %v4727_v5  ;;  %3943 = vmatprep.subr.bf16.mxu0 %v4227_v34 }
  0xce   :  { %3552 = vmatprep.subr.bf16.mxu1 %v4739_v7 }
  0xd0   :  { %3944 = vmatpush3.bf16.msra.mxu0 %v4899_v33 }
  0xd1   :  { %3553 = vmatpush3.bf16.msra.mxu1 %v4751_v9  ;;  %3568 = vmatprep.subr.bf16.mxu0 %v4660_v56 }
  0xd2   :  { %3554 = vmatprep.subr.bf16.mxu1 %v4763_v11 }
  0xd3   :  { %3946 = vmatmul.mubr.msk.bf16.vlgmr.msra.gmra.mxu0 %vm341_vm1, %v4141_v35 }
  0xd4   :  { %3569 = vmatpush3.bf16.msra.mxu0 %v4679_v60  ;;  %1543 = vmatprep.mubr.bf16.mxu0 %v4147_v36 }
  0xd5   :  { %3555 = vmatpush3.bf16.msra.mxu1 %v4775_v13  ;;  %3570 = vmatprep.subr.bf16.mxu0 %v4690_v62 }
  0xd6   :  { %3556 = vmatprep.subr.bf16.mxu1 %v4787_v15 }
  0xd8   :  { %3571 = vmatpush3.bf16.msra.mxu0 %v4710_v2 }
  0xd9   :  { %3557 = vmatpush3.bf16.msra.mxu1 %v4799_v17  ;;  %3572 = vmatprep.subr.bf16.mxu0 %v4721_v4 }
  0xda   :  { %3558 = vmatprep.subr.bf16.mxu1 %v4811_v19 }
  0xdc   :  { %3573 = vmatpush3.bf16.msra.mxu0 %v4734_v6 }
  0xdd   :  { %3559 = vmatpush3.bf16.msra.mxu1 %v4823_v21  ;;  %3574 = vmatprep.subr.bf16.mxu0 %v4745_v8 }
  0xde   :  { %3560 = vmatprep.subr.bf16.mxu1 %v4835_v23 }
  0xe0   :  { %3575 = vmatpush3.bf16.msra.mxu0 %v4758_v10 }
  0xe1   :  { %3561 = vmatpush3.bf16.msra.mxu1 %v4847_v25  ;;  %3576 = vmatprep.subr.bf16.mxu0 %v4769_v12 }
  0xe2   :  { %3949 = vmatprep.subr.bf16.mxu1 %v4227_v34 }
  0xe3   :  { %v3317_v38 = vpop.f32.mrf.mxu0 }
  0xe4   :  { %v3339_v39 = vpop.f32.mrf.mxu1  ;;  %1503 = vmatmul.mubr.bf16.vlgmr.msra.gmra.mxu1 %v4142_v37  ;;  %3577 = vmatpush3.bf16.msra.mxu0 %v4782_v14 }
  0xe5   :  { %3950 = vmatpush3.bf16.msra.mxu1 %v4867_v29  ;;  %v3318_v41 = vpop.f32.mrf.mxu0  ;;  %3578 = vmatprep.subr.bf16.mxu0 %v4793_v16 }
  0xe6   :  { %v3319_v42 = vadd.f32 %v3318_v41, %v3317_v38  ;;  %v3340_v43 = vpop.f32.mrf.mxu1  ;;  %3951 = vmatprep.subr.bf16.mxu1 %v4227_v34  ;;  %3957 = vmatprep.mubr.msk.bf16.mxu1 %vm4228_vm0, %v4227_v34 }
  0xe7   :  { %v3341_v44 = vadd.f32 %v3340_v43, %v3339_v39  ;;  %v3320_v45 = vpop.f32.mrf.mxu0 }
  0xe8   :  { %v380_v46 = vadd.f32 %v3319_v42, %v4939_v40  ;;  %v3342_v47 = vpop.f32.mrf.mxu1  ;;  %3579 = vmatpush3.bf16.msra.mxu0 %v4806_v18 }
  0xe9   :  { %3952 = vmatpush3.bf16.msra.mxu1 %v4879_v31  ;;  %v3321_v48 = vpop.f32.mrf.mxu0  ;;  %3580 = vmatprep.subr.bf16.mxu0 %v4817_v20 }
  0xea   :  { %v3322_v49 = vadd.f32 %v3321_v48, %v3320_v45  ;;  %v3343_v50 = vpop.f32.mrf.mxu1  ;;  %3953 = vmatprep.subr.bf16.mxu1 %v4227_v34  ;;  %v421_v51 = vadd.f32 %v3341_v44, %v380_v46  ;;  %v4149_v45 = vld [vmem:[%s5623_s0 + $0xf0] ss:$20 sps:$4 sm:$0xff]   ;;  %v4152_v46 = vld [vmem:[%s5623_s0 + $0xf8] ss:$20 sps:$4 sm:$0xff]  }
  0xeb   :  { %v3344_v52 = vadd.f32 %v3343_v50, %v3342_v47  ;;  %v4158_v48 = vld [vmem:[%s5623_s0 + $0x11c] ss:$20 sps:$4 sm:$0xff]  }
  0xec   :  { %v383_v53 = vadd.f32 %v3322_v49, %v4939_v40  ;;  %3581 = vmatpush3.bf16.msra.mxu0 %v4830_v22 }
  0xed   :  { %3954 = vmatpush3.bf16.msra.mxu1 %v4890_v32  ;;  %3582 = vmatprep.subr.bf16.mxu0 %v4841_v24 }
  0xee   :  { %3955 = vmatprep.subr.bf16.mxu1 %v4227_v34  ;;  %v424_v54 = vadd.f32 %v3344_v52, %v383_v53 }
  0xf0   :  { %3583 = vmatpush3.bf16.msra.mxu0 %v4854_v26 }
  0xf1   :  { %3956 = vmatpush3.bf16.msra.mxu1 %v4899_v33  ;;  %3595 = vmatprep.subr.bf16.mxu0 %v4654_v55 }
  0xf2   :  { %3617 = vmatprep.subr.bf16.mxu1 %v4660_v56 }
  0xf3   :  { %v461_v0 = vpop.f32.mrf.mxu0  ;;  %1544 = vmatmul.mubr.bf16.vlgmr.msra.gmra.mxu0 %v4145_v57 }
  0xf4   :  { %v4971_v28 = vadd.f32 %v461_v0, %v421_v51  ;;  %3958 = vmatmul.mubr.msk.bf16.vlgmr.msra.gmra.mxu1 %vm341_vm1, %v4148_v58  ;;  %3596 = vmatpush3.bf16.msra.mxu0 %v4672_v59 }
  0xf5   :  { %3618 = vmatpush3.bf16.msra.mxu1 %v4679_v60  ;;  %v3899_v30 = vpop.f32.mrf.mxu0  ;;  %3597 = vmatprep.subr.bf16.mxu0 %v4684_v61 }
  0xf6   :  { %3619 = vmatprep.subr.bf16.mxu1 %v4690_v62  ;;  %1668 = vmatprep.mubr.bf16.mxu0 %v4151_v63  ;;  %v470_v58 = vmul.f32 0.01, %v4971_v28  ;;  %vm468_vm2 = vcmp.ge.f32.partialorder %v4971_v28, 0.0 }
  0xf7   :  { %v464_v35 = vpop.f32.mrf.mxu0  ;;  %1709 = vmatprep.mubr.bf16.mxu1 %v4154_v27 }
  0xf8   :  { %v4978_v36 = vadd.f32 %v464_v35, %v424_v54  ;;  %3598 = vmatpush3.bf16.msra.mxu0 %v4703_v1 }
  0xf9   :  { %3620 = vmatpush3.bf16.msra.mxu1 %v4710_v2  ;;  %v3900_v37 = vpop.f32.mrf.mxu0  ;;  %3599 = vmatprep.subr.bf16.mxu0 %v4715_v3 }
  0xfa   :  { %3621 = vmatprep.subr.bf16.mxu1 %v4721_v4  ;;  %v471_v37 = vmul.f32 0.01, %v4978_v36  ;;  %vm469_vm4 = vcmp.ge.f32.partialorder %v4978_v36, 0.0 }
  0xfc   :  { %3600 = vmatpush3.bf16.msra.mxu0 %v4727_v5 }
  0xfd   :  { %3622 = vmatpush3.bf16.msra.mxu1 %v4734_v6  ;;  %3601 = vmatprep.subr.bf16.mxu0 %v4739_v7 }
  0xfe   :  { %3623 = vmatprep.subr.bf16.mxu1 %v4745_v8 }
 0x100   :  { %3602 = vmatpush3.bf16.msra.mxu0 %v4751_v9 }
 0x101   :  { %3624 = vmatpush3.bf16.msra.mxu1 %v4758_v10  ;;  %3603 = vmatprep.subr.bf16.mxu0 %v4763_v11 }
 0x102   :  { %3625 = vmatprep.subr.bf16.mxu1 %v4769_v12 }
 0x104   :  { %v3366_v38 = vpop.f32.mrf.mxu1  ;;  %3604 = vmatpush3.bf16.msra.mxu0 %v4775_v13 }
 0x105   :  { %3626 = vmatpush3.bf16.msra.mxu1 %v4782_v14  ;;  %3605 = vmatprep.subr.bf16.mxu0 %v4787_v15 }
 0x106   :  { %v3367_v39 = vpop.f32.mrf.mxu1  ;;  %3627 = vmatprep.subr.bf16.mxu1 %v4793_v16 }
 0x107   :  { %v3368_v41 = vadd.f32 %v3367_v39, %v3366_v38  ;;  %v4155_v39 = vld [vmem:[%s5623_s0 + $0x100] ss:$20 sps:$4 sm:$0xff]  }
 0x108   :  { %v3369_v42 = vpop.f32.mrf.mxu1  ;;  %3606 = vmatpush3.bf16.msra.mxu0 %v4799_v17 }
 0x109   :  { %3628 = vmatpush3.bf16.msra.mxu1 %v4806_v18  ;;  %3607 = vmatprep.subr.bf16.mxu0 %v4811_v19  ;;  %v544_v51 = vadd.f32 %v3368_v41, %v4939_v40 }
 0x10a   :  { %v3370_v43 = vpop.f32.mrf.mxu1  ;;  %3629 = vmatprep.subr.bf16.mxu1 %v4817_v20 }
 0x10b   :  { %v3371_v44 = vadd.f32 %v3370_v43, %v3369_v42 }
 0x10c   :  { %3608 = vmatpush3.bf16.msra.mxu0 %v4823_v21 }
 0x10d   :  { %3630 = vmatpush3.bf16.msra.mxu1 %v4830_v22  ;;  %3609 = vmatprep.subr.bf16.mxu0 %v4835_v23  ;;  %v547_v63 = vadd.f32 %v3371_v44, %v4939_v40  ;;  %v5213_v44 = vld [vmem:[%s5622_s1 + $0x2e0] sm:$0xff]  }
 0x10e   :  { %3631 = vmatprep.subr.bf16.mxu1 %v4841_v24 }
 0x110   :  { %3610 = vmatpush3.bf16.msra.mxu0 %v4847_v25 }
 0x111   :  { %3632 = vmatpush3.bf16.msra.mxu1 %v4854_v26  ;;  %3961 = vmatprep.subr.bf16.mxu0 %v4227_v34 }
 0x112   :  { %3644 = vmatprep.subr.bf16.mxu1 %v4654_v55 }
 0x113   :  { %v3388_v47 = vpop.f32.mrf.mxu0  ;;  %1669 = vmatmul.mubr.bf16.vlgmr.msra.gmra.mxu0 %v4149_v45  ;;  %v5218_v45 = vld [vmem:[%s5622_s1 + $0x298] sm:$0xff]  }
 0x114   :  { %v625_v49 = vpop.f32.mrf.mxu1  ;;  %1710 = vmatmul.mubr.bf16.vlgmr.msra.gmra.mxu1 %v4152_v46  ;;  %3962 = vmatpush3.bf16.msra.mxu0 %v4867_v29  ;;  %v5224_v46 = vld [vmem:[%s5622_s1 + $0x318] sm:$0xff]  }
 0x115   :  { %3645 = vmatpush3.bf16.msra.mxu1 %v4672_v59  ;;  %v3389_v50 = vpop.f32.mrf.mxu0  ;;  %3963 = vmatprep.subr.bf16.mxu0 %v4227_v34 }
 0x116   :  { %v3390_v52 = vadd.f32 %v3389_v50, %v3388_v47  ;;  %v3911_v53 = vpop.f32.mrf.mxu1  ;;  %3646 = vmatprep.subr.bf16.mxu1 %v4684_v61  ;;  %3969 = vmatprep.mubr.msk.bf16.mxu0 %vm4228_vm0, %v4227_v34  ;;  %v5242_v50 = vld [vmem:[%s5622_s1 + $0x290] sm:$0xff]  }
 0x117   :  { %v3391_v55 = vpop.f32.mrf.mxu0  ;;  %1834 = vmatprep.mubr.bf16.mxu1 %v4158_v48  ;;  %v5230_v48 = vld [vmem:[%s5622_s1 + $0x258] sm:$0xff]   ;;  %v5254_v53 = vld [vmem:[%s5622_s1 + $0x250] sm:$0xff]  }
 0x118   :  { %v585_v54 = vadd.f32 %v3390_v52, %v544_v51  ;;  %v628_v57 = vpop.f32.mrf.mxu1  ;;  %3964 = vmatpush3.bf16.msra.mxu0 %v4879_v31  ;;  %v5248_v51 = vld [vmem:[%s5622_s1 + $0x310] sm:$0xff]  }
 0x119   :  { %3647 = vmatpush3.bf16.msra.mxu1 %v4703_v1  ;;  %v3392_v59 = vpop.f32.mrf.mxu0  ;;  %3965 = vmatprep.subr.bf16.mxu0 %v4227_v34  ;;  %v5035_v1 = vsel %vm468_vm2, %v4971_v28, %v470_v58  ;;  %v4161_v28 = vld [vmem:[%s5623_s0 + $0x124] ss:$20 sps:$4 sm:$0xff]  }
 0x11a   :  { %v626_v0 = vadd.f32 %v625_v49, %v585_v54  ;;  %v3393_v61 = vadd.f32 %v3392_v59, %v3391_v55  ;;  %v3912_v27 = vpop.f32.mrf.mxu1  ;;  %3648 = vmatprep.subr.bf16.mxu1 %v4715_v3  ;;  %v5237_v49 = vld [vmem:[%s5622_s1 + $0x2d8] sm:$0xff]   ;;  %v5261_v55 = vld [vmem:[%s5622_s1 + $0x2d0] sm:$0xff]   ;;  %v5266_v54 = vld [vmem:[%s5622_s1 + $0x288] sm:$0xff]  }
 0x11b   :  { %v5272_v59 = vld [vmem:[%s5622_s1 + $0x308] sm:$0xff]  }
 0x11c   :  { %vm632_vm3 = vcmp.ge.f32.partialorder %v626_v0, 0.0  ;;  %v634_v30 = vmul.f32 0.01, %v626_v0  ;;  %v588_v35 = vadd.f32 %v3393_v61, %v547_v63  ;;  %3966 = vmatpush3.bf16.msra.mxu0 %v4890_v32  ;;  %v5280_v63 = vld [vmem:[%s5622_s1 + $0x248] sm:$0xff]   ;;  %v5292_v61 = vld [vmem:[%s5622_s1 + $0x280] sm:$0xff]  }
 0x11d   :  { %3649 = vmatpush3.bf16.msra.mxu1 %v4727_v5  ;;  %3967 = vmatprep.subr.bf16.mxu0 %v4227_v34 }
 0x11e   :  { %v629_v38 = vadd.f32 %v628_v57, %v588_v35  ;;  %3650 = vmatprep.subr.bf16.mxu1 %v4739_v7  ;;  %v5039_v3 = vsel %vm632_vm3, %v626_v0, %v634_v30  ;;  %v5054_v7 = vsel %vm469_vm4, %v4978_v36, %v471_v37  ;;  %v5206_v36 = vld [vmem:[%s5622_s1 + $0x260] sm:$0xff]   ;;  %v5287_v0 = vld [vmem:[%s5622_s1 + $0x2c8] sm:$0xff]  }
 0x11f   :  { %v638_v5 = vmax.f32 %v5035_v1, %v5039_v3  ;;  %v5298_v30 = vld [vmem:[%s5622_s1 + $0x300] sm:$0xff]   ;;  %v4211_v1 = vld [vmem:[%s5623_s0 + $0x174] ss:$20 sps:$4 sm:$0xff]  }
 0x120   :  { %vm633_vm5 = vcmp.ge.f32.partialorder %v629_v38, 0.0  ;;  %v635_v41 = vmul.f32 0.01, %v629_v38  ;;  %3968 = vmatpush3.bf16.msra.mxu0 %v4899_v33 }
 0x121   :  { %3651 = vmatpush3.bf16.msra.mxu1 %v4751_v9  ;;  %3666 = vmatprep.subr.bf16.mxu0 %v4660_v56  ;;  %v4156_v56 = vld [vmem:[%s5623_s0 + $0x118] ss:$20 sps:$4 sm:$0xff]   ;;  %v4164_v9 = vld [vmem:[%s5623_s0 + $0x128] ss:$20 sps:$4 sm:$0xff]  }
 0x122   :  { %3652 = vmatprep.subr.bf16.mxu1 %v4763_v11  ;;  %v5057_v42 = vsel %vm633_vm5, %v629_v38, %v635_v41  ;;  %v5314_v41 = vld [vmem:[%s5622_s1 + $0x2c0] sm:$0xff]  }
 0x123   :  { %3970 = vmatmul.mubr.msk.bf16.vlgmr.msra.gmra.mxu0 %vm341_vm1, %v4155_v39  ;;  %v639_v43 = vmax.f32 %v5054_v7, %v5057_v42  ;;  %v5307_v39 = vld [vmem:[%s5622_s1 + $0x240] sm:$0xff]   ;;  %v4206_v7 = vld [vmem:[%s5623_s0 + $0x168] ss:$20 sps:$4 sm:$0xff]  }
 0x124   :  { %3667 = vmatpush3.bf16.msra.mxu0 %v4679_v60  ;;  %1875 = vmatprep.mubr.bf16.mxu0 %v4161_v28 }
 0x125   :  { %3653 = vmatpush3.bf16.msra.mxu1 %v4775_v13  ;;  %3668 = vmatprep.subr.bf16.mxu0 %v4690_v62  ;;  %v5135_v13 = vld [vmem:[%s5622_s1 + $0x2b0] sm:$0xff]  }
 0x126   :  { %3654 = vmatprep.subr.bf16.mxu1 %v4787_v15  ;;  %v4197_v15 = vld [vmem:[%s5623_s0 + $0x144] ss:$20 sps:$4 sm:$0xff]  }
 0x128   :  { %3669 = vmatpush3.bf16.msra.mxu0 %v4710_v2 }
 0x129   :  { %3655 = vmatpush3.bf16.msra.mxu1 %v4799_v17  ;;  %3670 = vmatprep.subr.bf16.mxu0 %v4721_v4  ;;  %v5103_v4 = vld [vmem:[%s5622_s1 + $0x2b8] sm:$0xff]   ;;  %v4200_v17 = vld [vmem:[%s5623_s0 + $0x14c] ss:$20 sps:$4 sm:$0xff]  }
 0x12a   :  { %3656 = vmatprep.subr.bf16.mxu1 %v4811_v19 }
 0x12c   :  { %3671 = vmatpush3.bf16.msra.mxu0 %v4734_v6  ;;  %v5109_v6 = vld [vmem:[%s5622_s1 + $0x338] sm:$0xff]  }
 0x12d   :  { %3657 = vmatpush3.bf16.msra.mxu1 %v4823_v21  ;;  %3672 = vmatprep.subr.bf16.mxu0 %v4745_v8  ;;  %v4159_v8 = vld [vmem:[%s5623_s0 + $0x120] ss:$20 sps:$4 sm:$0xff]   ;;  %v5168_v21 = vld [vmem:[%s5622_s1 + $0x2a8] sm:$0xff]  }
 0x12e   :  { %3658 = vmatprep.subr.bf16.mxu1 %v4835_v23 }
 0x130   :  { %3673 = vmatpush3.bf16.msra.mxu0 %v4758_v10  ;;  %v5121_v10 = vld [vmem:[%s5622_s1 + $0x278] sm:$0xff]  }
 0x131   :  { %3659 = vmatpush3.bf16.msra.mxu1 %v4847_v25  ;;  %3674 = vmatprep.subr.bf16.mxu0 %v4769_v12  ;;  %v5130_v12 = vld [vmem:[%s5622_s1 + $0x2f8] sm:$0xff]   ;;  %v5182_v25 = vld [vmem:[%s5622_s1 + $0x268] sm:$0xff]  }
 0x132   :  { %3973 = vmatprep.subr.bf16.mxu1 %v4227_v34 }
 0x133   :  { %v5082_v60 = vpop.f32.mrf.mxu0 }
 0x134   :  { %1835 = vmatmul.mubr.bf16.vlgmr.msra.gmra.mxu1 %v4156_v56  ;;  %3675 = vmatpush3.bf16.msra.mxu0 %v4782_v14  ;;  %v5141_v14 = vld [vmem:[%s5622_s1 + $0x330] sm:$0xff]  }
 0x135   :  { %3974 = vmatpush3.bf16.msra.mxu1 %v4867_v29  ;;  %3676 = vmatprep.subr.bf16.mxu0 %v4793_v16  ;;  %v5090_v62 = vpop.f32.mrf.mxu0  ;;  %v5189_v29 = vld [vmem:[%s5622_s1 + $0x2e8] sm:$0xff]  }
 0x136   :  { %3975 = vmatprep.subr.bf16.mxu1 %v4227_v34  ;;  %3981 = vmatprep.mubr.msk.bf16.mxu1 %vm4228_vm0, %v4227_v34  ;;  %v3417_v58 = vadd.f32 %v5090_v62, %v5082_v60 }
 0x137   :  { %v5096_v2 = vpop.f32.mrf.mxu0 }
 0x138   :  { %3677 = vmatpush3.bf16.msra.mxu0 %v4806_v18  ;;  %v5156_v18 = vld [vmem:[%s5622_s1 + $0x270] sm:$0xff]   ;;  %v710_v35 = vadd.f32 %v3417_v58, %v4939_v40 }
 0x139   :  { %3976 = vmatpush3.bf16.msra.mxu1 %v4879_v31  ;;  %3678 = vmatprep.subr.bf16.mxu0 %v4817_v20  ;;  %v5123_v11 = vpop.f32.mrf.mxu0  ;;  %v5163_v20 = vld [vmem:[%s5622_s1 + $0x2f0] sm:$0xff]   ;;  %v5194_v31 = vld [vmem:[%s5622_s1 + $0x2a0] sm:$0xff]  }
 0x13a   :  { %3977 = vmatprep.subr.bf16.mxu1 %v4227_v34  ;;  %v3420_v38 = vadd.f32 %v5123_v11, %v5096_v2  ;;  %v4195_v2 = vld [vmem:[%s5623_s0 + $0x140] ss:$20 sps:$4 sm:$0xff]  }
 0x13c   :  { %3679 = vmatpush3.bf16.msra.mxu0 %v4830_v22  ;;  %v5174_v22 = vld [vmem:[%s5622_s1 + $0x328] sm:$0xff]   ;;  %v713_v56 = vadd.f32 %v3420_v38, %v4939_v40 }
 0x13d   :  { %3978 = vmatpush3.bf16.msra.mxu1 %v4890_v32  ;;  %3680 = vmatprep.subr.bf16.mxu0 %v4841_v24  ;;  %v3437_v24 = vpop.f32.mrf.mxu1  ;;  %v5200_v32 = vld [vmem:[%s5622_s1 + $0x320] sm:$0xff]  }
 0x13e   :  { %3979 = vmatprep.subr.bf16.mxu1 %v4227_v34 }
 0x140   :  { %3681 = vmatpush3.bf16.msra.mxu0 %v4854_v26 }
 0x141   :  { %3980 = vmatpush3.bf16.msra.mxu1 %v4899_v33  ;;  %3693 = vmatprep.subr.bf16.mxu0 %v5103_v4  ;;  %v3438_v33 = vpop.f32.mrf.mxu1 }
 0x142   :  { %3715 = vmatprep.subr.bf16.mxu1 %v5109_v6  ;;  %v3439_v37 = vadd.f32 %v3438_v33, %v3437_v24 }
 0x143   :  { %v5146_v16 = vpop.f32.mrf.mxu0  ;;  %1876 = vmatmul.mubr.bf16.vlgmr.msra.gmra.mxu0 %v4159_v8  ;;  %v3440_v47 = vpop.f32.mrf.mxu1  ;;  %v4198_v8 = vld [vmem:[%s5623_s0 + $0x148] ss:$20 sps:$4 sm:$0xff]  }
 0x144   :  { %3982 = vmatmul.mubr.msk.bf16.vlgmr.msra.gmra.mxu1 %vm341_vm1, %v4164_v9  ;;  %3694 = vmatpush3.bf16.msra.mxu0 %v5121_v10  ;;  %v751_v62 = vadd.f32 %v3439_v37, %v710_v35  ;;  %v5328_v9 = vld [vmem:[%s5622_s1 + $0x358] sm:$0xff]  }
 0x145   :  { %3716 = vmatpush3.bf16.msra.mxu1 %v5130_v12  ;;  %v3923_v19 = vpop.f32.mrf.mxu0  ;;  %3695 = vmatprep.subr.bf16.mxu0 %v5135_v13  ;;  %v3441_v52 = vpop.f32.mrf.mxu1 }
 0x146   :  { %3717 = vmatprep.subr.bf16.mxu1 %v5141_v14  ;;  %2300 = vmatprep.mubr.bf16.mxu0 %v4197_v15  ;;  %v3442_v60 = vadd.f32 %v3441_v52, %v3440_v47  ;;  %v792_v11 = vadd.f32 %v5146_v16, %v751_v62  ;;  %v5341_v16 = vld [vmem:[%s5622_s1 + $0x350] sm:$0xff]  }
 0x147   :  { %v5176_v23 = vpop.f32.mrf.mxu0  ;;  %2341 = vmatprep.mubr.bf16.mxu1 %v4200_v17 }
 0x148   :  { %3696 = vmatpush3.bf16.msra.mxu0 %v5156_v18  ;;  %v754_v19 = vadd.f32 %v3442_v60, %v713_v56  ;;  %v800_v47 = vmul.f32 0.01, %v792_v11  ;;  %vm798_vm6 = vcmp.ge.f32.partialorder %v792_v11, 0.0  ;;  %v5354_v60 = vld [vmem:[%s5622_s1 + $0x348] sm:$0xff]  }
 0x149   :  { %3718 = vmatpush3.bf16.msra.mxu1 %v5163_v20  ;;  %v3924_v26 = vpop.f32.mrf.mxu0  ;;  %3697 = vmatprep.subr.bf16.mxu0 %v5168_v21 }
 0x14a   :  { %3719 = vmatprep.subr.bf16.mxu1 %v5174_v22  ;;  %v4208_v26 = vld [vmem:[%s5623_s0 + $0x16c] ss:$20 sps:$4 sm:$0xff]   ;;  %v795_v52 = vadd.f32 %v5176_v23, %v754_v19  ;;  %v802_v62 = vsel %vm798_vm6, %v792_v11, %v800_v47 }
 0x14b   :  { %v5364_v11 = vld [vmem:[%s5622_s1 + $0x340] sm:$0xff]  }
 0x14c   :  { %3698 = vmatpush3.bf16.msra.mxu0 %v5182_v25  ;;  %vm799_vm7 = vcmp.ge.f32.partialorder %v795_v52, 0.0 }
 0x14d   :  { %3720 = vmatpush3.bf16.msra.mxu1 %v5189_v29  ;;  %3699 = vmatprep.subr.bf16.mxu0 %v5194_v31 }
 0x14e   :  { %3721 = vmatprep.subr.bf16.mxu1 %v5200_v32 }
 0x150   :  { %3700 = vmatpush3.bf16.msra.mxu0 %v5206_v36 }
 0x151   :  { %3722 = vmatpush3.bf16.msra.mxu1 %v5213_v44  ;;  %3701 = vmatprep.subr.bf16.mxu0 %v5218_v45 }
 0x152   :  { %3723 = vmatprep.subr.bf16.mxu1 %v5224_v46 }
 0x154   :  { %3702 = vmatpush3.bf16.msra.mxu0 %v5230_v48  ;;  %v3464_v57 = vpop.f32.mrf.mxu1 }
 0x155   :  { %3724 = vmatpush3.bf16.msra.mxu1 %v5237_v49  ;;  %3703 = vmatprep.subr.bf16.mxu0 %v5242_v50 }
 0x156   :  { %3725 = vmatprep.subr.bf16.mxu1 %v5248_v51  ;;  %v3465_v27 = vpop.f32.mrf.mxu1 }
 0x157   :  { %v3466_v15 = vadd.f32 %v3465_v27, %v3464_v57 }
 0x158   :  { %3704 = vmatpush3.bf16.msra.mxu0 %v5254_v53  ;;  %v3467_v28 = vpop.f32.mrf.mxu1 }
 0x159   :  { %3726 = vmatpush3.bf16.msra.mxu1 %v5261_v55  ;;  %3705 = vmatprep.subr.bf16.mxu0 %v5266_v54  ;;  %v876_v58 = vadd.f32 %v3466_v15, %v4939_v40 }
 0x15a   :  { %3727 = vmatprep.subr.bf16.mxu1 %v5272_v59  ;;  %v3468_v17 = vpop.f32.mrf.mxu1 }
 0x15b   :  { %v3469_v27 = vadd.f32 %v3468_v17, %v3467_v28 }
 0x15c   :  { %3706 = vmatpush3.bf16.msra.mxu0 %v5280_v63 }
 0x15d   :  { %3728 = vmatpush3.bf16.msra.mxu1 %v5287_v0  ;;  %3707 = vmatprep.subr.bf16.mxu0 %v5292_v61 }
 0x15e   :  { %3729 = vmatprep.subr.bf16.mxu1 %v5298_v30 }
 0x160   :  { %3708 = vmatpush3.bf16.msra.mxu0 %v5307_v39 }
 0x161   :  { %3730 = vmatpush3.bf16.msra.mxu1 %v5314_v41  ;;  %3985 = vmatprep.subr.bf16.mxu0 %v4227_v34 }
 0x162   :  { %3742 = vmatprep.subr.bf16.mxu1 %v5103_v4 }
 0x163   :  { %v3486_v24 = vpop.f32.mrf.mxu0  ;;  %2301 = vmatmul.mubr.bf16.vlgmr.msra.gmra.mxu0 %v4195_v2  ;;  %v801_v2 = vmul.f32 0.01, %v795_v52 }
 0x164   :  { %v957_v33 = vpop.f32.mrf.mxu1  ;;  %2342 = vmatmul.mubr.bf16.vlgmr.msra.gmra.mxu1 %v4198_v8  ;;  %3986 = vmatpush3.bf16.msra.mxu0 %v5328_v9  ;;  %v879_v8 = vadd.f32 %v3469_v27, %v4939_v40  ;;  %v804_v40 = vmax.f32 %v638_v5, %v802_v62  ;;  %v4205_v27 = vld [vmem:[%s5623_s0 + $0x150] ss:$20 sps:$4 sm:$0xff]  }
 0x165   :  { %3743 = vmatpush3.bf16.msra.mxu1 %v5121_v10  ;;  %v3487_v57 = vpop.f32.mrf.mxu0  ;;  %3987 = vmatprep.subr.bf16.mxu0 %v4227_v34 }
 0x166   :  { %v3488_v35 = vadd.f32 %v3487_v57, %v3486_v24  ;;  %v3935_v37 = vpop.f32.mrf.mxu1  ;;  %3744 = vmatprep.subr.bf16.mxu1 %v5135_v13  ;;  %3993 = vmatprep.mubr.msk.bf16.mxu0 %vm4228_vm0, %v4227_v34 }
 0x167   :  { %v3489_v38 = vpop.f32.mrf.mxu0  ;;  %2464 = vmatprep.mubr.bf16.mxu1 %v4208_v26  ;;  %v5418_v37 = vld [vmem:[%s5624_s2 + $0x1] ss:$0 sm:$0xff] }
 0x168   :  { %v917_v56 = vadd.f32 %v3488_v35, %v876_v58  ;;  %v960_v23 = vpop.f32.mrf.mxu1  ;;  %3988 = vmatpush3.bf16.msra.mxu0 %v5341_v16 }
 0x169   :  { %3745 = vmatpush3.bf16.msra.mxu1 %v5156_v18  ;;  %v3490_v28 = vpop.f32.mrf.mxu0  ;;  %3989 = vmatprep.subr.bf16.mxu0 %v4227_v34 }
 0x16a   :  { %v958_v15 = vadd.f32 %v957_v33, %v917_v56  ;;  %v3491_v17 = vadd.f32 %v3490_v28, %v3489_v38  ;;  %v3936_v19 = vpop.f32.mrf.mxu1  ;;  %3746 = vmatprep.subr.bf16.mxu1 %v5168_v21  ;;  %v803_v33 = vsel %vm799_vm7, %v795_v52, %v801_v2 }
 0x16b   :  { %v805_v3 = vmax.f32 %v639_v43, %v803_v33 }
 0x16c   :  { %vm964_vm8 = vcmp.ge.f32.partialorder %v958_v15, 0.0  ;;  %v966_v24 = vmul.f32 0.01, %v958_v15  ;;  %v920_v26 = vadd.f32 %v3491_v17, %v879_v8  ;;  %3990 = vmatpush3.bf16.msra.mxu0 %v5354_v60 }
 0x16d   :  { %3747 = vmatpush3.bf16.msra.mxu1 %v5182_v25  ;;  %3991 = vmatprep.subr.bf16.mxu0 %v4227_v34 }
 0x16e   :  { %v968_v47 = vsel %vm964_vm8, %v958_v15, %v966_v24  ;;  %v961_v57 = vadd.f32 %v960_v23, %v920_v26  ;;  %3748 = vmatprep.subr.bf16.mxu1 %v5194_v31 }
 0x16f   :  { %v970_v58 = vmax.f32 %v804_v40, %v968_v47  ;;  %v4209_v47 = vld [vmem:[%s5623_s0 + $0x170] ss:$20 sps:$4 sm:$0xff]  }
 0x170   :  { %vm965_vm9 = vcmp.ge.f32.partialorder %v961_v57, 0.0  ;;  %v967_v35 = vmul.f32 0.01, %v961_v57  ;;  %3992 = vmatpush3.bf16.msra.mxu0 %v5364_v11 }
 0x171   :  { %972 = vst.msk [vmem:[%s5625_s3] sm:$0xff] %vm341_vm1, %v970_v58  ;;  %3749 = vmatpush3.bf16.msra.mxu1 %v5206_v36  ;;  %3764 = vmatprep.subr.bf16.mxu0 %v5109_v6  ;;  %v4215_v58 = vld [vmem:[%s5623_s0 + $0x194] ss:$20 sps:$4 sm:$0xff]  }
 0x172   :  { %v969_v5 = vsel %vm965_vm9, %v961_v57, %v967_v35  ;;  %3750 = vmatprep.subr.bf16.mxu1 %v5218_v45  ;;  %v4212_v57 = vld [vmem:[%s5623_s0 + $0x178] ss:$20 sps:$4 sm:$0xff]   ;;  %v4218_v35 = vld [vmem:[%s5623_s0 + $0x19c] ss:$20 sps:$4 sm:$0xff]  }
 0x173   :  { %v971_v52 = vmax.f32 %v805_v3, %v969_v5  ;;  %3994 = vmatmul.mubr.msk.bf16.vlgmr.msra.gmra.mxu0 %vm341_vm1, %v4205_v27 }
 0x174   :  { %3765 = vmatpush3.bf16.msra.mxu0 %v5130_v12  ;;  %2505 = vmatprep.mubr.bf16.mxu0 %v4211_v1 }
 0x175   :  { %973 = vst.msk [vmem:[%s5625_s3 + $0x8] sm:$0xff] %vm341_vm1, %v971_v52  ;;  %3751 = vmatpush3.bf16.msra.mxu1 %v5230_v48  ;;  %3766 = vmatprep.subr.bf16.mxu0 %v5141_v14 }
 0x176   :  { %3752 = vmatprep.subr.bf16.mxu1 %v5242_v50 }
 0x178   :  { %3767 = vmatpush3.bf16.msra.mxu0 %v5163_v20 }
 0x179   :  { %3753 = vmatpush3.bf16.msra.mxu1 %v5254_v53  ;;  %3768 = vmatprep.subr.bf16.mxu0 %v5174_v22 }
 0x17a   :  { %3754 = vmatprep.subr.bf16.mxu1 %v5266_v54 }
 0x17c   :  { %3769 = vmatpush3.bf16.msra.mxu0 %v5189_v29 }
 0x17d   :  { %3755 = vmatpush3.bf16.msra.mxu1 %v5280_v63  ;;  %3770 = vmatprep.subr.bf16.mxu0 %v5200_v32 }
 0x17e   :  { %3756 = vmatprep.subr.bf16.mxu1 %v5292_v61 }
 0x180   :  { %3771 = vmatpush3.bf16.msra.mxu0 %v5213_v44 }
 0x181   :  { %3757 = vmatpush3.bf16.msra.mxu1 %v5307_v39  ;;  %3772 = vmatprep.subr.bf16.mxu0 %v5224_v46 }
 0x182   :  { %3997 = vmatprep.subr.bf16.mxu1 %v4227_v34 }
 0x183   :  { %v3513_v42 = vpop.f32.mrf.mxu0 }
 0x184   :  { %v3535_v43 = vpop.f32.mrf.mxu1  ;;  %2465 = vmatmul.mubr.bf16.vlgmr.msra.gmra.mxu1 %v4206_v7  ;;  %3773 = vmatpush3.bf16.msra.mxu0 %v5237_v49 }
 0x185   :  { %3998 = vmatpush3.bf16.msra.mxu1 %v5328_v9  ;;  %v3514_v38 = vpop.f32.mrf.mxu0  ;;  %3774 = vmatprep.subr.bf16.mxu0 %v5248_v51 }
 0x186   :  { %v3515_v56 = vadd.f32 %v3514_v38, %v3513_v42  ;;  %v3536_v23 = vpop.f32.mrf.mxu1  ;;  %3999 = vmatprep.subr.bf16.mxu1 %v4227_v34  ;;  %4005 = vmatprep.mubr.msk.bf16.mxu1 %vm4228_vm0, %v4227_v34 }
 0x187   :  { %v3537_v62 = vadd.f32 %v3536_v23, %v3535_v43  ;;  %v3516_v28 = vpop.f32.mrf.mxu0 }
 0x188   :  { %v1341_v2 = vadd.f32 %v3515_v56, %v5418_v37  ;;  %v3538_v8 = vpop.f32.mrf.mxu1  ;;  %3775 = vmatpush3.bf16.msra.mxu0 %v5261_v55 }
 0x189   :  { %4000 = vmatpush3.bf16.msra.mxu1 %v5341_v16  ;;  %v3517_v15 = vpop.f32.mrf.mxu0  ;;  %3776 = vmatprep.subr.bf16.mxu0 %v5272_v59 }
 0x18a   :  { %v3518_v17 = vadd.f32 %v3517_v15, %v3516_v28  ;;  %v3539_v19 = vpop.f32.mrf.mxu1  ;;  %4001 = vmatprep.subr.bf16.mxu1 %v4227_v34  ;;  %v1382_v24 = vadd.f32 %v3537_v62, %v1341_v2  ;;  %v4213_v28 = vld [vmem:[%s5623_s0 + $0x190] ss:$20 sps:$4 sm:$0xff]   ;;  %v4216_v2 = vld [vmem:[%s5623_s0 + $0x198] ss:$20 sps:$4 sm:$0xff]  }
 0x18b   :  { %v3540_v26 = vadd.f32 %v3539_v19, %v3538_v8  ;;  %v4222_v15 = vld [vmem:[%s5623_s0 + $0x1bc] ss:$20 sps:$4 sm:$0xff]  }
 0x18c   :  { %v1344_v40 = vadd.f32 %v3518_v17, %v5418_v37  ;;  %3777 = vmatpush3.bf16.msra.mxu0 %v5287_v0 }
 0x18d   :  { %4002 = vmatpush3.bf16.msra.mxu1 %v5354_v60  ;;  %3778 = vmatprep.subr.bf16.mxu0 %v5298_v30 }
 0x18e   :  { %4003 = vmatprep.subr.bf16.mxu1 %v4227_v34  ;;  %v1385_v33 = vadd.f32 %v3540_v26, %v1344_v40 }
 0x190   :  { %3779 = vmatpush3.bf16.msra.mxu0 %v5314_v41 }
 0x191   :  { %4004 = vmatpush3.bf16.msra.mxu1 %v5364_v11  ;;  %3791 = vmatprep.subr.bf16.mxu0 %v5103_v4 }
 0x192   :  { %3813 = vmatprep.subr.bf16.mxu1 %v5109_v6 }
 0x193   :  { %v1422_v27 = vpop.f32.mrf.mxu0  ;;  %2506 = vmatmul.mubr.bf16.vlgmr.msra.gmra.mxu0 %v4209_v47 }
 0x194   :  { %v5450_v1 = vadd.f32 %v1422_v27, %v1382_v24  ;;  %4006 = vmatmul.mubr.msk.bf16.vlgmr.msra.gmra.mxu1 %vm341_vm1, %v4212_v57  ;;  %3792 = vmatpush3.bf16.msra.mxu0 %v5121_v10 }
 0x195   :  { %3814 = vmatpush3.bf16.msra.mxu1 %v5130_v12  ;;  %v3947_v3 = vpop.f32.mrf.mxu0  ;;  %3793 = vmatprep.subr.bf16.mxu0 %v5135_v13 }
 0x196   :  { %3815 = vmatprep.subr.bf16.mxu1 %v5141_v14  ;;  %2630 = vmatprep.mubr.bf16.mxu0 %v4215_v58  ;;  %v1431_v57 = vmul.f32 0.01, %v5450_v1  ;;  %vm1429_vm10 = vcmp.ge.f32.partialorder %v5450_v1, 0.0 }
 0x197   :  { %v1425_v5 = vpop.f32.mrf.mxu0  ;;  %2671 = vmatprep.mubr.bf16.mxu1 %v4218_v35 }
 0x198   :  { %v5457_v52 = vadd.f32 %v1425_v5, %v1385_v33  ;;  %3794 = vmatpush3.bf16.msra.mxu0 %v5156_v18 }
 0x199   :  { %3816 = vmatpush3.bf16.msra.mxu1 %v5163_v20  ;;  %v3948_v7 = vpop.f32.mrf.mxu0  ;;  %3795 = vmatprep.subr.bf16.mxu0 %v5168_v21 }
 0x19a   :  { %3817 = vmatprep.subr.bf16.mxu1 %v5174_v22  ;;  %v1432_v7 = vmul.f32 0.01, %v5457_v52  ;;  %vm1430_vm12 = vcmp.ge.f32.partialorder %v5457_v52, 0.0 }
 0x19c   :  { %3796 = vmatpush3.bf16.msra.mxu0 %v5182_v25 }
 0x19d   :  { %3818 = vmatpush3.bf16.msra.mxu1 %v5189_v29  ;;  %3797 = vmatprep.subr.bf16.mxu0 %v5194_v31 }
 0x19e   :  { %3819 = vmatprep.subr.bf16.mxu1 %v5200_v32 }
 0x1a0   :  { %3798 = vmatpush3.bf16.msra.mxu0 %v5206_v36 }
 0x1a1   :  { %3820 = vmatpush3.bf16.msra.mxu1 %v5213_v44  ;;  %3799 = vmatprep.subr.bf16.mxu0 %v5218_v45 }
 0x1a2   :  { %3821 = vmatprep.subr.bf16.mxu1 %v5224_v46 }
 0x1a4   :  { %v3562_v42 = vpop.f32.mrf.mxu1  ;;  %3800 = vmatpush3.bf16.msra.mxu0 %v5230_v48 }
 0x1a5   :  { %3822 = vmatpush3.bf16.msra.mxu1 %v5237_v49  ;;  %3801 = vmatprep.subr.bf16.mxu0 %v5242_v50 }
 0x1a6   :  { %v3563_v43 = vpop.f32.mrf.mxu1  ;;  %3823 = vmatprep.subr.bf16.mxu1 %v5248_v51 }
 0x1a7   :  { %v3564_v38 = vadd.f32 %v3563_v43, %v3562_v42  ;;  %v4219_v43 = vld [vmem:[%s5623_s0 + $0x1a0] ss:$20 sps:$4 sm:$0xff]  }
 0x1a8   :  { %v3565_v56 = vpop.f32.mrf.mxu1  ;;  %3802 = vmatpush3.bf16.msra.mxu0 %v5254_v53 }
 0x1a9   :  { %3824 = vmatpush3.bf16.msra.mxu1 %v5261_v55  ;;  %3803 = vmatprep.subr.bf16.mxu0 %v5266_v54  ;;  %v1505_v24 = vadd.f32 %v3564_v38, %v5418_v37 }
 0x1aa   :  { %v3566_v23 = vpop.f32.mrf.mxu1  ;;  %3825 = vmatprep.subr.bf16.mxu1 %v5272_v59 }
 0x1ab   :  { %v3567_v62 = vadd.f32 %v3566_v23, %v3565_v56 }
 0x1ac   :  { %3804 = vmatpush3.bf16.msra.mxu0 %v5280_v63 }
 0x1ad   :  { %3826 = vmatpush3.bf16.msra.mxu1 %v5287_v0  ;;  %3805 = vmatprep.subr.bf16.mxu0 %v5292_v61  ;;  %v1508_v58 = vadd.f32 %v3567_v62, %v5418_v37 }
 0x1ae   :  { %3827 = vmatprep.subr.bf16.mxu1 %v5298_v30 }
 0x1b0   :  { %3806 = vmatpush3.bf16.msra.mxu0 %v5307_v39 }
 0x1b1   :  { %3828 = vmatpush3.bf16.msra.mxu1 %v5314_v41  ;;  %4009 = vmatprep.subr.bf16.mxu0 %v4227_v34 }
 0x1b2   :  { %3840 = vmatprep.subr.bf16.mxu1 %v5103_v4 }
 0x1b3   :  { %v3584_v8 = vpop.f32.mrf.mxu0  ;;  %2631 = vmatmul.mubr.bf16.vlgmr.msra.gmra.mxu0 %v4213_v28 }
 0x1b4   :  { %v1586_v17 = vpop.f32.mrf.mxu1  ;;  %2672 = vmatmul.mubr.bf16.vlgmr.msra.gmra.mxu1 %v4216_v2  ;;  %4010 = vmatpush3.bf16.msra.mxu0 %v5328_v9 }
 0x1b5   :  { %3841 = vmatpush3.bf16.msra.mxu1 %v5121_v10  ;;  %v3585_v19 = vpop.f32.mrf.mxu0  ;;  %4011 = vmatprep.subr.bf16.mxu0 %v4227_v34 }
 0x1b6   :  { %v3586_v26 = vadd.f32 %v3585_v19, %v3584_v8  ;;  %v3959_v40 = vpop.f32.mrf.mxu1  ;;  %3842 = vmatprep.subr.bf16.mxu1 %v5135_v13  ;;  %4017 = vmatprep.mubr.msk.bf16.mxu0 %vm4228_vm0, %v4227_v34 }
 0x1b7   :  { %v3587_v4 = vpop.f32.mrf.mxu0  ;;  %2796 = vmatprep.mubr.bf16.mxu1 %v4222_v15 }
 0x1b8   :  { %v1546_v33 = vadd.f32 %v3586_v26, %v1505_v24  ;;  %v1589_v47 = vpop.f32.mrf.mxu1  ;;  %4012 = vmatpush3.bf16.msra.mxu0 %v5341_v16 }
 0x1b9   :  { %3843 = vmatpush3.bf16.msra.mxu1 %v5156_v18  ;;  %v3588_v10 = vpop.f32.mrf.mxu0  ;;  %4013 = vmatprep.subr.bf16.mxu0 %v4227_v34  ;;  %v5514_v18 = vsel %vm1429_vm10, %v5450_v1, %v1431_v57  ;;  %v4225_v1 = vld [vmem:[%s5623_s0 + $0x1c4] ss:$20 sps:$4 sm:$0xff]  }
 0x1ba   :  { %v1587_v27 = vadd.f32 %v1586_v17, %v1546_v33  ;;  %v3589_v13 = vadd.f32 %v3588_v10, %v3587_v4  ;;  %v3960_v35 = vpop.f32.mrf.mxu1  ;;  %3844 = vmatprep.subr.bf16.mxu1 %v5168_v21 }
 0x1bc   :  { %vm1593_vm11 = vcmp.ge.f32.partialorder %v1587_v27, 0.0  ;;  %v1595_v3 = vmul.f32 0.01, %v1587_v27  ;;  %v1549_v5 = vadd.f32 %v3589_v13, %v1508_v58  ;;  %4014 = vmatpush3.bf16.msra.mxu0 %v5354_v60 }
 0x1bd   :  { %3845 = vmatpush3.bf16.msra.mxu1 %v5182_v25  ;;  %4015 = vmatprep.subr.bf16.mxu0 %v4227_v34 }
 0x1be   :  { %v1590_v42 = vadd.f32 %v1589_v47, %v1549_v5  ;;  %3846 = vmatprep.subr.bf16.mxu1 %v5194_v31  ;;  %v5518_v21 = vsel %vm1593_vm11, %v1587_v27, %v1595_v3  ;;  %v5533_v31 = vsel %vm1430_vm12, %v5457_v52, %v1432_v7 }
 0x1bf   :  { %v1599_v25 = vmax.f32 %v5514_v18, %v5518_v21 }
 0x1c0   :  { %vm1594_vm13 = vcmp.ge.f32.partialorder %v1590_v42, 0.0  ;;  %v1596_v38 = vmul.f32 0.01, %v1590_v42  ;;  %4016 = vmatpush3.bf16.msra.mxu0 %v5364_v11 }
 0x1c1   :  { %3847 = vmatpush3.bf16.msra.mxu1 %v5206_v36  ;;  %3862 = vmatprep.subr.bf16.mxu0 %v5109_v6  ;;  %v4220_v6 = vld [vmem:[%s5623_s0 + $0x1b8] ss:$20 sps:$4 sm:$0xff]  }
 0x1c2   :  { %3848 = vmatprep.subr.bf16.mxu1 %v5218_v45  ;;  %v5536_v56 = vsel %vm1594_vm13, %v1590_v42, %v1596_v38 }
 0x1c3   :  { %4018 = vmatmul.mubr.msk.bf16.vlgmr.msra.gmra.mxu0 %vm341_vm1, %v4219_v43  ;;  %v1600_v23 = vmax.f32 %v5533_v31, %v5536_v56 }
 0x1c4   :  { %3863 = vmatpush3.bf16.msra.mxu0 %v5130_v12  ;;  %2837 = vmatprep.mubr.bf16.mxu0 %v4225_v1 }
 0x1c5   :  { %3849 = vmatpush3.bf16.msra.mxu1 %v5230_v48  ;;  %3864 = vmatprep.subr.bf16.mxu0 %v5141_v14 }
 0x1c6   :  { %3850 = vmatprep.subr.bf16.mxu1 %v5242_v50 }
 0x1c8   :  { %3865 = vmatpush3.bf16.msra.mxu0 %v5163_v20 }
 0x1c9   :  { %3851 = vmatpush3.bf16.msra.mxu1 %v5254_v53  ;;  %3866 = vmatprep.subr.bf16.mxu0 %v5174_v22  ;;  %v4223_v22 = vld [vmem:[%s5623_s0 + $0x1c0] ss:$20 sps:$4 sm:$0xff]  }
 0x1ca   :  { %3852 = vmatprep.subr.bf16.mxu1 %v5266_v54 }
 0x1cc   :  { %3867 = vmatpush3.bf16.msra.mxu0 %v5189_v29  ;;  %v4226_v29 = vld [vmem:[%s5623_s0 + $0x1c8] ss:$20 sps:$4 sm:$0xff]  }
 0x1cd   :  { %3853 = vmatpush3.bf16.msra.mxu1 %v5280_v63  ;;  %3868 = vmatprep.subr.bf16.mxu0 %v5200_v32 }
 0x1ce   :  { %3854 = vmatprep.subr.bf16.mxu1 %v5292_v61 }
 0x1d0   :  { %3869 = vmatpush3.bf16.msra.mxu0 %v5213_v44 }
 0x1d1   :  { %3855 = vmatpush3.bf16.msra.mxu1 %v5307_v39  ;;  %3870 = vmatprep.subr.bf16.mxu0 %v5224_v46 }
 0x1d2   :  { %4021 = vmatprep.subr.bf16.mxu1 %v4227_v34 }
 0x1d3   :  { %v3611_v12 = vpop.f32.mrf.mxu0 }
 0x1d4   :  { %2797 = vmatmul.mubr.bf16.vlgmr.msra.gmra.mxu1 %v4220_v6  ;;  %3871 = vmatpush3.bf16.msra.mxu0 %v5237_v49 }
 0x1d5   :  { %4022 = vmatpush3.bf16.msra.mxu1 %v5328_v9  ;;  %3872 = vmatprep.subr.bf16.mxu0 %v5248_v51  ;;  %v3612_v14 = vpop.f32.mrf.mxu0 }
 0x1d6   :  { %4023 = vmatprep.subr.bf16.mxu1 %v4227_v34  ;;  %4029 = vmatprep.mubr.msk.bf16.mxu1 %vm4228_vm0, %v4227_v34  ;;  %v3613_v53 = vadd.f32 %v3612_v14, %v3611_v12 }
 0x1d7   :  { %v3614_v20 = vpop.f32.mrf.mxu0 }
 0x1d8   :  { %3873 = vmatpush3.bf16.msra.mxu0 %v5261_v55  ;;  %v1671_v54 = vadd.f32 %v3613_v53, %v5418_v37 }
 0x1d9   :  { %4024 = vmatpush3.bf16.msra.mxu1 %v5341_v16  ;;  %3874 = vmatprep.subr.bf16.mxu0 %v5272_v59  ;;  %v3615_v32 = vpop.f32.mrf.mxu0 }
 0x1da   :  { %4025 = vmatprep.subr.bf16.mxu1 %v4227_v34  ;;  %v3616_v63 = vadd.f32 %v3615_v32, %v3614_v20 }
 0x1dc   :  { %3875 = vmatpush3.bf16.msra.mxu0 %v5287_v0 }
 0x1dd   :  { %4026 = vmatpush3.bf16.msra.mxu1 %v5354_v60  ;;  %3876 = vmatprep.subr.bf16.mxu0 %v5298_v30  ;;  %v1674_v30 = vadd.f32 %v3616_v63, %v5418_v37 }
 0x1de   :  { %4027 = vmatprep.subr.bf16.mxu1 %v4227_v34  ;;  %v3633_v34 = vpop.f32.mrf.mxu1 }
 0x1e0   :  { %3877 = vmatpush3.bf16.msra.mxu0 %v5314_v41  ;;  %v3634_v48 = vpop.f32.mrf.mxu1 }
 0x1e1   :  { %4028 = vmatpush3.bf16.msra.mxu1 %v5364_v11  ;;  %v3635_v59 = vadd.f32 %v3634_v48, %v3633_v34 }
 0x1e2   :  { %v3636_v49 = vpop.f32.mrf.mxu1 }
 0x1e3   :  { %v1752_v36 = vpop.f32.mrf.mxu0  ;;  %2838 = vmatmul.mubr.bf16.vlgmr.msra.gmra.mxu0 %v4223_v22  ;;  %v1712_v61 = vadd.f32 %v3635_v59, %v1671_v54 }
 0x1e4   :  { %4030 = vmatmul.mubr.msk.bf16.vlgmr.msra.gmra.mxu1 %vm341_vm1, %v4226_v29  ;;  %v3637_v50 = vpop.f32.mrf.mxu1 }
 0x1e5   :  { %v3971_v44 = vpop.f32.mrf.mxu0  ;;  %v3638_v39 = vadd.f32 %v3637_v50, %v3636_v49  ;;  %v1753_v41 = vadd.f32 %v1752_v36, %v1712_v61 }
 0x1e7   :  { %v1755_v45 = vpop.f32.mrf.mxu0  ;;  %v1715_v11 = vadd.f32 %v3638_v39, %v1674_v30  ;;  %vm1759_vm14 = vcmp.ge.f32.partialorder %v1753_v41, 0.0  ;;  %v1761_v62 = vmul.f32 0.01, %v1753_v41 }
 0x1e9   :  { %v3972_v46 = vpop.f32.mrf.mxu0  ;;  %v1756_v2 = vadd.f32 %v1755_v45, %v1715_v11  ;;  %v1763_v4 = vsel %vm1759_vm14, %v1753_v41, %v1761_v62 }
 0x1ea   :  { %v1765_v3 = vmax.f32 %v1599_v25, %v1763_v4  ;;  %v5604_v25 = vld [vmem:[%s5624_s2 + $0x2] ss:$0 sm:$0xff] }
 0x1eb   :  { %v1762_v47 = vmul.f32 0.01, %v1756_v2  ;;  %vm1760_vm15 = vcmp.ge.f32.partialorder %v1756_v2, 0.0 }
 0x1ed   :  { %v1764_v5 = vsel %vm1760_vm15, %v1756_v2, %v1762_v47 }
 0x1f4   :  { %v3660_v51 = vpop.f32.mrf.mxu1 }
 0x1f6   :  { %v3661_v55 = vpop.f32.mrf.mxu1 }
 0x1f7   :  { %v3662_v9 = vadd.f32 %v3661_v55, %v3660_v51 }
 0x1f8   :  { %v3663_v0 = vpop.f32.mrf.mxu1 }
 0x1f9   :  { %v1837_v8 = vadd.f32 %v3662_v9, %v5418_v37 }
 0x1fa   :  { %v3664_v16 = vpop.f32.mrf.mxu1 }
 0x1fb   :  { %v3665_v15 = vadd.f32 %v3664_v16, %v3663_v0 }
 0x1fd   :  { %v1840_v10 = vadd.f32 %v3665_v15, %v5418_v37  ;;  %v1766_v37 = vmax.f32 %v1600_v23, %v1764_v5 }
 0x203   :  { %v3682_v60 = vpop.f32.mrf.mxu0 }
 0x204   :  { %v1918_v52 = vpop.f32.mrf.mxu1 }
 0x205   :  { %v3683_v28 = vpop.f32.mrf.mxu0 }
 0x206   :  { %v3684_v17 = vadd.f32 %v3683_v28, %v3682_v60  ;;  %v3983_v19 = vpop.f32.mrf.mxu1 }
 0x207   :  { %v3685_v24 = vpop.f32.mrf.mxu0 }
 0x208   :  { %v1878_v26 = vadd.f32 %v3684_v17, %v1837_v8  ;;  %v1921_v40 = vpop.f32.mrf.mxu1 }
 0x209   :  { %v3686_v33 = vpop.f32.mrf.mxu0 }
 0x20a   :  { %v1919_v57 = vadd.f32 %v1918_v52, %v1878_v26  ;;  %v3687_v58 = vadd.f32 %v3686_v33, %v3685_v24  ;;  %v3984_v27 = vpop.f32.mrf.mxu1 }
 0x20c   :  { %vm1925_vm0 = vcmp.ge.f32.partialorder %v1919_v57, 0.0  ;;  %v1927_v13 = vmul.f32 0.01, %v1919_v57  ;;  %v1881_v35 = vadd.f32 %v3687_v58, %v1840_v10 }
 0x20e   :  { %v1929_v7 = vsel %vm1925_vm0, %v1919_v57, %v1927_v13  ;;  %v1922_v42 = vadd.f32 %v1921_v40, %v1881_v35 }
 0x20f   :  { %v1931_v43 = vmax.f32 %v1765_v3, %v1929_v7 }
 0x210   :  { %vm1926_vm2 = vcmp.ge.f32.partialorder %v1922_v42, 0.0  ;;  %v1928_v38 = vmul.f32 0.01, %v1922_v42 }
 0x211   :  { %3139 = vst.msk [vmem:[%s5625_s3 + $0x10] sm:$0xff] %vm341_vm1, %v1931_v43 }
 0x212   :  { %v1930_v1 = vsel %vm1926_vm2, %v1922_v42, %v1928_v38 }
 0x213   :  { %v1932_v6 = vmax.f32 %v1766_v37, %v1930_v1 }
 0x215   :  { %3140 = vst.msk [vmem:[%s5625_s3 + $0x18] sm:$0xff] %vm341_vm1, %v1932_v6 }
 0x223   :  { %v3709_v18 = vpop.f32.mrf.mxu0 }
 0x224   :  { %v3731_v21 = vpop.f32.mrf.mxu1 }
 0x225   :  { %v3710_v31 = vpop.f32.mrf.mxu0 }
 0x226   :  { %v3711_v56 = vadd.f32 %v3710_v31, %v3709_v18  ;;  %v3732_v23 = vpop.f32.mrf.mxu1 }
 0x227   :  { %v3733_v12 = vadd.f32 %v3732_v23, %v3731_v21  ;;  %v3712_v14 = vpop.f32.mrf.mxu0 }
 0x228   :  { %v2303_v20 = vadd.f32 %v3711_v56, %v5604_v25  ;;  %v3734_v22 = vpop.f32.mrf.mxu1 }
 0x229   :  { %v3713_v29 = vpop.f32.mrf.mxu0 }
 0x22a   :  { %v3714_v32 = vadd.f32 %v3713_v29, %v3712_v14  ;;  %v3735_v36 = vpop.f32.mrf.mxu1  ;;  %v2344_v44 = vadd.f32 %v3733_v12, %v2303_v20 }
 0x22b   :  { %v3736_v45 = vadd.f32 %v3735_v36, %v3734_v22 }
 0x22c   :  { %v2306_v34 = vadd.f32 %v3714_v32, %v5604_v25 }
 0x22e   :  { %v2347_v46 = vadd.f32 %v3736_v45, %v2306_v34 }
 0x233   :  { %v2384_v48 = vpop.f32.mrf.mxu0 }
 0x234   :  { %v2385_v49 = vadd.f32 %v2384_v48, %v2344_v44 }
 0x235   :  { %v3995_v50 = vpop.f32.mrf.mxu0 }
 0x236   :  { %v2393_v8 = vmul.f32 0.01, %v2385_v49  ;;  %vm2391_vm3 = vcmp.ge.f32.partialorder %v2385_v49, 0.0 }
 0x237   :  { %v2387_v51 = vpop.f32.mrf.mxu0 }
 0x238   :  { %v2388_v53 = vadd.f32 %v2387_v51, %v2347_v46  ;;  %v2395_v4 = vsel %vm2391_vm3, %v2385_v49, %v2393_v8 }
 0x239   :  { %v3996_v55 = vpop.f32.mrf.mxu0 }
 0x23a   :  { %v2394_v33 = vmul.f32 0.01, %v2388_v53  ;;  %vm2392_vm5 = vcmp.ge.f32.partialorder %v2388_v53, 0.0 }
 0x23c   :  { %v2396_v27 = vsel %vm2392_vm5, %v2388_v53, %v2394_v33 }
 0x244   :  { %v3758_v54 = vpop.f32.mrf.mxu1 }
 0x246   :  { %v3759_v59 = vpop.f32.mrf.mxu1 }
 0x247   :  { %v3760_v63 = vadd.f32 %v3759_v59, %v3758_v54 }
 0x248   :  { %v3761_v0 = vpop.f32.mrf.mxu1 }
 0x249   :  { %v2467_v16 = vadd.f32 %v3760_v63, %v5604_v25 }
 0x24a   :  { %v3762_v61 = vpop.f32.mrf.mxu1 }
 0x24b   :  { %v3763_v30 = vadd.f32 %v3762_v61, %v3761_v0 }
 0x24d   :  { %v2470_v15 = vadd.f32 %v3763_v30, %v5604_v25 }
 0x253   :  { %v3780_v39 = vpop.f32.mrf.mxu0 }
 0x254   :  { %v2548_v41 = vpop.f32.mrf.mxu1 }
 0x255   :  { %v3781_v9 = vpop.f32.mrf.mxu0 }
 0x256   :  { %v3782_v60 = vadd.f32 %v3781_v9, %v3780_v39  ;;  %v4007_v11 = vpop.f32.mrf.mxu1 }
 0x257   :  { %v3783_v52 = vpop.f32.mrf.mxu0 }
 0x258   :  { %v2508_v62 = vadd.f32 %v3782_v60, %v2467_v16  ;;  %v2551_v28 = vpop.f32.mrf.mxu1 }
 0x259   :  { %v3784_v2 = vpop.f32.mrf.mxu0 }
 0x25a   :  { %v2549_v17 = vadd.f32 %v2548_v41, %v2508_v62  ;;  %v3785_v19 = vadd.f32 %v3784_v2, %v3783_v52  ;;  %v4008_v24 = vpop.f32.mrf.mxu1 }
 0x25c   :  { %vm2555_vm4 = vcmp.ge.f32.partialorder %v2549_v17, 0.0  ;;  %v2557_v26 = vmul.f32 0.01, %v2549_v17  ;;  %v2511_v40 = vadd.f32 %v3785_v19, %v2470_v15 }
 0x25e   :  { %v2552_v47 = vadd.f32 %v2551_v28, %v2511_v40  ;;  %v2559_v10 = vsel %vm2555_vm4, %v2549_v17, %v2557_v26 }
 0x25f   :  { %v2561_v57 = vmax.f32 %v2395_v4, %v2559_v10 }
 0x260   :  { %vm2556_vm6 = vcmp.ge.f32.partialorder %v2552_v47, 0.0  ;;  %v2558_v58 = vmul.f32 0.01, %v2552_v47 }
 0x262   :  { %v2560_v13 = vsel %vm2556_vm6, %v2552_v47, %v2558_v58 }
 0x263   :  { %v2562_v35 = vmax.f32 %v2396_v27, %v2560_v13 }
 0x273   :  { %v3807_v3 = vpop.f32.mrf.mxu0 }
 0x274   :  { %v3829_v1 = vpop.f32.mrf.mxu1 }
 0x275   :  { %v3808_v5 = vpop.f32.mrf.mxu0 }
 0x276   :  { %v3830_v18 = vpop.f32.mrf.mxu1  ;;  %v3809_v23 = vadd.f32 %v3808_v5, %v3807_v3 }
 0x277   :  { %v3810_v7 = vpop.f32.mrf.mxu0  ;;  %v3831_v20 = vadd.f32 %v3830_v18, %v3829_v1 }
 0x278   :  { %v3832_v21 = vpop.f32.mrf.mxu1  ;;  %v2633_v14 = vadd.f32 %v3809_v23, %v5604_v25 }
 0x279   :  { %v3811_v42 = vpop.f32.mrf.mxu0 }
 0x27a   :  { %v3833_v31 = vpop.f32.mrf.mxu1  ;;  %v3812_v22 = vadd.f32 %v3811_v42, %v3810_v7  ;;  %v2674_v32 = vadd.f32 %v3831_v20, %v2633_v14 }
 0x27b   :  { %v3834_v44 = vadd.f32 %v3833_v31, %v3832_v21 }
 0x27c   :  { %v2636_v36 = vadd.f32 %v3812_v22, %v5604_v25 }
 0x27e   :  { %v2677_v49 = vadd.f32 %v3834_v44, %v2636_v36 }
 0x283   :  { %v2714_v43 = vpop.f32.mrf.mxu0 }
 0x284   :  { %v2715_v45 = vadd.f32 %v2714_v43, %v2674_v32 }
 0x285   :  { %v4019_v38 = vpop.f32.mrf.mxu0 }
 0x286   :  { %vm2721_vm7 = vcmp.ge.f32.partialorder %v2715_v45, 0.0  ;;  %v2723_v51 = vmul.f32 0.01, %v2715_v45 }
 0x287   :  { %v2717_v37 = vpop.f32.mrf.mxu0 }
 0x288   :  { %v2718_v55 = vadd.f32 %v2717_v37, %v2677_v49  ;;  %v2725_v41 = vsel %vm2721_vm7, %v2715_v45, %v2723_v51 }
 0x289   :  { %v4020_v6 = vpop.f32.mrf.mxu0  ;;  %v2727_v8 = vmax.f32 %v2561_v57, %v2725_v41 }
 0x28a   :  { %v2724_v16 = vmul.f32 0.01, %v2718_v55  ;;  %vm2722_vm8 = vcmp.ge.f32.partialorder %v2718_v55, 0.0 }
 0x28c   :  { %v2726_v15 = vsel %vm2722_vm8, %v2718_v55, %v2724_v16 }
 0x28d   :  { %v2728_v40 = vmax.f32 %v2562_v35, %v2726_v15 }
 0x294   :  { %v3856_v56 = vpop.f32.mrf.mxu1 }
 0x296   :  { %v3857_v12 = vpop.f32.mrf.mxu1 }
 0x297   :  { %v3858_v34 = vadd.f32 %v3857_v12, %v3856_v56 }
 0x298   :  { %v3859_v29 = vpop.f32.mrf.mxu1 }
 0x299   :  { %v2799_v54 = vadd.f32 %v3858_v34, %v5604_v25 }
 0x29a   :  { %v3860_v46 = vpop.f32.mrf.mxu1 }
 0x29b   :  { %v3861_v59 = vadd.f32 %v3860_v46, %v3859_v29 }
 0x29d   :  { %v2802_v60 = vadd.f32 %v3861_v59, %v5604_v25 }
 0x2a3   :  { %v3878_v48 = vpop.f32.mrf.mxu0 }
 0x2a4   :  { %v2880_v50 = vpop.f32.mrf.mxu1 }
 0x2a5   :  { %v3879_v53 = vpop.f32.mrf.mxu0 }
 0x2a6   :  { %v3880_v63 = vadd.f32 %v3879_v53, %v3878_v48  ;;  %v4031_v0 = vpop.f32.mrf.mxu1 }
 0x2a7   :  { %v3881_v61 = vpop.f32.mrf.mxu0 }
 0x2a8   :  { %v2840_v30 = vadd.f32 %v3880_v63, %v2799_v54  ;;  %v2883_v39 = vpop.f32.mrf.mxu1 }
 0x2a9   :  { %v3882_v9 = vpop.f32.mrf.mxu0 }
 0x2aa   :  { %v2881_v11 = vadd.f32 %v2880_v50, %v2840_v30  ;;  %v3883_v52 = vadd.f32 %v3882_v9, %v3881_v61  ;;  %v4032_v62 = vpop.f32.mrf.mxu1 }
 0x2ac   :  { %vm2887_vm9 = vcmp.ge.f32.partialorder %v2881_v11, 0.0  ;;  %v2889_v28 = vmul.f32 0.01, %v2881_v11  ;;  %v2843_v2 = vadd.f32 %v3883_v52, %v2802_v60 }
 0x2ae   :  { %v2891_v17 = vsel %vm2887_vm9, %v2881_v11, %v2889_v28  ;;  %v2884_v19 = vadd.f32 %v2883_v39, %v2843_v2 }
 0x2af   :  { %v2893_v24 = vmax.f32 %v2727_v8, %v2891_v17 }
 0x2b0   :  { %vm2888_vm10 = vcmp.ge.f32.partialorder %v2884_v19, 0.0  ;;  %v2890_v26 = vmul.f32 0.01, %v2884_v19 }
 0x2b1   :  { %3299 = vst.msk [vmem:[%s5625_s3 + $0x20] sm:$0xff] %vm341_vm1, %v2893_v24 }
 0x2b2   :  { %v2892_v25 = vsel %vm2888_vm10, %v2884_v19, %v2890_v26 }
 0x2b3   :  { %v2894_v4 = vmax.f32 %v2728_v40, %v2892_v25 }
 0x2b5   :  { %3300 = vst.msk [vmem:[%s5625_s3 + $0x28] sm:$0xff] %vm341_vm1, %v2894_v4 }

// kernel: curlnet_forward.10
= control target key start
LH: loop header
LB: loop body
LE: loop exit
PB: predicated region body
PF: predicated region fallthrough
CT: control target
= control target key end

     0   :  { %v1970_v21 = vmov 1966171168   ;;  %v94_v23 = vlaneseq  ;;  %v1971_v40 = vmov 0.0   ;;  %vm1972_vm0 = vmmov 0   ;;  %s2385_s1 = inlined_call_operand.vmem [shape: bf16[3,576,64], index: 1, kind: input, shape index: {}]   ;;  %s2386_s0 = inlined_call_operand.vmem [shape: bf16[3,1,576], index: 0, kind: input, shape index: {}]   ;;  %s2387_s2 = inlined_call_operand.vmem [shape: f32[3,1,64], index: 2, kind: input, shape index: {}]   ;;  %s2388_s3 = inlined_call_operand.vmem [shape: f32[3,1,64], index: 3, kind: output, shape index: {}]  }
   0x1   :  { %v1859_v0 = vld [vmem:[%s2385_s1 + $0x78] sm:$0xff]   ;;  %v1863_v4 = vld [vmem:[%s2385_s1 + $0x70] sm:$0xff]   ;;  %v1867_v8 = vld [vmem:[%s2385_s1 + $0x68] sm:$0xff]   ;;  %v92_v22 = vunpack.c.l.s4 %v1970_v21  ;;  %vm349_vm1 = vcmask 523264   ;;  %vm476_vm3 = vcmask 516096  }
   0x2   :  { %v1860_v1 = vld [vmem:[%s2385_s1 + $0x38] sm:$0xff]   ;;  %1673 = vmatprep.subr.bf16.mxu0 %v1859_v0  ;;  %v1864_v5 = vld [vmem:[%s2385_s1 + $0x30] sm:$0xff]   ;;  %v1868_v9 = vld [vmem:[%s2385_s1 + $0x28] sm:$0xff]   ;;  %v95_v29 = vshrl.u32 %v94_v23, 7 }
   0x3   :  { %v1861_v2 = vld [vmem:[%s2385_s1 + $0xf8] sm:$0xff]   ;;  %1674 = vmatpush3.bf16.msra.mxu0 %v1860_v1  ;;  %v1865_v6 = vld [vmem:[%s2385_s1 + $0xf0] sm:$0xff]   ;;  %v1869_v10 = vld [vmem:[%s2385_s1 + $0xe8] sm:$0xff]   ;;  %v93_v28 = vunpack.c.0.s8 %v92_v22 }
   0x4   :  { %v1862_v3 = vld [vmem:[%s2385_s1 + $0xb8] sm:$0xff]   ;;  %1695 = vmatprep.subr.bf16.mxu1 %v1861_v2  ;;  %1675 = vmatprep.subr.bf16.mxu0 %v1863_v4  ;;  %v1866_v7 = vld [vmem:[%s2385_s1 + $0xb0] sm:$0xff]   ;;  %v1870_v11 = vld [vmem:[%s2385_s1 + $0xa8] sm:$0xff]  }
   0x5   :  { %1696 = vmatpush3.bf16.msra.mxu1 %v1862_v3  ;;  %v1871_v12 = vld [vmem:[%s2385_s1 + $0x60] sm:$0xff]   ;;  %v1875_v16 = vld [vmem:[%s2385_s1 + $0x58] sm:$0xff]   ;;  %v1879_v20 = vld [vmem:[%s2385_s1 + $0x50] sm:$0xff]   ;;  %v2080_v34 = vsub.s32 %v93_v28, %v95_v29 }
   0x6   :  { %1697 = vmatprep.subr.bf16.mxu1 %v1865_v6  ;;  %v1872_v13 = vld [vmem:[%s2385_s1 + $0x20] sm:$0xff]   ;;  %v1876_v17 = vld [vmem:[%s2385_s1 + $0x18] sm:$0xff]   ;;  %v1880_v24 = vld [vmem:[%s2385_s1 + $0x10] sm:$0xff]  }
   0x7   :  { %1676 = vmatpush3.bf16.msra.mxu0 %v1864_v5  ;;  %v1873_v14 = vld [vmem:[%s2385_s1 + $0xe0] sm:$0xff]   ;;  %v1877_v18 = vld [vmem:[%s2385_s1 + $0xd8] sm:$0xff]   ;;  %v1881_v25 = vld [vmem:[%s2385_s1 + $0xd0] sm:$0xff]  }
   0x8   :  { %1677 = vmatprep.subr.bf16.mxu0 %v1867_v8  ;;  %v1874_v15 = vld [vmem:[%s2385_s1 + $0xa0] sm:$0xff]   ;;  %v1878_v19 = vld [vmem:[%s2385_s1 + $0x98] sm:$0xff]   ;;  %v1882_v26 = vld [vmem:[%s2385_s1 + $0x90] sm:$0xff]  }
   0x9   :  { %1698 = vmatpush3.bf16.msra.mxu1 %v1866_v7  ;;  %v1883_v27 = vld [vmem:[%s2385_s1 + $0x48] sm:$0xff]   ;;  %v1887_v33 = vld [vmem:[%s2385_s1 + $0x40] sm:$0xff]   ;;  %v1893_v43 = vld [vmem:[%s2385_s1 + $0x198] sm:$0xff]  }
   0xa   :  { %1699 = vmatprep.subr.bf16.mxu1 %v1869_v10  ;;  %v1884_v30 = vld [vmem:[%s2385_s1 + $0x8] sm:$0xff]   ;;  %v1888_v35 = vld [vmem:[%s2385_s1] sm:$0xff]   ;;  %v1892_v45 = vld [vmem:[%s2385_s1 + $0x118] sm:$0xff]  }
   0xb   :  { %1678 = vmatpush3.bf16.msra.mxu0 %v1868_v9  ;;  %v1885_v31 = vld [vmem:[%s2385_s1 + $0xc8] sm:$0xff]   ;;  %v1889_v36 = vld [vmem:[%s2385_s1 + $0xc0] sm:$0xff]   ;;  %v1894_v48 = vld [vmem:[%s2385_s1 + $0x158] sm:$0xff]  }
   0xc   :  { %1679 = vmatprep.subr.bf16.mxu0 %v1871_v12  ;;  %v1886_v32 = vld [vmem:[%s2385_s1 + $0x88] sm:$0xff]   ;;  %v15_v37 = vld [vmem:[%s2386_s0] sm:$0x1f]  ;;  %v1896_v49 = vld [vmem:[%s2385_s1 + $0x190] sm:$0xff]  }
   0xd   :  { %1700 = vmatpush3.bf16.msra.mxu1 %v1870_v11  ;;  %v97_v38 = vrot.slane %v15_v37, %v2080_v34  ;;  %v1891_v39 = vld [vmem:[%s2385_s1 + $0x80] sm:$0xff]   ;;  %v1895_v50 = vld [vmem:[%s2385_s1 + $0x110] sm:$0xff]   ;;  %v90_v52 = vcombine.high %v15_v37, %v15_v37  ;;  %v1899_v53 = vld [vmem:[%s2385_s1 + $0x188] sm:$0xff]  }
   0xe   :  { %1701 = vmatprep.subr.bf16.mxu1 %v1873_v14  ;;  %v1897_v51 = vld [vmem:[%s2385_s1 + $0x150] sm:$0xff]   ;;  %v1898_v54 = vld [vmem:[%s2385_s1 + $0x108] sm:$0xff]   ;;  %v1902_v57 = vld [vmem:[%s2385_s1 + $0x180] sm:$0xff]  }
   0xf   :  { %1680 = vmatpush3.bf16.msra.mxu0 %v1872_v13  ;;  %v105_v41 = vcombine.high %v97_v38, %v97_v38  ;;  %v112_v42 = vrot.slane %v97_v38, %v2080_v34  ;;  %v1900_v55 = vld [vmem:[%s2385_s1 + $0x148] sm:$0xff]   ;;  %v104_v56 = vrot.slane %v90_v52, %v2080_v34  ;;  %v1901_v58 = vld [vmem:[%s2385_s1 + $0x100] sm:$0xff]   ;;  %v1904_v59 = vld [vmem:[%s2385_s1 + $0x218] sm:$0xff]  }
  0x10   :  { %1681 = vmatprep.subr.bf16.mxu0 %v1875_v16  ;;  %v1903_v60 = vld [vmem:[%s2385_s1 + $0x140] sm:$0xff]   ;;  %v1906_v62 = vld [vmem:[%s2385_s1 + $0x178] sm:$0xff]   ;;  %v1908_v0 = vld [vmem:[%s2385_s1 + $0x210] sm:$0xff]  }
  0x11   :  { %1702 = vmatpush3.bf16.msra.mxu1 %v1874_v15  ;;  %v126_v44 = vrot.slane %v105_v41, %v2080_v34  ;;  %v127_v46 = vcombine.high %v112_v42, %v112_v42  ;;  %v119_v61 = vrot.slane %v104_v56, %v2080_v34  ;;  %v1905_v63 = vld [vmem:[%s2385_s1 + $0x1d8] sm:$0xff]   ;;  %v1910_v2 = vld [vmem:[%s2385_s1 + $0x170] sm:$0xff]   ;;  %v1912_v4 = vld [vmem:[%s2385_s1 + $0x208] sm:$0xff]  }
  0x12   :  { %1703 = vmatprep.subr.bf16.mxu1 %v1877_v18  ;;  %v1907_v1 = vld [vmem:[%s2385_s1 + $0x138] sm:$0xff]   ;;  %v1909_v3 = vld [vmem:[%s2385_s1 + $0x1d0] sm:$0xff]   ;;  %v1914_v6 = vld [vmem:[%s2385_s1 + $0x168] sm:$0xff]  }
  0x13   :  { %1682 = vmatpush3.bf16.msra.mxu0 %v1876_v17  ;;  %385 = vmatprep.mubr.bf16.mxu0 %v126_v44  ;;  %v128_v47 = vcombine.high %v126_v44, %v126_v44  ;;  %v1911_v5 = vld [vmem:[%s2385_s1 + $0x130] sm:$0xff]   ;;  %v1913_v7 = vld [vmem:[%s2385_s1 + $0x1c8] sm:$0xff]   ;;  %v1916_v8 = vld [vmem:[%s2385_s1 + $0x200] sm:$0xff]  }
  0x14   :  { %1683 = vmatprep.subr.bf16.mxu0 %v1879_v20  ;;  %v1915_v9 = vld [vmem:[%s2385_s1 + $0x128] sm:$0xff]   ;;  %v1918_v11 = vld [vmem:[%s2385_s1 + $0x160] sm:$0xff]   ;;  %v1920_v14 = vld [vmem:[%s2385_s1 + $0x1f8] sm:$0xff]  }
  0x15   :  { %1704 = vmatpush3.bf16.msra.mxu1 %v1878_v19  ;;  %425 = vmatprep.mubr.bf16.mxu1 %v128_v47  ;;  %v1449_v10 = vld [vmem:[%s2386_s0 + $0x5] sm:$0x1f]  ;;  %v1921_v18 = vld [vmem:[%s2385_s1 + $0x1b8] sm:$0xff]   ;;  %v1924_v20 = vld [vmem:[%s2385_s1 + $0x1f0] sm:$0xff]  }
  0x16   :  { %1705 = vmatprep.subr.bf16.mxu1 %v1881_v25  ;;  %v563_v12 = vrot.slane %v1449_v10, %v2080_v34  ;;  %v1917_v13 = vld [vmem:[%s2385_s1 + $0x1c0] sm:$0xff]   ;;  %v1923_v22 = vld [vmem:[%s2385_s1 + $0x238] sm:$0xff]   ;;  %v1925_v23 = vld [vmem:[%s2385_s1 + $0x1b0] sm:$0xff]  }
  0x17   :  { %1684 = vmatpush3.bf16.msra.mxu0 %v1880_v24  ;;  %v1919_v16 = vld [vmem:[%s2385_s1 + $0x120] sm:$0xff]   ;;  %v1927_v24 = vld [vmem:[%s2385_s1 + $0x1e8] sm:$0xff]   ;;  %v1926_v25 = vld [vmem:[%s2385_s1 + $0x230] sm:$0xff]  }
  0x18   :  { %1685 = vmatprep.subr.bf16.mxu0 %v1883_v27  ;;  %v571_v15 = vcombine.high %v563_v12, %v563_v12  ;;  %v578_v19 = vrot.slane %v563_v12, %v2080_v34  ;;  %v556_v27 = vcombine.high %v1449_v10, %v1449_v10  ;;  %v1930_v28 = vld [vmem:[%s2385_s1 + $0x1e0] sm:$0xff]   ;;  %v1929_v29 = vld [vmem:[%s2385_s1 + $0x228] sm:$0xff]   ;;  %v1934_v37 = vld [vmem:[%s2385_s1 + $0x278] sm:$0xff]  }
  0x19   :  { %1706 = vmatpush3.bf16.msra.mxu1 %v1882_v26  ;;  %v1928_v26 = vld [vmem:[%s2385_s1 + $0x1a8] sm:$0xff]   ;;  %v1936_v41 = vld [vmem:[%s2385_s1 + $0x2f8] sm:$0xff]   ;;  %v1953_v56 = vld [vmem:[%s2385_s1 + $0x290] sm:$0xff]  }
  0x1a   :  { %1707 = vmatprep.subr.bf16.mxu1 %v1885_v31  ;;  %v592_v17 = vrot.slane %v571_v15, %v2080_v34  ;;  %v570_v31 = vrot.slane %v556_v27, %v2080_v34  ;;  %v1941_v44 = vld [vmem:[%s2385_s1 + $0x2a8] sm:$0xff]   ;;  %v1949_v52 = vld [vmem:[%s2385_s1 + $0x298] sm:$0xff]   ;;  %v1965_v10 = vld [vmem:[%s2385_s1 + $0x2c0] sm:$0xff]  }
  0x1b   :  { %1686 = vmatpush3.bf16.msra.mxu0 %v1884_v30  ;;  %v1931_v30 = vld [vmem:[%s2385_s1 + $0x1a0] sm:$0xff]   ;;  %v1942_v47 = vld [vmem:[%s2385_s1 + $0x268] sm:$0xff]  }
  0x1c   :  { %1687 = vmatprep.subr.bf16.mxu0 %v1887_v33  ;;  %v594_v21 = vcombine.high %v592_v17, %v592_v17  ;;  %v1932_v33 = vld [vmem:[%s2385_s1 + $0x220] sm:$0xff]   ;;  %v585_v38 = vrot.slane %v570_v31, %v2080_v34  ;;  %v1968_v15 = vld [vmem:[%s2385_s1 + $0x348] sm:$0xff]  }
  0x1d   :  { %1708 = vmatpush3.bf16.msra.mxu1 %v1886_v32  ;;  %v1933_v32 = vld [vmem:[%s2385_s1 + $0x2b8] sm:$0xff]   ;;  %v88_v27 = vld [vmem:[%s2387_s2] sm:$0x1] }
  0x1e   :  { %1709 = vmatprep.subr.bf16.mxu1 %v1889_v36  ;;  %v1935_v36 = vld [vmem:[%s2385_s1 + $0x338] sm:$0xff]  }
  0x1f   :  { %1688 = vmatpush3.bf16.msra.mxu0 %v1888_v35  ;;  %v593_v35 = vcombine.high %v578_v19, %v578_v19 }
  0x20   :  { %1820 = vmatprep.subr.bf16.mxu0 %v1971_v40 }
  0x21   :  { %1710 = vmatpush3.bf16.msra.mxu1 %v1891_v39  ;;  %v1937_v39 = vld [vmem:[%s2385_s1 + $0x2b0] sm:$0xff]  }
  0x22   :  { %1722 = vmatprep.subr.bf16.mxu1 %v1893_v43  ;;  %386 = vmatmul.mubr.bf16.vlgmr.msra.gmra.mxu0 %v112_v42  ;;  %v1939_v42 = vld [vmem:[%s2385_s1 + $0x330] sm:$0xff]  }
  0x23   :  { %1821 = vmatpush3.bf16.msra.mxu0 %v1892_v45  ;;  %1828 = vmatprep.mubr.msk.bf16.mxu0 %vm1972_vm0, %v1971_v40  ;;  %v1938_v43 = vld [vmem:[%s2385_s1 + $0x270] sm:$0xff]  }
  0x24   :  { %426 = vmatmul.mubr.bf16.vlgmr.msra.gmra.mxu1 %v127_v46  ;;  %1822 = vmatprep.subr.bf16.mxu0 %v1971_v40  ;;  %v1940_v45 = vld [vmem:[%s2385_s1 + $0x2f0] sm:$0xff]   ;;  %v1943_v46 = vld [vmem:[%s2385_s1 + $0x328] sm:$0xff]  }
  0x25   :  { %1723 = vmatpush3.bf16.msra.mxu1 %v1894_v48  ;;  %850 = vmatprep.mubr.bf16.mxu1 %v592_v17  ;;  %v1945_v48 = vld [vmem:[%s2385_s1 + $0x2a0] sm:$0xff]  }
  0x26   :  { %1724 = vmatprep.subr.bf16.mxu1 %v1896_v49  ;;  %v1944_v49 = vld [vmem:[%s2385_s1 + $0x2e8] sm:$0xff]   ;;  %v1969_v17 = vld [vmem:[%s2385_s1 + $0x340] sm:$0xff]  }
  0x27   :  { %1823 = vmatpush3.bf16.msra.mxu0 %v1895_v50  ;;  %v1947_v50 = vld [vmem:[%s2385_s1 + $0x320] sm:$0xff]  }
  0x28   :  { %1824 = vmatprep.subr.bf16.mxu0 %v1971_v40 }
  0x29   :  { %1725 = vmatpush3.bf16.msra.mxu1 %v1897_v51  ;;  %v1946_v51 = vld [vmem:[%s2385_s1 + $0x260] sm:$0xff]  }
  0x2a   :  { %1726 = vmatprep.subr.bf16.mxu1 %v1899_v53  ;;  %v1948_v53 = vld [vmem:[%s2385_s1 + $0x2e0] sm:$0xff]  }
  0x2b   :  { %1825 = vmatpush3.bf16.msra.mxu0 %v1898_v54  ;;  %v1951_v54 = vld [vmem:[%s2385_s1 + $0x318] sm:$0xff]  }
  0x2c   :  { %1826 = vmatprep.subr.bf16.mxu0 %v1971_v40 }
  0x2d   :  { %1727 = vmatpush3.bf16.msra.mxu1 %v1900_v55  ;;  %v1950_v55 = vld [vmem:[%s2385_s1 + $0x258] sm:$0xff]  }
  0x2e   :  { %1728 = vmatprep.subr.bf16.mxu1 %v1902_v57  ;;  %v1952_v57 = vld [vmem:[%s2385_s1 + $0x2d8] sm:$0xff]  }
  0x2f   :  { %1827 = vmatpush3.bf16.msra.mxu0 %v1901_v58  ;;  %v1955_v58 = vld [vmem:[%s2385_s1 + $0x310] sm:$0xff]  }
  0x30   :  { %1744 = vmatprep.subr.bf16.mxu0 %v1904_v59  ;;  %v1561_v59 = vld [vmem:[%s2386_s0 + $0xa] sm:$0x1f] }
  0x31   :  { %1729 = vmatpush3.bf16.msra.mxu1 %v1903_v60  ;;  %v1954_v60 = vld [vmem:[%s2385_s1 + $0x250] sm:$0xff]  }
  0x32   :  { %1829 = vmatmul.mubr.msk.bf16.vlgmr.msra.gmra.mxu0 %vm349_vm1, %v119_v61  ;;  %1730 = vmatprep.subr.bf16.mxu1 %v1906_v62  ;;  %v1028_v61 = vrot.slane %v1561_v59, %v2080_v34  ;;  %v1957_v62 = vld [vmem:[%s2385_s1 + $0x288] sm:$0xff]  }
  0x33   :  { %1745 = vmatpush3.bf16.msra.mxu0 %v1905_v63  ;;  %890 = vmatprep.mubr.bf16.mxu0 %v594_v21  ;;  %v1956_v63 = vld [vmem:[%s2385_s1 + $0x2d0] sm:$0xff]  }
  0x34   :  { %1746 = vmatprep.subr.bf16.mxu0 %v1908_v0  ;;  %v1036_v0 = vcombine.high %v1028_v61, %v1028_v61 }
  0x35   :  { %1731 = vmatpush3.bf16.msra.mxu1 %v1907_v1  ;;  %v1959_v1 = vld [vmem:[%s2385_s1 + $0x308] sm:$0xff]  }
  0x36   :  { %1732 = vmatprep.subr.bf16.mxu1 %v1910_v2  ;;  %v1958_v2 = vld [vmem:[%s2385_s1 + $0x248] sm:$0xff]  }
  0x37   :  { %1747 = vmatpush3.bf16.msra.mxu0 %v1909_v3  ;;  %v1057_v3 = vrot.slane %v1036_v0, %v2080_v34 }
  0x38   :  { %1748 = vmatprep.subr.bf16.mxu0 %v1912_v4  ;;  %v1961_v4 = vld [vmem:[%s2385_s1 + $0x280] sm:$0xff]  }
  0x39   :  { %1733 = vmatpush3.bf16.msra.mxu1 %v1911_v5  ;;  %v1960_v5 = vld [vmem:[%s2385_s1 + $0x2c8] sm:$0xff]  }
  0x3a   :  { %1734 = vmatprep.subr.bf16.mxu1 %v1914_v6  ;;  %v1059_v6 = vcombine.high %v1057_v3, %v1057_v3 }
  0x3b   :  { %1749 = vmatpush3.bf16.msra.mxu0 %v1913_v7  ;;  %v1963_v7 = vld [vmem:[%s2385_s1 + $0x300] sm:$0xff]  }
  0x3c   :  { %1750 = vmatprep.subr.bf16.mxu0 %v1916_v8  ;;  %v1962_v8 = vld [vmem:[%s2385_s1 + $0x240] sm:$0xff]  }
  0x3d   :  { %1735 = vmatpush3.bf16.msra.mxu1 %v1915_v9  ;;  %v1043_v9 = vrot.slane %v1028_v61, %v2080_v34 }
  0x3e   :  { %1736 = vmatprep.subr.bf16.mxu1 %v1918_v11  ;;  %v1966_v11 = vld [vmem:[%s2385_s1 + $0x358] sm:$0xff]  }
  0x3f   :  { %1751 = vmatpush3.bf16.msra.mxu0 %v1917_v13  ;;  %v1058_v12 = vcombine.high %v1043_v9, %v1043_v9  ;;  %v1967_v13 = vld [vmem:[%s2385_s1 + $0x350] sm:$0xff]  }
  0x40   :  { %1752 = vmatprep.subr.bf16.mxu0 %v1920_v14  ;;  %v1021_v14 = vcombine.high %v1561_v59, %v1561_v59 }
  0x41   :  { %1737 = vmatpush3.bf16.msra.mxu1 %v1919_v16 }
  0x42   :  { %1832 = vmatprep.subr.bf16.mxu1 %v1971_v40  ;;  %v1035_v16 = vrot.slane %v1021_v14, %v2080_v34 }
  0x43   :  { %1753 = vmatpush3.bf16.msra.mxu0 %v1921_v18 }
  0x44   :  { %851 = vmatmul.mubr.bf16.vlgmr.msra.gmra.mxu1 %v578_v19  ;;  %1754 = vmatprep.subr.bf16.mxu0 %v1924_v20  ;;  %v1050_v18 = vrot.slane %v1035_v16, %v2080_v34 }
  0x45   :  { %1833 = vmatpush3.bf16.msra.mxu1 %v1923_v22  ;;  %1840 = vmatprep.mubr.msk.bf16.mxu1 %vm1972_vm0, %v1971_v40 }
  0x46   :  { %1834 = vmatprep.subr.bf16.mxu1 %v1971_v40 }
  0x47   :  { %1755 = vmatpush3.bf16.msra.mxu0 %v1925_v23 }
  0x48   :  { %1756 = vmatprep.subr.bf16.mxu0 %v1927_v24 }
  0x49   :  { %1835 = vmatpush3.bf16.msra.mxu1 %v1926_v25 }
  0x4a   :  { %1836 = vmatprep.subr.bf16.mxu1 %v1971_v40 }
  0x4b   :  { %1757 = vmatpush3.bf16.msra.mxu0 %v1928_v26 }
  0x4c   :  { %1758 = vmatprep.subr.bf16.mxu0 %v1930_v28 }
  0x4d   :  { %1837 = vmatpush3.bf16.msra.mxu1 %v1929_v29 }
  0x4e   :  { %1838 = vmatprep.subr.bf16.mxu1 %v1971_v40 }
  0x4f   :  { %1759 = vmatpush3.bf16.msra.mxu0 %v1931_v30 }
  0x50   :  { %1771 = vmatprep.subr.bf16.mxu0 %v1933_v32 }
  0x51   :  { %1839 = vmatpush3.bf16.msra.mxu1 %v1932_v33 }
  0x52   :  { %891 = vmatmul.mubr.bf16.vlgmr.msra.gmra.mxu0 %v593_v35  ;;  %1793 = vmatprep.subr.bf16.mxu1 %v1935_v36 }
  0x53   :  { %1772 = vmatpush3.bf16.msra.mxu0 %v1934_v37  ;;  %1315 = vmatprep.mubr.bf16.mxu0 %v1057_v3  ;;  %v1634_v3 = vld [vmem:[%s2387_s2 + $0x2] sm:$0x1] }
  0x54   :  { %1841 = vmatmul.mubr.msk.bf16.vlgmr.msra.gmra.mxu1 %vm349_vm1, %v585_v38  ;;  %1773 = vmatprep.subr.bf16.mxu0 %v1937_v39 }
  0x55   :  { %1794 = vmatpush3.bf16.msra.mxu1 %v1936_v41  ;;  %1355 = vmatprep.mubr.bf16.mxu1 %v1059_v6 }
  0x56   :  { %1795 = vmatprep.subr.bf16.mxu1 %v1939_v42 }
  0x57   :  { %1774 = vmatpush3.bf16.msra.mxu0 %v1938_v43 }
  0x58   :  { %1775 = vmatprep.subr.bf16.mxu0 %v1941_v44  ;;  %v1522_v44 = vld [vmem:[%s2387_s2 + $0x1] sm:$0x1] }
  0x59   :  { %1796 = vmatpush3.bf16.msra.mxu1 %v1940_v45 }
  0x5a   :  { %1797 = vmatprep.subr.bf16.mxu1 %v1943_v46 }
  0x5b   :  { %1776 = vmatpush3.bf16.msra.mxu0 %v1942_v47 }
  0x5c   :  { %1777 = vmatprep.subr.bf16.mxu0 %v1945_v48 }
  0x5d   :  { %1798 = vmatpush3.bf16.msra.mxu1 %v1944_v49 }
  0x5e   :  { %1799 = vmatprep.subr.bf16.mxu1 %v1947_v50 }
  0x5f   :  { %1778 = vmatpush3.bf16.msra.mxu0 %v1946_v51 }
  0x60   :  { %1779 = vmatprep.subr.bf16.mxu0 %v1949_v52 }
  0x61   :  { %1800 = vmatpush3.bf16.msra.mxu1 %v1948_v53 }
  0x62   :  { %1801 = vmatprep.subr.bf16.mxu1 %v1951_v54 }
  0x63   :  { %1780 = vmatpush3.bf16.msra.mxu0 %v1950_v55 }
  0x64   :  { %1781 = vmatprep.subr.bf16.mxu0 %v1953_v56 }
  0x65   :  { %1802 = vmatpush3.bf16.msra.mxu1 %v1952_v57 }
  0x66   :  { %1803 = vmatprep.subr.bf16.mxu1 %v1955_v58 }
  0x67   :  { %1782 = vmatpush3.bf16.msra.mxu0 %v1954_v60 }
  0x68   :  { %1783 = vmatprep.subr.bf16.mxu0 %v1957_v62 }
  0x69   :  { %1804 = vmatpush3.bf16.msra.mxu1 %v1956_v63 }
  0x6a   :  { %1805 = vmatprep.subr.bf16.mxu1 %v1959_v1 }
  0x6b   :  { %1784 = vmatpush3.bf16.msra.mxu0 %v1958_v2 }
  0x6c   :  { %1785 = vmatprep.subr.bf16.mxu0 %v1961_v4 }
  0x6d   :  { %1806 = vmatpush3.bf16.msra.mxu1 %v1960_v5 }
  0x6e   :  { %1807 = vmatprep.subr.bf16.mxu1 %v1963_v7 }
  0x6f   :  { %1786 = vmatpush3.bf16.msra.mxu0 %v1962_v8 }
  0x70   :  { %1844 = vmatprep.subr.bf16.mxu0 %v1971_v40 }
  0x71   :  { %1808 = vmatpush3.bf16.msra.mxu1 %v1965_v10 }
  0x72   :  { %1316 = vmatmul.mubr.bf16.vlgmr.msra.gmra.mxu0 %v1043_v9 }
  0x73   :  { %1845 = vmatpush3.bf16.msra.mxu0 %v1966_v11  ;;  %1852 = vmatprep.mubr.msk.bf16.mxu0 %vm1972_vm0, %v1971_v40 }
  0x74   :  { %1356 = vmatmul.mubr.bf16.vlgmr.msra.gmra.mxu1 %v1058_v12  ;;  %1846 = vmatprep.subr.bf16.mxu0 %v1971_v40 }
  0x77   :  { %1847 = vmatpush3.bf16.msra.mxu0 %v1967_v13 }
  0x78   :  { %1848 = vmatprep.subr.bf16.mxu0 %v1971_v40 }
  0x7b   :  { %1849 = vmatpush3.bf16.msra.mxu0 %v1968_v15 }
  0x7c   :  { %1850 = vmatprep.subr.bf16.mxu0 %v1971_v40 }
  0x7f   :  { %1851 = vmatpush3.bf16.msra.mxu0 %v1969_v17 }
  0x82   :  { %1853 = vmatmul.mubr.msk.bf16.vlgmr.msra.gmra.mxu0 %vm349_vm1, %v1050_v18 }
  0xe2   :  { %v1689_v19 = vpop.f32.mrf.mxu0 }
  0xe4   :  { %v1690_v20 = vpop.f32.mrf.mxu0  ;;  %v1711_v21 = vpop.f32.mrf.mxu1 }
  0xe5   :  { %v1691_v26 = vadd.f32 %v1690_v20, %v1689_v19 }
  0xe6   :  { %v1692_v22 = vpop.f32.mrf.mxu0  ;;  %v1712_v23 = vpop.f32.mrf.mxu1 }
  0xe7   :  { %v388_v29 = vadd.f32 %v1691_v26, %v88_v27  ;;  %v1713_v40 = vadd.f32 %v1712_v23, %v1711_v21 }
  0xe8   :  { %v1693_v24 = vpop.f32.mrf.mxu0  ;;  %v1714_v25 = vpop.f32.mrf.mxu1 }
  0xe9   :  { %v428_v30 = vadd.f32 %v1713_v40, %v388_v29 }
  0xea   :  { %v1715_v28 = vpop.f32.mrf.mxu1 }
  0xf2   :  { %v467_v34 = vpop.f32.mrf.mxu0 }
  0xf3   :  { %v468_v31 = vadd.f32 %v467_v34, %v428_v30 }
  0xf4   :  { %v1830_v32 = vpop.f32.mrf.mxu0 }
  0xf5   :  { %vm473_vm2 = vcmp.ge.f32.partialorder %v468_v31, 0.0  ;;  %v474_v33 = vmul.f32 0.01, %v468_v31 }
  0xf6   :  { %v470_v35 = vpop.f32.mrf.mxu0 }
  0xf7   :  { %v475_v36 = vsel %vm473_vm2, %v468_v31, %v474_v33 }
  0xf8   :  { %477 = vst.msk [vmem:[%s2388_s3] sm:$0x1] %vm476_vm3, %v475_v36  ;;  %v1831_v37 = vpop.f32.mrf.mxu0 }
 0x104   :  { %v1738_v38 = vpop.f32.mrf.mxu1 }
 0x106   :  { %v1739_v39 = vpop.f32.mrf.mxu1 }
 0x107   :  { %v1740_v43 = vadd.f32 %v1739_v39, %v1738_v38 }
 0x108   :  { %v1741_v41 = vpop.f32.mrf.mxu1 }
 0x109   :  { %v853_v48 = vadd.f32 %v1740_v43, %v1522_v44 }
 0x10a   :  { %v1742_v42 = vpop.f32.mrf.mxu1 }
 0x112   :  { %v1760_v45 = vpop.f32.mrf.mxu0 }
 0x114   :  { %v1761_v46 = vpop.f32.mrf.mxu0  ;;  %v932_v47 = vpop.f32.mrf.mxu1 }
 0x115   :  { %v1762_v49 = vadd.f32 %v1761_v46, %v1760_v45 }
 0x116   :  { %v1763_v50 = vpop.f32.mrf.mxu0  ;;  %v1842_v51 = vpop.f32.mrf.mxu1 }
 0x117   :  { %v893_v52 = vadd.f32 %v1762_v49, %v853_v48 }
 0x118   :  { %v1764_v53 = vpop.f32.mrf.mxu0  ;;  %v935_v54 = vpop.f32.mrf.mxu1 }
 0x119   :  { %v933_v55 = vadd.f32 %v932_v47, %v893_v52 }
 0x11a   :  { %v1843_v56 = vpop.f32.mrf.mxu1 }
 0x11b   :  { %vm938_vm4 = vcmp.ge.f32.partialorder %v933_v55, 0.0  ;;  %v939_v57 = vmul.f32 0.01, %v933_v55 }
 0x11d   :  { %v940_v58 = vsel %vm938_vm4, %v933_v55, %v939_v57 }
 0x11e   :  { %1560 = vst.msk [vmem:[%s2388_s3 + $0x1] sm:$0x1] %vm476_vm3, %v940_v58 }
 0x132   :  { %v1787_v59 = vpop.f32.mrf.mxu0 }
 0x134   :  { %v1788_v60 = vpop.f32.mrf.mxu0  ;;  %v1809_v61 = vpop.f32.mrf.mxu1 }
 0x135   :  { %v1789_v2 = vadd.f32 %v1788_v60, %v1787_v59 }
 0x136   :  { %v1790_v62 = vpop.f32.mrf.mxu0  ;;  %v1810_v63 = vpop.f32.mrf.mxu1 }
 0x137   :  { %v1318_v5 = vadd.f32 %v1789_v2, %v1634_v3  ;;  %v1811_v6 = vadd.f32 %v1810_v63, %v1809_v61 }
 0x138   :  { %v1791_v0 = vpop.f32.mrf.mxu0  ;;  %v1812_v1 = vpop.f32.mrf.mxu1 }
 0x139   :  { %v1358_v7 = vadd.f32 %v1811_v6, %v1318_v5 }
 0x13a   :  { %v1813_v4 = vpop.f32.mrf.mxu1 }
 0x142   :  { %v1397_v8 = vpop.f32.mrf.mxu0 }
 0x143   :  { %v1398_v9 = vadd.f32 %v1397_v8, %v1358_v7 }
 0x144   :  { %v1854_v10 = vpop.f32.mrf.mxu0 }
 0x145   :  { %vm1403_vm5 = vcmp.ge.f32.partialorder %v1398_v9, 0.0  ;;  %v1404_v11 = vmul.f32 0.01, %v1398_v9 }
 0x146   :  { %v1400_v12 = vpop.f32.mrf.mxu0 }
 0x147   :  { %v1405_v13 = vsel %vm1403_vm5, %v1398_v9, %v1404_v11 }
 0x148   :  { %1672 = vst.msk [vmem:[%s2388_s3 + $0x2] sm:$0x1] %vm476_vm3, %v1405_v13  ;;  %v1855_v14 = vpop.f32.mrf.mxu0 }

// kernel: curlnet_forward.11
= control target key start
LH: loop header
LB: loop body
LE: loop exit
PB: predicated region body
PF: predicated region fallthrough
CT: control target
= control target key end

     0   :  { %v394_v0 = vmov 0.0   ;;  %vm395_vm0 = vmmov 0   ;;  %vm25_vm1 = vcmask 523264   ;;  %vm99_vm2 = vcmask 516096   ;;  %s548_s1 = inlined_call_operand.vmem [shape: f32[3,64,64], index: 1, kind: input, shape index: {}]   ;;  %s549_s0 = inlined_call_operand.vmem [shape: f32[3,1,64], index: 0, kind: input, shape index: {}]   ;;  %s550_s2 = inlined_call_operand.vmem [shape: f32[3,1,64], index: 2, kind: input, shape index: {}]   ;;  %s551_s3 = inlined_call_operand.vmem [shape: f32[3,1,64], index: 3, kind: output, shape index: {}]  }
   0x1   :  { %335 = vmatprep.subr.mxu0 %v394_v0  ;;  %v23_v1 = vld [vmem:[%s548_s1 + $0x38] sm:$0xff]  ;;  %v22_v2 = vld [vmem:[%s548_s1 + $0x30] sm:$0xff]  ;;  %354 = vmatprep.subr.mxu1 %v394_v0  ;;  %v21_v3 = vld [vmem:[%s548_s1 + $0x28] sm:$0xff] }
   0x2   :  { %336 = vmatpush3.msra.mxu0 %v23_v1  ;;  %351 = vmatprep.mubr.msk.f32.mxu0 %vm395_vm0, %v394_v0  ;;  %v292_v4 = vld [vmem:[%s548_s1 + $0x78] sm:$0xff]  ;;  %v291_v5 = vld [vmem:[%s548_s1 + $0x70] sm:$0xff]  ;;  %v20_v6 = vld [vmem:[%s548_s1 + $0x20] sm:$0xff] }
   0x3   :  { %337 = vmatprep.subr.mxu0 %v394_v0  ;;  %370 = vmatprep.mubr.msk.f32.mxu1 %vm395_vm0, %v394_v0  ;;  %v290_v7 = vld [vmem:[%s548_s1 + $0x68] sm:$0xff]  ;;  %v19_v8 = vld [vmem:[%s548_s1 + $0x18] sm:$0xff]  ;;  %v289_v9 = vld [vmem:[%s548_s1 + $0x60] sm:$0xff] }
   0x4   :  { %338 = vmatpush3.msra.mxu0 %v22_v2  ;;  %355 = vmatpush3.msra.mxu1 %v292_v4  ;;  %v18_v10 = vld [vmem:[%s548_s1 + $0x10] sm:$0xff]  ;;  %v288_v11 = vld [vmem:[%s548_s1 + $0x58] sm:$0xff]  ;;  %v17_v12 = vld [vmem:[%s548_s1 + $0x8] sm:$0xff] }
   0x5   :  { %339 = vmatprep.subr.mxu0 %v394_v0  ;;  %356 = vmatprep.subr.mxu1 %v394_v0  ;;  %v287_v13 = vld [vmem:[%s548_s1 + $0x50] sm:$0xff]  ;;  %v16_v14 = vld [vmem:[%s548_s1] sm:$0xff]  ;;  %v286_v15 = vld [vmem:[%s548_s1 + $0x48] sm:$0xff] }
   0x6   :  { %340 = vmatpush3.msra.mxu0 %v21_v3  ;;  %357 = vmatpush3.msra.mxu1 %v291_v5  ;;  %v14_v16 = vld [vmem:[%s549_s0] sm:$0x1]  ;;  %v304_v17 = vld [vmem:[%s548_s1 + $0xb8] sm:$0xff]  ;;  %v303_v19 = vld [vmem:[%s548_s1 + $0xb0] sm:$0xff] }
   0x7   :  { %341 = vmatprep.subr.mxu0 %v394_v0  ;;  %358 = vmatprep.subr.mxu1 %v394_v0  ;;  %v285_v18 = vld [vmem:[%s548_s1 + $0x40] sm:$0xff]  ;;  %v302_v21 = vld [vmem:[%s548_s1 + $0xa8] sm:$0xff]  ;;  %v300_v23 = vld [vmem:[%s548_s1 + $0x98] sm:$0xff] }
   0x8   :  { %342 = vmatpush3.msra.mxu0 %v20_v6  ;;  %359 = vmatpush3.msra.mxu1 %v290_v7  ;;  %v284_v20 = vld [vmem:[%s549_s0 + $0x1] sm:$0x1]  ;;  %v299_v24 = vld [vmem:[%s548_s1 + $0x90] sm:$0xff]  ;;  %v298_v25 = vld [vmem:[%s548_s1 + $0x88] sm:$0xff] }
   0x9   :  { %343 = vmatprep.subr.mxu0 %v394_v0  ;;  %360 = vmatprep.subr.mxu1 %v394_v0  ;;  %v301_v22 = vld [vmem:[%s548_s1 + $0xa0] sm:$0xff] }
   0xa   :  { %344 = vmatpush3.msra.mxu0 %v19_v8  ;;  %361 = vmatpush3.msra.mxu1 %v289_v9  ;;  %v297_v26 = vld [vmem:[%s548_s1 + $0x80] sm:$0xff] }
   0xb   :  { %345 = vmatprep.subr.mxu0 %v394_v0  ;;  %362 = vmatprep.subr.mxu1 %v394_v0  ;;  %v296_v27 = vld [vmem:[%s549_s0 + $0x2] sm:$0x1]  ;;  %v24_v28 = vld [vmem:[%s550_s2] sm:$0x1]  ;;  %v293_v31 = vld [vmem:[%s550_s2 + $0x1] sm:$0x1] }
   0xc   :  { %346 = vmatpush3.msra.mxu0 %v18_v10  ;;  %363 = vmatpush3.msra.mxu1 %v288_v11  ;;  %v305_v36 = vld [vmem:[%s550_s2 + $0x2] sm:$0x1] }
   0xd   :  { %347 = vmatprep.subr.mxu0 %v394_v0  ;;  %364 = vmatprep.subr.mxu1 %v394_v0 }
   0xe   :  { %348 = vmatpush3.msra.mxu0 %v17_v12  ;;  %365 = vmatpush3.msra.mxu1 %v287_v13 }
   0xf   :  { %349 = vmatprep.subr.mxu0 %v394_v0  ;;  %366 = vmatprep.subr.mxu1 %v394_v0 }
  0x10   :  { %350 = vmatpush3.msra.mxu0 %v16_v14  ;;  %367 = vmatpush3.msra.mxu1 %v286_v15 }
  0x11   :  { %352 = vmatmul.mubr.msk.f32.vlgmr.msra.gmra.mxu0 %vm25_vm1, %v14_v16  ;;  %373 = vmatprep.subr.mxu0 %v394_v0 }
  0x12   :  { %374 = vmatpush3.msra.mxu0 %v304_v17  ;;  %368 = vmatprep.subr.mxu1 %v394_v0 }
  0x13   :  { %375 = vmatprep.subr.mxu0 %v394_v0  ;;  %369 = vmatpush3.msra.mxu1 %v285_v18 }
  0x14   :  { %376 = vmatpush3.msra.mxu0 %v303_v19  ;;  %371 = vmatmul.mubr.msk.f32.vlgmr.msra.gmra.mxu1 %vm25_vm1, %v284_v20 }
  0x15   :  { %377 = vmatprep.subr.mxu0 %v394_v0  ;;  %389 = vmatprep.mubr.msk.f32.mxu0 %vm395_vm0, %v394_v0 }
  0x16   :  { %378 = vmatpush3.msra.mxu0 %v302_v21 }
  0x17   :  { %379 = vmatprep.subr.mxu0 %v394_v0 }
  0x18   :  { %380 = vmatpush3.msra.mxu0 %v301_v22 }
  0x19   :  { %381 = vmatprep.subr.mxu0 %v394_v0 }
  0x1a   :  { %382 = vmatpush3.msra.mxu0 %v300_v23 }
  0x1b   :  { %383 = vmatprep.subr.mxu0 %v394_v0 }
  0x1c   :  { %384 = vmatpush3.msra.mxu0 %v299_v24 }
  0x1d   :  { %385 = vmatprep.subr.mxu0 %v394_v0 }
  0x1e   :  { %386 = vmatpush3.msra.mxu0 %v298_v25 }
  0x1f   :  { %387 = vmatprep.subr.mxu0 %v394_v0 }
  0x20   :  { %388 = vmatpush3.msra.mxu0 %v297_v26 }
  0x21   :  { %390 = vmatmul.mubr.msk.f32.vlgmr.msra.gmra.mxu0 %vm25_vm1, %v296_v27 }
  0xd1   :  { %v95_v29 = vpop.f32.mrf.mxu0 }
  0xd2   :  { %v96_v30 = vadd.f32 %v95_v29, %v24_v28 }
  0xd3   :  { %v353_v32 = vpop.f32.mrf.mxu0 }
  0xd4   :  { %100 = vst.msk [vmem:[%s551_s3] sm:$0x1] %vm99_vm2, %v96_v30  ;;  %v184_v33 = vpop.f32.mrf.mxu1 }
  0xd5   :  { %v185_v34 = vadd.f32 %v293_v31, %v184_v33 }
  0xd6   :  { %v372_v35 = vpop.f32.mrf.mxu1 }
  0xd7   :  { %295 = vst.msk [vmem:[%s551_s3 + $0x1] sm:$0x1] %vm99_vm2, %v185_v34 }
  0xe1   :  { %v273_v37 = vpop.f32.mrf.mxu0 }
  0xe2   :  { %v274_v38 = vadd.f32 %v305_v36, %v273_v37 }
  0xe3   :  { %v391_v39 = vpop.f32.mrf.mxu0 }
  0xe4   :  { %307 = vst.msk [vmem:[%s551_s3 + $0x2] sm:$0x1] %vm99_vm2, %v274_v38 }

// kernel: curlnet_forward.9
= control target key start
LH: loop header
LB: loop body
LE: loop exit
PB: predicated region body
PF: predicated region fallthrough
CT: control target
= control target key end

     0   :  { %v4103_v22 = vmov 1966171168   ;;  %v94_v24 = vlaneseq  ;;  %v4104_v40 = vmov 0.0   ;;  %vm4105_vm0 = vmmov 0   ;;  %s5452_s1 = inlined_call_operand.vmem [shape: bf16[3,576,64], index: 1, kind: input, shape index: {}]   ;;  %s5453_s0 = inlined_call_operand.vmem [shape: bf16[12,1,576], index: 0, kind: input, shape index: {}]   ;;  %s5454_s2 = inlined_call_operand.vmem [shape: f32[3,1,64], index: 2, kind: input, shape index: {}]   ;;  %s5455_s3 = inlined_call_operand.vmem [shape: f32[3,1,64], index: 3, kind: output, shape index: {}]  }
   0x1   :  { %v4129_v0 = vld [vmem:[%s5452_s1 + $0x78] sm:$0xff]   ;;  %v4152_v4 = vld [vmem:[%s5452_s1 + $0x70] sm:$0xff]   ;;  %v4176_v8 = vld [vmem:[%s5452_s1 + $0x68] sm:$0xff]   ;;  %v92_v23 = vunpack.c.l.s4 %v4103_v22  ;;  %vm349_vm1 = vcmask 523264   ;;  %vm995_vm6 = vcmask 516096  }
   0x2   :  { %v4134_v1 = vld [vmem:[%s5452_s1 + $0xf8] sm:$0xff]   ;;  %3248 = vmatprep.subr.bf16.mxu0 %v4129_v0  ;;  %v4158_v5 = vld [vmem:[%s5452_s1 + $0xf0] sm:$0xff]   ;;  %v4182_v9 = vld [vmem:[%s5452_s1 + $0xe8] sm:$0xff]   ;;  %v95_v30 = vshrl.u32 %v94_v24, 7 }
   0x3   :  { %v4140_v2 = vld [vmem:[%s5452_s1 + $0x38] sm:$0xff]   ;;  %3270 = vmatprep.subr.bf16.mxu1 %v4134_v1  ;;  %v4164_v6 = vld [vmem:[%s5452_s1 + $0x30] sm:$0xff]   ;;  %v4188_v10 = vld [vmem:[%s5452_s1 + $0x28] sm:$0xff]   ;;  %v93_v29 = vunpack.c.0.s8 %v92_v23 }
   0x4   :  { %v4146_v3 = vld [vmem:[%s5452_s1 + $0xb8] sm:$0xff]   ;;  %3249 = vmatpush3.bf16.msra.mxu0 %v4140_v2  ;;  %v4170_v7 = vld [vmem:[%s5452_s1 + $0xb0] sm:$0xff]   ;;  %v4194_v11 = vld [vmem:[%s5452_s1 + $0xa8] sm:$0xff]  }
   0x5   :  { %3271 = vmatpush3.bf16.msra.mxu1 %v4146_v3  ;;  %3250 = vmatprep.subr.bf16.mxu0 %v4152_v4  ;;  %v4200_v12 = vld [vmem:[%s5452_s1 + $0x60] sm:$0xff]   ;;  %v4224_v16 = vld [vmem:[%s5452_s1 + $0x58] sm:$0xff]   ;;  %v4248_v20 = vld [vmem:[%s5452_s1 + $0x50] sm:$0xff]   ;;  %v4304_v35 = vsub.s32 %v93_v29, %v95_v30 }
   0x6   :  { %3272 = vmatprep.subr.bf16.mxu1 %v4158_v5  ;;  %v4206_v13 = vld [vmem:[%s5452_s1 + $0xe0] sm:$0xff]   ;;  %v4230_v17 = vld [vmem:[%s5452_s1 + $0xd8] sm:$0xff]   ;;  %v4254_v21 = vld [vmem:[%s5452_s1 + $0xd0] sm:$0xff]  }
   0x7   :  { %v4212_v14 = vld [vmem:[%s5452_s1 + $0x20] sm:$0xff]   ;;  %v4236_v18 = vld [vmem:[%s5452_s1 + $0x18] sm:$0xff]   ;;  %v4260_v25 = vld [vmem:[%s5452_s1 + $0x10] sm:$0xff]  }
   0x8   :  { %3251 = vmatpush3.bf16.msra.mxu0 %v4164_v6  ;;  %v4218_v15 = vld [vmem:[%s5452_s1 + $0xa0] sm:$0xff]   ;;  %v4242_v19 = vld [vmem:[%s5452_s1 + $0x98] sm:$0xff]   ;;  %v4266_v26 = vld [vmem:[%s5452_s1 + $0x90] sm:$0xff]  }
   0x9   :  { %3273 = vmatpush3.bf16.msra.mxu1 %v4170_v7  ;;  %3252 = vmatprep.subr.bf16.mxu0 %v4176_v8  ;;  %v4272_v27 = vld [vmem:[%s5452_s1 + $0x48] sm:$0xff]   ;;  %v4296_v33 = vld [vmem:[%s5452_s1 + $0x40] sm:$0xff]   ;;  %v4336_v45 = vld [vmem:[%s5452_s1 + $0x118] sm:$0xff]  }
   0xa   :  { %3274 = vmatprep.subr.bf16.mxu1 %v4182_v9  ;;  %v4278_v28 = vld [vmem:[%s5452_s1 + $0xc8] sm:$0xff]   ;;  %v4302_v34 = vld [vmem:[%s5452_s1 + $0xc0] sm:$0xff]   ;;  %v4344_v50 = vld [vmem:[%s5452_s1 + $0x110] sm:$0xff]  }
   0xb   :  { %v4284_v31 = vld [vmem:[%s5452_s1 + $0x8] sm:$0xff]   ;;  %v4310_v36 = vld [vmem:[%s5452_s1] sm:$0xff]  }
   0xc   :  { %3253 = vmatpush3.bf16.msra.mxu0 %v4188_v10  ;;  %v4290_v32 = vld [vmem:[%s5452_s1 + $0x88] sm:$0xff]   ;;  %v4316_v37 = vld [vmem:[%s5452_s1 + $0x80] sm:$0xff]  }
   0xd   :  { %3275 = vmatpush3.bf16.msra.mxu1 %v4194_v11  ;;  %3254 = vmatprep.subr.bf16.mxu0 %v4200_v12  ;;  %v88_v38 = vld [vmem:[%s5453_s0] sm:$0x1f]  ;;  %v4330_v43 = vld [vmem:[%s5453_s0 + $0x5] sm:$0x1f]  ;;  %v4395_v59 = vld [vmem:[%s5453_s0 + $0xa] sm:$0x1f] }
   0xe   :  { %3276 = vmatprep.subr.bf16.mxu1 %v4206_v13  ;;  %v97_v39 = vrot.slane %v88_v38, %v4304_v35  ;;  %v486_v47 = vrot.slane %v4330_v43, %v4304_v35  ;;  %v90_v52 = vcombine.high %v88_v38, %v88_v38  ;;  %v4356_v53 = vld [vmem:[%s5452_s1 + $0x108] sm:$0xff]   ;;  %v4366_v55 = vld [vmem:[%s5452_s1 + $0x100] sm:$0xff]   ;;  %v659_v60 = vrot.slane %v4395_v59, %v4304_v35 }
   0xf   :  { %v479_v61 = vcombine.high %v4330_v43, %v4330_v43  ;;  %v4448_v30 = vld [vmem:[%s5453_s0 + $0xf] sm:$0x1f] }
  0x10   :  { %3255 = vmatpush3.bf16.msra.mxu0 %v4212_v14  ;;  %v105_v41 = vcombine.high %v97_v39, %v97_v39  ;;  %v112_v42 = vrot.slane %v97_v39, %v4304_v35  ;;  %v494_v49 = vcombine.high %v486_v47, %v486_v47  ;;  %v104_v54 = vrot.slane %v90_v52, %v4304_v35  ;;  %v4694_v52 = vld [vmem:[%s5453_s0 + $0x19] sm:$0x1f] }
  0x11   :  { %3277 = vmatpush3.bf16.msra.mxu1 %v4218_v15  ;;  %3256 = vmatprep.subr.bf16.mxu0 %v4224_v16  ;;  %v501_v58 = vrot.slane %v486_v47, %v4304_v35  ;;  %v667_v62 = vcombine.high %v659_v60, %v659_v60  ;;  %v493_v63 = vrot.slane %v479_v61, %v4304_v35  ;;  %v4665_v47 = vld [vmem:[%s5452_s1 + $0x1f0] sm:$0xff]  }
  0x12   :  { %3278 = vmatprep.subr.bf16.mxu1 %v4230_v17  ;;  %v126_v44 = vrot.slane %v105_v41, %v4304_v35  ;;  %v127_v46 = vcombine.high %v112_v42, %v112_v42  ;;  %v515_v51 = vrot.slane %v494_v49, %v4304_v35  ;;  %v119_v56 = vrot.slane %v104_v54, %v4304_v35  ;;  %v4677_v49 = vld [vmem:[%s5452_s1 + $0x168] sm:$0xff]   ;;  %v4706_v54 = vld [vmem:[%s5452_s1 + $0x160] sm:$0xff]  }
  0x13   :  { %v688_v22 = vrot.slane %v667_v62, %v4304_v35  ;;  %v516_v23 = vcombine.high %v501_v58, %v501_v58  ;;  %v508_v24 = vrot.slane %v493_v63, %v4304_v35  ;;  %v832_v38 = vrot.slane %v4448_v30, %v4304_v35  ;;  %v4742_v62 = vld [vmem:[%s5452_s1 + $0x238] sm:$0xff]  }
  0x14   :  { %3257 = vmatpush3.bf16.msra.mxu0 %v4236_v18  ;;  %385 = vmatprep.mubr.bf16.mxu0 %v126_v44  ;;  %v128_v48 = vcombine.high %v126_v44, %v126_v44  ;;  %v517_v57 = vcombine.high %v515_v51, %v515_v51  ;;  %v674_v39 = vrot.slane %v659_v60, %v4304_v35  ;;  %v4735_v60 = vld [vmem:[%s5452_s1 + $0x1a0] sm:$0xff]  }
  0x15   :  { %3279 = vmatpush3.bf16.msra.mxu1 %v4242_v19  ;;  %3258 = vmatprep.subr.bf16.mxu0 %v4248_v20  ;;  %v690_v29 = vcombine.high %v688_v22, %v688_v22  ;;  %v840_v41 = vcombine.high %v832_v38, %v832_v38  ;;  %v652_v44 = vcombine.high %v4395_v59, %v4395_v59 }
  0x16   :  { %3280 = vmatprep.subr.bf16.mxu1 %v4254_v21  ;;  %425 = vmatprep.mubr.bf16.mxu1 %v128_v48  ;;  %v4671_v48 = vld [vmem:[%s5452_s1 + $0x130] sm:$0xff]  }
  0x17   :  { %v861_v43 = vrot.slane %v840_v41, %v4304_v35 }
  0x18   :  { %3259 = vmatpush3.bf16.msra.mxu0 %v4260_v25 }
  0x19   :  { %3281 = vmatpush3.bf16.msra.mxu1 %v4266_v26  ;;  %3260 = vmatprep.subr.bf16.mxu0 %v4272_v27 }
  0x1a   :  { %3282 = vmatprep.subr.bf16.mxu1 %v4278_v28 }
  0x1c   :  { %3261 = vmatpush3.bf16.msra.mxu0 %v4284_v31 }
  0x1d   :  { %3283 = vmatpush3.bf16.msra.mxu1 %v4290_v32  ;;  %3262 = vmatprep.subr.bf16.mxu0 %v4296_v33 }
  0x1e   :  { %3284 = vmatprep.subr.bf16.mxu1 %v4302_v34 }
  0x20   :  { %3263 = vmatpush3.bf16.msra.mxu0 %v4310_v36 }
  0x21   :  { %3285 = vmatpush3.bf16.msra.mxu1 %v4316_v37  ;;  %3836 = vmatprep.subr.bf16.mxu0 %v4104_v40 }
  0x22   :  { %3297 = vmatprep.subr.bf16.mxu1 %v4129_v0 }
  0x23   :  { %386 = vmatmul.mubr.bf16.vlgmr.msra.gmra.mxu0 %v112_v42  ;;  %v689_v42 = vcombine.high %v674_v39, %v674_v39 }
  0x24   :  { %3837 = vmatpush3.bf16.msra.mxu0 %v4336_v45  ;;  %426 = vmatmul.mubr.bf16.vlgmr.msra.gmra.mxu1 %v127_v46  ;;  %v4659_v46 = vld [vmem:[%s5452_s1 + $0x1b8] sm:$0xff]  }
  0x25   :  { %3838 = vmatprep.subr.bf16.mxu0 %v4104_v40  ;;  %3298 = vmatpush3.bf16.msra.mxu1 %v4140_v2 }
  0x26   :  { %3844 = vmatprep.mubr.msk.bf16.mxu0 %vm4105_vm0, %v4104_v40  ;;  %3299 = vmatprep.subr.bf16.mxu1 %v4152_v4 }
  0x27   :  { %557 = vmatprep.mubr.bf16.mxu1 %v515_v51  ;;  %v4689_v51 = vld [vmem:[%s5452_s1 + $0x1e8] sm:$0xff]  }
  0x28   :  { %3839 = vmatpush3.bf16.msra.mxu0 %v4344_v50 }
  0x29   :  { %3840 = vmatprep.subr.bf16.mxu0 %v4104_v40  ;;  %3300 = vmatpush3.bf16.msra.mxu1 %v4164_v6 }
  0x2a   :  { %3301 = vmatprep.subr.bf16.mxu1 %v4176_v8 }
  0x2c   :  { %3841 = vmatpush3.bf16.msra.mxu0 %v4356_v53 }
  0x2d   :  { %3842 = vmatprep.subr.bf16.mxu0 %v4104_v40  ;;  %3302 = vmatpush3.bf16.msra.mxu1 %v4188_v10 }
  0x2e   :  { %3303 = vmatprep.subr.bf16.mxu1 %v4200_v12 }
  0x30   :  { %3843 = vmatpush3.bf16.msra.mxu0 %v4366_v55 }
  0x31   :  { %3319 = vmatprep.subr.bf16.mxu0 %v4134_v1  ;;  %3304 = vmatpush3.bf16.msra.mxu1 %v4212_v14 }
  0x32   :  { %3305 = vmatprep.subr.bf16.mxu1 %v4224_v16 }
  0x33   :  { %3845 = vmatmul.mubr.msk.bf16.vlgmr.msra.gmra.mxu0 %vm349_vm1, %v119_v56  ;;  %v1470_v56 = vrot.slane %v4694_v52, %v4304_v35 }
  0x34   :  { %3320 = vmatpush3.bf16.msra.mxu0 %v4146_v3  ;;  %597 = vmatprep.mubr.bf16.mxu0 %v517_v57  ;;  %v4720_v57 = vld [vmem:[%s5452_s1 + $0x1e0] sm:$0xff]  }
  0x35   :  { %3321 = vmatprep.subr.bf16.mxu0 %v4158_v5  ;;  %3306 = vmatpush3.bf16.msra.mxu1 %v4236_v18  ;;  %v1478_v61 = vcombine.high %v1470_v56, %v1470_v56 }
  0x36   :  { %3307 = vmatprep.subr.bf16.mxu1 %v4248_v20 }
  0x38   :  { %3322 = vmatpush3.bf16.msra.mxu0 %v4170_v7 }
  0x39   :  { %3323 = vmatprep.subr.bf16.mxu0 %v4182_v9  ;;  %3308 = vmatpush3.bf16.msra.mxu1 %v4260_v25 }
  0x3a   :  { %3309 = vmatprep.subr.bf16.mxu1 %v4272_v27 }
  0x3c   :  { %3324 = vmatpush3.bf16.msra.mxu0 %v4194_v11 }
  0x3d   :  { %3325 = vmatprep.subr.bf16.mxu0 %v4206_v13  ;;  %3310 = vmatpush3.bf16.msra.mxu1 %v4284_v31 }
  0x3e   :  { %3311 = vmatprep.subr.bf16.mxu1 %v4296_v33 }
  0x40   :  { %3326 = vmatpush3.bf16.msra.mxu0 %v4218_v15 }
  0x41   :  { %3327 = vmatprep.subr.bf16.mxu0 %v4230_v17  ;;  %3312 = vmatpush3.bf16.msra.mxu1 %v4310_v36 }
  0x42   :  { %3848 = vmatprep.subr.bf16.mxu1 %v4104_v40 }
  0x44   :  { %3328 = vmatpush3.bf16.msra.mxu0 %v4242_v19  ;;  %558 = vmatmul.mubr.bf16.vlgmr.msra.gmra.mxu1 %v501_v58  ;;  %v4726_v58 = vld [vmem:[%s5452_s1 + $0x120] sm:$0xff]  }
  0x45   :  { %3329 = vmatprep.subr.bf16.mxu0 %v4254_v21  ;;  %3849 = vmatpush3.bf16.msra.mxu1 %v4336_v45 }
  0x46   :  { %3856 = vmatprep.mubr.msk.bf16.mxu1 %vm4105_vm0, %v4104_v40  ;;  %3850 = vmatprep.subr.bf16.mxu1 %v4104_v40 }
  0x48   :  { %3330 = vmatpush3.bf16.msra.mxu0 %v4266_v26 }
  0x49   :  { %3331 = vmatprep.subr.bf16.mxu0 %v4278_v28  ;;  %3851 = vmatpush3.bf16.msra.mxu1 %v4344_v50 }
  0x4a   :  { %3852 = vmatprep.subr.bf16.mxu1 %v4104_v40 }
  0x4c   :  { %3332 = vmatpush3.bf16.msra.mxu0 %v4290_v32 }
  0x4d   :  { %3333 = vmatprep.subr.bf16.mxu0 %v4302_v34  ;;  %3853 = vmatpush3.bf16.msra.mxu1 %v4356_v53 }
  0x4e   :  { %3854 = vmatprep.subr.bf16.mxu1 %v4104_v40 }
  0x50   :  { %3334 = vmatpush3.bf16.msra.mxu0 %v4316_v37 }
  0x51   :  { %3346 = vmatprep.subr.bf16.mxu0 %v4129_v0  ;;  %3855 = vmatpush3.bf16.msra.mxu1 %v4366_v55 }
  0x52   :  { %3368 = vmatprep.subr.bf16.mxu1 %v4134_v1 }
  0x53   :  { %598 = vmatmul.mubr.bf16.vlgmr.msra.gmra.mxu0 %v516_v23  ;;  %v4752_v23 = vld [vmem:[%s5452_s1 + $0x230] sm:$0xff]  }
  0x54   :  { %3347 = vmatpush3.bf16.msra.mxu0 %v4140_v2  ;;  %730 = vmatprep.mubr.bf16.mxu0 %v688_v22  ;;  %v1499_v22 = vrot.slane %v1478_v61, %v4304_v35 }
  0x55   :  { %3857 = vmatmul.mubr.msk.bf16.vlgmr.msra.gmra.mxu1 %vm349_vm1, %v508_v24  ;;  %3348 = vmatprep.subr.bf16.mxu0 %v4152_v4 }
  0x56   :  { %3369 = vmatpush3.bf16.msra.mxu1 %v4146_v3  ;;  %770 = vmatprep.mubr.bf16.mxu1 %v690_v29  ;;  %v4765_v29 = vld [vmem:[%s5452_s1 + $0x228] sm:$0xff]   ;;  %v1501_v41 = vcombine.high %v1499_v22, %v1499_v22 }
  0x57   :  { %3370 = vmatprep.subr.bf16.mxu1 %v4158_v5 }
  0x58   :  { %3349 = vmatpush3.bf16.msra.mxu0 %v4164_v6 }
  0x59   :  { %3350 = vmatprep.subr.bf16.mxu0 %v4176_v8 }
  0x5a   :  { %3371 = vmatpush3.bf16.msra.mxu1 %v4170_v7 }
  0x5b   :  { %3372 = vmatprep.subr.bf16.mxu1 %v4182_v9 }
  0x5c   :  { %3351 = vmatpush3.bf16.msra.mxu0 %v4188_v10 }
  0x5d   :  { %3352 = vmatprep.subr.bf16.mxu0 %v4200_v12 }
  0x5e   :  { %3373 = vmatpush3.bf16.msra.mxu1 %v4194_v11 }
  0x5f   :  { %3374 = vmatprep.subr.bf16.mxu1 %v4206_v13 }
  0x60   :  { %3353 = vmatpush3.bf16.msra.mxu0 %v4212_v14 }
  0x61   :  { %3354 = vmatprep.subr.bf16.mxu0 %v4224_v16 }
  0x62   :  { %3375 = vmatpush3.bf16.msra.mxu1 %v4218_v15 }
  0x63   :  { %3376 = vmatprep.subr.bf16.mxu1 %v4230_v17 }
  0x64   :  { %3355 = vmatpush3.bf16.msra.mxu0 %v4236_v18 }
  0x65   :  { %3356 = vmatprep.subr.bf16.mxu0 %v4248_v20 }
  0x66   :  { %3377 = vmatpush3.bf16.msra.mxu1 %v4242_v19 }
  0x67   :  { %3378 = vmatprep.subr.bf16.mxu1 %v4254_v21 }
  0x68   :  { %3357 = vmatpush3.bf16.msra.mxu0 %v4260_v25 }
  0x69   :  { %3358 = vmatprep.subr.bf16.mxu0 %v4272_v27 }
  0x6a   :  { %3379 = vmatpush3.bf16.msra.mxu1 %v4266_v26 }
  0x6b   :  { %3380 = vmatprep.subr.bf16.mxu1 %v4278_v28 }
  0x6c   :  { %3359 = vmatpush3.bf16.msra.mxu0 %v4284_v31 }
  0x6d   :  { %3360 = vmatprep.subr.bf16.mxu0 %v4296_v33 }
  0x6e   :  { %3381 = vmatpush3.bf16.msra.mxu1 %v4290_v32 }
  0x6f   :  { %3382 = vmatprep.subr.bf16.mxu1 %v4302_v34 }
  0x70   :  { %3361 = vmatpush3.bf16.msra.mxu0 %v4310_v36 }
  0x71   :  { %3860 = vmatprep.subr.bf16.mxu0 %v4104_v40 }
  0x72   :  { %3383 = vmatpush3.bf16.msra.mxu1 %v4316_v37 }
  0x73   :  { %731 = vmatmul.mubr.bf16.vlgmr.msra.gmra.mxu0 %v674_v39  ;;  %3395 = vmatprep.subr.bf16.mxu1 %v4129_v0  ;;  %v666_v0 = vrot.slane %v652_v44, %v4304_v35  ;;  %v4806_v44 = vld [vmem:[%s5453_s0 + $0x1e] sm:$0x1f] }
  0x74   :  { %3861 = vmatpush3.bf16.msra.mxu0 %v4336_v45  ;;  %3868 = vmatprep.mubr.msk.bf16.mxu0 %vm4105_vm0, %v4104_v40 }
  0x75   :  { %771 = vmatmul.mubr.bf16.vlgmr.msra.gmra.mxu1 %v689_v42  ;;  %3862 = vmatprep.subr.bf16.mxu0 %v4104_v40  ;;  %v1485_v42 = vrot.slane %v1470_v56, %v4304_v35 }
  0x76   :  { %3396 = vmatpush3.bf16.msra.mxu1 %v4140_v2  ;;  %903 = vmatprep.mubr.bf16.mxu1 %v861_v43  ;;  %v681_v2 = vrot.slane %v666_v0, %v4304_v35 }
  0x77   :  { %3397 = vmatprep.subr.bf16.mxu1 %v4152_v4  ;;  %v863_v4 = vcombine.high %v861_v43, %v861_v43 }
  0x78   :  { %3863 = vmatpush3.bf16.msra.mxu0 %v4344_v50 }
  0x79   :  { %3864 = vmatprep.subr.bf16.mxu0 %v4104_v40 }
  0x7a   :  { %3398 = vmatpush3.bf16.msra.mxu1 %v4164_v6  ;;  %v825_v6 = vcombine.high %v4448_v30, %v4448_v30 }
  0x7b   :  { %3399 = vmatprep.subr.bf16.mxu1 %v4176_v8 }
  0x7c   :  { %3865 = vmatpush3.bf16.msra.mxu0 %v4356_v53  ;;  %v839_v8 = vrot.slane %v825_v6, %v4304_v35 }
  0x7d   :  { %3866 = vmatprep.subr.bf16.mxu0 %v4104_v40 }
  0x7e   :  { %3400 = vmatpush3.bf16.msra.mxu1 %v4188_v10 }
  0x7f   :  { %3401 = vmatprep.subr.bf16.mxu1 %v4200_v12  ;;  %v4543_v12 = vld [vmem:[%s5452_s1 + $0x218] sm:$0xff]  }
  0x80   :  { %3867 = vmatpush3.bf16.msra.mxu0 %v4366_v55 }
  0x81   :  { %3417 = vmatprep.subr.bf16.mxu0 %v4134_v1  ;;  %v847_v1 = vrot.slane %v832_v38, %v4304_v35  ;;  %v4775_v38 = vld [vmem:[%s5452_s1 + $0x220] sm:$0xff]  }
  0x82   :  { %3402 = vmatpush3.bf16.msra.mxu1 %v4212_v14  ;;  %v854_v14 = vrot.slane %v839_v8, %v4304_v35 }
  0x83   :  { %3869 = vmatmul.mubr.msk.bf16.vlgmr.msra.gmra.mxu0 %vm349_vm1, %v681_v2  ;;  %3403 = vmatprep.subr.bf16.mxu1 %v4224_v16  ;;  %v4562_v16 = vld [vmem:[%s5452_s1 + $0x1d8] sm:$0xff]   ;;  %v4812_v2 = vld [vmem:[%s5454_s2] sm:$0x1] }
  0x84   :  { %3418 = vmatpush3.bf16.msra.mxu0 %v4146_v3  ;;  %943 = vmatprep.mubr.bf16.mxu0 %v863_v4  ;;  %v4509_v3 = vld [vmem:[%s5453_s0 + $0x14] sm:$0x1f] }
  0x85   :  { %3419 = vmatprep.subr.bf16.mxu0 %v4158_v5  ;;  %v4518_v5 = vrot.slane %v4509_v3, %v4304_v35  ;;  %v1075_v24 = vcombine.high %v4509_v3, %v4509_v3  ;;  %v4820_v3 = vrot.slane %v4806_v44, %v4304_v35 }
  0x86   :  { %3404 = vmatpush3.bf16.msra.mxu1 %v4236_v18  ;;  %v4568_v18 = vld [vmem:[%s5452_s1 + $0x210] sm:$0xff]  }
  0x87   :  { %3405 = vmatprep.subr.bf16.mxu1 %v4248_v20  ;;  %v4581_v20 = vld [vmem:[%s5452_s1 + $0x188] sm:$0xff]   ;;  %v1097_v59 = vrot.slane %v4518_v5, %v4304_v35  ;;  %v1089_v30 = vrot.slane %v1075_v24, %v4304_v35  ;;  %v1651_v56 = vcombine.high %v4820_v3, %v4820_v3 }
  0x88   :  { %3420 = vmatpush3.bf16.msra.mxu0 %v4170_v7  ;;  %v1090_v7 = vcombine.high %v4518_v5, %v4518_v5 }
  0x89   :  { %3421 = vmatprep.subr.bf16.mxu0 %v4182_v9  ;;  %v4535_v9 = vld [vmem:[%s5452_s1 + $0x198] sm:$0xff]   ;;  %v1112_v63 = vcombine.high %v1097_v59, %v1097_v59  ;;  %v1104_v39 = vrot.slane %v1089_v30, %v4304_v35 }
  0x8a   :  { %3406 = vmatpush3.bf16.msra.mxu1 %v4260_v25  ;;  %v1111_v10 = vrot.slane %v1090_v7, %v4304_v35  ;;  %v4593_v25 = vld [vmem:[%s5452_s1 + $0x208] sm:$0xff]  }
  0x8b   :  { %3407 = vmatprep.subr.bf16.mxu1 %v4272_v27  ;;  %v4605_v27 = vld [vmem:[%s5452_s1 + $0x180] sm:$0xff]  }
  0x8c   :  { %3422 = vmatpush3.bf16.msra.mxu0 %v4194_v11  ;;  %v862_v11 = vcombine.high %v847_v1, %v847_v1 }
  0x8d   :  { %3423 = vmatprep.subr.bf16.mxu0 %v4206_v13  ;;  %v4549_v13 = vld [vmem:[%s5452_s1 + $0x158] sm:$0xff]  }
  0x8e   :  { %3408 = vmatpush3.bf16.msra.mxu1 %v4284_v31  ;;  %v4617_v31 = vld [vmem:[%s5452_s1 + $0x200] sm:$0xff]  }
  0x8f   :  { %3409 = vmatprep.subr.bf16.mxu1 %v4296_v33  ;;  %v4629_v33 = vld [vmem:[%s5452_s1 + $0x178] sm:$0xff]  }
  0x90   :  { %3424 = vmatpush3.bf16.msra.mxu0 %v4218_v15  ;;  %v4556_v15 = vld [vmem:[%s5452_s1 + $0x190] sm:$0xff]  }
  0x91   :  { %3425 = vmatprep.subr.bf16.mxu0 %v4230_v17  ;;  %v1113_v17 = vcombine.high %v1111_v10, %v1111_v10 }
  0x92   :  { %3410 = vmatpush3.bf16.msra.mxu1 %v4310_v36  ;;  %v4641_v36 = vld [vmem:[%s5452_s1 + $0x1f8] sm:$0xff]  }
  0x93   :  { %3872 = vmatprep.subr.bf16.mxu1 %v4104_v40 }
  0x94   :  { %3426 = vmatpush3.bf16.msra.mxu0 %v4242_v19  ;;  %v4574_v19 = vld [vmem:[%s5452_s1 + $0x150] sm:$0xff]  }
  0x95   :  { %904 = vmatmul.mubr.bf16.vlgmr.msra.gmra.mxu1 %v847_v1  ;;  %3427 = vmatprep.subr.bf16.mxu0 %v4254_v21  ;;  %v4587_v21 = vld [vmem:[%s5452_s1 + $0x1d0] sm:$0xff]  }
  0x96   :  { %3873 = vmatpush3.bf16.msra.mxu1 %v4336_v45  ;;  %3880 = vmatprep.mubr.msk.bf16.mxu1 %vm4105_vm0, %v4104_v40  ;;  %v4653_v45 = vld [vmem:[%s5452_s1 + $0x170] sm:$0xff]  }
  0x97   :  { %3874 = vmatprep.subr.bf16.mxu1 %v4104_v40 }
  0x98   :  { %3428 = vmatpush3.bf16.msra.mxu0 %v4266_v26  ;;  %v4599_v26 = vld [vmem:[%s5452_s1 + $0x148] sm:$0xff]  }
  0x99   :  { %3429 = vmatprep.subr.bf16.mxu0 %v4278_v28  ;;  %v4611_v28 = vld [vmem:[%s5452_s1 + $0x1c8] sm:$0xff]  }
  0x9a   :  { %3875 = vmatpush3.bf16.msra.mxu1 %v4344_v50  ;;  %v4683_v50 = vld [vmem:[%s5452_s1 + $0x1b0] sm:$0xff]  }
  0x9b   :  { %3876 = vmatprep.subr.bf16.mxu1 %v4104_v40 }
  0x9c   :  { %3430 = vmatpush3.bf16.msra.mxu0 %v4290_v32  ;;  %v4623_v32 = vld [vmem:[%s5452_s1 + $0x140] sm:$0xff]  }
  0x9d   :  { %3431 = vmatprep.subr.bf16.mxu0 %v4302_v34  ;;  %v4635_v34 = vld [vmem:[%s5452_s1 + $0x1c0] sm:$0xff]  }
  0x9e   :  { %3877 = vmatpush3.bf16.msra.mxu1 %v4356_v53  ;;  %v4700_v53 = vld [vmem:[%s5452_s1 + $0x128] sm:$0xff]  }
  0x9f   :  { %3878 = vmatprep.subr.bf16.mxu1 %v4104_v40 }
  0xa0   :  { %3432 = vmatpush3.bf16.msra.mxu0 %v4316_v37  ;;  %v4647_v37 = vld [vmem:[%s5452_s1 + $0x138] sm:$0xff]  }
  0xa1   :  { %3444 = vmatprep.subr.bf16.mxu0 %v4535_v9 }
  0xa2   :  { %3879 = vmatpush3.bf16.msra.mxu1 %v4366_v55  ;;  %v4712_v55 = vld [vmem:[%s5452_s1 + $0x1a8] sm:$0xff]  }
  0xa3   :  { %944 = vmatmul.mubr.bf16.vlgmr.msra.gmra.mxu0 %v862_v11  ;;  %3466 = vmatprep.subr.bf16.mxu1 %v4543_v12 }
  0xa4   :  { %3445 = vmatpush3.bf16.msra.mxu0 %v4549_v13  ;;  %1369 = vmatprep.mubr.bf16.mxu0 %v1111_v10  ;;  %v1463_v10 = vcombine.high %v4694_v52, %v4694_v52  ;;  %v1672_v52 = vrot.slane %v1651_v56, %v4304_v35 }
  0xa5   :  { %3881 = vmatmul.mubr.msk.bf16.vlgmr.msra.gmra.mxu1 %vm349_vm1, %v854_v14  ;;  %3446 = vmatprep.subr.bf16.mxu0 %v4556_v15 }
  0xa6   :  { %3467 = vmatpush3.bf16.msra.mxu1 %v4562_v16  ;;  %1409 = vmatprep.mubr.bf16.mxu1 %v1113_v17  ;;  %v1477_v61 = vrot.slane %v1463_v10, %v4304_v35  ;;  %v1674_v24 = vcombine.high %v1672_v52, %v1672_v52  ;;  %v1658_v10 = vrot.slane %v4820_v3, %v4304_v35 }
  0xa7   :  { %3468 = vmatprep.subr.bf16.mxu1 %v4568_v18 }
  0xa8   :  { %3447 = vmatpush3.bf16.msra.mxu0 %v4574_v19 }
  0xa9   :  { %3448 = vmatprep.subr.bf16.mxu0 %v4581_v20 }
  0xaa   :  { %3469 = vmatpush3.bf16.msra.mxu1 %v4587_v21 }
  0xab   :  { %3470 = vmatprep.subr.bf16.mxu1 %v4593_v25 }
  0xac   :  { %3449 = vmatpush3.bf16.msra.mxu0 %v4599_v26 }
  0xad   :  { %3450 = vmatprep.subr.bf16.mxu0 %v4605_v27 }
  0xae   :  { %3471 = vmatpush3.bf16.msra.mxu1 %v4611_v28 }
  0xaf   :  { %3472 = vmatprep.subr.bf16.mxu1 %v4617_v31 }
  0xb0   :  { %3451 = vmatpush3.bf16.msra.mxu0 %v4623_v32 }
  0xb1   :  { %3452 = vmatprep.subr.bf16.mxu0 %v4629_v33 }
  0xb2   :  { %3473 = vmatpush3.bf16.msra.mxu1 %v4635_v34 }
  0xb3   :  { %3474 = vmatprep.subr.bf16.mxu1 %v4641_v36 }
  0xb4   :  { %3453 = vmatpush3.bf16.msra.mxu0 %v4647_v37 }
  0xb5   :  { %3454 = vmatprep.subr.bf16.mxu0 %v4653_v45 }
  0xb6   :  { %3475 = vmatpush3.bf16.msra.mxu1 %v4659_v46 }
  0xb7   :  { %3476 = vmatprep.subr.bf16.mxu1 %v4665_v47 }
  0xb8   :  { %3455 = vmatpush3.bf16.msra.mxu0 %v4671_v48 }
  0xb9   :  { %3456 = vmatprep.subr.bf16.mxu0 %v4677_v49 }
  0xba   :  { %3477 = vmatpush3.bf16.msra.mxu1 %v4683_v50 }
  0xbb   :  { %3478 = vmatprep.subr.bf16.mxu1 %v4689_v51 }
  0xbc   :  { %3457 = vmatpush3.bf16.msra.mxu0 %v4700_v53 }
  0xbd   :  { %3458 = vmatprep.subr.bf16.mxu0 %v4706_v54 }
  0xbe   :  { %3479 = vmatpush3.bf16.msra.mxu1 %v4712_v55 }
  0xbf   :  { %3480 = vmatprep.subr.bf16.mxu1 %v4720_v57 }
  0xc0   :  { %3459 = vmatpush3.bf16.msra.mxu0 %v4726_v58 }
  0xc1   :  { %3884 = vmatprep.subr.bf16.mxu0 %v4104_v40 }
  0xc2   :  { %3481 = vmatpush3.bf16.msra.mxu1 %v4735_v60 }
  0xc3   :  { %1370 = vmatmul.mubr.bf16.vlgmr.msra.gmra.mxu0 %v1097_v59  ;;  %3493 = vmatprep.subr.bf16.mxu1 %v4535_v9 }
  0xc4   :  { %3885 = vmatpush3.bf16.msra.mxu0 %v4742_v62  ;;  %3892 = vmatprep.mubr.msk.bf16.mxu0 %vm4105_vm0, %v4104_v40 }
  0xc5   :  { %1410 = vmatmul.mubr.bf16.vlgmr.msra.gmra.mxu1 %v1112_v63  ;;  %3886 = vmatprep.subr.bf16.mxu0 %v4104_v40  ;;  %v1500_v63 = vcombine.high %v1485_v42, %v1485_v42 }
  0xc6   :  { %3494 = vmatpush3.bf16.msra.mxu1 %v4549_v13  ;;  %1541 = vmatprep.mubr.bf16.mxu1 %v1499_v22  ;;  %v1492_v22 = vrot.slane %v1477_v61, %v4304_v35 }
  0xc7   :  { %3495 = vmatprep.subr.bf16.mxu1 %v4556_v15 }
  0xc8   :  { %3887 = vmatpush3.bf16.msra.mxu0 %v4752_v23 }
  0xc9   :  { %3888 = vmatprep.subr.bf16.mxu0 %v4104_v40 }
  0xca   :  { %3496 = vmatpush3.bf16.msra.mxu1 %v4574_v19 }
  0xcb   :  { %3497 = vmatprep.subr.bf16.mxu1 %v4581_v20 }
  0xcc   :  { %3889 = vmatpush3.bf16.msra.mxu0 %v4765_v29 }
  0xcd   :  { %3890 = vmatprep.subr.bf16.mxu0 %v4104_v40 }
  0xce   :  { %3498 = vmatpush3.bf16.msra.mxu1 %v4599_v26 }
  0xcf   :  { %3499 = vmatprep.subr.bf16.mxu1 %v4605_v27 }
  0xd0   :  { %3891 = vmatpush3.bf16.msra.mxu0 %v4775_v38 }
  0xd1   :  { %3515 = vmatprep.subr.bf16.mxu0 %v4543_v12 }
  0xd2   :  { %3500 = vmatpush3.bf16.msra.mxu1 %v4623_v32 }
  0xd3   :  { %3893 = vmatmul.mubr.msk.bf16.vlgmr.msra.gmra.mxu0 %vm349_vm1, %v1104_v39  ;;  %3501 = vmatprep.subr.bf16.mxu1 %v4629_v33 }
  0xd4   :  { %3516 = vmatpush3.bf16.msra.mxu0 %v4562_v16  ;;  %1581 = vmatprep.mubr.bf16.mxu0 %v1501_v41 }
  0xd5   :  { %3517 = vmatprep.subr.bf16.mxu0 %v4568_v18 }
  0xd6   :  { %3502 = vmatpush3.bf16.msra.mxu1 %v4647_v37 }
  0xd7   :  { %3503 = vmatprep.subr.bf16.mxu1 %v4653_v45 }
  0xd8   :  { %3518 = vmatpush3.bf16.msra.mxu0 %v4587_v21 }
  0xd9   :  { %3519 = vmatprep.subr.bf16.mxu0 %v4593_v25 }
  0xda   :  { %3504 = vmatpush3.bf16.msra.mxu1 %v4671_v48 }
  0xdb   :  { %3505 = vmatprep.subr.bf16.mxu1 %v4677_v49 }
  0xdc   :  { %3520 = vmatpush3.bf16.msra.mxu0 %v4611_v28 }
  0xdd   :  { %3521 = vmatprep.subr.bf16.mxu0 %v4617_v31 }
  0xde   :  { %3506 = vmatpush3.bf16.msra.mxu1 %v4700_v53 }
  0xdf   :  { %3507 = vmatprep.subr.bf16.mxu1 %v4706_v54 }
  0xe0   :  { %3522 = vmatpush3.bf16.msra.mxu0 %v4635_v34 }
  0xe1   :  { %3523 = vmatprep.subr.bf16.mxu0 %v4641_v36 }
  0xe2   :  { %3508 = vmatpush3.bf16.msra.mxu1 %v4726_v58 }
  0xe3   :  { %v3264_v43 = vpop.f32.mrf.mxu0  ;;  %3896 = vmatprep.subr.bf16.mxu1 %v4104_v40 }
  0xe4   :  { %3524 = vmatpush3.bf16.msra.mxu0 %v4659_v46  ;;  %v3286_v0 = vpop.f32.mrf.mxu1 }
  0xe5   :  { %1542 = vmatmul.mubr.bf16.vlgmr.msra.gmra.mxu1 %v1485_v42  ;;  %v3265_v4 = vpop.f32.mrf.mxu0  ;;  %3525 = vmatprep.subr.bf16.mxu0 %v4665_v47 }
  0xe6   :  { %3897 = vmatpush3.bf16.msra.mxu1 %v4742_v62  ;;  %v3266_v1 = vadd.f32 %v3265_v4, %v3264_v43  ;;  %3904 = vmatprep.mubr.msk.bf16.mxu1 %vm4105_vm0, %v4104_v40  ;;  %v3287_v5 = vpop.f32.mrf.mxu1 }
  0xe7   :  { %v3267_v6 = vpop.f32.mrf.mxu0  ;;  %3898 = vmatprep.subr.bf16.mxu1 %v4104_v40  ;;  %v3288_v8 = vadd.f32 %v3287_v5, %v3286_v0 }
  0xe8   :  { %v388_v7 = vadd.f32 %v3266_v1, %v4812_v2  ;;  %3526 = vmatpush3.bf16.msra.mxu0 %v4683_v50  ;;  %v3289_v11 = vpop.f32.mrf.mxu1  ;;  %v4869_v1 = vld [vmem:[%s5453_s0 + $0x23] sm:$0x1f] }
  0xe9   :  { %v3268_v14 = vpop.f32.mrf.mxu0  ;;  %3527 = vmatprep.subr.bf16.mxu0 %v4689_v51 }
  0xea   :  { %3899 = vmatpush3.bf16.msra.mxu1 %v4752_v23  ;;  %v428_v17 = vadd.f32 %v3288_v8, %v388_v7  ;;  %v3290_v59 = vpop.f32.mrf.mxu1  ;;  %v4876_v7 = vrot.slane %v4869_v1, %v4304_v35  ;;  %v1673_v14 = vcombine.high %v1658_v10, %v1658_v10 }
  0xeb   :  { %3900 = vmatprep.subr.bf16.mxu1 %v4104_v40 }
  0xec   :  { %3528 = vmatpush3.bf16.msra.mxu0 %v4712_v55  ;;  %v1824_v11 = vcombine.high %v4876_v7, %v4876_v7 }
  0xed   :  { %3529 = vmatprep.subr.bf16.mxu0 %v4720_v57 }
  0xee   :  { %3901 = vmatpush3.bf16.msra.mxu1 %v4765_v29 }
  0xef   :  { %3902 = vmatprep.subr.bf16.mxu1 %v4104_v40 }
  0xf0   :  { %3530 = vmatpush3.bf16.msra.mxu0 %v4735_v60 }
  0xf1   :  { %3542 = vmatprep.subr.bf16.mxu0 %v4535_v9 }
  0xf2   :  { %3903 = vmatpush3.bf16.msra.mxu1 %v4775_v38 }
  0xf3   :  { %v467_v30 = vpop.f32.mrf.mxu0  ;;  %1582 = vmatmul.mubr.bf16.vlgmr.msra.gmra.mxu0 %v1500_v63  ;;  %3564 = vmatprep.subr.bf16.mxu1 %v4543_v12  ;;  %v1636_v63 = vcombine.high %v4806_v44, %v4806_v44 }
  0xf4   :  { %v4843_v39 = vadd.f32 %v467_v30, %v428_v17  ;;  %3543 = vmatpush3.bf16.msra.mxu0 %v4549_v13  ;;  %1714 = vmatprep.mubr.bf16.mxu0 %v1672_v52  ;;  %v1845_v17 = vrot.slane %v1824_v11, %v4304_v35  ;;  %v5076_v11 = vld [vmem:[%s5452_s1 + $0x298] sm:$0xff]  }
  0xf5   :  { %3905 = vmatmul.mubr.msk.bf16.vlgmr.msra.gmra.mxu1 %vm349_vm1, %v1492_v22  ;;  %v3846_v41 = vpop.f32.mrf.mxu0  ;;  %3544 = vmatprep.subr.bf16.mxu0 %v4556_v15 }
  0xf6   :  { %3565 = vmatpush3.bf16.msra.mxu1 %v4562_v16  ;;  %1754 = vmatprep.mubr.bf16.mxu1 %v1674_v24  ;;  %vm473_vm2 = vcmp.ge.f32.partialorder %v4843_v39, 0.0 }
  0xf7   :  { %v470_v42 = vpop.f32.mrf.mxu0  ;;  %3566 = vmatprep.subr.bf16.mxu1 %v4568_v18 }
  0xf8   :  { %3545 = vmatpush3.bf16.msra.mxu0 %v4574_v19  ;;  %v474_v42 = vmul.f32 0.01, %v4843_v39 }
  0xf9   :  { %v3847_v43 = vpop.f32.mrf.mxu0  ;;  %3546 = vmatprep.subr.bf16.mxu0 %v4581_v20 }
  0xfa   :  { %3567 = vmatpush3.bf16.msra.mxu1 %v4587_v21 }
  0xfb   :  { %3568 = vmatprep.subr.bf16.mxu1 %v4593_v25 }
  0xfc   :  { %3547 = vmatpush3.bf16.msra.mxu0 %v4599_v26 }
  0xfd   :  { %3548 = vmatprep.subr.bf16.mxu0 %v4605_v27 }
  0xfe   :  { %3569 = vmatpush3.bf16.msra.mxu1 %v4611_v28 }
  0xff   :  { %3570 = vmatprep.subr.bf16.mxu1 %v4617_v31 }
 0x100   :  { %3549 = vmatpush3.bf16.msra.mxu0 %v4623_v32 }
 0x101   :  { %3550 = vmatprep.subr.bf16.mxu0 %v4629_v33 }
 0x102   :  { %3571 = vmatpush3.bf16.msra.mxu1 %v4635_v34 }
 0x103   :  { %3572 = vmatprep.subr.bf16.mxu1 %v4641_v36 }
 0x104   :  { %3551 = vmatpush3.bf16.msra.mxu0 %v4647_v37  ;;  %v3313_v0 = vpop.f32.mrf.mxu1 }
 0x105   :  { %3552 = vmatprep.subr.bf16.mxu0 %v4653_v45 }
 0x106   :  { %3573 = vmatpush3.bf16.msra.mxu1 %v4659_v46  ;;  %v3314_v4 = vpop.f32.mrf.mxu1 }
 0x107   :  { %3574 = vmatprep.subr.bf16.mxu1 %v4665_v47  ;;  %v3315_v5 = vadd.f32 %v3314_v4, %v3313_v0  ;;  %v4911_v0 = vsel %vm473_vm2, %v4843_v39, %v474_v42  ;;  %v5046_v39 = vld [vmem:[%s5452_s1 + $0x268] sm:$0xff]  }
 0x108   :  { %3553 = vmatpush3.bf16.msra.mxu0 %v4671_v48  ;;  %v3316_v6 = vpop.f32.mrf.mxu1 }
 0x109   :  { %3554 = vmatprep.subr.bf16.mxu0 %v4677_v49  ;;  %v560_v61 = vadd.f32 %v3315_v5, %v4812_v2  ;;  %v1847_v5 = vcombine.high %v1845_v17, %v1845_v17  ;;  %v5052_v6 = vld [vmem:[%s5452_s1 + $0x2a0] sm:$0xff]  }
 0x10a   :  { %3575 = vmatpush3.bf16.msra.mxu1 %v4683_v50  ;;  %v3317_v8 = vpop.f32.mrf.mxu1 }
 0x10b   :  { %3576 = vmatprep.subr.bf16.mxu1 %v4689_v51  ;;  %v5064_v8 = vld [vmem:[%s5452_s1 + $0x320] sm:$0xff]  }
 0x10c   :  { %3555 = vmatpush3.bf16.msra.mxu0 %v4700_v53 }
 0x10d   :  { %3556 = vmatprep.subr.bf16.mxu0 %v4706_v54 }
 0x10e   :  { %3577 = vmatpush3.bf16.msra.mxu1 %v4712_v55 }
 0x10f   :  { %3578 = vmatprep.subr.bf16.mxu1 %v4720_v57 }
 0x110   :  { %3557 = vmatpush3.bf16.msra.mxu0 %v4726_v58 }
 0x111   :  { %3908 = vmatprep.subr.bf16.mxu0 %v4104_v40 }
 0x112   :  { %3579 = vmatpush3.bf16.msra.mxu1 %v4735_v60 }
 0x113   :  { %v3335_v56 = vpop.f32.mrf.mxu0  ;;  %1715 = vmatmul.mubr.bf16.vlgmr.msra.gmra.mxu0 %v1658_v10  ;;  %3591 = vmatprep.subr.bf16.mxu1 %v4535_v9  ;;  %v5070_v10 = vld [vmem:[%s5452_s1 + $0x260] sm:$0xff]  }
 0x114   :  { %3909 = vmatpush3.bf16.msra.mxu0 %v4742_v62  ;;  %3916 = vmatprep.mubr.msk.bf16.mxu0 %vm4105_vm0, %v4104_v40 }
 0x115   :  { %v639_v3 = vpop.f32.mrf.mxu1  ;;  %1755 = vmatmul.mubr.bf16.vlgmr.msra.gmra.mxu1 %v1673_v14  ;;  %v3336_v59 = vpop.f32.mrf.mxu0  ;;  %3910 = vmatprep.subr.bf16.mxu0 %v4104_v40  ;;  %v5082_v14 = vld [vmem:[%s5452_s1 + $0x2e0] sm:$0xff]  }
 0x116   :  { %3592 = vmatpush3.bf16.msra.mxu1 %v4549_v13  ;;  %v3337_v52 = vadd.f32 %v3336_v59, %v3335_v56  ;;  %1887 = vmatprep.mubr.bf16.mxu1 %v1845_v17  ;;  %v1650_v13 = vrot.slane %v1636_v63, %v4304_v35  ;;  %v5088_v17 = vld [vmem:[%s5452_s1 + $0x318] sm:$0xff]  }
 0x117   :  { %v3858_v9 = vpop.f32.mrf.mxu1  ;;  %v3338_v22 = vpop.f32.mrf.mxu0  ;;  %3593 = vmatprep.subr.bf16.mxu1 %v4556_v15  ;;  %v5094_v56 = vld [vmem:[%s5452_s1 + $0x258] sm:$0xff]  }
 0x118   :  { %v600_v24 = vadd.f32 %v3337_v52, %v560_v61  ;;  %3911 = vmatpush3.bf16.msra.mxu0 %v4752_v23  ;;  %v5106_v59 = vld [vmem:[%s5452_s1 + $0x2d8] sm:$0xff]   ;;  %v5112_v61 = vld [vmem:[%s5452_s1 + $0x310] sm:$0xff]   ;;  %v5124_v9 = vld [vmem:[%s5452_s1 + $0x288] sm:$0xff]  }
 0x119   :  { %v642_v30 = vpop.f32.mrf.mxu1  ;;  %v3339_v41 = vpop.f32.mrf.mxu0  ;;  %3912 = vmatprep.subr.bf16.mxu0 %v4104_v40  ;;  %v5118_v52 = vld [vmem:[%s5452_s1 + $0x250] sm:$0xff]  }
 0x11a   :  { %v640_v43 = vadd.f32 %v639_v3, %v600_v24  ;;  %3594 = vmatpush3.bf16.msra.mxu1 %v4574_v19  ;;  %v1665_v19 = vrot.slane %v1650_v13, %v4304_v35  ;;  %v5100_v3 = vld [vmem:[%s5452_s1 + $0x290] sm:$0xff]   ;;  %v5136_v30 = vld [vmem:[%s5452_s1 + $0x308] sm:$0xff]  }
 0x11b   :  { %v3859_v44 = vpop.f32.mrf.mxu1  ;;  %3595 = vmatprep.subr.bf16.mxu1 %v4581_v20  ;;  %v5130_v22 = vld [vmem:[%s5452_s1 + $0x2d0] sm:$0xff]  }
 0x11c   :  { %vm645_vm3 = vcmp.ge.f32.partialorder %v640_v43, 0.0  ;;  %v646_v15 = vmul.f32 0.01, %v640_v43  ;;  %3913 = vmatpush3.bf16.msra.mxu0 %v4765_v29  ;;  %v5141_v41 = vld [vmem:[%s5453_s0 + $0x2d] sm:$0x1f]  ;;  %v5155_v44 = vld [vmem:[%s5452_s1 + $0x280] sm:$0xff]  }
 0x11d   :  { %3914 = vmatprep.subr.bf16.mxu0 %v4104_v40 }
 0x11e   :  { %3596 = vmatpush3.bf16.msra.mxu1 %v4599_v26  ;;  %v4914_v4 = vsel %vm645_vm3, %v640_v43, %v646_v15  ;;  %v5149_v43 = vld [vmem:[%s5452_s1 + $0x248] sm:$0xff]  }
 0x11f   :  { %3597 = vmatprep.subr.bf16.mxu1 %v4605_v27  ;;  %v648_v20 = vmax.f32 %v4911_v0, %v4914_v4  ;;  %v5161_v15 = vld [vmem:[%s5452_s1 + $0x2c8] sm:$0xff]  }
 0x120   :  { %3915 = vmatpush3.bf16.msra.mxu0 %v4775_v38 }
 0x121   :  { %3613 = vmatprep.subr.bf16.mxu0 %v4543_v12  ;;  %v1831_v12 = vrot.slane %v4876_v7, %v4304_v35  ;;  %v5058_v7 = vld [vmem:[%s5452_s1 + $0x2e8] sm:$0xff]  }
 0x122   :  { %3598 = vmatpush3.bf16.msra.mxu1 %v4623_v32 }
 0x123   :  { %3917 = vmatmul.mubr.msk.bf16.vlgmr.msra.gmra.mxu0 %vm349_vm1, %v1665_v19  ;;  %3599 = vmatprep.subr.bf16.mxu1 %v4629_v33  ;;  %v5165_v19 = vrot.slane %v5141_v41, %v4304_v35 }
 0x124   :  { %3614 = vmatpush3.bf16.msra.mxu0 %v4562_v16  ;;  %1927 = vmatprep.mubr.bf16.mxu0 %v1847_v5 }
 0x125   :  { %3615 = vmatprep.subr.bf16.mxu0 %v4568_v18  ;;  %v4948_v18 = vld [vmem:[%s5453_s0 + $0x28] sm:$0x1f]  ;;  %v2469_v0 = vrot.slane %v5165_v19, %v4304_v35 }
 0x126   :  { %3600 = vmatpush3.bf16.msra.mxu1 %v4647_v37  ;;  %v4961_v26 = vrot.slane %v4948_v18, %v4304_v35 }
 0x127   :  { %3601 = vmatprep.subr.bf16.mxu1 %v4653_v45  ;;  %v4980_v45 = vld [vmem:[%s5452_s1 + $0x2b8] sm:$0xff]  }
 0x128   :  { %3616 = vmatpush3.bf16.msra.mxu0 %v4587_v21 }
 0x129   :  { %3617 = vmatprep.subr.bf16.mxu0 %v4593_v25 }
 0x12a   :  { %3602 = vmatpush3.bf16.msra.mxu1 %v4671_v48  ;;  %v4988_v48 = vld [vmem:[%s5452_s1 + $0x338] sm:$0xff]  }
 0x12b   :  { %3603 = vmatprep.subr.bf16.mxu1 %v4677_v49  ;;  %v4994_v49 = vld [vmem:[%s5452_s1 + $0x278] sm:$0xff]  }
 0x12c   :  { %3618 = vmatpush3.bf16.msra.mxu0 %v4611_v28 }
 0x12d   :  { %3619 = vmatprep.subr.bf16.mxu0 %v4617_v31  ;;  %v1809_v31 = vcombine.high %v4869_v1, %v4869_v1 }
 0x12e   :  { %3604 = vmatpush3.bf16.msra.mxu1 %v4700_v53  ;;  %v5007_v53 = vld [vmem:[%s5452_s1 + $0x2f8] sm:$0xff]  }
 0x12f   :  { %3605 = vmatprep.subr.bf16.mxu1 %v4706_v54  ;;  %v1823_v37 = vrot.slane %v1809_v31, %v4304_v35  ;;  %v2081_v31 = vrot.slane %v4961_v26, %v4304_v35 }
 0x130   :  { %3620 = vmatpush3.bf16.msra.mxu0 %v4635_v34  ;;  %v2074_v34 = vcombine.high %v4961_v26, %v4961_v26 }
 0x131   :  { %3621 = vmatprep.subr.bf16.mxu0 %v4641_v36  ;;  %v2096_v26 = vcombine.high %v2081_v31, %v2081_v31 }
 0x132   :  { %3606 = vmatpush3.bf16.msra.mxu1 %v4726_v58  ;;  %v5021_v58 = vld [vmem:[%s5452_s1 + $0x270] sm:$0xff]  }
 0x133   :  { %v4942_v16 = vpop.f32.mrf.mxu0  ;;  %3920 = vmatprep.subr.bf16.mxu1 %v4104_v40 }
 0x134   :  { %3622 = vmatpush3.bf16.msra.mxu0 %v4659_v46  ;;  %v2095_v46 = vrot.slane %v2074_v34, %v4304_v35 }
 0x135   :  { %v4951_v21 = vpop.f32.mrf.mxu1  ;;  %1888 = vmatmul.mubr.bf16.vlgmr.msra.gmra.mxu1 %v1831_v12  ;;  %v4953_v25 = vpop.f32.mrf.mxu0  ;;  %3623 = vmatprep.subr.bf16.mxu0 %v4665_v47  ;;  %v1846_v47 = vcombine.high %v1831_v12, %v1831_v12  ;;  %v5171_v12 = vld [vmem:[%s5452_s1 + $0x300] sm:$0xff]  }
 0x136   :  { %3921 = vmatpush3.bf16.msra.mxu1 %v4742_v62  ;;  %3928 = vmatprep.mubr.msk.bf16.mxu1 %vm4105_vm0, %v4104_v40  ;;  %v2097_v54 = vcombine.high %v2095_v46, %v2095_v46  ;;  %v5028_v62 = vld [vmem:[%s5452_s1 + $0x2a8] sm:$0xff]   ;;  %v3364_v42 = vadd.f32 %v4953_v25, %v4942_v16 }
 0x137   :  { %v4963_v27 = vpop.f32.mrf.mxu1  ;;  %v3365_v28 = vpop.f32.mrf.mxu0  ;;  %3922 = vmatprep.subr.bf16.mxu1 %v4104_v40 }
 0x138   :  { %3624 = vmatpush3.bf16.msra.mxu0 %v4683_v50  ;;  %v1838_v50 = vrot.slane %v1823_v37, %v4304_v35  ;;  %v733_v16 = vadd.f32 %v3364_v42, %v4812_v2  ;;  %v3386_v25 = vadd.f32 %v4963_v27, %v4951_v21  ;;  %v5180_v28 = vld [vmem:[%s5452_s1 + $0x240] sm:$0xff]   ;;  %v2462_v21 = vcombine.high %v5165_v19, %v5165_v19 }
 0x139   :  { %v3387_v32 = vpop.f32.mrf.mxu1  ;;  %v3366_v33 = vpop.f32.mrf.mxu0  ;;  %3625 = vmatprep.subr.bf16.mxu0 %v4689_v51  ;;  %v5001_v51 = vld [vmem:[%s5452_s1 + $0x2b0] sm:$0xff]  }
 0x13a   :  { %3923 = vmatpush3.bf16.msra.mxu1 %v4752_v23  ;;  %v5034_v23 = vld [vmem:[%s5452_s1 + $0x2f0] sm:$0xff]   ;;  %v5189_v32 = vld [vmem:[%s5452_s1 + $0x2c0] sm:$0xff]   ;;  %v773_v27 = vadd.f32 %v3386_v25, %v733_v16  ;;  %v5198_v33 = vld [vmem:[%s5452_s1 + $0x358] sm:$0xff]   ;;  %v2483_v37 = vrot.slane %v2462_v21, %v4304_v35 }
 0x13b   :  { %v3388_v36 = vpop.f32.mrf.mxu1  ;;  %3924 = vmatprep.subr.bf16.mxu1 %v4104_v40 }
 0x13c   :  { %3626 = vmatpush3.bf16.msra.mxu0 %v4712_v55 }
 0x13d   :  { %3627 = vmatprep.subr.bf16.mxu0 %v4720_v57  ;;  %v5015_v57 = vld [vmem:[%s5452_s1 + $0x330] sm:$0xff]  }
 0x13e   :  { %3925 = vmatpush3.bf16.msra.mxu1 %v4765_v29 }
 0x13f   :  { %3926 = vmatprep.subr.bf16.mxu1 %v4104_v40 }
 0x140   :  { %3628 = vmatpush3.bf16.msra.mxu0 %v4735_v60 }
 0x141   :  { %3640 = vmatprep.subr.bf16.mxu0 %v4980_v45 }
 0x142   :  { %3927 = vmatpush3.bf16.msra.mxu1 %v4775_v38  ;;  %v5040_v38 = vld [vmem:[%s5452_s1 + $0x328] sm:$0xff]  }
 0x143   :  { %v5009_v55 = vpop.f32.mrf.mxu0  ;;  %1928 = vmatmul.mubr.bf16.vlgmr.msra.gmra.mxu0 %v1846_v47  ;;  %3662 = vmatprep.subr.bf16.mxu1 %v4988_v48  ;;  %v5209_v47 = vld [vmem:[%s5452_s1 + $0x350] sm:$0xff]  }
 0x144   :  { %3641 = vmatpush3.bf16.msra.mxu0 %v4994_v49  ;;  %2353 = vmatprep.mubr.bf16.mxu0 %v2095_v46  ;;  %v813_v34 = vadd.f32 %v5009_v55, %v773_v27  ;;  %v5233_v27 = vld [vmem:[%s5452_s1 + $0x340] sm:$0xff]  }
 0x145   :  { %3929 = vmatmul.mubr.msk.bf16.vlgmr.msra.gmra.mxu1 %vm349_vm1, %v1838_v50  ;;  %v3870_v60 = vpop.f32.mrf.mxu0  ;;  %3642 = vmatprep.subr.bf16.mxu0 %v5001_v51 }
 0x146   :  { %3663 = vmatpush3.bf16.msra.mxu1 %v5007_v53  ;;  %2393 = vmatprep.mubr.bf16.mxu1 %v2097_v54  ;;  %v819_v55 = vmul.f32 0.01, %v813_v34  ;;  %vm818_vm4 = vcmp.ge.f32.partialorder %v813_v34, 0.0 }
 0x147   :  { %v815_v29 = vpop.f32.mrf.mxu0  ;;  %3664 = vmatprep.subr.bf16.mxu1 %v5015_v57 }
 0x148   :  { %3643 = vmatpush3.bf16.msra.mxu0 %v5021_v58  ;;  %v820_v16 = vsel %vm818_vm4, %v813_v34, %v819_v55 }
 0x149   :  { %v3871_v1 = vpop.f32.mrf.mxu0  ;;  %3644 = vmatprep.subr.bf16.mxu0 %v5028_v62 }
 0x14a   :  { %3665 = vmatpush3.bf16.msra.mxu1 %v5034_v23  ;;  %v2059_v1 = vcombine.high %v4948_v18, %v4948_v18 }
 0x14b   :  { %3666 = vmatprep.subr.bf16.mxu1 %v5040_v38 }
 0x14c   :  { %3645 = vmatpush3.bf16.msra.mxu0 %v5046_v39  ;;  %v2073_v18 = vrot.slane %v2059_v1, %v4304_v35 }
 0x14d   :  { %3646 = vmatprep.subr.bf16.mxu0 %v5052_v6 }
 0x14e   :  { %3667 = vmatpush3.bf16.msra.mxu1 %v5058_v7 }
 0x14f   :  { %3668 = vmatprep.subr.bf16.mxu1 %v5064_v8 }
 0x150   :  { %3647 = vmatpush3.bf16.msra.mxu0 %v5070_v10 }
 0x151   :  { %3648 = vmatprep.subr.bf16.mxu0 %v5076_v11 }
 0x152   :  { %3669 = vmatpush3.bf16.msra.mxu1 %v5082_v14 }
 0x153   :  { %3670 = vmatprep.subr.bf16.mxu1 %v5088_v17 }
 0x154   :  { %3649 = vmatpush3.bf16.msra.mxu0 %v5094_v56 }
 0x155   :  { %v3411_v63 = vpop.f32.mrf.mxu1  ;;  %3650 = vmatprep.subr.bf16.mxu0 %v5100_v3 }
 0x156   :  { %3671 = vmatpush3.bf16.msra.mxu1 %v5106_v59 }
 0x157   :  { %v3412_v24 = vpop.f32.mrf.mxu1  ;;  %3672 = vmatprep.subr.bf16.mxu1 %v5112_v61 }
 0x158   :  { %3651 = vmatpush3.bf16.msra.mxu0 %v5118_v52  ;;  %v3413_v36 = vadd.f32 %v3412_v24, %v3411_v63 }
 0x159   :  { %v3414_v13 = vpop.f32.mrf.mxu1  ;;  %3652 = vmatprep.subr.bf16.mxu0 %v5124_v9 }
 0x15a   :  { %3673 = vmatpush3.bf16.msra.mxu1 %v5130_v22  ;;  %v906_v60 = vadd.f32 %v3413_v36, %v4812_v2  ;;  %v5223_v13 = vld [vmem:[%s5452_s1 + $0x348] sm:$0xff]  }
 0x15b   :  { %v3415_v5 = vpop.f32.mrf.mxu1  ;;  %3674 = vmatprep.subr.bf16.mxu1 %v5136_v30 }
 0x15c   :  { %3653 = vmatpush3.bf16.msra.mxu0 %v5149_v43 }
 0x15d   :  { %3654 = vmatprep.subr.bf16.mxu0 %v5155_v44 }
 0x15e   :  { %3675 = vmatpush3.bf16.msra.mxu1 %v5161_v15 }
 0x15f   :  { %3676 = vmatprep.subr.bf16.mxu1 %v5171_v12 }
 0x160   :  { %3655 = vmatpush3.bf16.msra.mxu0 %v5180_v28 }
 0x161   :  { %3932 = vmatprep.subr.bf16.mxu0 %v4104_v40 }
 0x162   :  { %3677 = vmatpush3.bf16.msra.mxu1 %v5189_v32 }
 0x163   :  { %v3433_v46 = vpop.f32.mrf.mxu0  ;;  %2354 = vmatmul.mubr.bf16.vlgmr.msra.gmra.mxu0 %v2081_v31  ;;  %3689 = vmatprep.subr.bf16.mxu1 %v4980_v45 }
 0x164   :  { %3933 = vmatpush3.bf16.msra.mxu0 %v5198_v33  ;;  %3940 = vmatprep.mubr.msk.bf16.mxu0 %vm4105_vm0, %v4104_v40 }
 0x165   :  { %v985_v50 = vpop.f32.mrf.mxu1  ;;  %2394 = vmatmul.mubr.bf16.vlgmr.msra.gmra.mxu1 %v2096_v26  ;;  %v3434_v54 = vpop.f32.mrf.mxu0  ;;  %3934 = vmatprep.subr.bf16.mxu0 %v4104_v40  ;;  %v821_v26 = vmax.f32 %v648_v20, %v820_v16  ;;  %v5272_v20 = vld [vmem:[%s5453_s0 + $0x32] sm:$0x1f] }
 0x166   :  { %3690 = vmatpush3.bf16.msra.mxu1 %v4994_v49  ;;  %v3435_v29 = vadd.f32 %v3434_v54, %v3433_v46  ;;  %2525 = vmatprep.mubr.bf16.mxu1 %v2483_v37  ;;  %v2088_v46 = vrot.slane %v2073_v18, %v4304_v35  ;;  %v5278_v54 = vld [vmem:[%s5454_s2 + $0x1] sm:$0x1] }
 0x167   :  { %v3882_v63 = vpop.f32.mrf.mxu1  ;;  %v3436_v24 = vpop.f32.mrf.mxu0  ;;  %3691 = vmatprep.subr.bf16.mxu1 %v5001_v51 }
 0x168   :  { %v946_v42 = vadd.f32 %v3435_v29, %v906_v60  ;;  %3935 = vmatpush3.bf16.msra.mxu0 %v5209_v47  ;;  %v5286_v60 = vrot.slane %v5272_v20, %v4304_v35 }
 0x169   :  { %v988_v2 = vpop.f32.mrf.mxu1  ;;  %v3437_v5 = vpop.f32.mrf.mxu0  ;;  %3936 = vmatprep.subr.bf16.mxu0 %v4104_v40 }
 0x16a   :  { %v986_v25 = vadd.f32 %v985_v50, %v946_v42  ;;  %3692 = vmatpush3.bf16.msra.mxu1 %v5021_v58  ;;  %v2485_v50 = vcombine.high %v2483_v37, %v2483_v37  ;;  %v2447_v42 = vcombine.high %v5141_v41, %v5141_v41 }
 0x16b   :  { %v3883_v31 = vpop.f32.mrf.mxu1  ;;  %3693 = vmatprep.subr.bf16.mxu1 %v5028_v62 }
 0x16c   :  { %vm991_vm5 = vcmp.ge.f32.partialorder %v986_v25, 0.0  ;;  %v992_v21 = vmul.f32 0.01, %v986_v25  ;;  %3937 = vmatpush3.bf16.msra.mxu0 %v5223_v13  ;;  %v2461_v31 = vrot.slane %v2447_v42, %v4304_v35  ;;  %v2642_v42 = vrot.slane %v5286_v60, %v4304_v35 }
 0x16d   :  { %3938 = vmatprep.subr.bf16.mxu0 %v4104_v40 }
 0x16e   :  { %v993_v34 = vsel %vm991_vm5, %v986_v25, %v992_v21  ;;  %3694 = vmatpush3.bf16.msra.mxu1 %v5046_v39  ;;  %v2635_v25 = vcombine.high %v5286_v60, %v5286_v60  ;;  %v2484_v21 = vcombine.high %v2469_v0, %v2469_v0 }
 0x16f   :  { %v994_v36 = vmax.f32 %v821_v26, %v993_v34  ;;  %3695 = vmatprep.subr.bf16.mxu1 %v5052_v6  ;;  %v2476_v26 = vrot.slane %v2461_v31, %v4304_v35 }
 0x170   :  { %3939 = vmatpush3.bf16.msra.mxu0 %v5233_v27  ;;  %v2656_v41 = vrot.slane %v2635_v25, %v4304_v35 }
 0x171   :  { %996 = vst.msk [vmem:[%s5455_s3] sm:$0x1] %vm995_vm6, %v994_v36  ;;  %3711 = vmatprep.subr.bf16.mxu0 %v4988_v48 }
 0x172   :  { %3696 = vmatpush3.bf16.msra.mxu1 %v5070_v10  ;;  %v2658_v34 = vcombine.high %v2656_v41, %v2656_v41 }
 0x173   :  { %3941 = vmatmul.mubr.msk.bf16.vlgmr.msra.gmra.mxu0 %vm349_vm1, %v2088_v46  ;;  %3697 = vmatprep.subr.bf16.mxu1 %v5076_v11 }
 0x174   :  { %3712 = vmatpush3.bf16.msra.mxu0 %v5007_v53  ;;  %2565 = vmatprep.mubr.bf16.mxu0 %v2485_v50 }
 0x175   :  { %3713 = vmatprep.subr.bf16.mxu0 %v5015_v57 }
 0x176   :  { %3698 = vmatpush3.bf16.msra.mxu1 %v5094_v56 }
 0x177   :  { %3699 = vmatprep.subr.bf16.mxu1 %v5100_v3 }
 0x178   :  { %3714 = vmatpush3.bf16.msra.mxu0 %v5034_v23 }
 0x179   :  { %3715 = vmatprep.subr.bf16.mxu0 %v5040_v38 }
 0x17a   :  { %3700 = vmatpush3.bf16.msra.mxu1 %v5118_v52 }
 0x17b   :  { %3701 = vmatprep.subr.bf16.mxu1 %v5124_v9 }
 0x17c   :  { %3716 = vmatpush3.bf16.msra.mxu0 %v5058_v7 }
 0x17d   :  { %3717 = vmatprep.subr.bf16.mxu0 %v5064_v8 }
 0x17e   :  { %3702 = vmatpush3.bf16.msra.mxu1 %v5149_v43 }
 0x17f   :  { %3703 = vmatprep.subr.bf16.mxu1 %v5155_v44 }
 0x180   :  { %3718 = vmatpush3.bf16.msra.mxu0 %v5082_v14 }
 0x181   :  { %3719 = vmatprep.subr.bf16.mxu0 %v5088_v17 }
 0x182   :  { %3704 = vmatpush3.bf16.msra.mxu1 %v5180_v28 }
 0x183   :  { %v3460_v4 = vpop.f32.mrf.mxu0  ;;  %3944 = vmatprep.subr.bf16.mxu1 %v4104_v40 }
 0x184   :  { %3720 = vmatpush3.bf16.msra.mxu0 %v5106_v59 }
 0x185   :  { %v3482_v37 = vpop.f32.mrf.mxu1  ;;  %2526 = vmatmul.mubr.bf16.vlgmr.msra.gmra.mxu1 %v2469_v0  ;;  %v3461_v19 = vpop.f32.mrf.mxu0  ;;  %3721 = vmatprep.subr.bf16.mxu0 %v5112_v61 }
 0x186   :  { %3945 = vmatpush3.bf16.msra.mxu1 %v5198_v33  ;;  %v3462_v55 = vadd.f32 %v3461_v19, %v3460_v4  ;;  %3952 = vmatprep.mubr.msk.bf16.mxu1 %vm4105_vm0, %v4104_v40 }
 0x187   :  { %v3483_v29 = vpop.f32.mrf.mxu1  ;;  %v3463_v1 = vpop.f32.mrf.mxu0  ;;  %3946 = vmatprep.subr.bf16.mxu1 %v4104_v40 }
 0x188   :  { %v1372_v63 = vadd.f32 %v3462_v55, %v5278_v54  ;;  %v3484_v24 = vadd.f32 %v3483_v29, %v3482_v37  ;;  %3722 = vmatpush3.bf16.msra.mxu0 %v5130_v22  ;;  %v5335_v55 = vld [vmem:[%s5453_s0 + $0x37] sm:$0x1f] }
 0x189   :  { %v3485_v2 = vpop.f32.mrf.mxu1  ;;  %v3464_v5 = vpop.f32.mrf.mxu0  ;;  %3723 = vmatprep.subr.bf16.mxu0 %v5136_v30 }
 0x18a   :  { %3947 = vmatpush3.bf16.msra.mxu1 %v5209_v47  ;;  %v1412_v16 = vadd.f32 %v3484_v24, %v1372_v63  ;;  %v5342_v63 = vrot.slane %v5335_v55, %v4304_v35  ;;  %v2657_v5 = vcombine.high %v2642_v42, %v2642_v42 }
 0x18b   :  { %v3486_v18 = vpop.f32.mrf.mxu1  ;;  %3948 = vmatprep.subr.bf16.mxu1 %v4104_v40 }
 0x18c   :  { %3724 = vmatpush3.bf16.msra.mxu0 %v5161_v15  ;;  %v2808_v2 = vcombine.high %v5342_v63, %v5342_v63 }
 0x18d   :  { %3725 = vmatprep.subr.bf16.mxu0 %v5171_v12 }
 0x18e   :  { %3949 = vmatpush3.bf16.msra.mxu1 %v5223_v13 }
 0x18f   :  { %3950 = vmatprep.subr.bf16.mxu1 %v4104_v40 }
 0x190   :  { %3726 = vmatpush3.bf16.msra.mxu0 %v5189_v32 }
 0x191   :  { %3738 = vmatprep.subr.bf16.mxu0 %v4980_v45 }
 0x192   :  { %3951 = vmatpush3.bf16.msra.mxu1 %v5233_v27 }
 0x193   :  { %v1451_v36 = vpop.f32.mrf.mxu0  ;;  %2566 = vmatmul.mubr.bf16.vlgmr.msra.gmra.mxu0 %v2484_v21  ;;  %3760 = vmatprep.subr.bf16.mxu1 %v4988_v48  ;;  %v2620_v21 = vcombine.high %v5272_v20, %v5272_v20 }
 0x194   :  { %v5309_v46 = vadd.f32 %v1451_v36, %v1412_v16  ;;  %3739 = vmatpush3.bf16.msra.mxu0 %v4994_v49  ;;  %2698 = vmatprep.mubr.bf16.mxu0 %v2656_v41  ;;  %v2829_v16 = vrot.slane %v2808_v2, %v4304_v35 }
 0x195   :  { %3953 = vmatmul.mubr.msk.bf16.vlgmr.msra.gmra.mxu1 %vm349_vm1, %v2476_v26  ;;  %v3894_v50 = vpop.f32.mrf.mxu0  ;;  %3740 = vmatprep.subr.bf16.mxu0 %v5001_v51 }
 0x196   :  { %3761 = vmatpush3.bf16.msra.mxu1 %v5007_v53  ;;  %2738 = vmatprep.mubr.bf16.mxu1 %v2658_v34  ;;  %vm1457_vm7 = vcmp.ge.f32.partialorder %v5309_v46, 0.0 }
 0x197   :  { %v1454_v0 = vpop.f32.mrf.mxu0  ;;  %3762 = vmatprep.subr.bf16.mxu1 %v5015_v57 }
 0x198   :  { %3741 = vmatpush3.bf16.msra.mxu0 %v5021_v58  ;;  %v1458_v0 = vmul.f32 0.01, %v5309_v46 }
 0x199   :  { %v3895_v4 = vpop.f32.mrf.mxu0  ;;  %3742 = vmatprep.subr.bf16.mxu0 %v5028_v62 }
 0x19a   :  { %3763 = vmatpush3.bf16.msra.mxu1 %v5034_v23 }
 0x19b   :  { %3764 = vmatprep.subr.bf16.mxu1 %v5040_v38 }
 0x19c   :  { %3743 = vmatpush3.bf16.msra.mxu0 %v5046_v39 }
 0x19d   :  { %3744 = vmatprep.subr.bf16.mxu0 %v5052_v6 }
 0x19e   :  { %3765 = vmatpush3.bf16.msra.mxu1 %v5058_v7 }
 0x19f   :  { %3766 = vmatprep.subr.bf16.mxu1 %v5064_v8 }
 0x1a0   :  { %3745 = vmatpush3.bf16.msra.mxu0 %v5070_v10 }
 0x1a1   :  { %3746 = vmatprep.subr.bf16.mxu0 %v5076_v11 }
 0x1a2   :  { %3767 = vmatpush3.bf16.msra.mxu1 %v5082_v14 }
 0x1a3   :  { %3768 = vmatprep.subr.bf16.mxu1 %v5088_v17 }
 0x1a4   :  { %3747 = vmatpush3.bf16.msra.mxu0 %v5094_v56 }
 0x1a5   :  { %v3509_v37 = vpop.f32.mrf.mxu1  ;;  %3748 = vmatprep.subr.bf16.mxu0 %v5100_v3 }
 0x1a6   :  { %3769 = vmatpush3.bf16.msra.mxu1 %v5106_v59 }
 0x1a7   :  { %v3510_v19 = vpop.f32.mrf.mxu1  ;;  %3770 = vmatprep.subr.bf16.mxu1 %v5112_v61 }
 0x1a8   :  { %v3511_v29 = vadd.f32 %v3510_v19, %v3509_v37  ;;  %3749 = vmatpush3.bf16.msra.mxu0 %v5118_v52  ;;  %v5377_v37 = vsel %vm1457_vm7, %v5309_v46, %v1458_v0 }
 0x1a9   :  { %v3512_v1 = vpop.f32.mrf.mxu1  ;;  %3750 = vmatprep.subr.bf16.mxu0 %v5124_v9 }
 0x1aa   :  { %3771 = vmatpush3.bf16.msra.mxu1 %v5130_v22  ;;  %v1544_v31 = vadd.f32 %v3511_v29, %v5278_v54  ;;  %v2831_v29 = vcombine.high %v2829_v16, %v2829_v16 }
 0x1ab   :  { %v3513_v24 = vpop.f32.mrf.mxu1  ;;  %3772 = vmatprep.subr.bf16.mxu1 %v5136_v30 }
 0x1ac   :  { %3751 = vmatpush3.bf16.msra.mxu0 %v5149_v43 }
 0x1ad   :  { %3752 = vmatprep.subr.bf16.mxu0 %v5155_v44 }
 0x1ae   :  { %3773 = vmatpush3.bf16.msra.mxu1 %v5161_v15 }
 0x1af   :  { %3774 = vmatprep.subr.bf16.mxu1 %v5171_v12 }
 0x1b0   :  { %3753 = vmatpush3.bf16.msra.mxu0 %v5180_v28 }
 0x1b1   :  { %3956 = vmatprep.subr.bf16.mxu0 %v4104_v40 }
 0x1b2   :  { %3775 = vmatpush3.bf16.msra.mxu1 %v5189_v32 }
 0x1b3   :  { %v3531_v25 = vpop.f32.mrf.mxu0  ;;  %2699 = vmatmul.mubr.bf16.vlgmr.msra.gmra.mxu0 %v2642_v42  ;;  %3787 = vmatprep.subr.bf16.mxu1 %v4980_v45 }
 0x1b4   :  { %3957 = vmatpush3.bf16.msra.mxu0 %v5198_v33  ;;  %3964 = vmatprep.mubr.msk.bf16.mxu0 %vm4105_vm0, %v4104_v40 }
 0x1b5   :  { %v1623_v60 = vpop.f32.mrf.mxu1  ;;  %2739 = vmatmul.mubr.bf16.vlgmr.msra.gmra.mxu1 %v2657_v5  ;;  %v3532_v18 = vpop.f32.mrf.mxu0  ;;  %3958 = vmatprep.subr.bf16.mxu0 %v4104_v40 }
 0x1b6   :  { %3788 = vmatpush3.bf16.msra.mxu1 %v4994_v49  ;;  %v3533_v41 = vadd.f32 %v3532_v18, %v3531_v25  ;;  %2871 = vmatprep.mubr.bf16.mxu1 %v2829_v16  ;;  %v2634_v49 = vrot.slane %v2620_v21, %v4304_v35 }
 0x1b7   :  { %v3906_v45 = vpop.f32.mrf.mxu1  ;;  %v3534_v26 = vpop.f32.mrf.mxu0  ;;  %3789 = vmatprep.subr.bf16.mxu1 %v5001_v51 }
 0x1b8   :  { %v1584_v34 = vadd.f32 %v3533_v41, %v1544_v31  ;;  %3959 = vmatpush3.bf16.msra.mxu0 %v5209_v47  ;;  %v5442_v41 = vld [vmem:[%s5454_s2 + $0x2] sm:$0x1] }
 0x1b9   :  { %v1626_v36 = vpop.f32.mrf.mxu1  ;;  %v3535_v50 = vpop.f32.mrf.mxu0  ;;  %3960 = vmatprep.subr.bf16.mxu0 %v4104_v40 }
 0x1ba   :  { %v1624_v4 = vadd.f32 %v1623_v60, %v1584_v34  ;;  %3790 = vmatpush3.bf16.msra.mxu1 %v5021_v58  ;;  %v2649_v58 = vrot.slane %v2634_v49, %v4304_v35 }
 0x1bb   :  { %v3907_v20 = vpop.f32.mrf.mxu1  ;;  %3791 = vmatprep.subr.bf16.mxu1 %v5028_v62 }
 0x1bc   :  { %vm1629_vm8 = vcmp.ge.f32.partialorder %v1624_v4, 0.0  ;;  %v1630_v51 = vmul.f32 0.01, %v1624_v4  ;;  %3961 = vmatpush3.bf16.msra.mxu0 %v5223_v13 }
 0x1bd   :  { %3962 = vmatprep.subr.bf16.mxu0 %v4104_v40 }
 0x1be   :  { %3792 = vmatpush3.bf16.msra.mxu1 %v5046_v39  ;;  %v5380_v19 = vsel %vm1629_vm8, %v1624_v4, %v1630_v51 }
 0x1bf   :  { %3793 = vmatprep.subr.bf16.mxu1 %v5052_v6  ;;  %v1632_v62 = vmax.f32 %v5377_v37, %v5380_v19  ;;  %v2793_v6 = vcombine.high %v5335_v55, %v5335_v55 }
 0x1c0   :  { %3963 = vmatpush3.bf16.msra.mxu0 %v5233_v27 }
 0x1c1   :  { %3809 = vmatprep.subr.bf16.mxu0 %v4988_v48  ;;  %v2815_v48 = vrot.slane %v5342_v63, %v4304_v35 }
 0x1c2   :  { %3794 = vmatpush3.bf16.msra.mxu1 %v5070_v10 }
 0x1c3   :  { %3965 = vmatmul.mubr.msk.bf16.vlgmr.msra.gmra.mxu0 %vm349_vm1, %v2649_v58  ;;  %3795 = vmatprep.subr.bf16.mxu1 %v5076_v11  ;;  %v2807_v11 = vrot.slane %v2793_v6, %v4304_v35 }
 0x1c4   :  { %3810 = vmatpush3.bf16.msra.mxu0 %v5007_v53  ;;  %2911 = vmatprep.mubr.bf16.mxu0 %v2831_v29 }
 0x1c5   :  { %3811 = vmatprep.subr.bf16.mxu0 %v5015_v57 }
 0x1c6   :  { %3796 = vmatpush3.bf16.msra.mxu1 %v5094_v56 }
 0x1c7   :  { %3797 = vmatprep.subr.bf16.mxu1 %v5100_v3 }
 0x1c8   :  { %3812 = vmatpush3.bf16.msra.mxu0 %v5034_v23 }
 0x1c9   :  { %3813 = vmatprep.subr.bf16.mxu0 %v5040_v38 }
 0x1ca   :  { %3798 = vmatpush3.bf16.msra.mxu1 %v5118_v52 }
 0x1cb   :  { %3799 = vmatprep.subr.bf16.mxu1 %v5124_v9 }
 0x1cc   :  { %3814 = vmatpush3.bf16.msra.mxu0 %v5058_v7 }
 0x1cd   :  { %3815 = vmatprep.subr.bf16.mxu0 %v5064_v8 }
 0x1ce   :  { %3800 = vmatpush3.bf16.msra.mxu1 %v5149_v43 }
 0x1cf   :  { %3801 = vmatprep.subr.bf16.mxu1 %v5155_v44 }
 0x1d0   :  { %3816 = vmatpush3.bf16.msra.mxu0 %v5082_v14  ;;  %v2830_v14 = vcombine.high %v2815_v48, %v2815_v48 }
 0x1d1   :  { %3817 = vmatprep.subr.bf16.mxu0 %v5088_v17  ;;  %v2822_v17 = vrot.slane %v2807_v11, %v4304_v35 }
 0x1d2   :  { %3802 = vmatpush3.bf16.msra.mxu1 %v5180_v28 }
 0x1d3   :  { %v3558_v53 = vpop.f32.mrf.mxu0  ;;  %3968 = vmatprep.subr.bf16.mxu1 %v4104_v40 }
 0x1d4   :  { %3818 = vmatpush3.bf16.msra.mxu0 %v5106_v59 }
 0x1d5   :  { %v3580_v57 = vpop.f32.mrf.mxu1  ;;  %2872 = vmatmul.mubr.bf16.vlgmr.msra.gmra.mxu1 %v2815_v48  ;;  %v3559_v23 = vpop.f32.mrf.mxu0  ;;  %3819 = vmatprep.subr.bf16.mxu0 %v5112_v61 }
 0x1d6   :  { %3969 = vmatpush3.bf16.msra.mxu1 %v5198_v33  ;;  %3976 = vmatprep.mubr.msk.bf16.mxu1 %vm4105_vm0, %v4104_v40 }
 0x1d7   :  { %v3581_v38 = vpop.f32.mrf.mxu1  ;;  %v3561_v39 = vpop.f32.mrf.mxu0  ;;  %3970 = vmatprep.subr.bf16.mxu1 %v4104_v40 }
 0x1d8   :  { %3820 = vmatpush3.bf16.msra.mxu0 %v5130_v22  ;;  %v3560_v22 = vadd.f32 %v3559_v23, %v3558_v53  ;;  %v3582_v44 = vadd.f32 %v3581_v38, %v3580_v57 }
 0x1d9   :  { %v3583_v7 = vpop.f32.mrf.mxu1  ;;  %v3562_v8 = vpop.f32.mrf.mxu0  ;;  %3821 = vmatprep.subr.bf16.mxu0 %v5136_v30 }
 0x1da   :  { %3971 = vmatpush3.bf16.msra.mxu1 %v5209_v47 }
 0x1db   :  { %v3584_v10 = vpop.f32.mrf.mxu1  ;;  %3972 = vmatprep.subr.bf16.mxu1 %v4104_v40 }
 0x1dc   :  { %3822 = vmatpush3.bf16.msra.mxu0 %v5161_v15 }
 0x1dd   :  { %3823 = vmatprep.subr.bf16.mxu0 %v5171_v12 }
 0x1de   :  { %3973 = vmatpush3.bf16.msra.mxu1 %v5223_v13 }
 0x1df   :  { %3974 = vmatprep.subr.bf16.mxu1 %v4104_v40  ;;  %v1717_v40 = vadd.f32 %v3560_v22, %v5278_v54 }
 0x1e0   :  { %3824 = vmatpush3.bf16.msra.mxu0 %v5189_v32 }
 0x1e1   :  { %v1757_v15 = vadd.f32 %v3582_v44, %v1717_v40 }
 0x1e2   :  { %3975 = vmatpush3.bf16.msra.mxu1 %v5233_v27 }
 0x1e3   :  { %v1796_v56 = vpop.f32.mrf.mxu0  ;;  %2912 = vmatmul.mubr.bf16.vlgmr.msra.gmra.mxu0 %v2830_v14 }
 0x1e4   :  { %v1797_v12 = vadd.f32 %v1796_v56, %v1757_v15 }
 0x1e5   :  { %3977 = vmatmul.mubr.msk.bf16.vlgmr.msra.gmra.mxu1 %vm349_vm1, %v2822_v17  ;;  %v3918_v3 = vpop.f32.mrf.mxu0 }
 0x1e6   :  { %v1803_v47 = vmul.f32 0.01, %v1797_v12  ;;  %vm1802_vm9 = vcmp.ge.f32.partialorder %v1797_v12, 0.0 }
 0x1e7   :  { %v1799_v59 = vpop.f32.mrf.mxu0 }
 0x1e8   :  { %v1804_v42 = vsel %vm1802_vm9, %v1797_v12, %v1803_v47 }
 0x1e9   :  { %v3919_v61 = vpop.f32.mrf.mxu0  ;;  %v1805_v25 = vmax.f32 %v1632_v62, %v1804_v42 }
 0x1f5   :  { %v3607_v52 = vpop.f32.mrf.mxu1 }
 0x1f7   :  { %v3608_v9 = vpop.f32.mrf.mxu1 }
 0x1f8   :  { %v3609_v35 = vadd.f32 %v3608_v9, %v3607_v52 }
 0x1f9   :  { %v3610_v30 = vpop.f32.mrf.mxu1 }
 0x1fa   :  { %v1890_v13 = vadd.f32 %v3609_v35, %v5278_v54 }
 0x1fb   :  { %v3611_v43 = vpop.f32.mrf.mxu1 }
 0x203   :  { %v3629_v28 = vpop.f32.mrf.mxu0 }
 0x205   :  { %v1969_v32 = vpop.f32.mrf.mxu1  ;;  %v3630_v33 = vpop.f32.mrf.mxu0 }
 0x206   :  { %v3631_v27 = vadd.f32 %v3630_v33, %v3629_v28 }
 0x207   :  { %v3930_v46 = vpop.f32.mrf.mxu1  ;;  %v3632_v55 = vpop.f32.mrf.mxu0 }
 0x208   :  { %v1930_v1 = vadd.f32 %v3631_v27, %v1890_v13 }
 0x209   :  { %v1972_v63 = vpop.f32.mrf.mxu1  ;;  %v3633_v24 = vpop.f32.mrf.mxu0 }
 0x20a   :  { %v1970_v2 = vadd.f32 %v1969_v32, %v1930_v1 }
 0x20b   :  { %v3931_v5 = vpop.f32.mrf.mxu1 }
 0x20c   :  { %vm1975_vm10 = vcmp.ge.f32.partialorder %v1970_v2, 0.0  ;;  %v1976_v16 = vmul.f32 0.01, %v1970_v2 }
 0x20e   :  { %v1977_v60 = vsel %vm1975_vm10, %v1970_v2, %v1976_v16 }
 0x20f   :  { %v1978_v18 = vmax.f32 %v1805_v25, %v1977_v60 }
 0x211   :  { %3129 = vst.msk [vmem:[%s5455_s3 + $0x1] sm:$0x1] %vm995_vm6, %v1978_v18 }
 0x223   :  { %v3656_v54 = vpop.f32.mrf.mxu0 }
 0x225   :  { %v3678_v31 = vpop.f32.mrf.mxu1  ;;  %v3657_v21 = vpop.f32.mrf.mxu0 }
 0x226   :  { %v3658_v45 = vadd.f32 %v3657_v21, %v3656_v54 }
 0x227   :  { %v3679_v26 = vpop.f32.mrf.mxu1  ;;  %v3659_v34 = vpop.f32.mrf.mxu0 }
 0x228   :  { %v2356_v36 = vadd.f32 %v3658_v45, %v5442_v41  ;;  %v3680_v50 = vadd.f32 %v3679_v26, %v3678_v31 }
 0x229   :  { %v3681_v0 = vpop.f32.mrf.mxu1  ;;  %v3660_v4 = vpop.f32.mrf.mxu0 }
 0x22a   :  { %v2396_v49 = vadd.f32 %v3680_v50, %v2356_v36 }
 0x22b   :  { %v3682_v20 = vpop.f32.mrf.mxu1 }
 0x233   :  { %v2435_v51 = vpop.f32.mrf.mxu0 }
 0x234   :  { %v2436_v37 = vadd.f32 %v2435_v51, %v2396_v49 }
 0x235   :  { %v3942_v19 = vpop.f32.mrf.mxu0 }
 0x236   :  { %v2442_v3 = vmul.f32 0.01, %v2436_v37  ;;  %vm2441_vm11 = vcmp.ge.f32.partialorder %v2436_v37, 0.0 }
 0x237   :  { %v2438_v58 = vpop.f32.mrf.mxu0 }
 0x238   :  { %v2443_v9 = vsel %vm2441_vm11, %v2436_v37, %v2442_v3 }
 0x239   :  { %v3943_v62 = vpop.f32.mrf.mxu0 }
 0x245   :  { %v3705_v29 = vpop.f32.mrf.mxu1 }
 0x247   :  { %v3706_v48 = vpop.f32.mrf.mxu1 }
 0x248   :  { %v3707_v53 = vadd.f32 %v3706_v48, %v3705_v29 }
 0x249   :  { %v3708_v57 = vpop.f32.mrf.mxu1 }
 0x24a   :  { %v2528_v7 = vadd.f32 %v3707_v53, %v5442_v41 }
 0x24b   :  { %v3709_v23 = vpop.f32.mrf.mxu1 }
 0x253   :  { %v3727_v38 = vpop.f32.mrf.mxu0 }
 0x255   :  { %v2607_v39 = vpop.f32.mrf.mxu1  ;;  %v3728_v6 = vpop.f32.mrf.mxu0 }
 0x256   :  { %v3729_v8 = vadd.f32 %v3728_v6, %v3727_v38 }
 0x257   :  { %v3954_v10 = vpop.f32.mrf.mxu1  ;;  %v3730_v11 = vpop.f32.mrf.mxu0 }
 0x258   :  { %v2568_v14 = vadd.f32 %v3729_v8, %v2528_v7 }
 0x259   :  { %v2610_v17 = vpop.f32.mrf.mxu1  ;;  %v3731_v56 = vpop.f32.mrf.mxu0 }
 0x25a   :  { %v2608_v59 = vadd.f32 %v2607_v39, %v2568_v14 }
 0x25b   :  { %v3955_v61 = vpop.f32.mrf.mxu1 }
 0x25c   :  { %vm2613_vm12 = vcmp.ge.f32.partialorder %v2608_v59, 0.0  ;;  %v2614_v52 = vmul.f32 0.01, %v2608_v59 }
 0x25e   :  { %v2615_v22 = vsel %vm2613_vm12, %v2608_v59, %v2614_v52 }
 0x25f   :  { %v2616_v30 = vmax.f32 %v2443_v9, %v2615_v22 }
 0x273   :  { %v3754_v43 = vpop.f32.mrf.mxu0 }
 0x275   :  { %v3776_v40 = vpop.f32.mrf.mxu1  ;;  %v3755_v44 = vpop.f32.mrf.mxu0 }
 0x276   :  { %v3756_v1 = vadd.f32 %v3755_v44, %v3754_v43 }
 0x277   :  { %v3777_v15 = vpop.f32.mrf.mxu1  ;;  %v3757_v12 = vpop.f32.mrf.mxu0 }
 0x278   :  { %v2701_v42 = vadd.f32 %v3756_v1, %v5442_v41  ;;  %v3778_v2 = vadd.f32 %v3777_v15, %v3776_v40 }
 0x279   :  { %v3779_v35 = vpop.f32.mrf.mxu1  ;;  %v3758_v28 = vpop.f32.mrf.mxu0 }
 0x27a   :  { %v2741_v5 = vadd.f32 %v3778_v2, %v2701_v42 }
 0x27b   :  { %v3780_v32 = vpop.f32.mrf.mxu1 }
 0x283   :  { %v2780_v33 = vpop.f32.mrf.mxu0 }
 0x284   :  { %v2781_v16 = vadd.f32 %v2780_v33, %v2741_v5 }
 0x285   :  { %v3966_v47 = vpop.f32.mrf.mxu0 }
 0x286   :  { %v2787_v31 = vmul.f32 0.01, %v2781_v16  ;;  %vm2786_vm13 = vcmp.ge.f32.partialorder %v2781_v16, 0.0 }
 0x287   :  { %v2783_v13 = vpop.f32.mrf.mxu0 }
 0x288   :  { %v2788_v4 = vsel %vm2786_vm13, %v2781_v16, %v2787_v31 }
 0x289   :  { %v3967_v27 = vpop.f32.mrf.mxu0  ;;  %v2789_v37 = vmax.f32 %v2616_v30, %v2788_v4 }
 0x295   :  { %v3803_v46 = vpop.f32.mrf.mxu1 }
 0x297   :  { %v3804_v55 = vpop.f32.mrf.mxu1 }
 0x298   :  { %v3805_v25 = vadd.f32 %v3804_v55, %v3803_v46 }
 0x299   :  { %v3806_v63 = vpop.f32.mrf.mxu1 }
 0x29a   :  { %v2874_v21 = vadd.f32 %v3805_v25, %v5442_v41 }
 0x29b   :  { %v3807_v24 = vpop.f32.mrf.mxu1 }
 0x2a3   :  { %v3825_v60 = vpop.f32.mrf.mxu0 }
 0x2a5   :  { %v2953_v18 = vpop.f32.mrf.mxu1  ;;  %v3826_v54 = vpop.f32.mrf.mxu0 }
 0x2a6   :  { %v3827_v45 = vadd.f32 %v3826_v54, %v3825_v60 }
 0x2a7   :  { %v3978_v26 = vpop.f32.mrf.mxu1  ;;  %v3828_v34 = vpop.f32.mrf.mxu0 }
 0x2a8   :  { %v2914_v36 = vadd.f32 %v3827_v45, %v2874_v21 }
 0x2a9   :  { %v2956_v50 = vpop.f32.mrf.mxu1  ;;  %v3829_v0 = vpop.f32.mrf.mxu0 }
 0x2aa   :  { %v2954_v49 = vadd.f32 %v2953_v18, %v2914_v36 }
 0x2ab   :  { %v3979_v20 = vpop.f32.mrf.mxu1 }
 0x2ac   :  { %vm2959_vm14 = vcmp.ge.f32.partialorder %v2954_v49, 0.0  ;;  %v2960_v51 = vmul.f32 0.01, %v2954_v49 }
 0x2ae   :  { %v2961_v19 = vsel %vm2959_vm14, %v2954_v49, %v2960_v51 }
 0x2af   :  { %v2962_v58 = vmax.f32 %v2789_v37, %v2961_v19 }
 0x2b1   :  { %3247 = vst.msk [vmem:[%s5455_s3 + $0x2] sm:$0x1] %vm995_vm6, %v2962_v58 }

</bundles_post_ra>
